<compile_context>
chip_gen: v6e
topology: v6e:2x2x1
jax: 0.10.0
libtpu: 0.0.40
codegen_flags: <defaults>
</compile_context>

<pallas_src>
import jax
import jax.numpy as jnp
import numpy as np
from jax.experimental import pallas as pl
from jax.experimental.pallas import tpu as pltpu

IN_FEATURES = 508 * 64      # 32512
HIDDEN = 100
OUT = 2

TK = 16256                  # 32512 = 2 * 16256; 16256 = 127 * 128 (lane-legal)
N_K = IN_FEATURES // TK     # 2 independent K-tiles -> 2 grid steps


def _round_up(x, m):
    return (x + m - 1) // m * m


def _fc1_partial_kernel(x_ref, w1t_ref, part_ref):
    """One K-tile of fc1: part[k] = W1^T[:, k-tile] @ x[:, k-tile]^T.

    x_ref:    (B_pad, TK)        float32
    w1t_ref:  (HIDDEN, TK)       float32 (or bfloat16 if opted in)
    part_ref: (1, HIDDEN, B_pad) float32
    Grid axis 0 ("parallel") runs over the K-tiles; each step writes its own
    partial block, so there is no cross-step accumulator and the two steps can
    be sharded across the v7x TensorCores.
    """
    x_t = x_ref[...].T                       # (TK, B_pad); XLU transpose, hidden
                                             # under the W1 DMA wait (DMA-bound).
    w1t = w1t_ref[...].astype(jnp.float32)   # no-op for f32 weights
    part_ref[0, :, :] = jnp.dot(w1t, x_t, preferred_element_type=jnp.float32)


def cldnn_dc_forward(x, alpha, params):
    """Forward pass of CLDNN_DC.  `alpha` only scales the reversed gradient in
    the backward pass, so the forward result does not depend on it."""
    del alpha  # ReverseLayerF is the identity in the forward pass.

    B = x.shape[0]
    xf = x.reshape(B, -1).astype(jnp.float32)            # (B, 32512)
    assert xf.shape[1] == IN_FEATURES, xf.shape

    # Pad the batch to a sublane multiple: keeps every block shape legal for any
    # B and makes the in-kernel (B_pad, TK) -> (TK, B_pad) transpose a clean
    # whole-vreg operation.  Padded rows are zeros and are sliced off below.
    b_pad = _round_up(max(B, 8), 8)
    if b_pad != B:
        xf = jnp.pad(xf, ((0, b_pad - B), (0, 0)))

    w1t = params["w1t"]                                   # (100, 32512), lane-dense
    assert w1t.shape == (HIDDEN, IN_FEATURES)
    w_itemsize = jnp.dtype(w1t.dtype).itemsize

    # ---- VMEM budget (per core), derived from the padded batch --------------
    # (W1 path budgeted at 4 B/elem: for bf16 weights the smaller stream buffers
    #  plus the in-kernel f32 upcast temp add up to about the same.)
    w1_bufs = 2 * _round_up(HIDDEN, 8) * TK * 4           # double-buffered W1^T tiles
    x_bufs = 2 * b_pad * TK * 4                           # double-buffered x tiles
    xt_tmp = TK * _round_up(b_pad, 128) * 4               # transposed-x temporary
    out_bufs = 2 * _round_up(HIDDEN, 8) * _round_up(b_pad, 128) * 4
    vmem_limit = int(1.3 * (w1_bufs + x_bufs + xt_tmp + out_bufs)) + (6 << 20)
    # TODO(synk): for b_pad > ~128 tile the batch with an extra "parallel" grid
    # axis instead of growing VMEM (v7x has only 64 MiB physical per TC).
    assert vmem_limit <= 56 * 1024 * 1024, (
        f"batch {B} needs ~{vmem_limit >> 20} MiB VMEM; add batch tiling")

    # Physical (tile-padded) bytes actually moved, so XLA can schedule
    # surrounding work around this memory-bound custom call.
    bytes_accessed = (_round_up(HIDDEN, 8) * IN_FEATURES * w_itemsize   # W1^T read
                      + b_pad * IN_FEATURES * 4                         # x read
                      + N_K * _round_up(HIDDEN, 8) * _round_up(b_pad, 128) * 4)
    cost = pl.CostEstimate(flops=2 * b_pad * IN_FEATURES * HIDDEN,
                           transcendentals=0,
                           bytes_accessed=bytes_accessed)

    partials = pl.pallas_call(
        _fc1_partial_kernel,
        out_shape=jax.ShapeDtypeStruct((N_K, HIDDEN, b_pad), jnp.float32),
        grid_spec=pltpu.PrefetchScalarGridSpec(
            num_scalar_prefetch=0,
            grid=(N_K,),
            in_specs=[
                pl.BlockSpec((b_pad, TK), lambda k: (0, k)),      # x K-tile
                pl.BlockSpec((HIDDEN, TK), lambda k: (0, k)),     # W1^T K-tile
            ],
            out_specs=pl.BlockSpec((1, HIDDEN, b_pad), lambda k: (k, 0, 0)),
        ),
        compiler_params=pltpu.CompilerParams(
            # K-halves are independent -> both v7x TensorCores stream W1;
            # on 1-TC chips the two steps run pipelined as before.
            dimension_semantics=("parallel",),
            vmem_limit_bytes=vmem_limit,
        ),
        cost_estimate=cost,
    )(xf, w1t)                                            # (N_K, HIDDEN, b_pad)

    # Tiny epilogue (well under 1% of the kernel's HBM time) in plain JAX:
    # combine K-halves, bias + relu, fc2, un-transpose, drop batch padding.
    h_t = jnp.maximum(partials.sum(axis=0) + params["b1"][:, None], 0.0)
    out_t = params["w2"].T @ h_t + params["b2"][:, None]  # (OUT, b_pad)
    return out_t.T[:B]                                    # (B, OUT)


def init_params(key, w1_dtype=jnp.float32):
    """Synthetic params matching nn.Linear shapes.  fc1's weight is stored
    transposed once here, (HIDDEN, IN_FEATURES), so the kernel streams it with
    the 32512 dim lane-dense.  Pass w1_dtype=jnp.bfloat16 to halve the dominant
    HBM read (numerics-visible, so opt-in; default keeps f32 parity)."""
    k1, k2, k3, k4 = jax.random.split(key, 4)
    s1 = 1.0 / np.sqrt(IN_FEATURES)
    s2 = 1.0 / np.sqrt(HIDDEN)
    return {
        "w1t": jax.random.uniform(k1, (HIDDEN, IN_FEATURES), jnp.float32,
                                  -s1, s1).astype(w1_dtype),
        "b1": jax.random.uniform(k2, (HIDDEN,), jnp.float32, -s1, s1),
        "w2": jax.random.uniform(k3, (HIDDEN, OUT), jnp.float32, -s2, s2),
        "b2": jax.random.uniform(k4, (OUT,), jnp.float32, -s2, s2),
    }


def reference_forward(x, params):
    xf = x.reshape(x.shape[0], -1)
    w1 = params["w1t"].astype(jnp.float32).T              # (32512, 100)
    h = jnp.maximum(xf @ w1 + params["b1"], 0.0)
    return h @ params["w2"] + params["b2"]


if __name__ == "__main__":
    key = jax.random.PRNGKey(0)
    kx, kp = jax.random.split(key)
    B = 2
    x = jax.random.normal(kx, (B, 508, 64), jnp.float32)
    alpha = 0.5           # only affects the (reversed) backward pass
    params = init_params(kp)                              # f32: exact module parity

    fwd = jax.jit(cldnn_dc_forward)
    out = jax.block_until_ready(fwd(x, alpha, params))

    ref = reference_forward(x, params)
    # Both sides contract 32512 terms through the TPU's bf16-pass f32 matmul
    # path (kernel via Mosaic, reference via XLA); the tolerance covers small
    # accumulation-order / pass-count differences between the two lowerings,
    # while any wiring bug (bias, relu, tile index) would be O(0.1) off.
    np.testing.assert_allclose(np.asarray(out), np.asarray(ref),
                               rtol=5e-3, atol=5e-3)
    assert out.shape == (B, OUT)
    print("KERNEL_OK")
</pallas_src>

<mosaic_0001>
module attributes {stable_mosaic.version = 11 : i64} {
  func.func @_fc1_partial_kernel(%arg0: i32, %arg1: memref<8x16256xf32, #tpu.memory_space<vmem>>, %arg2: memref<100x16256xf32, #tpu.memory_space<vmem>>, %arg3: memref<1x100x8xf32, #tpu.memory_space<vmem>>) attributes {dimension_semantics = [#tpu.dimension_semantics<parallel>], iteration_bounds = array<i64: 2>, scalar_prefetch = 0 : i64, scratch_operands = 0 : i64, tpu.core_type = #tpu.core_type<tc>, window_params = [{transform_indices = @transform_0, window_bounds = array<i64: 8, 16256>}, {transform_indices = @transform_1, window_bounds = array<i64: 100, 16256>}, {transform_indices = @transform_2, window_bounds = array<i64: 1, 100, 8>}]} {
    %c0 = arith.constant 0 : index
    %c0_0 = arith.constant 0 : index
    %0 = vector.load %arg1[%c0, %c0_0] : memref<8x16256xf32, #tpu.memory_space<vmem>>, vector<8x16256xf32>
    %1 = tpu.transpose %0, [1, 0] : vector<8x16256xf32> -> vector<16256x8xf32>
    %c0_1 = arith.constant 0 : index
    %c0_2 = arith.constant 0 : index
    %2 = vector.load %arg2[%c0_1, %c0_2] : memref<100x16256xf32, #tpu.memory_space<vmem>>, vector<100x16256xf32>
    %cst = arith.constant dense<0.000000e+00> : vector<100x8xf32>
    %3 = tpu.matmul %2, %1, %cst {dimension_numbers = #tpu.dot_dimension_numbers<[1], [0], [0], [1], [0, 0, 1, 1], [], []>} : vector<100x16256xf32>, vector<16256x8xf32>, vector<100x8xf32> -> vector<100x8xf32>
    %c0_3 = arith.constant 0 : index
    %c0_4 = arith.constant 0 : index
    %c0_5 = arith.constant 0 : index
    %4 = vector.load %arg3[%c0_3, %c0_4, %c0_5] : memref<1x100x8xf32, #tpu.memory_space<vmem>>, vector<1x100x8xf32>
    %5 = vector.shape_cast %4 : vector<1x100x8xf32> to vector<100x8xf32>
    %6 = vector.shape_cast %3 : vector<100x8xf32> to vector<1x100x8xf32>
    tpu.vector_store %arg3[%c0_3, %c0_4, %c0_5], %6 {strides = array<i32>} : memref<1x100x8xf32, #tpu.memory_space<vmem>>, vector<1x100x8xf32>,
    return
  }
  func.func @transform_0(%arg0: i32) -> (i32, i32) {
    %c0_i32 = arith.constant 0 : i32
    %c0_i32_0 = arith.constant 0 : i32
    return %c0_i32, %arg0 : i32, i32
  }
  func.func @transform_1(%arg0: i32) -> (i32, i32) {
    %c0_i32 = arith.constant 0 : i32
    %c0_i32_0 = arith.constant 0 : i32
    return %c0_i32, %arg0 : i32, i32
  }
  func.func @transform_2(%arg0: i32) -> (i32, i32, i32) {
    %c0_i32 = arith.constant 0 : i32
    %c0_i32_0 = arith.constant 0 : i32
    %c0_i32_1 = arith.constant 0 : i32
    return %arg0, %c0_i32, %c0_i32_0 : i32, i32, i32
  }
}

</mosaic_0001>

<bundles_post_ra>
// kernel: cldnn_dc_forward.1
= control target key start
LH: loop header
LB: loop body
LE: loop exit
PB: predicated region body
PF: predicated region fallthrough
CT: control target
= control target key end

     0   :  { %7 = vsyncpa [#allocation3], 0  ;;  %s13748_s0 = inlined_call_operand.vmem [shape: f32[8,32512], index: 0, kind: input, shape index: {}]   ;;  %s13749_s1 = inlined_call_operand.hbm [shape: f32[100,32512], index: 1, kind: input, shape index: {}]   ;;  %s13750_s2 = inlined_call_operand.vmem [shape: f32[2,100,8], index: 2, kind: output, shape index: {}]  }
   0x1   :  { %9 = vsyncpa [#allocation3 + $0x1], 0  ;;  %s10576_s9 = smov 0   ;;  %s10578_s10 = smov 0  }
   0x2   :  { %s10580_s11 = smov 0   ;;  %s10582_s12 = smov 0  }
   0x3 LB: > { %s10595_s13 = sadd.s32 4294967295, %s10553_s12   ;;  %s10598_s14 = sadd.s32 1, %s10553_s12   ;;  %s10553_s12 = sphi %s10582_s12, %s13758_s12   ;;  %s10549_s11 = sphi %s10580_s11, %s13757_s11   ;;  %s10545_s10 = sphi %s10578_s10, %s13756_s10   ;;  %s10541_s9 = sphi %s10576_s9, %s13755_s9  }
   0x4   : > { %s45_s15 = ssub.s32 %s10553_s12, %s10598_s14  ;;  %s48_s16 = sadd.s32 1, %s10549_s11 }
   0x5   : > { %p46_p0 = scmp.eq.s32.totalorder %s45_s15, 0  ;;  %p55_p1 = scmp.ne.s32.totalorder %s10549_s11, %s10545_s10 }
   0x6   : > { %p56_p2 = scmp.eq.s32.totalorder %s10553_s12, 0  ;;  %p61_p3 = scmp.ne.s32.totalorder %s10545_s10, %s10541_s9 }
   0x7   : > { %s10608_s17 = scalar_select %p46_p0, %s10549_s11, %s48_s16  }
   0x8   : > { %p57_p4 = por %p56_p2, %p55_p1  ;;  %p62_p5 = scmp.eq.s32.totalorder %s10595_s13, 0 }
   0x9   : > { %p10453_p6 = scmp.lt.s32.totalorder %s10553_s12, 2  ;;  %s120_s19 = sand.u32 1, %s10549_s11  }
   0xa   : > { %p10612_p7 = por %p62_p5, %p61_p3  ;;  %s10444_s20 = smul.u32 13208, %s120_s19 }
   0xb   : > { %s10388_s21 = smul.u32 16256, %s10553_s12  ;;  %p10618_p8 = pnand %p10453_p6, %p57_p4 }
   0xc   : > { %s13752_s18 = scalar_select %p10612_p7, 1, 0 }
   0xd   : > { %s10625_s25 = scalar_lea.hbm %s13749_s1, %s10388_s21  ;;  %s124_s26 = scalar_lea.vmem [#allocation2], %s10444_s20 }
   0xe   : > { %s131_s27 = sshll.u32 %s124_s26, 4  ;;  %s10629_s28 = scalar_lea.sflag [#allocation3], %s120_s19  ;;  %s10627_s27 = int_to_ptr.vmem [resolvable:$true] %s131_s27 }
   0xf   : > { %s10491_s29 = scalar_lea.hbm %s10625_s25, 211328  ;;  %p10493_p10 = pneg %p10618_p8 }
  0x10   : > { %p10492_p9 = scmp.ne.s32.totalorder %s10625_s25, %s10491_s29  ;;  %s10496_s4 = scalar_lea.hbm %s13749_s1, 422656 }
  0x11   : > { %p10497_p13 = scmp.lt.s32.totalorder %s10625_s25, %s13749_s1  ;;  %p10498_p0 = scmp.lt.s32.totalorder %s10496_s4, %s10491_s29 }
  0x12   : > { %p10494_p11 = pnand %p10493_p10, %p10492_p9 }
  0x13   : > { %p10499_p1 = por %p10498_p0, %p10497_p13 }
  0x14   : > { %p10495_p12 = pneg %p10494_p11 }
  0x16   : > { %p10500_p2 = pnand %p10499_p1, %p10495_p12 }
  0x18   : > { %10503 = shalt.err (!%p10500_p2)
}
  0x19   : > { %s10504_s7 = scalar_lea.vmem %s10627_s27, 211328  ;;  %s10555_s8 = smov [#allocation2]  }
  0x1a   : > { %p10505_p3 = scmp.ne.s32.totalorder %s10627_s27, %s10504_s7  ;;  %s10509_s9 = sshll.u32 %s10555_s8, 4  ;;  %s10510_s9 = int_to_ptr.vmem [resolvable:$false] %s10509_s9 }
  0x1b   : > { %s10511_s15 = scalar_lea.vmem %s10510_s9, 422656  ;;  %p10512_p6 = scmp.lt.s32.totalorder %s10627_s27, %s10510_s9 }
  0x1c   : > { %p10507_p4 = pnand %p10505_p3, %p10493_p10  ;;  %p10513_p9 = scmp.lt.s32.totalorder %s10511_s15, %s10504_s7 }
  0x1e   : > { %p10508_p5 = pneg %p10507_p4  ;;  %p10514_p11 = por %p10513_p9, %p10512_p6 }
  0x20   : > { %p10515_p7 = pnand %p10514_p11, %p10508_p5 }
  0x22   : > { %10518 = shalt.err (!%p10515_p7)
}
  0x23   : > { %s10556_s16 = smov 32512   ;;  %s10557_s19 = smov 16256  }
  0x24   : > { %s10558_s20 = smov 1016   ;;  %p10383_p10 = scmp.ge.s32.totalorder %s10553_s12, 1 }
  0x25   : > { %10452 = dma.hbm_to_vmem [thread:$0]  (!%p10618_p8), %s10625_s25, 211328, %s10627_s27, %s10629_s28, %s10556_s16, %s10557_s19, %s10558_s20  }
  0x26   : > { %p139_p12 = scmp.lt.s32.totalorder %s10553_s12, 3 }
  0x28   : > { %p140_p13 = pnand %p10383_p10, %p139_p12 }
  0x29   : > { %s145_s21 = sand.u32 (!%p140_p13), 1, %s10545_s10   ;;  %p13754_p7 = scmp.ne.s32.totalorder (!%p140_p13), %s13752_s18, 0 }
  0x2a   : > { %143 = sbr.rel (%p140_p13) target bundleno = 1918 (0x77e), region = 28  ;;  %s146_s24 = scalar_lea.sflag (!%p140_p13), [#allocation3], %s145_s21 }
  0x2b   : > { %s10445_s23 = smul.u32 (!%p140_p13), 13208, %s145_s21 }
  0x2d   : > { %s10653_s26 = scalar_lea.vmem (!%p140_p13), [#allocation2], %s10445_s23 }
  0x2f   : > { %10536 = dma.done.wait (%p13754_p7), %s146_s24, 211328  }
  0x30   : > { %10538 = vsyncadd (%p13754_p7), %s146_s24, 4294755968  ;;  %s175_s22 = smul.u32 127, %s10595_s13  ;;  %v315_v0 = vld [vmem:[%s10653_s26 + $0x8] sm:$0xff]  ;;  %v317_v1 = vld [vmem:[%s10653_s26 + $0x18] sm:$0xff]  ;;  %vm10560_vm0 = vmmov 0   ;;  %p182_p0 = scmp.lt.s32.totalorder %s10595_s13, 1 }
  0x31   : > { %2029 = vmatprep.mubr.f32.mxu0 %v315_v0  ;;  %2159 = vmatprep.mubr.f32.mxu1 %v317_v1  ;;  %v314_v7 = vld [vmem:[%s10653_s26] sm:$0xff]  ;;  %v316_v8 = vld [vmem:[%s10653_s26 + $0x10] sm:$0xff]  ;;  %v441_v14 = vld [vmem:[%s10653_s26 + $0x3f8] sm:$0xff]  ;;  %vm10285_vm1 = vcmask 64512   ;;  %vm10298_vm2 = vcmask 60416  }
  0x32   : > { %p176_p8 = scmp.lt.s32.totalorder %s175_s22, 253  ;;  %v442_v11 = vld [vmem:[%s10653_s26 + $0x400] sm:$0xff]  ;;  %v444_v13 = vld [vmem:[%s10653_s26 + $0x410] sm:$0xff]  ;;  %v443_v15 = vld [vmem:[%s10653_s26 + $0x408] sm:$0xff]  ;;  %s13762_s13 = smov (!%p182_p0, %s10595_s13), 1 }
  0x33   : > { %v569_v16 = vld [vmem:[%s10653_s26 + $0x7f8] sm:$0xff]  ;;  %v571_v17 = vld [vmem:[%s10653_s26 + $0x808] sm:$0xff]  ;;  %v568_v18 = vld [vmem:[%s10653_s26 + $0x7f0] sm:$0xff]  ;;  %s10446_s18 = smul.u32 104, %s13762_s13 }
  0x34   : > { %s13760_s22 = smov (!%p176_p8, %s175_s22), 253  ;;  %v570_v19 = vld [vmem:[%s10653_s26 + $0x800] sm:$0xff]  ;;  %v696_v20 = vld [vmem:[%s10653_s26 + $0xbf0] sm:$0xff]  ;;  %v695_v22 = vld [vmem:[%s10653_s26 + $0xbe8] sm:$0xff] }
  0x35   : > { %s10384_s12 = sshll.u32 %s13760_s22, 3  ;;  %v698_v21 = vld [vmem:[%s10653_s26 + $0xc00] sm:$0xff]  ;;  %v697_v23 = vld [vmem:[%s10653_s26 + $0xbf8] sm:$0xff]  ;;  %v823_v24 = vld [vmem:[%s10653_s26 + $0xfe8] sm:$0xff]  ;;  %s13676_s3 = scalar_lea.vmem %s13750_s2, %s10446_s18 }
  0x36   : > { %s10663_s28 = scalar_lea.vmem %s13748_s0, %s10384_s12  ;;  %v825_v25 = vld [vmem:[%s10653_s26 + $0xff8] sm:$0xff]  ;;  %v822_v26 = vld [vmem:[%s10653_s26 + $0xfe0] sm:$0xff]  ;;  %v824_v27 = vld [vmem:[%s10653_s26 + $0xff0] sm:$0xff] }
  0x37   : > { %v188_v2 = vld [vmem:[%s10663_s28 + $0x8] sm:$0xff]  ;;  %v187_v3 = vld [vmem:[%s10663_s28] sm:$0xff]  ;;  %v190_v4 = vld [vmem:[%s10663_s28 + $0x18] sm:$0xff] }
  0x38   : > { %1995 = vmatprep.subr.mxu0 %v188_v2  ;;  %2125 = vmatprep.subr.mxu1 %v190_v4  ;;  %v189_v5 = vld [vmem:[%s10663_s28 + $0x10] sm:$0xff]  ;;  %v192_v6 = vld [vmem:[%s10663_s28 + $0x28] sm:$0xff]  ;;  %v194_v9 = vld [vmem:[%s10663_s28 + $0x38] sm:$0xff] }
  0x39   : > { %1996 = vmatpush1.xpose.msra.mxu0 %v187_v3  ;;  %2126 = vmatpush1.xpose.msra.mxu1 %v189_v5  ;;  %v191_v10 = vld [vmem:[%s10663_s28 + $0x20] sm:$0xff]  ;;  %v193_v12 = vld [vmem:[%s10663_s28 + $0x30] sm:$0xff]  ;;  %v196_v30 = vld [vmem:[%s10663_s28 + $0x48] sm:$0xff] }
  0x3a   : > { %2255 = vmatprep.subr.mxu0 %v192_v6  ;;  %2385 = vmatprep.subr.mxu1 %v194_v9  ;;  %v950_v28 = vld [vmem:[%s10653_s26 + $0x13e0] sm:$0xff]  ;;  %v952_v29 = vld [vmem:[%s10653_s26 + $0x13f0] sm:$0xff]  ;;  %v949_v32 = vld [vmem:[%s10653_s26 + $0x13d8] sm:$0xff] }
  0x3b   : > { %v198_v31 = vld [vmem:[%s10663_s28 + $0x58] sm:$0xff]  ;;  %v951_v33 = vld [vmem:[%s10653_s26 + $0x13e8] sm:$0xff]  ;;  %v1078_v37 = vld [vmem:[%s10653_s26 + $0x17e0] sm:$0xff] }
  0x3c   : > { %2030 = vmatmul.mubr.f32.vlgmr.msra.gmra.mxu0 %v314_v7  ;;  %2160 = vmatmul.mubr.f32.vlgmr.msra.gmra.mxu1 %v316_v8  ;;  %v1077_v34 = vld [vmem:[%s10653_s26 + $0x17d8] sm:$0xff]  ;;  %v1079_v35 = vld [vmem:[%s10653_s26 + $0x17e8] sm:$0xff]  ;;  %v1076_v36 = vld [vmem:[%s10653_s26 + $0x17d0] sm:$0xff] }
  0x3d   : > { %2256 = vmatpush1.xpose.msra.mxu0 %v191_v10  ;;  %2034 = vmatprep.mubr.f32.mxu0 %v442_v11  ;;  %v1204_v38 = vld [vmem:[%s10653_s26 + $0x1bd0] sm:$0xff]  ;;  %v1206_v39 = vld [vmem:[%s10653_s26 + $0x1be0] sm:$0xff]  ;;  %v1203_v40 = vld [vmem:[%s10653_s26 + $0x1bc8] sm:$0xff] }
  0x3e   : > { %2386 = vmatpush1.xpose.msra.mxu1 %v193_v12  ;;  %2164 = vmatprep.mubr.f32.mxu1 %v444_v13  ;;  %v1205_v41 = vld [vmem:[%s10653_s26 + $0x1bd8] sm:$0xff]  ;;  %v1331_v42 = vld [vmem:[%s10653_s26 + $0x1fc8] sm:$0xff]  ;;  %v1330_v44 = vld [vmem:[%s10653_s26 + $0x1fc0] sm:$0xff] }
  0x3f   : > { %2515 = vmatprep.subr.mxu0 %v196_v30  ;;  %2645 = vmatprep.subr.mxu1 %v198_v31  ;;  %v1333_v43 = vld [vmem:[%s10653_s26 + $0x1fd8] sm:$0xff]  ;;  %v1332_v45 = vld [vmem:[%s10653_s26 + $0x1fd0] sm:$0xff]  ;;  %v1458_v46 = vld [vmem:[%s10653_s26 + $0x23c0] sm:$0xff] }
  0x40   : > { %2035 = vmatmul.mubr.f32.gmra.mxu0 %v441_v14  ;;  %2165 = vmatmul.mubr.f32.gmra.mxu1 %v443_v15  ;;  %v1460_v47 = vld [vmem:[%s10653_s26 + $0x23d0] sm:$0xff]  ;;  %v1457_v48 = vld [vmem:[%s10653_s26 + $0x23b8] sm:$0xff]  ;;  %v1459_v49 = vld [vmem:[%s10653_s26 + $0x23c8] sm:$0xff] }
  0x41   : > { %2039 = vmatprep.mubr.f32.mxu0 %v569_v16  ;;  %2169 = vmatprep.mubr.f32.mxu1 %v571_v17  ;;  %v1585_v50 = vld [vmem:[%s10653_s26 + $0x27b8] sm:$0xff]  ;;  %v1587_v51 = vld [vmem:[%s10653_s26 + $0x27c8] sm:$0xff]  ;;  %v1584_v52 = vld [vmem:[%s10653_s26 + $0x27b0] sm:$0xff] }
  0x42   : > { %v1586_v53 = vld [vmem:[%s10653_s26 + $0x27c0] sm:$0xff]  ;;  %v1712_v54 = vld [vmem:[%s10653_s26 + $0x2bb0] sm:$0xff]  ;;  %v1711_v56 = vld [vmem:[%s10653_s26 + $0x2ba8] sm:$0xff] }
  0x43   : > { %v1714_v55 = vld [vmem:[%s10653_s26 + $0x2bc0] sm:$0xff]  ;;  %v1713_v57 = vld [vmem:[%s10653_s26 + $0x2bb8] sm:$0xff]  ;;  %v1839_v58 = vld [vmem:[%s10653_s26 + $0x2fa8] sm:$0xf] }
  0x44   : > { %2040 = vmatmul.mubr.f32.gmra.mxu0 %v568_v18  ;;  %2170 = vmatmul.mubr.f32.gmra.mxu1 %v570_v19  ;;  %v1841_v59 = vld [vmem:[%s10653_s26 + $0x2fb8] sm:$0xf]  ;;  %v1838_v60 = vld [vmem:[%s10653_s26 + $0x2fa0] sm:$0xf]  ;;  %v1840_v61 = vld [vmem:[%s10653_s26 + $0x2fb0] sm:$0xf] }
  0x45   : > { %2044 = vmatprep.mubr.f32.mxu0 %v696_v20  ;;  %2174 = vmatprep.mubr.f32.mxu1 %v698_v21  ;;  %v319_v62 = vld [vmem:[%s10653_s26 + $0x28] sm:$0xff]  ;;  %v321_v63 = vld [vmem:[%s10653_s26 + $0x38] sm:$0xff]  ;;  %v318_v0 = vld [vmem:[%s10653_s26 + $0x20] sm:$0xff] }
  0x46   : > { %v320_v1 = vld [vmem:[%s10653_s26 + $0x30] sm:$0xff]  ;;  %v195_v2 = vld [vmem:[%s10663_s28 + $0x40] sm:$0xff]  ;;  %v200_v6 = vld [vmem:[%s10663_s28 + $0x68] sm:$0xff] }
  0x47   : > { %v446_v3 = vld [vmem:[%s10653_s26 + $0x420] sm:$0xff]  ;;  %v197_v4 = vld [vmem:[%s10663_s28 + $0x50] sm:$0xff]  ;;  %v202_v7 = vld [vmem:[%s10663_s28 + $0x78] sm:$0xff] }
  0x48   : > { %2045 = vmatmul.mubr.f32.gmra.mxu0 %v695_v22  ;;  %2175 = vmatmul.mubr.f32.gmra.mxu1 %v697_v23  ;;  %v448_v5 = vld [vmem:[%s10653_s26 + $0x430] sm:$0xff]  ;;  %v445_v8 = vld [vmem:[%s10653_s26 + $0x418] sm:$0xff]  ;;  %v447_v9 = vld [vmem:[%s10653_s26 + $0x428] sm:$0xff] }
  0x49   : > { %2049 = vmatprep.mubr.f32.mxu0 %v823_v24  ;;  %2179 = vmatprep.mubr.f32.mxu1 %v825_v25  ;;  %v573_v10 = vld [vmem:[%s10653_s26 + $0x818] sm:$0xff]  ;;  %v575_v11 = vld [vmem:[%s10653_s26 + $0x828] sm:$0xff]  ;;  %v572_v12 = vld [vmem:[%s10653_s26 + $0x810] sm:$0xff] }
  0x4a   : > { %v574_v13 = vld [vmem:[%s10653_s26 + $0x820] sm:$0xff]  ;;  %v700_v14 = vld [vmem:[%s10653_s26 + $0xc10] sm:$0xff]  ;;  %v699_v16 = vld [vmem:[%s10653_s26 + $0xc08] sm:$0xff] }
  0x4b   : > { %v702_v15 = vld [vmem:[%s10653_s26 + $0xc20] sm:$0xff]  ;;  %v701_v17 = vld [vmem:[%s10653_s26 + $0xc18] sm:$0xff]  ;;  %v827_v18 = vld [vmem:[%s10653_s26 + $0x1008] sm:$0xff] }
  0x4c   : > { %2050 = vmatmul.mubr.f32.gmra.mxu0 %v822_v26  ;;  %2180 = vmatmul.mubr.f32.gmra.mxu1 %v824_v27  ;;  %v829_v19 = vld [vmem:[%s10653_s26 + $0x1018] sm:$0xff]  ;;  %v826_v20 = vld [vmem:[%s10653_s26 + $0x1000] sm:$0xff]  ;;  %v828_v21 = vld [vmem:[%s10653_s26 + $0x1010] sm:$0xff] }
  0x4d   : > { %2054 = vmatprep.mubr.f32.mxu0 %v950_v28  ;;  %2184 = vmatprep.mubr.f32.mxu1 %v952_v29  ;;  %v954_v22 = vld [vmem:[%s10653_s26 + $0x1400] sm:$0xff]  ;;  %v956_v23 = vld [vmem:[%s10653_s26 + $0x1410] sm:$0xff]  ;;  %v953_v24 = vld [vmem:[%s10653_s26 + $0x13f8] sm:$0xff] }
  0x4e   : > { %v955_v25 = vld [vmem:[%s10653_s26 + $0x1408] sm:$0xff]  ;;  %v1081_v26 = vld [vmem:[%s10653_s26 + $0x17f8] sm:$0xff]  ;;  %v1080_v28 = vld [vmem:[%s10653_s26 + $0x17f0] sm:$0xff] }
  0x4f   : > { %v1083_v27 = vld [vmem:[%s10653_s26 + $0x1808] sm:$0xff]  ;;  %v1082_v29 = vld [vmem:[%s10653_s26 + $0x1800] sm:$0xff]  ;;  %v1208_v30 = vld [vmem:[%s10653_s26 + $0x1bf0] sm:$0xff] }
  0x50   : > { %2055 = vmatmul.mubr.f32.gmra.mxu0 %v949_v32  ;;  %2185 = vmatmul.mubr.f32.gmra.mxu1 %v951_v33  ;;  %v1210_v31 = vld [vmem:[%s10653_s26 + $0x1c00] sm:$0xff]  ;;  %v1207_v32 = vld [vmem:[%s10653_s26 + $0x1be8] sm:$0xff]  ;;  %v1209_v33 = vld [vmem:[%s10653_s26 + $0x1bf8] sm:$0xff] }
  0x51   : > { %2059 = vmatprep.mubr.f32.mxu0 %v1077_v34  ;;  %2189 = vmatprep.mubr.f32.mxu1 %v1079_v35  ;;  %v1335_v34 = vld [vmem:[%s10653_s26 + $0x1fe8] sm:$0xff]  ;;  %v1337_v35 = vld [vmem:[%s10653_s26 + $0x1ff8] sm:$0xff] }
  0x54   : > { %2060 = vmatmul.mubr.f32.gmra.mxu0 %v1076_v36  ;;  %2190 = vmatmul.mubr.f32.gmra.mxu1 %v1078_v37  ;;  %v1334_v36 = vld [vmem:[%s10653_s26 + $0x1fe0] sm:$0xff]  ;;  %v1336_v37 = vld [vmem:[%s10653_s26 + $0x1ff0] sm:$0xff] }
  0x55   : > { %2064 = vmatprep.mubr.f32.mxu0 %v1204_v38  ;;  %2194 = vmatprep.mubr.f32.mxu1 %v1206_v39  ;;  %v1462_v38 = vld [vmem:[%s10653_s26 + $0x23e0] sm:$0xff]  ;;  %v1464_v39 = vld [vmem:[%s10653_s26 + $0x23f0] sm:$0xff] }
  0x58   : > { %2065 = vmatmul.mubr.f32.gmra.mxu0 %v1203_v40  ;;  %2195 = vmatmul.mubr.f32.gmra.mxu1 %v1205_v41  ;;  %v1461_v40 = vld [vmem:[%s10653_s26 + $0x23d8] sm:$0xff]  ;;  %v1463_v41 = vld [vmem:[%s10653_s26 + $0x23e8] sm:$0xff] }
  0x59   : > { %2069 = vmatprep.mubr.f32.mxu0 %v1331_v42  ;;  %2199 = vmatprep.mubr.f32.mxu1 %v1333_v43  ;;  %v1589_v42 = vld [vmem:[%s10653_s26 + $0x27d8] sm:$0xff]  ;;  %v1591_v43 = vld [vmem:[%s10653_s26 + $0x27e8] sm:$0xff] }
  0x5c   : > { %2070 = vmatmul.mubr.f32.gmra.mxu0 %v1330_v44  ;;  %2200 = vmatmul.mubr.f32.gmra.mxu1 %v1332_v45  ;;  %v1588_v44 = vld [vmem:[%s10653_s26 + $0x27d0] sm:$0xff]  ;;  %v1590_v45 = vld [vmem:[%s10653_s26 + $0x27e0] sm:$0xff] }
  0x5d   : > { %2074 = vmatprep.mubr.f32.mxu0 %v1458_v46  ;;  %2204 = vmatprep.mubr.f32.mxu1 %v1460_v47  ;;  %v1716_v46 = vld [vmem:[%s10653_s26 + $0x2bd0] sm:$0xff]  ;;  %v1718_v47 = vld [vmem:[%s10653_s26 + $0x2be0] sm:$0xff] }
  0x60   : > { %2075 = vmatmul.mubr.f32.gmra.mxu0 %v1457_v48  ;;  %2205 = vmatmul.mubr.f32.gmra.mxu1 %v1459_v49  ;;  %v1715_v48 = vld [vmem:[%s10653_s26 + $0x2bc8] sm:$0xff]  ;;  %v1717_v49 = vld [vmem:[%s10653_s26 + $0x2bd8] sm:$0xff] }
  0x61   : > { %2079 = vmatprep.mubr.f32.mxu0 %v1585_v50  ;;  %2209 = vmatprep.mubr.f32.mxu1 %v1587_v51  ;;  %v1843_v50 = vld [vmem:[%s10653_s26 + $0x2fc8] sm:$0xf]  ;;  %v1845_v51 = vld [vmem:[%s10653_s26 + $0x2fd8] sm:$0xf] }
  0x64   : > { %2080 = vmatmul.mubr.f32.gmra.mxu0 %v1584_v52  ;;  %2210 = vmatmul.mubr.f32.gmra.mxu1 %v1586_v53  ;;  %v1842_v52 = vld [vmem:[%s10653_s26 + $0x2fc0] sm:$0xf]  ;;  %v1844_v53 = vld [vmem:[%s10653_s26 + $0x2fd0] sm:$0xf] }
  0x65   : > { %2084 = vmatprep.mubr.f32.mxu0 %v1712_v54  ;;  %2214 = vmatprep.mubr.f32.mxu1 %v1714_v55  ;;  %v323_v54 = vld [vmem:[%s10653_s26 + $0x48] sm:$0xff]  ;;  %v325_v55 = vld [vmem:[%s10653_s26 + $0x58] sm:$0xff] }
  0x68   : > { %2085 = vmatmul.mubr.f32.gmra.mxu0 %v1711_v56  ;;  %2215 = vmatmul.mubr.f32.gmra.mxu1 %v1713_v57  ;;  %v322_v56 = vld [vmem:[%s10653_s26 + $0x40] sm:$0xff]  ;;  %v324_v57 = vld [vmem:[%s10653_s26 + $0x50] sm:$0xff] }
  0x69   : > { %2089 = vmatprep.mubr.f32.mxu0 %v1839_v58  ;;  %2219 = vmatprep.mubr.f32.mxu1 %v1841_v59  ;;  %v199_v58 = vld [vmem:[%s10663_s28 + $0x60] sm:$0xff] }
  0x6a   : > { %v450_v59 = vld [vmem:[%s10653_s26 + $0x440] sm:$0xff] }
  0x6c   : > { %2090 = vmatmul.mubr.f32.gmra.mxu0 %v1838_v60  ;;  %2220 = vmatmul.mubr.f32.gmra.mxu1 %v1840_v61  ;;  %v201_v60 = vld [vmem:[%s10663_s28 + $0x70] sm:$0xff] }
  0x6d   : > { %2289 = vmatprep.mubr.f32.mxu0 %v319_v62  ;;  %2419 = vmatprep.mubr.f32.mxu1 %v321_v63  ;;  %v452_v61 = vld [vmem:[%s10653_s26 + $0x450] sm:$0xff]  ;;  %v204_v62 = vld [vmem:[%s10663_s28 + $0x88] sm:$0xff] }
  0x6e   : > { %v206_v63 = vld [vmem:[%s10663_s28 + $0x98] sm:$0xff] }
  0x70   : > { %2290 = vmatmul.mubr.f32.vlgmr.msra.gmra.mxu0 %v318_v0  ;;  %2420 = vmatmul.mubr.f32.vlgmr.msra.gmra.mxu1 %v320_v1  ;;  %v449_v0 = vld [vmem:[%s10653_s26 + $0x438] sm:$0xff]  ;;  %v451_v1 = vld [vmem:[%s10653_s26 + $0x448] sm:$0xff] }
  0x71   : > { %2516 = vmatpush1.xpose.msra.mxu0 %v195_v2  ;;  %2294 = vmatprep.mubr.f32.mxu0 %v446_v3  ;;  %v577_v2 = vld [vmem:[%s10653_s26 + $0x838] sm:$0xff]  ;;  %v579_v3 = vld [vmem:[%s10653_s26 + $0x848] sm:$0xff] }
  0x72   : > { %2646 = vmatpush1.xpose.msra.mxu1 %v197_v4  ;;  %2424 = vmatprep.mubr.f32.mxu1 %v448_v5  ;;  %v576_v4 = vld [vmem:[%s10653_s26 + $0x830] sm:$0xff]  ;;  %v578_v5 = vld [vmem:[%s10653_s26 + $0x840] sm:$0xff] }
  0x73   : > { %2775 = vmatprep.subr.mxu0 %v200_v6  ;;  %2905 = vmatprep.subr.mxu1 %v202_v7  ;;  %v704_v6 = vld [vmem:[%s10653_s26 + $0xc30] sm:$0xff]  ;;  %v706_v7 = vld [vmem:[%s10653_s26 + $0xc40] sm:$0xff] }
  0x74   : > { %2295 = vmatmul.mubr.f32.gmra.mxu0 %v445_v8  ;;  %2425 = vmatmul.mubr.f32.gmra.mxu1 %v447_v9  ;;  %v703_v8 = vld [vmem:[%s10653_s26 + $0xc28] sm:$0xff]  ;;  %v705_v9 = vld [vmem:[%s10653_s26 + $0xc38] sm:$0xff] }
  0x75   : > { %2299 = vmatprep.mubr.f32.mxu0 %v573_v10  ;;  %2429 = vmatprep.mubr.f32.mxu1 %v575_v11  ;;  %v831_v10 = vld [vmem:[%s10653_s26 + $0x1028] sm:$0xff]  ;;  %v833_v11 = vld [vmem:[%s10653_s26 + $0x1038] sm:$0xff] }
  0x78   : > { %2300 = vmatmul.mubr.f32.gmra.mxu0 %v572_v12  ;;  %2430 = vmatmul.mubr.f32.gmra.mxu1 %v574_v13  ;;  %v830_v12 = vld [vmem:[%s10653_s26 + $0x1020] sm:$0xff]  ;;  %v832_v13 = vld [vmem:[%s10653_s26 + $0x1030] sm:$0xff] }
  0x79   : > { %2304 = vmatprep.mubr.f32.mxu0 %v700_v14  ;;  %2434 = vmatprep.mubr.f32.mxu1 %v702_v15  ;;  %v958_v14 = vld [vmem:[%s10653_s26 + $0x1420] sm:$0xff]  ;;  %v960_v15 = vld [vmem:[%s10653_s26 + $0x1430] sm:$0xff] }
  0x7c   : > { %2305 = vmatmul.mubr.f32.gmra.mxu0 %v699_v16  ;;  %2435 = vmatmul.mubr.f32.gmra.mxu1 %v701_v17  ;;  %v957_v16 = vld [vmem:[%s10653_s26 + $0x1418] sm:$0xff]  ;;  %v959_v17 = vld [vmem:[%s10653_s26 + $0x1428] sm:$0xff] }
  0x7d   : > { %2309 = vmatprep.mubr.f32.mxu0 %v827_v18  ;;  %2439 = vmatprep.mubr.f32.mxu1 %v829_v19  ;;  %v1085_v18 = vld [vmem:[%s10653_s26 + $0x1818] sm:$0xff]  ;;  %v1087_v19 = vld [vmem:[%s10653_s26 + $0x1828] sm:$0xff] }
  0x80   : > { %2310 = vmatmul.mubr.f32.gmra.mxu0 %v826_v20  ;;  %2440 = vmatmul.mubr.f32.gmra.mxu1 %v828_v21  ;;  %v1084_v20 = vld [vmem:[%s10653_s26 + $0x1810] sm:$0xff]  ;;  %v1086_v21 = vld [vmem:[%s10653_s26 + $0x1820] sm:$0xff] }
  0x81   : > { %2314 = vmatprep.mubr.f32.mxu0 %v954_v22  ;;  %2444 = vmatprep.mubr.f32.mxu1 %v956_v23  ;;  %v1212_v22 = vld [vmem:[%s10653_s26 + $0x1c10] sm:$0xff]  ;;  %v1214_v23 = vld [vmem:[%s10653_s26 + $0x1c20] sm:$0xff] }
  0x84   : > { %2315 = vmatmul.mubr.f32.gmra.mxu0 %v953_v24  ;;  %2445 = vmatmul.mubr.f32.gmra.mxu1 %v955_v25  ;;  %v1211_v24 = vld [vmem:[%s10653_s26 + $0x1c08] sm:$0xff]  ;;  %v1213_v25 = vld [vmem:[%s10653_s26 + $0x1c18] sm:$0xff] }
  0x85   : > { %2319 = vmatprep.mubr.f32.mxu0 %v1081_v26  ;;  %2449 = vmatprep.mubr.f32.mxu1 %v1083_v27  ;;  %v1339_v26 = vld [vmem:[%s10653_s26 + $0x2008] sm:$0xff]  ;;  %v1341_v27 = vld [vmem:[%s10653_s26 + $0x2018] sm:$0xff] }
  0x88   : > { %2320 = vmatmul.mubr.f32.gmra.mxu0 %v1080_v28  ;;  %2450 = vmatmul.mubr.f32.gmra.mxu1 %v1082_v29  ;;  %v1338_v28 = vld [vmem:[%s10653_s26 + $0x2000] sm:$0xff]  ;;  %v1340_v29 = vld [vmem:[%s10653_s26 + $0x2010] sm:$0xff] }
  0x89   : > { %2324 = vmatprep.mubr.f32.mxu0 %v1208_v30  ;;  %2454 = vmatprep.mubr.f32.mxu1 %v1210_v31  ;;  %v1466_v30 = vld [vmem:[%s10653_s26 + $0x2400] sm:$0xff]  ;;  %v1468_v31 = vld [vmem:[%s10653_s26 + $0x2410] sm:$0xff] }
  0x8c   : > { %2325 = vmatmul.mubr.f32.gmra.mxu0 %v1207_v32  ;;  %2455 = vmatmul.mubr.f32.gmra.mxu1 %v1209_v33  ;;  %v1465_v32 = vld [vmem:[%s10653_s26 + $0x23f8] sm:$0xff]  ;;  %v1467_v33 = vld [vmem:[%s10653_s26 + $0x2408] sm:$0xff] }
  0x8d   : > { %2329 = vmatprep.mubr.f32.mxu0 %v1335_v34  ;;  %2459 = vmatprep.mubr.f32.mxu1 %v1337_v35  ;;  %v1593_v34 = vld [vmem:[%s10653_s26 + $0x27f8] sm:$0xff]  ;;  %v1595_v35 = vld [vmem:[%s10653_s26 + $0x2808] sm:$0xff] }
  0x90   : > { %2330 = vmatmul.mubr.f32.gmra.mxu0 %v1334_v36  ;;  %2460 = vmatmul.mubr.f32.gmra.mxu1 %v1336_v37  ;;  %v1592_v36 = vld [vmem:[%s10653_s26 + $0x27f0] sm:$0xff]  ;;  %v1594_v37 = vld [vmem:[%s10653_s26 + $0x2800] sm:$0xff] }
  0x91   : > { %2334 = vmatprep.mubr.f32.mxu0 %v1462_v38  ;;  %2464 = vmatprep.mubr.f32.mxu1 %v1464_v39  ;;  %v1720_v38 = vld [vmem:[%s10653_s26 + $0x2bf0] sm:$0xff]  ;;  %v1722_v39 = vld [vmem:[%s10653_s26 + $0x2c00] sm:$0xff] }
  0x94   : > { %2335 = vmatmul.mubr.f32.gmra.mxu0 %v1461_v40  ;;  %2465 = vmatmul.mubr.f32.gmra.mxu1 %v1463_v41  ;;  %v1719_v40 = vld [vmem:[%s10653_s26 + $0x2be8] sm:$0xff]  ;;  %v1721_v41 = vld [vmem:[%s10653_s26 + $0x2bf8] sm:$0xff] }
  0x95   : > { %2339 = vmatprep.mubr.f32.mxu0 %v1589_v42  ;;  %2469 = vmatprep.mubr.f32.mxu1 %v1591_v43  ;;  %v1847_v42 = vld [vmem:[%s10653_s26 + $0x2fe8] sm:$0xf]  ;;  %v1849_v43 = vld [vmem:[%s10653_s26 + $0x2ff8] sm:$0xf] }
  0x98   : > { %2340 = vmatmul.mubr.f32.gmra.mxu0 %v1588_v44  ;;  %2470 = vmatmul.mubr.f32.gmra.mxu1 %v1590_v45  ;;  %v1846_v44 = vld [vmem:[%s10653_s26 + $0x2fe0] sm:$0xf]  ;;  %v1848_v45 = vld [vmem:[%s10653_s26 + $0x2ff0] sm:$0xf] }
  0x99   : > { %2344 = vmatprep.mubr.f32.mxu0 %v1716_v46  ;;  %2474 = vmatprep.mubr.f32.mxu1 %v1718_v47  ;;  %v327_v46 = vld [vmem:[%s10653_s26 + $0x68] sm:$0xff]  ;;  %v329_v47 = vld [vmem:[%s10653_s26 + $0x78] sm:$0xff] }
  0x9c   : > { %2345 = vmatmul.mubr.f32.gmra.mxu0 %v1715_v48  ;;  %2475 = vmatmul.mubr.f32.gmra.mxu1 %v1717_v49  ;;  %v326_v48 = vld [vmem:[%s10653_s26 + $0x60] sm:$0xff]  ;;  %v328_v49 = vld [vmem:[%s10653_s26 + $0x70] sm:$0xff] }
  0x9d   : > { %2349 = vmatprep.mubr.f32.mxu0 %v1843_v50  ;;  %2479 = vmatprep.mubr.f32.mxu1 %v1845_v51  ;;  %v203_v50 = vld [vmem:[%s10663_s28 + $0x80] sm:$0xff] }
  0x9e   : > { %v454_v51 = vld [vmem:[%s10653_s26 + $0x460] sm:$0xff] }
  0xa0   : > { %2350 = vmatmul.mubr.f32.gmra.mxu0 %v1842_v52  ;;  %2480 = vmatmul.mubr.f32.gmra.mxu1 %v1844_v53  ;;  %v205_v52 = vld [vmem:[%s10663_s28 + $0x90] sm:$0xff] }
  0xa1   : > { %2549 = vmatprep.mubr.f32.mxu0 %v323_v54  ;;  %2679 = vmatprep.mubr.f32.mxu1 %v325_v55  ;;  %v456_v53 = vld [vmem:[%s10653_s26 + $0x470] sm:$0xff]  ;;  %v208_v54 = vld [vmem:[%s10663_s28 + $0xa8] sm:$0xff] }
  0xa2   : > { %v210_v55 = vld [vmem:[%s10663_s28 + $0xb8] sm:$0xff] }
  0xa4   : > { %2550 = vmatmul.mubr.f32.vlgmr.msra.gmra.mxu0 %v322_v56  ;;  %2680 = vmatmul.mubr.f32.vlgmr.msra.gmra.mxu1 %v324_v57  ;;  %v453_v56 = vld [vmem:[%s10653_s26 + $0x458] sm:$0xff]  ;;  %v455_v57 = vld [vmem:[%s10653_s26 + $0x468] sm:$0xff] }
  0xa5   : > { %2776 = vmatpush1.xpose.msra.mxu0 %v199_v58  ;;  %2554 = vmatprep.mubr.f32.mxu0 %v450_v59  ;;  %v581_v58 = vld [vmem:[%s10653_s26 + $0x858] sm:$0xff]  ;;  %v583_v59 = vld [vmem:[%s10653_s26 + $0x868] sm:$0xff] }
  0xa6   : > { %2906 = vmatpush1.xpose.msra.mxu1 %v201_v60  ;;  %2684 = vmatprep.mubr.f32.mxu1 %v452_v61  ;;  %v580_v60 = vld [vmem:[%s10653_s26 + $0x850] sm:$0xff]  ;;  %v582_v61 = vld [vmem:[%s10653_s26 + $0x860] sm:$0xff] }
  0xa7   : > { %3035 = vmatprep.subr.mxu0 %v204_v62  ;;  %3165 = vmatprep.subr.mxu1 %v206_v63  ;;  %v708_v62 = vld [vmem:[%s10653_s26 + $0xc50] sm:$0xff]  ;;  %v710_v63 = vld [vmem:[%s10653_s26 + $0xc60] sm:$0xff] }
  0xa8   : > { %2555 = vmatmul.mubr.f32.gmra.mxu0 %v449_v0  ;;  %2685 = vmatmul.mubr.f32.gmra.mxu1 %v451_v1  ;;  %v707_v0 = vld [vmem:[%s10653_s26 + $0xc48] sm:$0xff]  ;;  %v709_v1 = vld [vmem:[%s10653_s26 + $0xc58] sm:$0xff] }
  0xa9   : > { %2559 = vmatprep.mubr.f32.mxu0 %v577_v2  ;;  %2689 = vmatprep.mubr.f32.mxu1 %v579_v3  ;;  %v835_v2 = vld [vmem:[%s10653_s26 + $0x1048] sm:$0xff]  ;;  %v837_v3 = vld [vmem:[%s10653_s26 + $0x1058] sm:$0xff] }
  0xac   : > { %2560 = vmatmul.mubr.f32.gmra.mxu0 %v576_v4  ;;  %2690 = vmatmul.mubr.f32.gmra.mxu1 %v578_v5  ;;  %v834_v4 = vld [vmem:[%s10653_s26 + $0x1040] sm:$0xff]  ;;  %v836_v5 = vld [vmem:[%s10653_s26 + $0x1050] sm:$0xff] }
  0xad   : > { %2564 = vmatprep.mubr.f32.mxu0 %v704_v6  ;;  %2694 = vmatprep.mubr.f32.mxu1 %v706_v7  ;;  %v962_v6 = vld [vmem:[%s10653_s26 + $0x1440] sm:$0xff]  ;;  %v964_v7 = vld [vmem:[%s10653_s26 + $0x1450] sm:$0xff] }
  0xb0   : > { %2565 = vmatmul.mubr.f32.gmra.mxu0 %v703_v8  ;;  %2695 = vmatmul.mubr.f32.gmra.mxu1 %v705_v9  ;;  %v961_v8 = vld [vmem:[%s10653_s26 + $0x1438] sm:$0xff]  ;;  %v963_v9 = vld [vmem:[%s10653_s26 + $0x1448] sm:$0xff] }
  0xb1   : > { %2569 = vmatprep.mubr.f32.mxu0 %v831_v10  ;;  %2699 = vmatprep.mubr.f32.mxu1 %v833_v11  ;;  %v1089_v10 = vld [vmem:[%s10653_s26 + $0x1838] sm:$0xff]  ;;  %v1091_v11 = vld [vmem:[%s10653_s26 + $0x1848] sm:$0xff] }
  0xb4   : > { %2570 = vmatmul.mubr.f32.gmra.mxu0 %v830_v12  ;;  %2700 = vmatmul.mubr.f32.gmra.mxu1 %v832_v13  ;;  %v1088_v12 = vld [vmem:[%s10653_s26 + $0x1830] sm:$0xff]  ;;  %v1090_v13 = vld [vmem:[%s10653_s26 + $0x1840] sm:$0xff] }
  0xb5   : > { %2574 = vmatprep.mubr.f32.mxu0 %v958_v14  ;;  %2704 = vmatprep.mubr.f32.mxu1 %v960_v15  ;;  %v1216_v14 = vld [vmem:[%s10653_s26 + $0x1c30] sm:$0xff]  ;;  %v1218_v15 = vld [vmem:[%s10653_s26 + $0x1c40] sm:$0xff] }
  0xb8   : > { %2575 = vmatmul.mubr.f32.gmra.mxu0 %v957_v16  ;;  %2705 = vmatmul.mubr.f32.gmra.mxu1 %v959_v17  ;;  %v1215_v16 = vld [vmem:[%s10653_s26 + $0x1c28] sm:$0xff]  ;;  %v1217_v17 = vld [vmem:[%s10653_s26 + $0x1c38] sm:$0xff] }
  0xb9   : > { %2579 = vmatprep.mubr.f32.mxu0 %v1085_v18  ;;  %2709 = vmatprep.mubr.f32.mxu1 %v1087_v19  ;;  %v1343_v18 = vld [vmem:[%s10653_s26 + $0x2028] sm:$0xff]  ;;  %v1345_v19 = vld [vmem:[%s10653_s26 + $0x2038] sm:$0xff] }
  0xbc   : > { %2580 = vmatmul.mubr.f32.gmra.mxu0 %v1084_v20  ;;  %2710 = vmatmul.mubr.f32.gmra.mxu1 %v1086_v21  ;;  %v1342_v20 = vld [vmem:[%s10653_s26 + $0x2020] sm:$0xff]  ;;  %v1344_v21 = vld [vmem:[%s10653_s26 + $0x2030] sm:$0xff] }
  0xbd   : > { %2584 = vmatprep.mubr.f32.mxu0 %v1212_v22  ;;  %2714 = vmatprep.mubr.f32.mxu1 %v1214_v23  ;;  %v1470_v22 = vld [vmem:[%s10653_s26 + $0x2420] sm:$0xff]  ;;  %v1472_v23 = vld [vmem:[%s10653_s26 + $0x2430] sm:$0xff] }
  0xc0   : > { %2585 = vmatmul.mubr.f32.gmra.mxu0 %v1211_v24  ;;  %2715 = vmatmul.mubr.f32.gmra.mxu1 %v1213_v25  ;;  %v1469_v24 = vld [vmem:[%s10653_s26 + $0x2418] sm:$0xff]  ;;  %v1471_v25 = vld [vmem:[%s10653_s26 + $0x2428] sm:$0xff] }
  0xc1   : > { %2589 = vmatprep.mubr.f32.mxu0 %v1339_v26  ;;  %2719 = vmatprep.mubr.f32.mxu1 %v1341_v27  ;;  %v1597_v26 = vld [vmem:[%s10653_s26 + $0x2818] sm:$0xff]  ;;  %v1599_v27 = vld [vmem:[%s10653_s26 + $0x2828] sm:$0xff] }
  0xc4   : > { %2590 = vmatmul.mubr.f32.gmra.mxu0 %v1338_v28  ;;  %2720 = vmatmul.mubr.f32.gmra.mxu1 %v1340_v29 }
  0xc5   : > { %2594 = vmatprep.mubr.f32.mxu0 %v1466_v30  ;;  %2724 = vmatprep.mubr.f32.mxu1 %v1468_v31  ;;  %v1596_v31 = vld [vmem:[%s10653_s26 + $0x2810] sm:$0xff] }
  0xc8   : > { %2595 = vmatmul.mubr.f32.gmra.mxu0 %v1465_v32  ;;  %2725 = vmatmul.mubr.f32.gmra.mxu1 %v1467_v33  ;;  %v1598_v32 = vld [vmem:[%s10653_s26 + $0x2820] sm:$0xff] }
  0xc9   : > { %2599 = vmatprep.mubr.f32.mxu0 %v1593_v34  ;;  %2729 = vmatprep.mubr.f32.mxu1 %v1595_v35  ;;  %v1724_v35 = vld [vmem:[%s10653_s26 + $0x2c10] sm:$0xff] }
  0xcc   : > { %2600 = vmatmul.mubr.f32.gmra.mxu0 %v1592_v36  ;;  %2730 = vmatmul.mubr.f32.gmra.mxu1 %v1594_v37  ;;  %v1726_v36 = vld [vmem:[%s10653_s26 + $0x2c20] sm:$0xff] }
  0xcd   : > { %2604 = vmatprep.mubr.f32.mxu0 %v1720_v38  ;;  %2734 = vmatprep.mubr.f32.mxu1 %v1722_v39 }
  0xd0   : > { %2605 = vmatmul.mubr.f32.gmra.mxu0 %v1719_v40  ;;  %2735 = vmatmul.mubr.f32.gmra.mxu1 %v1721_v41  ;;  %v1723_v40 = vld [vmem:[%s10653_s26 + $0x2c08] sm:$0xff]  ;;  %v1725_v41 = vld [vmem:[%s10653_s26 + $0x2c18] sm:$0xff] }
  0xd1   : > { %2609 = vmatprep.mubr.f32.mxu0 %v1847_v42  ;;  %2739 = vmatprep.mubr.f32.mxu1 %v1849_v43 }
  0xd4   : > { %2610 = vmatmul.mubr.f32.gmra.mxu0 %v1846_v44  ;;  %2740 = vmatmul.mubr.f32.gmra.mxu1 %v1848_v45  ;;  %v1851_v44 = vld [vmem:[%s10653_s26 + $0x3008] sm:$0xf]  ;;  %v1853_v45 = vld [vmem:[%s10653_s26 + $0x3018] sm:$0xf] }
  0xd5   : > { %2809 = vmatprep.mubr.f32.mxu0 %v327_v46  ;;  %2939 = vmatprep.mubr.f32.mxu1 %v329_v47 }
  0xd8   : > { %2810 = vmatmul.mubr.f32.vlgmr.msra.gmra.mxu0 %v326_v48  ;;  %2940 = vmatmul.mubr.f32.vlgmr.msra.gmra.mxu1 %v328_v49  ;;  %v1850_v49 = vld [vmem:[%s10653_s26 + $0x3000] sm:$0xf] }
  0xd9   : > { %3036 = vmatpush1.xpose.msra.mxu0 %v203_v50  ;;  %2814 = vmatprep.mubr.f32.mxu0 %v454_v51  ;;  %v1852_v50 = vld [vmem:[%s10653_s26 + $0x3010] sm:$0xf] }
  0xda   : > { %3166 = vmatpush1.xpose.msra.mxu1 %v205_v52  ;;  %2944 = vmatprep.mubr.f32.mxu1 %v456_v53  ;;  %v331_v53 = vld [vmem:[%s10653_s26 + $0x88] sm:$0xff] }
  0xdb   : > { %3295 = vmatprep.subr.mxu0 %v208_v54  ;;  %3425 = vmatprep.subr.mxu1 %v210_v55  ;;  %v333_v54 = vld [vmem:[%s10653_s26 + $0x98] sm:$0xff] }
  0xdc   : > { %2815 = vmatmul.mubr.f32.gmra.mxu0 %v453_v56  ;;  %2945 = vmatmul.mubr.f32.gmra.mxu1 %v455_v57 }
  0xdd   : > { %2819 = vmatprep.mubr.f32.mxu0 %v581_v58  ;;  %2949 = vmatprep.mubr.f32.mxu1 %v583_v59  ;;  %v330_v58 = vld [vmem:[%s10653_s26 + $0x80] sm:$0xff]  ;;  %v332_v59 = vld [vmem:[%s10653_s26 + $0x90] sm:$0xff] }
  0xe0   : > { %2820 = vmatmul.mubr.f32.gmra.mxu0 %v580_v60  ;;  %2950 = vmatmul.mubr.f32.gmra.mxu1 %v582_v61 }
  0xe1   : > { %2824 = vmatprep.mubr.f32.mxu0 %v708_v62  ;;  %2954 = vmatprep.mubr.f32.mxu1 %v710_v63  ;;  %v207_v62 = vld [vmem:[%s10663_s28 + $0xa0] sm:$0xff] }
  0xe2   : > { %v458_v63 = vld [vmem:[%s10653_s26 + $0x480] sm:$0xff] }
  0xe4   : > { %2825 = vmatmul.mubr.f32.gmra.mxu0 %v707_v0  ;;  %2955 = vmatmul.mubr.f32.gmra.mxu1 %v709_v1  ;;  %v209_v0 = vld [vmem:[%s10663_s28 + $0xb0] sm:$0xff] }
  0xe5   : > { %2829 = vmatprep.mubr.f32.mxu0 %v835_v2  ;;  %2959 = vmatprep.mubr.f32.mxu1 %v837_v3  ;;  %v460_v1 = vld [vmem:[%s10653_s26 + $0x490] sm:$0xff] }
  0xe8   : > { %2830 = vmatmul.mubr.f32.gmra.mxu0 %v834_v4  ;;  %2960 = vmatmul.mubr.f32.gmra.mxu1 %v836_v5  ;;  %v212_v4 = vld [vmem:[%s10663_s28 + $0xc8] sm:$0xff]  ;;  %v214_v5 = vld [vmem:[%s10663_s28 + $0xd8] sm:$0xff] }
  0xe9   : > { %2834 = vmatprep.mubr.f32.mxu0 %v962_v6  ;;  %2964 = vmatprep.mubr.f32.mxu1 %v964_v7  ;;  %v457_v7 = vld [vmem:[%s10653_s26 + $0x478] sm:$0xff] }
  0xec   : > { %2835 = vmatmul.mubr.f32.gmra.mxu0 %v961_v8  ;;  %2965 = vmatmul.mubr.f32.gmra.mxu1 %v963_v9  ;;  %v459_v8 = vld [vmem:[%s10653_s26 + $0x488] sm:$0xff] }
  0xed   : > { %2839 = vmatprep.mubr.f32.mxu0 %v1089_v10  ;;  %2969 = vmatprep.mubr.f32.mxu1 %v1091_v11  ;;  %v585_v11 = vld [vmem:[%s10653_s26 + $0x878] sm:$0xff] }
  0xf0   : > { %2840 = vmatmul.mubr.f32.gmra.mxu0 %v1088_v12  ;;  %2970 = vmatmul.mubr.f32.gmra.mxu1 %v1090_v13  ;;  %v587_v12 = vld [vmem:[%s10653_s26 + $0x888] sm:$0xff] }
  0xf1   : > { %2844 = vmatprep.mubr.f32.mxu0 %v1216_v14  ;;  %2974 = vmatprep.mubr.f32.mxu1 %v1218_v15 }
  0xf4   : > { %2845 = vmatmul.mubr.f32.gmra.mxu0 %v1215_v16  ;;  %2975 = vmatmul.mubr.f32.gmra.mxu1 %v1217_v17  ;;  %v584_v16 = vld [vmem:[%s10653_s26 + $0x870] sm:$0xff]  ;;  %v586_v17 = vld [vmem:[%s10653_s26 + $0x880] sm:$0xff] }
  0xf5   : > { %2849 = vmatprep.mubr.f32.mxu0 %v1343_v18  ;;  %2979 = vmatprep.mubr.f32.mxu1 %v1345_v19 }
  0xf8   : > { %2850 = vmatmul.mubr.f32.gmra.mxu0 %v1342_v20  ;;  %2980 = vmatmul.mubr.f32.gmra.mxu1 %v1344_v21  ;;  %v712_v20 = vld [vmem:[%s10653_s26 + $0xc70] sm:$0xff]  ;;  %v714_v21 = vld [vmem:[%s10653_s26 + $0xc80] sm:$0xff] }
  0xf9   : > { %2854 = vmatprep.mubr.f32.mxu0 %v1470_v22  ;;  %2984 = vmatprep.mubr.f32.mxu1 %v1472_v23 }
  0xfc   : > { %v2031_v28 = vpop.f32.mrf.mxu0  ;;  %2855 = vmatmul.mubr.f32.gmra.mxu0 %v1469_v24  ;;  %v2161_v29 = vpop.f32.mrf.mxu1  ;;  %2985 = vmatmul.mubr.f32.gmra.mxu1 %v1471_v25  ;;  %v711_v25 = vld [vmem:[%s10653_s26 + $0xc68] sm:$0xff] }
  0xfd   : > { %v10885_v30 = vadd.f32 %v2161_v29, %v2031_v28  ;;  %2859 = vmatprep.mubr.f32.mxu0 %v1597_v26  ;;  %2989 = vmatprep.mubr.f32.mxu1 %v1599_v27  ;;  %v713_v26 = vld [vmem:[%s10653_s26 + $0xc78] sm:$0xff]  ;;  %v839_v29 = vld [vmem:[%s10653_s26 + $0x1068] sm:$0xff] }
  0xfe   : > { %v2033_v33 = vpop.f32.mrf.mxu0  ;;  %v2163_v34 = vpop.f32.mrf.mxu1 }
 0x100   : > { %v2036_v37 = vpop.f32.mrf.mxu0  ;;  %2860 = vmatmul.mubr.f32.gmra.mxu0 %v1596_v31  ;;  %v2166_v38 = vpop.f32.mrf.mxu1  ;;  %2990 = vmatmul.mubr.f32.gmra.mxu1 %v1598_v32  ;;  %v841_v31 = vld [vmem:[%s10653_s26 + $0x1078] sm:$0xff] }
 0x101   : > { %v10891_v39 = vadd.f32 %v2166_v38, %v2036_v37  ;;  %2864 = vmatprep.mubr.f32.mxu0 %v1724_v35  ;;  %2994 = vmatprep.mubr.f32.mxu1 %v1726_v36  ;;  %v838_v35 = vld [vmem:[%s10653_s26 + $0x1060] sm:$0xff]  ;;  %v840_v36 = vld [vmem:[%s10653_s26 + $0x1070] sm:$0xff] }
 0x102   : > { %v2038_v42 = vpop.f32.mrf.mxu0  ;;  %v2168_v43 = vpop.f32.mrf.mxu1 }
 0x104   : > { %v2041_v46 = vpop.f32.mrf.mxu0  ;;  %2865 = vmatmul.mubr.f32.gmra.mxu0 %v1723_v40  ;;  %v2171_v47 = vpop.f32.mrf.mxu1  ;;  %2995 = vmatmul.mubr.f32.gmra.mxu1 %v1725_v41  ;;  %v966_v40 = vld [vmem:[%s10653_s26 + $0x1460] sm:$0xff]  ;;  %v968_v41 = vld [vmem:[%s10653_s26 + $0x1470] sm:$0xff] }
 0x105   : > { %v10897_v48 = vadd.f32 %v2171_v47, %v2041_v46  ;;  %2869 = vmatprep.mubr.f32.mxu0 %v1851_v44  ;;  %2999 = vmatprep.mubr.f32.mxu1 %v1853_v45  ;;  %v965_v45 = vld [vmem:[%s10653_s26 + $0x1458] sm:$0xff]  ;;  %v967_v46 = vld [vmem:[%s10653_s26 + $0x1468] sm:$0xff] }
 0x106   : > { %v2043_v51 = vpop.f32.mrf.mxu0  ;;  %v2173_v52 = vpop.f32.mrf.mxu1 }
 0x107   : > { %v1095_v51 = vld [vmem:[%s10653_s26 + $0x1868] sm:$0xff] }
 0x108   : > { %v2046_v55 = vpop.f32.mrf.mxu0  ;;  %2870 = vmatmul.mubr.f32.gmra.mxu0 %v1850_v49  ;;  %v2176_v56 = vpop.f32.mrf.mxu1  ;;  %3000 = vmatmul.mubr.f32.gmra.mxu1 %v1852_v50  ;;  %v1093_v50 = vld [vmem:[%s10653_s26 + $0x1858] sm:$0xff] }
 0x109   : > { %v10903_v57 = vadd.f32 %v2176_v56, %v2046_v55  ;;  %3069 = vmatprep.mubr.f32.mxu0 %v331_v53  ;;  %3199 = vmatprep.mubr.f32.mxu1 %v333_v54  ;;  %v1092_v55 = vld [vmem:[%s10653_s26 + $0x1850] sm:$0xff]  ;;  %v1094_v56 = vld [vmem:[%s10653_s26 + $0x1860] sm:$0xff] }
 0x10a   : > { %v2048_v60 = vpop.f32.mrf.mxu0  ;;  %v2178_v61 = vpop.f32.mrf.mxu1 }
 0x10b   : > { %v1220_v60 = vld [vmem:[%s10653_s26 + $0x1c50] sm:$0xff]  ;;  %v1222_v61 = vld [vmem:[%s10653_s26 + $0x1c60] sm:$0xff] }
 0x10c   : > { %v2051_v2 = vpop.f32.mrf.mxu0  ;;  %3070 = vmatmul.mubr.f32.vlgmr.msra.gmra.mxu0 %v330_v58  ;;  %v2181_v3 = vpop.f32.mrf.mxu1  ;;  %3200 = vmatmul.mubr.f32.vlgmr.msra.gmra.mxu1 %v332_v59 }
 0x10d   : > { %v10913_v6 = vadd.f32 %v2181_v3, %v2051_v2  ;;  %3296 = vmatpush1.xpose.msra.mxu0 %v207_v62  ;;  %3074 = vmatprep.mubr.f32.mxu0 %v458_v63  ;;  %v1221_v2 = vld [vmem:[%s10653_s26 + $0x1c58] sm:$0xff] }
 0x10e   : > { %v2053_v9 = vpop.f32.mrf.mxu0  ;;  %v2183_v10 = vpop.f32.mrf.mxu1  ;;  %3426 = vmatpush1.xpose.msra.mxu1 %v209_v0  ;;  %3204 = vmatprep.mubr.f32.mxu1 %v460_v1  ;;  %v1219_v1 = vld [vmem:[%s10653_s26 + $0x1c48] sm:$0xff] }
 0x10f   : > { %3555 = vmatprep.subr.mxu0 %v212_v4  ;;  %3685 = vmatprep.subr.mxu1 %v214_v5  ;;  %v1347_v5 = vld [vmem:[%s10653_s26 + $0x2048] sm:$0xff] }
 0x110   : > { %v2056_v13 = vpop.f32.mrf.mxu0  ;;  %3075 = vmatmul.mubr.f32.gmra.mxu0 %v457_v7  ;;  %v2186_v14 = vpop.f32.mrf.mxu1  ;;  %3205 = vmatmul.mubr.f32.gmra.mxu1 %v459_v8  ;;  %v1349_v7 = vld [vmem:[%s10653_s26 + $0x2058] sm:$0xff] }
 0x111   : > { %v10919_v15 = vadd.f32 %v2186_v14, %v2056_v13  ;;  %3079 = vmatprep.mubr.f32.mxu0 %v585_v11  ;;  %3209 = vmatprep.mubr.f32.mxu1 %v587_v12  ;;  %v1346_v11 = vld [vmem:[%s10653_s26 + $0x2040] sm:$0xff]  ;;  %v1348_v12 = vld [vmem:[%s10653_s26 + $0x2050] sm:$0xff] }
 0x112   : > { %v2058_v18 = vpop.f32.mrf.mxu0  ;;  %v2188_v19 = vpop.f32.mrf.mxu1 }
 0x114   : > { %v2061_v22 = vpop.f32.mrf.mxu0  ;;  %3080 = vmatmul.mubr.f32.gmra.mxu0 %v584_v16  ;;  %v2191_v23 = vpop.f32.mrf.mxu1  ;;  %3210 = vmatmul.mubr.f32.gmra.mxu1 %v586_v17  ;;  %v1474_v16 = vld [vmem:[%s10653_s26 + $0x2440] sm:$0xff]  ;;  %v1476_v17 = vld [vmem:[%s10653_s26 + $0x2450] sm:$0xff] }
 0x115   : > { %v10925_v24 = vadd.f32 %v2191_v23, %v2061_v22  ;;  %3084 = vmatprep.mubr.f32.mxu0 %v712_v20  ;;  %3214 = vmatprep.mubr.f32.mxu1 %v714_v21  ;;  %v1473_v21 = vld [vmem:[%s10653_s26 + $0x2438] sm:$0xff]  ;;  %v1475_v22 = vld [vmem:[%s10653_s26 + $0x2448] sm:$0xff] }
 0x116   : > { %v2063_v27 = vpop.f32.mrf.mxu0  ;;  %v2193_v28 = vpop.f32.mrf.mxu1 }
 0x117   : > { %v1603_v27 = vld [vmem:[%s10653_s26 + $0x2848] sm:$0xff] }
 0x118   : > { %v2066_v32 = vpop.f32.mrf.mxu0  ;;  %3085 = vmatmul.mubr.f32.gmra.mxu0 %v711_v25  ;;  %v2196_v33 = vpop.f32.mrf.mxu1  ;;  %3215 = vmatmul.mubr.f32.gmra.mxu1 %v713_v26  ;;  %v1601_v26 = vld [vmem:[%s10653_s26 + $0x2838] sm:$0xff] }
 0x119   : > { %v10931_v34 = vadd.f32 %v2196_v33, %v2066_v32  ;;  %3089 = vmatprep.mubr.f32.mxu0 %v839_v29  ;;  %3219 = vmatprep.mubr.f32.mxu1 %v841_v31  ;;  %v1600_v32 = vld [vmem:[%s10653_s26 + $0x2830] sm:$0xff]  ;;  %v1602_v33 = vld [vmem:[%s10653_s26 + $0x2840] sm:$0xff] }
 0x11a   : > { %v2068_v37 = vpop.f32.mrf.mxu0  ;;  %v2198_v38 = vpop.f32.mrf.mxu1 }
 0x11b   : > { %v1728_v37 = vld [vmem:[%s10653_s26 + $0x2c30] sm:$0xff]  ;;  %v1730_v38 = vld [vmem:[%s10653_s26 + $0x2c40] sm:$0xff] }
 0x11c   : > { %v2071_v42 = vpop.f32.mrf.mxu0  ;;  %3090 = vmatmul.mubr.f32.gmra.mxu0 %v838_v35  ;;  %v2201_v43 = vpop.f32.mrf.mxu1  ;;  %3220 = vmatmul.mubr.f32.gmra.mxu1 %v840_v36 }
 0x11d   : > { %v10937_v44 = vadd.f32 %v2201_v43, %v2071_v42  ;;  %3094 = vmatprep.mubr.f32.mxu0 %v966_v40  ;;  %3224 = vmatprep.mubr.f32.mxu1 %v968_v41  ;;  %v1727_v43 = vld [vmem:[%s10653_s26 + $0x2c28] sm:$0xff] }
 0x11e   : > { %v2073_v47 = vpop.f32.mrf.mxu0  ;;  %v2203_v49 = vpop.f32.mrf.mxu1 }
 0x11f   : > { %v1855_v49 = vld [vmem:[%s10653_s26 + $0x3028] sm:$0xf] }
 0x120   : > { %v2076_v52 = vpop.f32.mrf.mxu0  ;;  %3095 = vmatmul.mubr.f32.gmra.mxu0 %v965_v45  ;;  %v2206_v53 = vpop.f32.mrf.mxu1  ;;  %3225 = vmatmul.mubr.f32.gmra.mxu1 %v967_v46  ;;  %v1729_v45 = vld [vmem:[%s10653_s26 + $0x2c38] sm:$0xff] }
 0x121   : > { %v10943_v54 = vadd.f32 %v2206_v53, %v2076_v52  ;;  %3099 = vmatprep.mubr.f32.mxu0 %v1093_v50  ;;  %3229 = vmatprep.mubr.f32.mxu1 %v1095_v51  ;;  %v1857_v50 = vld [vmem:[%s10653_s26 + $0x3038] sm:$0xf] }
 0x122   : > { %v2078_v58 = vpop.f32.mrf.mxu0  ;;  %v2208_v59 = vpop.f32.mrf.mxu1 }
 0x124   : > { %v2081_v62 = vpop.f32.mrf.mxu0  ;;  %3100 = vmatmul.mubr.f32.gmra.mxu0 %v1092_v55  ;;  %v2211_v63 = vpop.f32.mrf.mxu1  ;;  %3230 = vmatmul.mubr.f32.gmra.mxu1 %v1094_v56  ;;  %v1854_v55 = vld [vmem:[%s10653_s26 + $0x3020] sm:$0xf]  ;;  %v1856_v56 = vld [vmem:[%s10653_s26 + $0x3030] sm:$0xf] }
 0x125   : > { %v10949_v0 = vadd.f32 %v2211_v63, %v2081_v62  ;;  %3104 = vmatprep.mubr.f32.mxu0 %v1220_v60  ;;  %3234 = vmatprep.mubr.f32.mxu1 %v1222_v61  ;;  %v335_v60 = vld [vmem:[%s10653_s26 + $0xa8] sm:$0xff]  ;;  %v337_v61 = vld [vmem:[%s10653_s26 + $0xb8] sm:$0xff] }
 0x126   : > { %v2083_v3 = vpop.f32.mrf.mxu0  ;;  %v2213_v4 = vpop.f32.mrf.mxu1 }
 0x127   : > { %v336_v3 = vld [vmem:[%s10653_s26 + $0xb0] sm:$0xff] }
 0x128   : > { %v2086_v8 = vpop.f32.mrf.mxu0  ;;  %3105 = vmatmul.mubr.f32.gmra.mxu0 %v1219_v1  ;;  %v2216_v9 = vpop.f32.mrf.mxu1  ;;  %3235 = vmatmul.mubr.f32.gmra.mxu1 %v1221_v2  ;;  %v334_v2 = vld [vmem:[%s10653_s26 + $0xa0] sm:$0xff] }
 0x129   : > { %v10955_v10 = vadd.f32 %v2216_v9, %v2086_v8  ;;  %3109 = vmatprep.mubr.f32.mxu0 %v1347_v5  ;;  %3239 = vmatprep.mubr.f32.mxu1 %v1349_v7  ;;  %v211_v7 = vld [vmem:[%s10663_s28 + $0xc0] sm:$0xff] }
 0x12a   : > { %v2088_v13 = vpop.f32.mrf.mxu0  ;;  %v2218_v14 = vpop.f32.mrf.mxu1  ;;  %v462_v8 = vld [vmem:[%s10653_s26 + $0x4a0] sm:$0xff] }
 0x12b   : > { %v216_v14 = vld [vmem:[%s10663_s28 + $0xe8] sm:$0xff] }
 0x12c   : > { %v2091_v18 = vpop.f32.mrf.mxu0  ;;  %3110 = vmatmul.mubr.f32.gmra.mxu0 %v1346_v11  ;;  %v2221_v19 = vpop.f32.mrf.mxu1  ;;  %3240 = vmatmul.mubr.f32.gmra.mxu1 %v1348_v12  ;;  %v213_v11 = vld [vmem:[%s10663_s28 + $0xd0] sm:$0xff] }
 0x12d   : > { %v10961_v20 = vadd.f32 %v2221_v19, %v2091_v18  ;;  %3114 = vmatprep.mubr.f32.mxu0 %v1474_v16  ;;  %3244 = vmatprep.mubr.f32.mxu1 %v1476_v17  ;;  %v464_v12 = vld [vmem:[%s10653_s26 + $0x4b0] sm:$0xff]  ;;  %v461_v18 = vld [vmem:[%s10653_s26 + $0x498] sm:$0xff]  ;;  %v463_v19 = vld [vmem:[%s10653_s26 + $0x4a8] sm:$0xff] }
 0x12e   : > { %v2093_v23 = vpop.f32.mrf.mxu0  ;;  %v2223_v25 = vpop.f32.mrf.mxu1  ;;  %v218_v16 = vld [vmem:[%s10663_s28 + $0xf8] sm:$0xff] }
 0x12f   : > { %v589_v23 = vld [vmem:[%s10653_s26 + $0x898] sm:$0xff]  ;;  %v591_v25 = vld [vmem:[%s10653_s26 + $0x8a8] sm:$0xff] }
 0x130   : > { %v2291_v28 = vpop.f32.mrf.mxu0  ;;  %3115 = vmatmul.mubr.f32.gmra.mxu0 %v1473_v21  ;;  %v2421_v29 = vpop.f32.mrf.mxu1  ;;  %3245 = vmatmul.mubr.f32.gmra.mxu1 %v1475_v22 }
 0x131   : > { %v2292_v31 = vadd.f32 %v2291_v28, %v10885_v30  ;;  %3119 = vmatprep.mubr.f32.mxu0 %v1601_v26  ;;  %3249 = vmatprep.mubr.f32.mxu1 %v1603_v27 }
 0x132   : > { %v2293_v35 = vpop.f32.mrf.mxu0  ;;  %v2423_v36 = vpop.f32.mrf.mxu1 }
 0x133   : > { %v10972_v40 = vadd.f32 %v2421_v29, %v2292_v31  ;;  %v588_v29 = vld [vmem:[%s10653_s26 + $0x890] sm:$0xff]  ;;  %v590_v31 = vld [vmem:[%s10653_s26 + $0x8a0] sm:$0xff] }
 0x134   : > { %v2296_v41 = vpop.f32.mrf.mxu0  ;;  %3120 = vmatmul.mubr.f32.gmra.mxu0 %v1600_v32  ;;  %v2426_v42 = vpop.f32.mrf.mxu1  ;;  %3250 = vmatmul.mubr.f32.gmra.mxu1 %v1602_v33  ;;  %v716_v35 = vld [vmem:[%s10653_s26 + $0xc90] sm:$0xff]  ;;  %v718_v36 = vld [vmem:[%s10653_s26 + $0xca0] sm:$0xff] }
 0x135   : > { %v2297_v30 = vadd.f32 %v2296_v41, %v10891_v39  ;;  %3124 = vmatprep.mubr.f32.mxu0 %v1728_v37  ;;  %3254 = vmatprep.mubr.f32.mxu1 %v1730_v38 }
 0x136   : > { %v2298_v46 = vpop.f32.mrf.mxu0  ;;  %v2428_v47 = vpop.f32.mrf.mxu1 }
 0x137   : > { %v10979_v51 = vadd.f32 %v2426_v42, %v2297_v30  ;;  %v715_v42 = vld [vmem:[%s10653_s26 + $0xc88] sm:$0xff]  ;;  %v717_v30 = vld [vmem:[%s10653_s26 + $0xc98] sm:$0xff] }
 0x138   : > { %v2301_v52 = vpop.f32.mrf.mxu0  ;;  %3125 = vmatmul.mubr.f32.gmra.mxu0 %v1727_v43  ;;  %v2431_v53 = vpop.f32.mrf.mxu1  ;;  %3255 = vmatmul.mubr.f32.gmra.mxu1 %v1729_v45  ;;  %v843_v46 = vld [vmem:[%s10653_s26 + $0x1088] sm:$0xff]  ;;  %v845_v47 = vld [vmem:[%s10653_s26 + $0x1098] sm:$0xff] }
 0x139   : > { %v2302_v39 = vadd.f32 %v2301_v52, %v10897_v48  ;;  %3129 = vmatprep.mubr.f32.mxu0 %v1855_v49  ;;  %3259 = vmatprep.mubr.f32.mxu1 %v1857_v50 }
 0x13a   : > { %v2303_v58 = vpop.f32.mrf.mxu0  ;;  %v2433_v59 = vpop.f32.mrf.mxu1 }
 0x13b   : > { %v10986_v62 = vadd.f32 %v2431_v53, %v2302_v39  ;;  %v842_v53 = vld [vmem:[%s10653_s26 + $0x1080] sm:$0xff]  ;;  %v844_v39 = vld [vmem:[%s10653_s26 + $0x1090] sm:$0xff] }
 0x13c   : > { %v2306_v63 = vpop.f32.mrf.mxu0  ;;  %3130 = vmatmul.mubr.f32.gmra.mxu0 %v1854_v55  ;;  %v2436_v1 = vpop.f32.mrf.mxu1  ;;  %3260 = vmatmul.mubr.f32.gmra.mxu1 %v1856_v56  ;;  %v970_v58 = vld [vmem:[%s10653_s26 + $0x1480] sm:$0xff]  ;;  %v972_v59 = vld [vmem:[%s10653_s26 + $0x1490] sm:$0xff] }
 0x13d   : > { %v2307_v48 = vadd.f32 %v2306_v63, %v10903_v57  ;;  %3329 = vmatprep.mubr.f32.mxu0 %v335_v60  ;;  %3459 = vmatprep.mubr.f32.mxu1 %v337_v61 }
 0x13e   : > { %v2308_v4 = vpop.f32.mrf.mxu0  ;;  %v2438_v5 = vpop.f32.mrf.mxu1 }
 0x13f   : > { %v10993_v9 = vadd.f32 %v2436_v1, %v2307_v48  ;;  %v969_v1 = vld [vmem:[%s10653_s26 + $0x1478] sm:$0xff]  ;;  %v971_v48 = vld [vmem:[%s10653_s26 + $0x1488] sm:$0xff] }
 0x140   : > { %v2311_v13 = vpop.f32.mrf.mxu0  ;;  %3330 = vmatmul.mubr.f32.vlgmr.msra.gmra.mxu0 %v334_v2  ;;  %v2441_v57 = vpop.f32.mrf.mxu1  ;;  %3460 = vmatmul.mubr.f32.vlgmr.msra.gmra.mxu1 %v336_v3  ;;  %v1097_v4 = vld [vmem:[%s10653_s26 + $0x1878] sm:$0xff]  ;;  %v1099_v5 = vld [vmem:[%s10653_s26 + $0x1888] sm:$0xff] }
 0x141   : > { %v2312_v17 = vadd.f32 %v2311_v13, %v10913_v6  ;;  %3556 = vmatpush1.xpose.msra.mxu0 %v211_v7  ;;  %3334 = vmatprep.mubr.f32.mxu0 %v462_v8  ;;  %v1098_v13 = vld [vmem:[%s10653_s26 + $0x1880] sm:$0xff] }
 0x142   : > { %v2313_v21 = vpop.f32.mrf.mxu0  ;;  %v2443_v22 = vpop.f32.mrf.mxu1  ;;  %3686 = vmatpush1.xpose.msra.mxu1 %v213_v11  ;;  %3464 = vmatprep.mubr.f32.mxu1 %v464_v12  ;;  %v1096_v12 = vld [vmem:[%s10653_s26 + $0x1870] sm:$0xff] }
 0x143   : > { %v11004_v26 = vadd.f32 %v2441_v57, %v2312_v17  ;;  %3815 = vmatprep.subr.mxu0 %v216_v14  ;;  %3945 = vmatprep.subr.mxu1 %v218_v16  ;;  %v1224_v16 = vld [vmem:[%s10653_s26 + $0x1c70] sm:$0xff]  ;;  %v1226_v17 = vld [vmem:[%s10653_s26 + $0x1c80] sm:$0xff]  ;;  %v1223_v22 = vld [vmem:[%s10653_s26 + $0x1c68] sm:$0xff] }
 0x144   : > { %v2316_v27 = vpop.f32.mrf.mxu0  ;;  %3335 = vmatmul.mubr.f32.gmra.mxu0 %v461_v18  ;;  %v2446_v6 = vpop.f32.mrf.mxu1  ;;  %3465 = vmatmul.mubr.f32.gmra.mxu1 %v463_v19 }
 0x145   : > { %v2317_v28 = vadd.f32 %v2316_v27, %v10919_v15  ;;  %3339 = vmatprep.mubr.f32.mxu0 %v589_v23  ;;  %3469 = vmatprep.mubr.f32.mxu1 %v591_v25  ;;  %v1225_v23 = vld [vmem:[%s10653_s26 + $0x1c78] sm:$0xff] }
 0x146   : > { %v2318_v32 = vpop.f32.mrf.mxu0  ;;  %v2448_v33 = vpop.f32.mrf.mxu1 }
 0x147   : > { %v11011_v37 = vadd.f32 %v2446_v6, %v2317_v28  ;;  %v1351_v6 = vld [vmem:[%s10653_s26 + $0x2068] sm:$0xff]  ;;  %v1353_v28 = vld [vmem:[%s10653_s26 + $0x2078] sm:$0xff]  ;;  %v1350_v33 = vld [vmem:[%s10653_s26 + $0x2060] sm:$0xff] }
 0x148   : > { %v2321_v38 = vpop.f32.mrf.mxu0  ;;  %3340 = vmatmul.mubr.f32.gmra.mxu0 %v588_v29  ;;  %v2451_v41 = vpop.f32.mrf.mxu1  ;;  %3470 = vmatmul.mubr.f32.gmra.mxu1 %v590_v31 }
 0x149   : > { %v2322_v15 = vadd.f32 %v2321_v38, %v10925_v24  ;;  %3344 = vmatprep.mubr.f32.mxu0 %v716_v35  ;;  %3474 = vmatprep.mubr.f32.mxu1 %v718_v36  ;;  %v1352_v35 = vld [vmem:[%s10653_s26 + $0x2070] sm:$0xff] }
 0x14a   : > { %v2323_v43 = vpop.f32.mrf.mxu0  ;;  %v2453_v45 = vpop.f32.mrf.mxu1 }
 0x14b   : > { %v11018_v49 = vadd.f32 %v2451_v41, %v2322_v15  ;;  %v1478_v41 = vld [vmem:[%s10653_s26 + $0x2460] sm:$0xff]  ;;  %v1480_v15 = vld [vmem:[%s10653_s26 + $0x2470] sm:$0xff]  ;;  %v1477_v45 = vld [vmem:[%s10653_s26 + $0x2458] sm:$0xff] }
 0x14c   : > { %v2326_v50 = vpop.f32.mrf.mxu0  ;;  %3345 = vmatmul.mubr.f32.gmra.mxu0 %v715_v42  ;;  %v2456_v52 = vpop.f32.mrf.mxu1  ;;  %3475 = vmatmul.mubr.f32.gmra.mxu1 %v717_v30 }
 0x14d   : > { %v2327_v24 = vadd.f32 %v2326_v50, %v10931_v34  ;;  %3349 = vmatprep.mubr.f32.mxu0 %v843_v46  ;;  %3479 = vmatprep.mubr.f32.mxu1 %v845_v47  ;;  %v1479_v46 = vld [vmem:[%s10653_s26 + $0x2468] sm:$0xff] }
 0x14e   : > { %v2328_v55 = vpop.f32.mrf.mxu0  ;;  %v2458_v56 = vpop.f32.mrf.mxu1 }
 0x14f   : > { %v11025_v60 = vadd.f32 %v2456_v52, %v2327_v24  ;;  %v1605_v52 = vld [vmem:[%s10653_s26 + $0x2858] sm:$0xff]  ;;  %v1607_v24 = vld [vmem:[%s10653_s26 + $0x2868] sm:$0xff]  ;;  %v1604_v56 = vld [vmem:[%s10653_s26 + $0x2850] sm:$0xff] }
 0x150   : > { %v2331_v61 = vpop.f32.mrf.mxu0  ;;  %3350 = vmatmul.mubr.f32.gmra.mxu0 %v842_v53  ;;  %v2461_v63 = vpop.f32.mrf.mxu1  ;;  %3480 = vmatmul.mubr.f32.gmra.mxu1 %v844_v39 }
 0x151   : > { %v2332_v34 = vadd.f32 %v2331_v61, %v10937_v44  ;;  %3354 = vmatprep.mubr.f32.mxu0 %v970_v58  ;;  %3484 = vmatprep.mubr.f32.mxu1 %v972_v59  ;;  %v1606_v58 = vld [vmem:[%s10653_s26 + $0x2860] sm:$0xff] }
 0x152   : > { %v2333_v2 = vpop.f32.mrf.mxu0  ;;  %v2463_v3 = vpop.f32.mrf.mxu1 }
 0x153   : > { %v11032_v7 = vadd.f32 %v2461_v63, %v2332_v34  ;;  %v1732_v63 = vld [vmem:[%s10653_s26 + $0x2c50] sm:$0xff]  ;;  %v1734_v34 = vld [vmem:[%s10653_s26 + $0x2c60] sm:$0xff]  ;;  %v1731_v3 = vld [vmem:[%s10653_s26 + $0x2c48] sm:$0xff] }
 0x154   : > { %v2336_v8 = vpop.f32.mrf.mxu0  ;;  %3355 = vmatmul.mubr.f32.gmra.mxu0 %v969_v1  ;;  %v2466_v11 = vpop.f32.mrf.mxu1  ;;  %3485 = vmatmul.mubr.f32.gmra.mxu1 %v971_v48 }
 0x155   : > { %v2337_v44 = vadd.f32 %v2336_v8, %v10943_v54  ;;  %3359 = vmatprep.mubr.f32.mxu0 %v1097_v4  ;;  %3489 = vmatprep.mubr.f32.mxu1 %v1099_v5  ;;  %v1733_v4 = vld [vmem:[%s10653_s26 + $0x2c58] sm:$0xff] }
 0x156   : > { %v2338_v57 = vpop.f32.mrf.mxu0  ;;  %v2468_v14 = vpop.f32.mrf.mxu1 }
 0x157   : > { %v11039_v18 = vadd.f32 %v2466_v11, %v2337_v44  ;;  %v1859_v11 = vld [vmem:[%s10653_s26 + $0x3048] sm:$0xf]  ;;  %v1861_v44 = vld [vmem:[%s10653_s26 + $0x3058] sm:$0xf]  ;;  %v1858_v14 = vld [vmem:[%s10653_s26 + $0x3040] sm:$0xf] }
 0x158   : > { %v2341_v19 = vpop.f32.mrf.mxu0  ;;  %3360 = vmatmul.mubr.f32.gmra.mxu0 %v1096_v12  ;;  %v2471_v21 = vpop.f32.mrf.mxu1  ;;  %3490 = vmatmul.mubr.f32.gmra.mxu1 %v1098_v13 }
 0x159   : > { %v2342_v54 = vadd.f32 %v2341_v19, %v10949_v0  ;;  %3364 = vmatprep.mubr.f32.mxu0 %v1224_v16  ;;  %3494 = vmatprep.mubr.f32.mxu1 %v1226_v17  ;;  %v1860_v16 = vld [vmem:[%s10653_s26 + $0x3050] sm:$0xf] }
 0x15a   : > { %v2343_v25 = vpop.f32.mrf.mxu0  ;;  %v2473_v27 = vpop.f32.mrf.mxu1 }
 0x15b   : > { %v11046_v29 = vadd.f32 %v2471_v21, %v2342_v54  ;;  %v339_v21 = vld [vmem:[%s10653_s26 + $0xc8] sm:$0xff]  ;;  %v341_v54 = vld [vmem:[%s10653_s26 + $0xd8] sm:$0xff]  ;;  %v338_v27 = vld [vmem:[%s10653_s26 + $0xc0] sm:$0xff] }
 0x15c   : > { %v2346_v31 = vpop.f32.mrf.mxu0  ;;  %3365 = vmatmul.mubr.f32.gmra.mxu0 %v1223_v22  ;;  %v2476_v32 = vpop.f32.mrf.mxu1  ;;  %3495 = vmatmul.mubr.f32.gmra.mxu1 %v1225_v23 }
 0x15d   : > { %v2347_v0 = vadd.f32 %v2346_v31, %v10955_v10  ;;  %3369 = vmatprep.mubr.f32.mxu0 %v1351_v6  ;;  %3499 = vmatprep.mubr.f32.mxu1 %v1353_v28  ;;  %v340_v6 = vld [vmem:[%s10653_s26 + $0xd0] sm:$0xff] }
 0x15e   : > { %v2348_v36 = vpop.f32.mrf.mxu0  ;;  %v2478_v38 = vpop.f32.mrf.mxu1 }
 0x15f   : > { %v11053_v42 = vadd.f32 %v2476_v32, %v2347_v0  ;;  %v215_v32 = vld [vmem:[%s10663_s28 + $0xe0] sm:$0xff]  ;;  %v468_v36 = vld [vmem:[%s10653_s26 + $0x4d0] sm:$0xff] }
 0x160   : > { %v2351_v30 = vpop.f32.mrf.mxu0  ;;  %3370 = vmatmul.mubr.f32.gmra.mxu0 %v1350_v33  ;;  %v2481_v43 = vpop.f32.mrf.mxu1  ;;  %3500 = vmatmul.mubr.f32.gmra.mxu1 %v1352_v35  ;;  %v466_v0 = vld [vmem:[%s10653_s26 + $0x4c0] sm:$0xff]  ;;  %v217_v35 = vld [vmem:[%s10663_s28 + $0xf0] sm:$0xff] }
 0x161   : > { %v2352_v10 = vadd.f32 %v2351_v30, %v10961_v20  ;;  %3374 = vmatprep.mubr.f32.mxu0 %v1478_v41  ;;  %3504 = vmatprep.mubr.f32.mxu1 %v1480_v15  ;;  %v220_v41 = vld [vmem:[%s10663_s28 + $0x108] sm:$0xff]  ;;  %v222_v15 = vld [vmem:[%s10663_s28 + $0x118] sm:$0xff] }
 0x162   : > { %v2353_v47 = vpop.f32.mrf.mxu0  ;;  %v2483_v50 = vpop.f32.mrf.mxu1 }
 0x163   : > { %v11060_v53 = vadd.f32 %v2481_v43, %v2352_v10  ;;  %v465_v43 = vld [vmem:[%s10653_s26 + $0x4b8] sm:$0xff]  ;;  %v467_v10 = vld [vmem:[%s10653_s26 + $0x4c8] sm:$0xff] }
 0x164   : > { %v2551_v39 = vpop.f32.mrf.mxu0  ;;  %3375 = vmatmul.mubr.f32.gmra.mxu0 %v1477_v45  ;;  %v2681_v55 = vpop.f32.mrf.mxu1  ;;  %3505 = vmatmul.mubr.f32.gmra.mxu1 %v1479_v46  ;;  %v593_v47 = vld [vmem:[%s10653_s26 + $0x8b8] sm:$0xff]  ;;  %v595_v50 = vld [vmem:[%s10653_s26 + $0x8c8] sm:$0xff] }
 0x165   : > { %v2552_v20 = vadd.f32 %v2551_v39, %v10972_v40  ;;  %3379 = vmatprep.mubr.f32.mxu0 %v1605_v52  ;;  %3509 = vmatprep.mubr.f32.mxu1 %v1607_v24 }
 0x166   : > { %v2553_v59 = vpop.f32.mrf.mxu0  ;;  %v2683_v61 = vpop.f32.mrf.mxu1 }
 0x167   : > { %v11067_v1 = vadd.f32 %v2681_v55, %v2552_v20  ;;  %v592_v55 = vld [vmem:[%s10653_s26 + $0x8b0] sm:$0xff]  ;;  %v594_v20 = vld [vmem:[%s10653_s26 + $0x8c0] sm:$0xff] }
 0x168   : > { %v2556_v48 = vpop.f32.mrf.mxu0  ;;  %3380 = vmatmul.mubr.f32.gmra.mxu0 %v1604_v56  ;;  %v2686_v2 = vpop.f32.mrf.mxu1  ;;  %3510 = vmatmul.mubr.f32.gmra.mxu1 %v1606_v58  ;;  %v720_v59 = vld [vmem:[%s10653_s26 + $0xcb0] sm:$0xff]  ;;  %v722_v61 = vld [vmem:[%s10653_s26 + $0xcc0] sm:$0xff] }
 0x169   : > { %v2557_v40 = vadd.f32 %v2556_v48, %v10979_v51  ;;  %3384 = vmatprep.mubr.f32.mxu0 %v1732_v63  ;;  %3514 = vmatprep.mubr.f32.mxu1 %v1734_v34 }
 0x16a   : > { %v2558_v5 = vpop.f32.mrf.mxu0  ;;  %v2688_v8 = vpop.f32.mrf.mxu1 }
 0x16b   : > { %v11074_v12 = vadd.f32 %v2686_v2, %v2557_v40  ;;  %v719_v2 = vld [vmem:[%s10653_s26 + $0xca8] sm:$0xff]  ;;  %v721_v40 = vld [vmem:[%s10653_s26 + $0xcb8] sm:$0xff] }
 0x16c   : > { %v2561_v13 = vpop.f32.mrf.mxu0  ;;  %3385 = vmatmul.mubr.f32.gmra.mxu0 %v1731_v3  ;;  %v2691_v57 = vpop.f32.mrf.mxu1  ;;  %3515 = vmatmul.mubr.f32.gmra.mxu1 %v1733_v4  ;;  %v847_v5 = vld [vmem:[%s10653_s26 + $0x10a8] sm:$0xff]  ;;  %v849_v8 = vld [vmem:[%s10653_s26 + $0x10b8] sm:$0xff] }
 0x16d   : > { %v2562_v51 = vadd.f32 %v2561_v13, %v10986_v62  ;;  %3389 = vmatprep.mubr.f32.mxu0 %v1859_v11  ;;  %3519 = vmatprep.mubr.f32.mxu1 %v1861_v44 }
 0x16e   : > { %v2563_v17 = vpop.f32.mrf.mxu0  ;;  %v2693_v19 = vpop.f32.mrf.mxu1 }
 0x16f   : > { %v11081_v22 = vadd.f32 %v2691_v57, %v2562_v51  ;;  %v846_v57 = vld [vmem:[%s10653_s26 + $0x10a0] sm:$0xff]  ;;  %v848_v51 = vld [vmem:[%s10653_s26 + $0x10b0] sm:$0xff] }
 0x170   : > { %v2566_v23 = vpop.f32.mrf.mxu0  ;;  %3390 = vmatmul.mubr.f32.gmra.mxu0 %v1858_v14  ;;  %v2696_v25 = vpop.f32.mrf.mxu1  ;;  %3520 = vmatmul.mubr.f32.gmra.mxu1 %v1860_v16  ;;  %v974_v17 = vld [vmem:[%s10653_s26 + $0x14a0] sm:$0xff]  ;;  %v976_v19 = vld [vmem:[%s10653_s26 + $0x14b0] sm:$0xff] }
 0x171   : > { %v2567_v62 = vadd.f32 %v2566_v23, %v10993_v9  ;;  %3589 = vmatprep.mubr.f32.mxu0 %v339_v21  ;;  %3719 = vmatprep.mubr.f32.mxu1 %v341_v54 }
 0x172   : > { %v2568_v28 = vpop.f32.mrf.mxu0  ;;  %v2698_v31 = vpop.f32.mrf.mxu1 }
 0x173   : > { %v11088_v33 = vadd.f32 %v2696_v25, %v2567_v62  ;;  %v973_v25 = vld [vmem:[%s10653_s26 + $0x1498] sm:$0xff]  ;;  %v975_v62 = vld [vmem:[%s10653_s26 + $0x14a8] sm:$0xff] }
 0x174   : > { %v2571_v38 = vpop.f32.mrf.mxu0  ;;  %3590 = vmatmul.mubr.f32.vlgmr.msra.gmra.mxu0 %v338_v27  ;;  %v2701_v9 = vpop.f32.mrf.mxu1  ;;  %3720 = vmatmul.mubr.f32.vlgmr.msra.gmra.mxu1 %v340_v6  ;;  %v1101_v28 = vld [vmem:[%s10653_s26 + $0x1898] sm:$0xff]  ;;  %v1103_v31 = vld [vmem:[%s10653_s26 + $0x18a8] sm:$0xff] }
 0x175   : > { %v2572_v30 = vadd.f32 %v2571_v38, %v11004_v26  ;;  %3816 = vmatpush1.xpose.msra.mxu0 %v215_v32  ;;  %3594 = vmatprep.mubr.f32.mxu0 %v466_v0  ;;  %v1102_v38 = vld [vmem:[%s10653_s26 + $0x18a0] sm:$0xff] }
 0x176   : > { %v2573_v45 = vpop.f32.mrf.mxu0  ;;  %v2703_v46 = vpop.f32.mrf.mxu1  ;;  %3946 = vmatpush1.xpose.msra.mxu1 %v217_v35  ;;  %3724 = vmatprep.mubr.f32.mxu1 %v468_v36  ;;  %v1100_v36 = vld [vmem:[%s10653_s26 + $0x1890] sm:$0xff] }
 0x177   : > { %v11099_v52 = vadd.f32 %v2701_v9, %v2572_v30  ;;  %4075 = vmatprep.subr.mxu0 %v220_v41  ;;  %4205 = vmatprep.subr.mxu1 %v222_v15  ;;  %v1228_v15 = vld [vmem:[%s10653_s26 + $0x1c90] sm:$0xff]  ;;  %v1230_v30 = vld [vmem:[%s10653_s26 + $0x1ca0] sm:$0xff]  ;;  %v1227_v46 = vld [vmem:[%s10653_s26 + $0x1c88] sm:$0xff] }
 0x178   : > { %v2576_v24 = vpop.f32.mrf.mxu0  ;;  %3595 = vmatmul.mubr.f32.gmra.mxu0 %v465_v43  ;;  %v2706_v26 = vpop.f32.mrf.mxu1  ;;  %3725 = vmatmul.mubr.f32.gmra.mxu1 %v467_v10 }
 0x179   : > { %v2577_v39 = vadd.f32 %v2576_v24, %v11011_v37  ;;  %3599 = vmatprep.mubr.f32.mxu0 %v593_v47  ;;  %3729 = vmatprep.mubr.f32.mxu1 %v595_v50  ;;  %v1229_v47 = vld [vmem:[%s10653_s26 + $0x1c98] sm:$0xff] }
 0x17a   : > { %v2578_v56 = vpop.f32.mrf.mxu0  ;;  %v2708_v58 = vpop.f32.mrf.mxu1 }
 0x17b   : > { %v11106_v63 = vadd.f32 %v2706_v26, %v2577_v39  ;;  %v1355_v26 = vld [vmem:[%s10653_s26 + $0x2088] sm:$0xff]  ;;  %v1357_v39 = vld [vmem:[%s10653_s26 + $0x2098] sm:$0xff]  ;;  %v1354_v58 = vld [vmem:[%s10653_s26 + $0x2080] sm:$0xff] }
 0x17c   : > { %v2581_v34 = vpop.f32.mrf.mxu0  ;;  %3600 = vmatmul.mubr.f32.gmra.mxu0 %v592_v55  ;;  %v2711_v48 = vpop.f32.mrf.mxu1  ;;  %3730 = vmatmul.mubr.f32.gmra.mxu1 %v594_v20 }
 0x17d   : > { %v2582_v37 = vadd.f32 %v2581_v34, %v11018_v49  ;;  %3604 = vmatprep.mubr.f32.mxu0 %v720_v59  ;;  %3734 = vmatprep.mubr.f32.mxu1 %v722_v61  ;;  %v1356_v59 = vld [vmem:[%s10653_s26 + $0x2090] sm:$0xff] }
 0x17e   : > { %v2583_v3 = vpop.f32.mrf.mxu0  ;;  %v2713_v4 = vpop.f32.mrf.mxu1 }
 0x17f   : > { %v11113_v11 = vadd.f32 %v2711_v48, %v2582_v37  ;;  %v1482_v48 = vld [vmem:[%s10653_s26 + $0x2480] sm:$0xff]  ;;  %v1484_v37 = vld [vmem:[%s10653_s26 + $0x2490] sm:$0xff]  ;;  %v1481_v4 = vld [vmem:[%s10653_s26 + $0x2478] sm:$0xff] }
 0x180   : > { %v2586_v44 = vpop.f32.mrf.mxu0  ;;  %3605 = vmatmul.mubr.f32.gmra.mxu0 %v719_v2  ;;  %v2716_v13 = vpop.f32.mrf.mxu1  ;;  %3735 = vmatmul.mubr.f32.gmra.mxu1 %v721_v40 }
 0x181   : > { %v2587_v49 = vadd.f32 %v2586_v44, %v11025_v60  ;;  %3609 = vmatprep.mubr.f32.mxu0 %v847_v5  ;;  %3739 = vmatprep.mubr.f32.mxu1 %v849_v8  ;;  %v1483_v5 = vld [vmem:[%s10653_s26 + $0x2488] sm:$0xff] }
 0x182   : > { %v2588_v14 = vpop.f32.mrf.mxu0  ;;  %v2718_v16 = vpop.f32.mrf.mxu1 }
 0x183   : > { %v11120_v21 = vadd.f32 %v2716_v13, %v2587_v49  ;;  %v1609_v13 = vld [vmem:[%s10653_s26 + $0x2878] sm:$0xff]  ;;  %v1611_v49 = vld [vmem:[%s10653_s26 + $0x2888] sm:$0xff]  ;;  %v1608_v16 = vld [vmem:[%s10653_s26 + $0x2870] sm:$0xff] }
 0x184   : > { %v2591_v54 = vpop.f32.mrf.mxu0  ;;  %3610 = vmatmul.mubr.f32.gmra.mxu0 %v846_v57  ;;  %v2721_v23 = vpop.f32.mrf.mxu1  ;;  %3740 = vmatmul.mubr.f32.gmra.mxu1 %v848_v51 }
 0x185   : > { %v2592_v60 = vadd.f32 %v2591_v54, %v11032_v7  ;;  %3614 = vmatprep.mubr.f32.mxu0 %v974_v17  ;;  %3744 = vmatprep.mubr.f32.mxu1 %v976_v19  ;;  %v1610_v17 = vld [vmem:[%s10653_s26 + $0x2880] sm:$0xff] }
 0x186   : > { %v2593_v27 = vpop.f32.mrf.mxu0  ;;  %v2723_v6 = vpop.f32.mrf.mxu1 }
 0x187   : > { %v11127_v32 = vadd.f32 %v2721_v23, %v2592_v60  ;;  %v1736_v23 = vld [vmem:[%s10653_s26 + $0x2c70] sm:$0xff]  ;;  %v1738_v60 = vld [vmem:[%s10653_s26 + $0x2c80] sm:$0xff]  ;;  %v1735_v6 = vld [vmem:[%s10653_s26 + $0x2c68] sm:$0xff] }
 0x188   : > { %v2596_v0 = vpop.f32.mrf.mxu0  ;;  %3615 = vmatmul.mubr.f32.gmra.mxu0 %v973_v25  ;;  %v2726_v35 = vpop.f32.mrf.mxu1  ;;  %3745 = vmatmul.mubr.f32.gmra.mxu1 %v975_v62 }
 0x189   : > { %v2597_v7 = vadd.f32 %v2596_v0, %v11039_v18  ;;  %3619 = vmatprep.mubr.f32.mxu0 %v1101_v28  ;;  %3749 = vmatprep.mubr.f32.mxu1 %v1103_v31  ;;  %v1737_v28 = vld [vmem:[%s10653_s26 + $0x2c78] sm:$0xff] }
 0x18a   : > { %v2598_v9 = vpop.f32.mrf.mxu0  ;;  %v2728_v41 = vpop.f32.mrf.mxu1 }
 0x18b   : > { %v11134_v43 = vadd.f32 %v2726_v35, %v2597_v7  ;;  %v1863_v35 = vld [vmem:[%s10653_s26 + $0x3068] sm:$0xf]  ;;  %v1865_v7 = vld [vmem:[%s10653_s26 + $0x3078] sm:$0xf]  ;;  %v1862_v41 = vld [vmem:[%s10653_s26 + $0x3060] sm:$0xf] }
 0x18c   : > { %v2601_v10 = vpop.f32.mrf.mxu0  ;;  %3620 = vmatmul.mubr.f32.gmra.mxu0 %v1100_v36  ;;  %v2731_v45 = vpop.f32.mrf.mxu1  ;;  %3750 = vmatmul.mubr.f32.gmra.mxu1 %v1102_v38 }
 0x18d   : > { %v2602_v18 = vadd.f32 %v2601_v10, %v11046_v29  ;;  %3624 = vmatprep.mubr.f32.mxu0 %v1228_v15  ;;  %3754 = vmatprep.mubr.f32.mxu1 %v1230_v30  ;;  %v1864_v15 = vld [vmem:[%s10653_s26 + $0x3070] sm:$0xf] }
 0x18e   : > { %v2603_v50 = vpop.f32.mrf.mxu0  ;;  %v2733_v24 = vpop.f32.mrf.mxu1 }
 0x18f   : > { %v11141_v55 = vadd.f32 %v2731_v45, %v2602_v18  ;;  %v343_v45 = vld [vmem:[%s10653_s26 + $0xe8] sm:$0xff]  ;;  %v345_v18 = vld [vmem:[%s10653_s26 + $0xf8] sm:$0xff]  ;;  %v342_v24 = vld [vmem:[%s10653_s26 + $0xe0] sm:$0xff] }
 0x190   : > { %v2606_v20 = vpop.f32.mrf.mxu0  ;;  %3625 = vmatmul.mubr.f32.gmra.mxu0 %v1227_v46  ;;  %v2736_v56 = vpop.f32.mrf.mxu1  ;;  %3755 = vmatmul.mubr.f32.gmra.mxu1 %v1229_v47 }
 0x191   : > { %v2607_v29 = vadd.f32 %v2606_v20, %v11053_v42  ;;  %3629 = vmatprep.mubr.f32.mxu0 %v1355_v26  ;;  %3759 = vmatprep.mubr.f32.mxu1 %v1357_v39  ;;  %v344_v26 = vld [vmem:[%s10653_s26 + $0xf0] sm:$0xff] }
 0x192   : > { %v2608_v61 = vpop.f32.mrf.mxu0  ;;  %v2738_v34 = vpop.f32.mrf.mxu1 }
 0x193   : > { %v11148_v2 = vadd.f32 %v2736_v56, %v2607_v29  ;;  %v219_v56 = vld [vmem:[%s10663_s28 + $0x100] sm:$0xff]  ;;  %v472_v61 = vld [vmem:[%s10653_s26 + $0x4f0] sm:$0xff] }
 0x194   : > { %v2611_v40 = vpop.f32.mrf.mxu0  ;;  %3630 = vmatmul.mubr.f32.gmra.mxu0 %v1354_v58  ;;  %v2741_v3 = vpop.f32.mrf.mxu1  ;;  %3760 = vmatmul.mubr.f32.gmra.mxu1 %v1356_v59  ;;  %v470_v29 = vld [vmem:[%s10653_s26 + $0x4e0] sm:$0xff]  ;;  %v221_v59 = vld [vmem:[%s10663_s28 + $0x110] sm:$0xff] }
 0x195   : > { %v2612_v42 = vadd.f32 %v2611_v40, %v11060_v53  ;;  %3634 = vmatprep.mubr.f32.mxu0 %v1482_v48  ;;  %3764 = vmatprep.mubr.f32.mxu1 %v1484_v37  ;;  %v224_v48 = vld [vmem:[%s10663_s28 + $0x128] sm:$0xff]  ;;  %v226_v37 = vld [vmem:[%s10663_s28 + $0x138] sm:$0xff] }
 0x196   : > { %v2613_v8 = vpop.f32.mrf.mxu0  ;;  %v2743_v44 = vpop.f32.mrf.mxu1 }
 0x197   : > { %v11155_v57 = vadd.f32 %v2741_v3, %v2612_v42  ;;  %v469_v3 = vld [vmem:[%s10653_s26 + $0x4d8] sm:$0xff]  ;;  %v471_v42 = vld [vmem:[%s10653_s26 + $0x4e8] sm:$0xff] }
 0x198   : > { %v2811_v51 = vpop.f32.mrf.mxu0  ;;  %3635 = vmatmul.mubr.f32.gmra.mxu0 %v1481_v4  ;;  %v2941_v14 = vpop.f32.mrf.mxu1  ;;  %3765 = vmatmul.mubr.f32.gmra.mxu1 %v1483_v5  ;;  %v597_v8 = vld [vmem:[%s10653_s26 + $0x8d8] sm:$0xff]  ;;  %v599_v44 = vld [vmem:[%s10653_s26 + $0x8e8] sm:$0xff] }
 0x199   : > { %v2812_v53 = vadd.f32 %v2811_v51, %v11067_v1  ;;  %3639 = vmatprep.mubr.f32.mxu0 %v1609_v13  ;;  %3769 = vmatprep.mubr.f32.mxu1 %v1611_v49 }
 0x19a   : > { %v2813_v19 = vpop.f32.mrf.mxu0  ;;  %v2943_v54 = vpop.f32.mrf.mxu1 }
 0x19b   : > { %v11162_v25 = vadd.f32 %v2941_v14, %v2812_v53  ;;  %v596_v14 = vld [vmem:[%s10653_s26 + $0x8d0] sm:$0xff]  ;;  %v598_v53 = vld [vmem:[%s10653_s26 + $0x8e0] sm:$0xff] }
 0x19c   : > { %v2816_v62 = vpop.f32.mrf.mxu0  ;;  %3640 = vmatmul.mubr.f32.gmra.mxu0 %v1608_v16  ;;  %v2946_v27 = vpop.f32.mrf.mxu1  ;;  %3770 = vmatmul.mubr.f32.gmra.mxu1 %v1610_v17  ;;  %v724_v19 = vld [vmem:[%s10653_s26 + $0xcd0] sm:$0xff]  ;;  %v726_v54 = vld [vmem:[%s10653_s26 + $0xce0] sm:$0xff] }
 0x19d   : > { %v2817_v1 = vadd.f32 %v2816_v62, %v11074_v12  ;;  %3644 = vmatprep.mubr.f32.mxu0 %v1736_v23  ;;  %3774 = vmatprep.mubr.f32.mxu1 %v1738_v60 }
 0x19e   : > { %v2818_v31 = vpop.f32.mrf.mxu0  ;;  %v2948_v0 = vpop.f32.mrf.mxu1 }
 0x19f   : > { %v11169_v36 = vadd.f32 %v2946_v27, %v2817_v1  ;;  %v723_v27 = vld [vmem:[%s10653_s26 + $0xcc8] sm:$0xff]  ;;  %v725_v1 = vld [vmem:[%s10653_s26 + $0xcd8] sm:$0xff] }
 0x1a0   : > { %v2821_v38 = vpop.f32.mrf.mxu0  ;;  %3645 = vmatmul.mubr.f32.gmra.mxu0 %v1735_v6  ;;  %v2951_v9 = vpop.f32.mrf.mxu1  ;;  %3775 = vmatmul.mubr.f32.gmra.mxu1 %v1737_v28  ;;  %v851_v31 = vld [vmem:[%s10653_s26 + $0x10c8] sm:$0xff]  ;;  %v853_v0 = vld [vmem:[%s10653_s26 + $0x10d8] sm:$0xff] }
 0x1a1   : > { %v2822_v12 = vadd.f32 %v2821_v38, %v11081_v22  ;;  %3649 = vmatprep.mubr.f32.mxu0 %v1863_v35  ;;  %3779 = vmatprep.mubr.f32.mxu1 %v1865_v7 }
 0x1a2   : > { %v2823_v30 = vpop.f32.mrf.mxu0  ;;  %v2953_v10 = vpop.f32.mrf.mxu1 }
 0x1a3   : > { %v11176_v46 = vadd.f32 %v2951_v9, %v2822_v12  ;;  %v850_v9 = vld [vmem:[%s10653_s26 + $0x10c0] sm:$0xff]  ;;  %v852_v12 = vld [vmem:[%s10653_s26 + $0x10d0] sm:$0xff] }
 0x1a4   : > { %v2826_v47 = vpop.f32.mrf.mxu0  ;;  %3650 = vmatmul.mubr.f32.gmra.mxu0 %v1862_v41  ;;  %v2956_v50 = vpop.f32.mrf.mxu1  ;;  %3780 = vmatmul.mubr.f32.gmra.mxu1 %v1864_v15  ;;  %v978_v30 = vld [vmem:[%s10653_s26 + $0x14c0] sm:$0xff]  ;;  %v980_v10 = vld [vmem:[%s10653_s26 + $0x14d0] sm:$0xff] }
 0x1a5   : > { %v2827_v22 = vadd.f32 %v2826_v47, %v11088_v33  ;;  %3849 = vmatprep.mubr.f32.mxu0 %v343_v45  ;;  %3979 = vmatprep.mubr.f32.mxu1 %v345_v18 }
 0x1a6   : > { %v2828_v39 = vpop.f32.mrf.mxu0  ;;  %v2958_v20 = vpop.f32.mrf.mxu1 }
 0x1a7   : > { %v11183_v58 = vadd.f32 %v2956_v50, %v2827_v22  ;;  %v977_v50 = vld [vmem:[%s10653_s26 + $0x14b8] sm:$0xff]  ;;  %v979_v22 = vld [vmem:[%s10653_s26 + $0x14c8] sm:$0xff] }
 0x1a8   : > { %v2831_v34 = vpop.f32.mrf.mxu0  ;;  %3850 = vmatmul.mubr.f32.vlgmr.msra.gmra.mxu0 %v342_v24  ;;  %v2961_v33 = vpop.f32.mrf.mxu1  ;;  %3980 = vmatmul.mubr.f32.vlgmr.msra.gmra.mxu1 %v344_v26  ;;  %v1105_v39 = vld [vmem:[%s10653_s26 + $0x18b8] sm:$0xff]  ;;  %v1107_v20 = vld [vmem:[%s10653_s26 + $0x18c8] sm:$0xff] }
 0x1a9   : > { %v2832_v40 = vadd.f32 %v2831_v34, %v11099_v52  ;;  %4076 = vmatpush1.xpose.msra.mxu0 %v219_v56  ;;  %3854 = vmatprep.mubr.f32.mxu0 %v470_v29  ;;  %v1106_v34 = vld [vmem:[%s10653_s26 + $0x18c0] sm:$0xff] }
 0x1aa   : > { %v2833_v4 = vpop.f32.mrf.mxu0  ;;  %v2963_v5 = vpop.f32.mrf.mxu1  ;;  %4206 = vmatpush1.xpose.msra.mxu1 %v221_v59  ;;  %3984 = vmatprep.mubr.f32.mxu1 %v472_v61  ;;  %v1104_v61 = vld [vmem:[%s10653_s26 + $0x18b0] sm:$0xff] }
 0x1ab   : > { %v11194_v13 = vadd.f32 %v2961_v33, %v2832_v40  ;;  %4335 = vmatprep.subr.mxu0 %v224_v48  ;;  %4465 = vmatprep.subr.mxu1 %v226_v37  ;;  %v1232_v37 = vld [vmem:[%s10653_s26 + $0x1cb0] sm:$0xff]  ;;  %v1234_v40 = vld [vmem:[%s10653_s26 + $0x1cc0] sm:$0xff]  ;;  %v1231_v5 = vld [vmem:[%s10653_s26 + $0x1ca8] sm:$0xff] }
 0x1ac   : > { %v2836_v49 = vpop.f32.mrf.mxu0  ;;  %3855 = vmatmul.mubr.f32.gmra.mxu0 %v469_v3  ;;  %v2966_v52 = vpop.f32.mrf.mxu1  ;;  %3985 = vmatmul.mubr.f32.gmra.mxu1 %v471_v42 }
 0x1ad   : > { %v2837_v51 = vadd.f32 %v2836_v49, %v11106_v63  ;;  %3859 = vmatprep.mubr.f32.mxu0 %v597_v8  ;;  %3989 = vmatprep.mubr.f32.mxu1 %v599_v44  ;;  %v1233_v8 = vld [vmem:[%s10653_s26 + $0x1cb8] sm:$0xff] }
 0x1ae   : > { %v2838_v16 = vpop.f32.mrf.mxu0  ;;  %v2968_v17 = vpop.f32.mrf.mxu1 }
 0x1af   : > { %v11201_v23 = vadd.f32 %v2966_v52, %v2837_v51  ;;  %v1359_v52 = vld [vmem:[%s10653_s26 + $0x20a8] sm:$0xff]  ;;  %v1361_v51 = vld [vmem:[%s10653_s26 + $0x20b8] sm:$0xff]  ;;  %v1358_v17 = vld [vmem:[%s10653_s26 + $0x20a0] sm:$0xff] }
 0x1b0   : > { %v2841_v60 = vpop.f32.mrf.mxu0  ;;  %3860 = vmatmul.mubr.f32.gmra.mxu0 %v596_v14  ;;  %v2971_v62 = vpop.f32.mrf.mxu1  ;;  %3990 = vmatmul.mubr.f32.gmra.mxu1 %v598_v53 }
 0x1b1   : > { %v2842_v63 = vadd.f32 %v2841_v60, %v11113_v11  ;;  %3864 = vmatprep.mubr.f32.mxu0 %v724_v19  ;;  %3994 = vmatprep.mubr.f32.mxu1 %v726_v54  ;;  %v1360_v19 = vld [vmem:[%s10653_s26 + $0x20b0] sm:$0xff] }
 0x1b2   : > { %v2843_v6 = vpop.f32.mrf.mxu0  ;;  %v2973_v28 = vpop.f32.mrf.mxu1 }
 0x1b3   : > { %v11208_v35 = vadd.f32 %v2971_v62, %v2842_v63  ;;  %v1486_v62 = vld [vmem:[%s10653_s26 + $0x24a0] sm:$0xff]  ;;  %v1488_v63 = vld [vmem:[%s10653_s26 + $0x24b0] sm:$0xff]  ;;  %v1485_v28 = vld [vmem:[%s10653_s26 + $0x2498] sm:$0xff] }
 0x1b4   : > { %v2846_v7 = vpop.f32.mrf.mxu0  ;;  %3865 = vmatmul.mubr.f32.gmra.mxu0 %v723_v27  ;;  %v2976_v38 = vpop.f32.mrf.mxu1  ;;  %3995 = vmatmul.mubr.f32.gmra.mxu1 %v725_v1 }
 0x1b5   : > { %v2847_v11 = vadd.f32 %v2846_v7, %v11120_v21  ;;  %3869 = vmatprep.mubr.f32.mxu0 %v851_v31  ;;  %3999 = vmatprep.mubr.f32.mxu1 %v853_v0  ;;  %v1487_v31 = vld [vmem:[%s10653_s26 + $0x24a8] sm:$0xff] }
 0x1b6   : > { %v2848_v41 = vpop.f32.mrf.mxu0  ;;  %v2978_v15 = vpop.f32.mrf.mxu1 }
 0x1b7   : > { %v11215_v45 = vadd.f32 %v2976_v38, %v2847_v11  ;;  %v1613_v38 = vld [vmem:[%s10653_s26 + $0x2898] sm:$0xff]  ;;  %v1615_v11 = vld [vmem:[%s10653_s26 + $0x28a8] sm:$0xff]  ;;  %v1612_v15 = vld [vmem:[%s10653_s26 + $0x2890] sm:$0xff] }
 0x1b8   : > { %v2851_v18 = vpop.f32.mrf.mxu0  ;;  %3870 = vmatmul.mubr.f32.gmra.mxu0 %v850_v9  ;;  %v2981_v47 = vpop.f32.mrf.mxu1  ;;  %4000 = vmatmul.mubr.f32.gmra.mxu1 %v852_v12 }
 0x1b9   : > { %v2852_v21 = vadd.f32 %v2851_v18, %v11127_v32  ;;  %3874 = vmatprep.mubr.f32.mxu0 %v978_v30  ;;  %4004 = vmatprep.mubr.f32.mxu1 %v980_v10  ;;  %v1614_v30 = vld [vmem:[%s10653_s26 + $0x28a0] sm:$0xff] }
 0x1ba   : > { %v2853_v24 = vpop.f32.mrf.mxu0  ;;  %v2983_v26 = vpop.f32.mrf.mxu1 }
 0x1bb   : > { %v11222_v56 = vadd.f32 %v2981_v47, %v2852_v21  ;;  %v1740_v47 = vld [vmem:[%s10653_s26 + $0x2c90] sm:$0xff]  ;;  %v1742_v21 = vld [vmem:[%s10653_s26 + $0x2ca0] sm:$0xff]  ;;  %v1739_v26 = vld [vmem:[%s10653_s26 + $0x2c88] sm:$0xff] }
 0x1bc   : > { %v2856_v29 = vpop.f32.mrf.mxu0  ;;  %3875 = vmatmul.mubr.f32.gmra.mxu0 %v977_v50  ;;  %v2986_v59 = vpop.f32.mrf.mxu1  ;;  %4005 = vmatmul.mubr.f32.gmra.mxu1 %v979_v22 }
 0x1bd   : > { %v2857_v32 = vadd.f32 %v2856_v29, %v11134_v43  ;;  %3879 = vmatprep.mubr.f32.mxu0 %v1105_v39  ;;  %4009 = vmatprep.mubr.f32.mxu1 %v1107_v20  ;;  %v1741_v39 = vld [vmem:[%s10653_s26 + $0x2c98] sm:$0xff] }
 0x1be   : > { %v2858_v33 = vpop.f32.mrf.mxu0  ;;  %v2988_v48 = vpop.f32.mrf.mxu1 }
 0x1bf   : > { %v11229_v3 = vadd.f32 %v2986_v59, %v2857_v32  ;;  %v1867_v59 = vld [vmem:[%s10653_s26 + $0x3088] sm:$0xf]  ;;  %v1869_v32 = vld [vmem:[%s10653_s26 + $0x3098] sm:$0xf]  ;;  %v1866_v48 = vld [vmem:[%s10653_s26 + $0x3080] sm:$0xf] }
 0x1c0   : > { %v2861_v42 = vpop.f32.mrf.mxu0  ;;  %3880 = vmatmul.mubr.f32.gmra.mxu0 %v1104_v61  ;;  %v2991_v4 = vpop.f32.mrf.mxu1  ;;  %4010 = vmatmul.mubr.f32.gmra.mxu1 %v1106_v34 }
 0x1c1   : > { %v2862_v43 = vadd.f32 %v2861_v42, %v11141_v55  ;;  %3884 = vmatprep.mubr.f32.mxu0 %v1232_v37  ;;  %4014 = vmatprep.mubr.f32.mxu1 %v1234_v40  ;;  %v1868_v37 = vld [vmem:[%s10653_s26 + $0x3090] sm:$0xf] }
 0x1c2   : > { %v2863_v44 = vpop.f32.mrf.mxu0  ;;  %v2993_v49 = vpop.f32.mrf.mxu1 }
 0x1c3   : > { %v11236_v14 = vadd.f32 %v2991_v4, %v2862_v43  ;;  %v347_v4 = vld [vmem:[%s10653_s26 + $0x108] sm:$0xff]  ;;  %v349_v43 = vld [vmem:[%s10653_s26 + $0x118] sm:$0xff]  ;;  %v346_v49 = vld [vmem:[%s10653_s26 + $0x100] sm:$0xff] }
 0x1c4   : > { %v2866_v53 = vpop.f32.mrf.mxu0  ;;  %3885 = vmatmul.mubr.f32.gmra.mxu0 %v1231_v5  ;;  %v2996_v16 = vpop.f32.mrf.mxu1  ;;  %4015 = vmatmul.mubr.f32.gmra.mxu1 %v1233_v8 }
 0x1c5   : > { %v2867_v55 = vadd.f32 %v2866_v53, %v11148_v2  ;;  %3889 = vmatprep.mubr.f32.mxu0 %v1359_v52  ;;  %4019 = vmatprep.mubr.f32.mxu1 %v1361_v51  ;;  %v348_v52 = vld [vmem:[%s10653_s26 + $0x110] sm:$0xff] }
 0x1c6   : > { %v2868_v54 = vpop.f32.mrf.mxu0  ;;  %v2998_v60 = vpop.f32.mrf.mxu1 }
 0x1c7   : > { %v11243_v27 = vadd.f32 %v2996_v16, %v2867_v55  ;;  %v223_v16 = vld [vmem:[%s10663_s28 + $0x120] sm:$0xff]  ;;  %v476_v54 = vld [vmem:[%s10653_s26 + $0x510] sm:$0xff] }
 0x1c8   : > { %v2871_v1 = vpop.f32.mrf.mxu0  ;;  %3890 = vmatmul.mubr.f32.gmra.mxu0 %v1358_v17  ;;  %v3001_v6 = vpop.f32.mrf.mxu1  ;;  %4020 = vmatmul.mubr.f32.gmra.mxu1 %v1360_v19  ;;  %v474_v55 = vld [vmem:[%s10653_s26 + $0x500] sm:$0xff]  ;;  %v225_v19 = vld [vmem:[%s10663_s28 + $0x130] sm:$0xff] }
 0x1c9   : > { %v2872_v2 = vadd.f32 %v2871_v1, %v11155_v57  ;;  %3894 = vmatprep.mubr.f32.mxu0 %v1486_v62  ;;  %4024 = vmatprep.mubr.f32.mxu1 %v1488_v63  ;;  %v228_v62 = vld [vmem:[%s10663_s28 + $0x148] sm:$0xff]  ;;  %v230_v63 = vld [vmem:[%s10663_s28 + $0x158] sm:$0xff] }
 0x1ca   : > { %v2873_v0 = vpop.f32.mrf.mxu0  ;;  %v3003_v7 = vpop.f32.mrf.mxu1 }
 0x1cb   : > { %v11250_v9 = vadd.f32 %v3001_v6, %v2872_v2  ;;  %v473_v6 = vld [vmem:[%s10653_s26 + $0x4f8] sm:$0xff]  ;;  %v475_v2 = vld [vmem:[%s10653_s26 + $0x508] sm:$0xff] }
 0x1cc   : > { %v3071_v12 = vpop.f32.mrf.mxu0  ;;  %3895 = vmatmul.mubr.f32.gmra.mxu0 %v1485_v28  ;;  %v3201_v41 = vpop.f32.mrf.mxu1  ;;  %4025 = vmatmul.mubr.f32.gmra.mxu1 %v1487_v31  ;;  %v601_v0 = vld [vmem:[%s10653_s26 + $0x8f8] sm:$0xff]  ;;  %v603_v7 = vld [vmem:[%s10653_s26 + $0x908] sm:$0xff] }
 0x1cd   : > { %v3072_v57 = vadd.f32 %v3071_v12, %v11162_v25  ;;  %3899 = vmatprep.mubr.f32.mxu0 %v1613_v38  ;;  %4029 = vmatprep.mubr.f32.mxu1 %v1615_v11 }
 0x1ce   : > { %v3073_v10 = vpop.f32.mrf.mxu0  ;;  %v3203_v18 = vpop.f32.mrf.mxu1 }
 0x1cf   : > { %v11257_v50 = vadd.f32 %v3201_v41, %v3072_v57  ;;  %v600_v41 = vld [vmem:[%s10653_s26 + $0x8f0] sm:$0xff]  ;;  %v602_v57 = vld [vmem:[%s10653_s26 + $0x900] sm:$0xff] }
 0x1d0   : > { %v3076_v22 = vpop.f32.mrf.mxu0  ;;  %3900 = vmatmul.mubr.f32.gmra.mxu0 %v1612_v15  ;;  %v3206_v24 = vpop.f32.mrf.mxu1  ;;  %4030 = vmatmul.mubr.f32.gmra.mxu1 %v1614_v30  ;;  %v728_v10 = vld [vmem:[%s10653_s26 + $0xcf0] sm:$0xff]  ;;  %v730_v18 = vld [vmem:[%s10653_s26 + $0xd00] sm:$0xff] }
 0x1d1   : > { %v3077_v25 = vadd.f32 %v3076_v22, %v11169_v36  ;;  %3904 = vmatprep.mubr.f32.mxu0 %v1740_v47  ;;  %4034 = vmatprep.mubr.f32.mxu1 %v1742_v21 }
 0x1d2   : > { %v3078_v20 = vpop.f32.mrf.mxu0  ;;  %v3208_v29 = vpop.f32.mrf.mxu1 }
 0x1d3   : > { %v11264_v61 = vadd.f32 %v3206_v24, %v3077_v25  ;;  %v727_v24 = vld [vmem:[%s10653_s26 + $0xce8] sm:$0xff]  ;;  %v729_v25 = vld [vmem:[%s10653_s26 + $0xcf8] sm:$0xff] }
 0x1d4   : > { %v3081_v34 = vpop.f32.mrf.mxu0  ;;  %3905 = vmatmul.mubr.f32.gmra.mxu0 %v1739_v26  ;;  %v3211_v33 = vpop.f32.mrf.mxu1  ;;  %4035 = vmatmul.mubr.f32.gmra.mxu1 %v1741_v39  ;;  %v855_v20 = vld [vmem:[%s10653_s26 + $0x10e8] sm:$0xff]  ;;  %v857_v29 = vld [vmem:[%s10653_s26 + $0x10f8] sm:$0xff] }
 0x1d5   : > { %v3082_v36 = vadd.f32 %v3081_v34, %v11176_v46  ;;  %3909 = vmatprep.mubr.f32.mxu0 %v1867_v59  ;;  %4039 = vmatprep.mubr.f32.mxu1 %v1869_v32 }
 0x1d6   : > { %v3083_v40 = vpop.f32.mrf.mxu0  ;;  %v3213_v42 = vpop.f32.mrf.mxu1 }
 0x1d7   : > { %v11271_v5 = vadd.f32 %v3211_v33, %v3082_v36  ;;  %v854_v33 = vld [vmem:[%s10653_s26 + $0x10e0] sm:$0xff]  ;;  %v856_v36 = vld [vmem:[%s10653_s26 + $0x10f0] sm:$0xff] }
 0x1d8   : > { %v3086_v8 = vpop.f32.mrf.mxu0  ;;  %3910 = vmatmul.mubr.f32.gmra.mxu0 %v1866_v48  ;;  %v3216_v44 = vpop.f32.mrf.mxu1  ;;  %4040 = vmatmul.mubr.f32.gmra.mxu1 %v1868_v37  ;;  %v982_v40 = vld [vmem:[%s10653_s26 + $0x14e0] sm:$0xff]  ;;  %v984_v42 = vld [vmem:[%s10653_s26 + $0x14f0] sm:$0xff] }
 0x1d9   : > { %v3087_v46 = vadd.f32 %v3086_v8, %v11183_v58  ;;  %4109 = vmatprep.mubr.f32.mxu0 %v347_v4  ;;  %4239 = vmatprep.mubr.f32.mxu1 %v349_v43 }
 0x1da   : > { %v3088_v51 = vpop.f32.mrf.mxu0  ;;  %v3218_v53 = vpop.f32.mrf.mxu1 }
 0x1db   : > { %v11278_v17 = vadd.f32 %v3216_v44, %v3087_v46  ;;  %v981_v44 = vld [vmem:[%s10653_s26 + $0x14d8] sm:$0xff]  ;;  %v983_v46 = vld [vmem:[%s10653_s26 + $0x14e8] sm:$0xff] }
 0x1dc   : > { %v3091_v60 = vpop.f32.mrf.mxu0  ;;  %4110 = vmatmul.mubr.f32.vlgmr.msra.gmra.mxu0 %v346_v49  ;;  %v3221_v58 = vpop.f32.mrf.mxu1  ;;  %4240 = vmatmul.mubr.f32.vlgmr.msra.gmra.mxu1 %v348_v52  ;;  %v1109_v51 = vld [vmem:[%s10653_s26 + $0x18d8] sm:$0xff]  ;;  %v1111_v53 = vld [vmem:[%s10653_s26 + $0x18e8] sm:$0xff] }
 0x1dd   : > { %v3092_v1 = vadd.f32 %v3091_v60, %v11194_v13  ;;  %4336 = vmatpush1.xpose.msra.mxu0 %v223_v16  ;;  %4114 = vmatprep.mubr.f32.mxu0 %v474_v55  ;;  %v1110_v60 = vld [vmem:[%s10653_s26 + $0x18e0] sm:$0xff] }
 0x1de   : > { %v3093_v28 = vpop.f32.mrf.mxu0  ;;  %v3223_v31 = vpop.f32.mrf.mxu1  ;;  %4466 = vmatpush1.xpose.msra.mxu1 %v225_v19  ;;  %4244 = vmatprep.mubr.f32.mxu1 %v476_v54  ;;  %v1108_v54 = vld [vmem:[%s10653_s26 + $0x18d0] sm:$0xff] }
 0x1df   : > { %v11289_v38 = vadd.f32 %v3221_v58, %v3092_v1  ;;  %4595 = vmatprep.subr.mxu0 %v228_v62  ;;  %4725 = vmatprep.subr.mxu1 %v230_v63  ;;  %v1236_v63 = vld [vmem:[%s10653_s26 + $0x1cd0] sm:$0xff]  ;;  %v1238_v1 = vld [vmem:[%s10653_s26 + $0x1ce0] sm:$0xff]  ;;  %v1235_v31 = vld [vmem:[%s10653_s26 + $0x1cc8] sm:$0xff] }
 0x1e0   : > { %v3096_v11 = vpop.f32.mrf.mxu0  ;;  %4115 = vmatmul.mubr.f32.gmra.mxu0 %v473_v6  ;;  %v3226_v13 = vpop.f32.mrf.mxu1  ;;  %4245 = vmatmul.mubr.f32.gmra.mxu1 %v475_v2 }
 0x1e1   : > { %v3097_v12 = vadd.f32 %v3096_v11, %v11201_v23  ;;  %4119 = vmatprep.mubr.f32.mxu0 %v601_v0  ;;  %4249 = vmatprep.mubr.f32.mxu1 %v603_v7  ;;  %v1237_v0 = vld [vmem:[%s10653_s26 + $0x1cd8] sm:$0xff] }
 0x1e2   : > { %v3098_v15 = vpop.f32.mrf.mxu0  ;;  %v3228_v30 = vpop.f32.mrf.mxu1 }
 0x1e3   : > { %v11296_v47 = vadd.f32 %v3226_v13, %v3097_v12  ;;  %v1363_v13 = vld [vmem:[%s10653_s26 + $0x20c8] sm:$0xff]  ;;  %v1365_v12 = vld [vmem:[%s10653_s26 + $0x20d8] sm:$0xff]  ;;  %v1362_v30 = vld [vmem:[%s10653_s26 + $0x20c0] sm:$0xff] }
 0x1e4   : > { %v3101_v21 = vpop.f32.mrf.mxu0  ;;  %4120 = vmatmul.mubr.f32.gmra.mxu0 %v600_v41  ;;  %v3231_v22 = vpop.f32.mrf.mxu1  ;;  %4250 = vmatmul.mubr.f32.gmra.mxu1 %v602_v57 }
 0x1e5   : > { %v3102_v23 = vadd.f32 %v3101_v21, %v11208_v35  ;;  %4124 = vmatprep.mubr.f32.mxu0 %v728_v10  ;;  %4254 = vmatprep.mubr.f32.mxu1 %v730_v18  ;;  %v1364_v10 = vld [vmem:[%s10653_s26 + $0x20d0] sm:$0xff] }
 0x1e6   : > { %v3103_v26 = vpop.f32.mrf.mxu0  ;;  %v3233_v39 = vpop.f32.mrf.mxu1 }
 0x1e7   : > { %v11303_v59 = vadd.f32 %v3231_v22, %v3102_v23  ;;  %v1490_v22 = vld [vmem:[%s10653_s26 + $0x24c0] sm:$0xff]  ;;  %v1492_v23 = vld [vmem:[%s10653_s26 + $0x24d0] sm:$0xff]  ;;  %v1489_v39 = vld [vmem:[%s10653_s26 + $0x24b8] sm:$0xff] }
 0x1e8   : > { %v3106_v32 = vpop.f32.mrf.mxu0  ;;  %4125 = vmatmul.mubr.f32.gmra.mxu0 %v727_v24  ;;  %v3236_v34 = vpop.f32.mrf.mxu1  ;;  %4255 = vmatmul.mubr.f32.gmra.mxu1 %v729_v25 }
 0x1e9   : > { %v3107_v35 = vadd.f32 %v3106_v32, %v11215_v45  ;;  %4129 = vmatprep.mubr.f32.mxu0 %v855_v20  ;;  %4259 = vmatprep.mubr.f32.mxu1 %v857_v29  ;;  %v1491_v20 = vld [vmem:[%s10653_s26 + $0x24c8] sm:$0xff] }
 0x1ea   : > { %v3108_v48 = vpop.f32.mrf.mxu0  ;;  %v3238_v37 = vpop.f32.mrf.mxu1 }
 0x1eb   : > { %v11310_v4 = vadd.f32 %v3236_v34, %v3107_v35  ;;  %v1617_v34 = vld [vmem:[%s10653_s26 + $0x28b8] sm:$0xff]  ;;  %v1619_v35 = vld [vmem:[%s10653_s26 + $0x28c8] sm:$0xff]  ;;  %v1616_v37 = vld [vmem:[%s10653_s26 + $0x28b0] sm:$0xff] }
 0x1ec   : > { %v3111_v43 = vpop.f32.mrf.mxu0  ;;  %4130 = vmatmul.mubr.f32.gmra.mxu0 %v854_v33  ;;  %v3241_v8 = vpop.f32.mrf.mxu1  ;;  %4260 = vmatmul.mubr.f32.gmra.mxu1 %v856_v36 }
 0x1ed   : > { %v3112_v45 = vadd.f32 %v3111_v43, %v11222_v56  ;;  %4134 = vmatprep.mubr.f32.mxu0 %v982_v40  ;;  %4264 = vmatprep.mubr.f32.mxu1 %v984_v42  ;;  %v1618_v40 = vld [vmem:[%s10653_s26 + $0x28c0] sm:$0xff] }
 0x1ee   : > { %v3113_v49 = vpop.f32.mrf.mxu0  ;;  %v3243_v52 = vpop.f32.mrf.mxu1 }
 0x1ef   : > { %v11317_v16 = vadd.f32 %v3241_v8, %v3112_v45  ;;  %v1744_v8 = vld [vmem:[%s10653_s26 + $0x2cb0] sm:$0xff]  ;;  %v1746_v45 = vld [vmem:[%s10653_s26 + $0x2cc0] sm:$0xff]  ;;  %v1743_v52 = vld [vmem:[%s10653_s26 + $0x2ca8] sm:$0xff] }
 0x1f0   : > { %v3116_v55 = vpop.f32.mrf.mxu0  ;;  %4135 = vmatmul.mubr.f32.gmra.mxu0 %v981_v44  ;;  %v3246_v19 = vpop.f32.mrf.mxu1  ;;  %4265 = vmatmul.mubr.f32.gmra.mxu1 %v983_v46 }
 0x1f1   : > { %v3117_v56 = vadd.f32 %v3116_v55, %v11229_v3  ;;  %4139 = vmatprep.mubr.f32.mxu0 %v1109_v51  ;;  %4269 = vmatprep.mubr.f32.mxu1 %v1111_v53  ;;  %v1745_v51 = vld [vmem:[%s10653_s26 + $0x2cb8] sm:$0xff] }
 0x1f2   : > { %v3118_v58 = vpop.f32.mrf.mxu0  ;;  %v3248_v62 = vpop.f32.mrf.mxu1 }
 0x1f3   : > { %v11324_v6 = vadd.f32 %v3246_v19, %v3117_v56  ;;  %v1871_v19 = vld [vmem:[%s10653_s26 + $0x30a8] sm:$0xf]  ;;  %v1873_v56 = vld [vmem:[%s10653_s26 + $0x30b8] sm:$0xf]  ;;  %v1870_v62 = vld [vmem:[%s10653_s26 + $0x30a0] sm:$0xf] }
 0x1f4   : > { %v3121_v2 = vpop.f32.mrf.mxu0  ;;  %4140 = vmatmul.mubr.f32.gmra.mxu0 %v1108_v54  ;;  %v3251_v28 = vpop.f32.mrf.mxu1  ;;  %4270 = vmatmul.mubr.f32.gmra.mxu1 %v1110_v60 }
 0x1f5   : > { %v3122_v3 = vadd.f32 %v3121_v2, %v11236_v14  ;;  %4144 = vmatprep.mubr.f32.mxu0 %v1236_v63  ;;  %4274 = vmatprep.mubr.f32.mxu1 %v1238_v1  ;;  %v1872_v63 = vld [vmem:[%s10653_s26 + $0x30b0] sm:$0xf] }
 0x1f6   : > { %v3123_v7 = vpop.f32.mrf.mxu0  ;;  %v3253_v11 = vpop.f32.mrf.mxu1 }
 0x1f7   : > { %v11331_v41 = vadd.f32 %v3251_v28, %v3122_v3  ;;  %v351_v28 = vld [vmem:[%s10653_s26 + $0x128] sm:$0xff]  ;;  %v353_v3 = vld [vmem:[%s10653_s26 + $0x138] sm:$0xff]  ;;  %v350_v11 = vld [vmem:[%s10653_s26 + $0x120] sm:$0xff] }
 0x1f8   : > { %v3126_v57 = vpop.f32.mrf.mxu0  ;;  %4145 = vmatmul.mubr.f32.gmra.mxu0 %v1235_v31  ;;  %v3256_v15 = vpop.f32.mrf.mxu1  ;;  %4275 = vmatmul.mubr.f32.gmra.mxu1 %v1237_v0 }
 0x1f9   : > { %v3127_v14 = vadd.f32 %v3126_v57, %v11243_v27  ;;  %4149 = vmatprep.mubr.f32.mxu0 %v1363_v13  ;;  %4279 = vmatprep.mubr.f32.mxu1 %v1365_v12  ;;  %v352_v13 = vld [vmem:[%s10653_s26 + $0x130] sm:$0xff] }
 0x1fa   : > { %v3128_v18 = vpop.f32.mrf.mxu0  ;;  %v3258_v21 = vpop.f32.mrf.mxu1 }
 0x1fb   : > { %v11338_v24 = vadd.f32 %v3256_v15, %v3127_v14  ;;  %v227_v15 = vld [vmem:[%s10663_s28 + $0x140] sm:$0xff]  ;;  %v480_v18 = vld [vmem:[%s10653_s26 + $0x530] sm:$0xff] }
 0x1fc   : > { %v3131_v25 = vpop.f32.mrf.mxu0  ;;  %4150 = vmatmul.mubr.f32.gmra.mxu0 %v1362_v30  ;;  %v3261_v26 = vpop.f32.mrf.mxu1  ;;  %4280 = vmatmul.mubr.f32.gmra.mxu1 %v1364_v10  ;;  %v478_v14 = vld [vmem:[%s10653_s26 + $0x520] sm:$0xff]  ;;  %v229_v10 = vld [vmem:[%s10663_s28 + $0x150] sm:$0xff] }
 0x1fd   : > { %v3132_v27 = vadd.f32 %v3131_v25, %v11250_v9  ;;  %4154 = vmatprep.mubr.f32.mxu0 %v1490_v22  ;;  %4284 = vmatprep.mubr.f32.mxu1 %v1492_v23  ;;  %v232_v22 = vld [vmem:[%s10663_s28 + $0x168] sm:$0xff]  ;;  %v234_v23 = vld [vmem:[%s10663_s28 + $0x178] sm:$0xff] }
 0x1fe   : > { %v3133_v29 = vpop.f32.mrf.mxu0  ;;  %v3263_v32 = vpop.f32.mrf.mxu1 }
 0x1ff   : > { %v11345_v33 = vadd.f32 %v3261_v26, %v3132_v27  ;;  %v477_v26 = vld [vmem:[%s10653_s26 + $0x518] sm:$0xff]  ;;  %v479_v27 = vld [vmem:[%s10653_s26 + $0x528] sm:$0xff] }
 0x200   : > { %v3331_v36 = vpop.f32.mrf.mxu0  ;;  %4155 = vmatmul.mubr.f32.gmra.mxu0 %v1489_v39  ;;  %v3461_v48 = vpop.f32.mrf.mxu1  ;;  %4285 = vmatmul.mubr.f32.gmra.mxu1 %v1491_v20  ;;  %v605_v29 = vld [vmem:[%s10653_s26 + $0x918] sm:$0xff]  ;;  %v607_v32 = vld [vmem:[%s10653_s26 + $0x928] sm:$0xff] }
 0x201   : > { %v3332_v9 = vadd.f32 %v3331_v36, %v11257_v50  ;;  %4159 = vmatprep.mubr.f32.mxu0 %v1617_v34  ;;  %4289 = vmatprep.mubr.f32.mxu1 %v1619_v35 }
 0x202   : > { %v3333_v42 = vpop.f32.mrf.mxu0  ;;  %v3463_v43 = vpop.f32.mrf.mxu1 }
 0x203   : > { %v11352_v44 = vadd.f32 %v3461_v48, %v3332_v9  ;;  %v604_v48 = vld [vmem:[%s10653_s26 + $0x910] sm:$0xff]  ;;  %v606_v9 = vld [vmem:[%s10653_s26 + $0x920] sm:$0xff] }
 0x204   : > { %v3336_v46 = vpop.f32.mrf.mxu0  ;;  %4160 = vmatmul.mubr.f32.gmra.mxu0 %v1616_v37  ;;  %v3466_v49 = vpop.f32.mrf.mxu1  ;;  %4290 = vmatmul.mubr.f32.gmra.mxu1 %v1618_v40  ;;  %v732_v42 = vld [vmem:[%s10653_s26 + $0xd10] sm:$0xff]  ;;  %v734_v43 = vld [vmem:[%s10653_s26 + $0xd20] sm:$0xff] }
 0x205   : > { %v3337_v50 = vadd.f32 %v3336_v46, %v11264_v61  ;;  %4164 = vmatprep.mubr.f32.mxu0 %v1744_v8  ;;  %4294 = vmatprep.mubr.f32.mxu1 %v1746_v45 }
 0x206   : > { %v3338_v53 = vpop.f32.mrf.mxu0  ;;  %v3468_v55 = vpop.f32.mrf.mxu1 }
 0x207   : > { %v11359_v54 = vadd.f32 %v3466_v49, %v3337_v50  ;;  %v731_v49 = vld [vmem:[%s10653_s26 + $0xd08] sm:$0xff]  ;;  %v733_v50 = vld [vmem:[%s10653_s26 + $0xd18] sm:$0xff] }
 0x208   : > { %v3341_v60 = vpop.f32.mrf.mxu0  ;;  %4165 = vmatmul.mubr.f32.gmra.mxu0 %v1743_v52  ;;  %v3471_v58 = vpop.f32.mrf.mxu1  ;;  %4295 = vmatmul.mubr.f32.gmra.mxu1 %v1745_v51  ;;  %v859_v53 = vld [vmem:[%s10653_s26 + $0x1108] sm:$0xff]  ;;  %v861_v55 = vld [vmem:[%s10653_s26 + $0x1118] sm:$0xff] }
 0x209   : > { %v3342_v61 = vadd.f32 %v3341_v60, %v11271_v5  ;;  %4169 = vmatprep.mubr.f32.mxu0 %v1871_v19  ;;  %4299 = vmatprep.mubr.f32.mxu1 %v1873_v56 }
 0x20a   : > { %v3343_v1 = vpop.f32.mrf.mxu0  ;;  %v3473_v2 = vpop.f32.mrf.mxu1 }
 0x20b   : > { %v11366_v31 = vadd.f32 %v3471_v58, %v3342_v61  ;;  %v858_v58 = vld [vmem:[%s10653_s26 + $0x1100] sm:$0xff]  ;;  %v860_v61 = vld [vmem:[%s10653_s26 + $0x1110] sm:$0xff] }
 0x20c   : > { %v3346_v0 = vpop.f32.mrf.mxu0  ;;  %4170 = vmatmul.mubr.f32.gmra.mxu0 %v1870_v62  ;;  %v3476_v7 = vpop.f32.mrf.mxu1  ;;  %4300 = vmatmul.mubr.f32.gmra.mxu1 %v1872_v63  ;;  %v986_v1 = vld [vmem:[%s10653_s26 + $0x1500] sm:$0xff]  ;;  %v988_v2 = vld [vmem:[%s10653_s26 + $0x1510] sm:$0xff] }
 0x20d   : > { %v3347_v5 = vadd.f32 %v3346_v0, %v11278_v17  ;;  %4369 = vmatprep.mubr.f32.mxu0 %v351_v28  ;;  %4499 = vmatprep.mubr.f32.mxu1 %v353_v3 }
 0x20e   : > { %v3348_v12 = vpop.f32.mrf.mxu0  ;;  %v3478_v57 = vpop.f32.mrf.mxu1 }
 0x20f   : > { %v11373_v30 = vadd.f32 %v3476_v7, %v3347_v5  ;;  %v985_v7 = vld [vmem:[%s10653_s26 + $0x14f8] sm:$0xff]  ;;  %v987_v5 = vld [vmem:[%s10653_s26 + $0x1508] sm:$0xff] }
 0x210   : > { %v3351_v21 = vpop.f32.mrf.mxu0  ;;  %4370 = vmatmul.mubr.f32.vlgmr.msra.gmra.mxu0 %v350_v11  ;;  %v3481_v17 = vpop.f32.mrf.mxu1  ;;  %4500 = vmatmul.mubr.f32.vlgmr.msra.gmra.mxu1 %v352_v13  ;;  %v1113_v12 = vld [vmem:[%s10653_s26 + $0x18f8] sm:$0xff]  ;;  %v1115_v57 = vld [vmem:[%s10653_s26 + $0x1908] sm:$0xff] }
 0x211   : > { %v3352_v25 = vadd.f32 %v3351_v21, %v11289_v38  ;;  %4596 = vmatpush1.xpose.msra.mxu0 %v227_v15  ;;  %4374 = vmatprep.mubr.f32.mxu0 %v478_v14  ;;  %v1114_v21 = vld [vmem:[%s10653_s26 + $0x1900] sm:$0xff] }
 0x212   : > { %v3353_v39 = vpop.f32.mrf.mxu0  ;;  %v3483_v20 = vpop.f32.mrf.mxu1  ;;  %4726 = vmatpush1.xpose.msra.mxu1 %v229_v10  ;;  %4504 = vmatprep.mubr.f32.mxu1 %v480_v18  ;;  %v1112_v18 = vld [vmem:[%s10653_s26 + $0x18f0] sm:$0xff] }
 0x213   : > { %v11384_v34 = vadd.f32 %v3481_v17, %v3352_v25  ;;  %4855 = vmatprep.subr.mxu0 %v232_v22  ;;  %4985 = vmatprep.subr.mxu1 %v234_v23  ;;  %v1240_v23 = vld [vmem:[%s10653_s26 + $0x1cf0] sm:$0xff]  ;;  %v1242_v25 = vld [vmem:[%s10653_s26 + $0x1d00] sm:$0xff]  ;;  %v1239_v20 = vld [vmem:[%s10653_s26 + $0x1ce8] sm:$0xff] }
 0x214   : > { %v3356_v35 = vpop.f32.mrf.mxu0  ;;  %4375 = vmatmul.mubr.f32.gmra.mxu0 %v477_v26  ;;  %v3486_v38 = vpop.f32.mrf.mxu1  ;;  %4505 = vmatmul.mubr.f32.gmra.mxu1 %v479_v27 }
 0x215   : > { %v3357_v36 = vadd.f32 %v3356_v35, %v11296_v47  ;;  %4379 = vmatprep.mubr.f32.mxu0 %v605_v29  ;;  %4509 = vmatprep.mubr.f32.mxu1 %v607_v32  ;;  %v1241_v29 = vld [vmem:[%s10653_s26 + $0x1cf8] sm:$0xff] }
 0x216   : > { %v3358_v37 = vpop.f32.mrf.mxu0  ;;  %v3488_v40 = vpop.f32.mrf.mxu1 }
 0x217   : > { %v11391_v8 = vadd.f32 %v3486_v38, %v3357_v36  ;;  %v1367_v38 = vld [vmem:[%s10653_s26 + $0x20e8] sm:$0xff]  ;;  %v1369_v36 = vld [vmem:[%s10653_s26 + $0x20f8] sm:$0xff]  ;;  %v1366_v40 = vld [vmem:[%s10653_s26 + $0x20e0] sm:$0xff] }
 0x218   : > { %v3361_v45 = vpop.f32.mrf.mxu0  ;;  %4380 = vmatmul.mubr.f32.gmra.mxu0 %v604_v48  ;;  %v3491_v46 = vpop.f32.mrf.mxu1  ;;  %4510 = vmatmul.mubr.f32.gmra.mxu1 %v606_v9 }
 0x219   : > { %v3362_v47 = vadd.f32 %v3361_v45, %v11303_v59  ;;  %4384 = vmatprep.mubr.f32.mxu0 %v732_v42  ;;  %4514 = vmatprep.mubr.f32.mxu1 %v734_v43  ;;  %v1368_v42 = vld [vmem:[%s10653_s26 + $0x20f0] sm:$0xff] }
 0x21a   : > { %v3363_v52 = vpop.f32.mrf.mxu0  ;;  %v3493_v51 = vpop.f32.mrf.mxu1 }
 0x21b   : > { %v11398_v19 = vadd.f32 %v3491_v46, %v3362_v47  ;;  %v1494_v46 = vld [vmem:[%s10653_s26 + $0x24e0] sm:$0xff]  ;;  %v1496_v47 = vld [vmem:[%s10653_s26 + $0x24f0] sm:$0xff]  ;;  %v1493_v51 = vld [vmem:[%s10653_s26 + $0x24d8] sm:$0xff] }
 0x21c   : > { %v3366_v56 = vpop.f32.mrf.mxu0  ;;  %4385 = vmatmul.mubr.f32.gmra.mxu0 %v731_v49  ;;  %v3496_v60 = vpop.f32.mrf.mxu1  ;;  %4515 = vmatmul.mubr.f32.gmra.mxu1 %v733_v50 }
 0x21d   : > { %v3367_v59 = vadd.f32 %v3366_v56, %v11310_v4  ;;  %4389 = vmatprep.mubr.f32.mxu0 %v859_v53  ;;  %4519 = vmatprep.mubr.f32.mxu1 %v861_v55  ;;  %v1495_v53 = vld [vmem:[%s10653_s26 + $0x24e8] sm:$0xff] }
 0x21e   : > { %v3368_v62 = vpop.f32.mrf.mxu0  ;;  %v3498_v63 = vpop.f32.mrf.mxu1 }
 0x21f   : > { %v11405_v28 = vadd.f32 %v3496_v60, %v3367_v59  ;;  %v1621_v60 = vld [vmem:[%s10653_s26 + $0x28d8] sm:$0xff]  ;;  %v1623_v59 = vld [vmem:[%s10653_s26 + $0x28e8] sm:$0xff]  ;;  %v1620_v63 = vld [vmem:[%s10653_s26 + $0x28d0] sm:$0xff] }
 0x220   : > { %v3371_v3 = vpop.f32.mrf.mxu0  ;;  %4390 = vmatmul.mubr.f32.gmra.mxu0 %v858_v58  ;;  %v3501_v0 = vpop.f32.mrf.mxu1  ;;  %4520 = vmatmul.mubr.f32.gmra.mxu1 %v860_v61 }
 0x221   : > { %v3372_v4 = vadd.f32 %v3371_v3, %v11317_v16  ;;  %4394 = vmatprep.mubr.f32.mxu0 %v986_v1  ;;  %4524 = vmatprep.mubr.f32.mxu1 %v988_v2  ;;  %v1622_v1 = vld [vmem:[%s10653_s26 + $0x28e0] sm:$0xff] }
 0x222   : > { %v3373_v11 = vpop.f32.mrf.mxu0  ;;  %v3503_v13 = vpop.f32.mrf.mxu1 }
 0x223   : > { %v11412_v15 = vadd.f32 %v3501_v0, %v3372_v4  ;;  %v1748_v0 = vld [vmem:[%s10653_s26 + $0x2cd0] sm:$0xff]  ;;  %v1750_v4 = vld [vmem:[%s10653_s26 + $0x2ce0] sm:$0xff]  ;;  %v1747_v13 = vld [vmem:[%s10653_s26 + $0x2cc8] sm:$0xff] }
 0x224   : > { %v3376_v14 = vpop.f32.mrf.mxu0  ;;  %4395 = vmatmul.mubr.f32.gmra.mxu0 %v985_v7  ;;  %v3506_v10 = vpop.f32.mrf.mxu1  ;;  %4525 = vmatmul.mubr.f32.gmra.mxu1 %v987_v5 }
 0x225   : > { %v3377_v16 = vadd.f32 %v3376_v14, %v11324_v6  ;;  %4399 = vmatprep.mubr.f32.mxu0 %v1113_v12  ;;  %4529 = vmatprep.mubr.f32.mxu1 %v1115_v57  ;;  %v1749_v12 = vld [vmem:[%s10653_s26 + $0x2cd8] sm:$0xff] }
 0x226   : > { %v3378_v17 = vpop.f32.mrf.mxu0  ;;  %v3508_v22 = vpop.f32.mrf.mxu1 }
 0x227   : > { %v11419_v26 = vadd.f32 %v3506_v10, %v3377_v16  ;;  %v1875_v10 = vld [vmem:[%s10653_s26 + $0x30c8] sm:$0xf]  ;;  %v1877_v16 = vld [vmem:[%s10653_s26 + $0x30d8] sm:$0xf]  ;;  %v1874_v22 = vld [vmem:[%s10653_s26 + $0x30c0] sm:$0xf] }
 0x228   : > { %v3381_v27 = vpop.f32.mrf.mxu0  ;;  %4400 = vmatmul.mubr.f32.gmra.mxu0 %v1112_v18  ;;  %v3511_v39 = vpop.f32.mrf.mxu1  ;;  %4530 = vmatmul.mubr.f32.gmra.mxu1 %v1114_v21 }
 0x229   : > { %v3382_v6 = vadd.f32 %v3381_v27, %v11331_v41  ;;  %4404 = vmatprep.mubr.f32.mxu0 %v1240_v23  ;;  %4534 = vmatprep.mubr.f32.mxu1 %v1242_v25  ;;  %v1876_v23 = vld [vmem:[%s10653_s26 + $0x30d0] sm:$0xf] }
 0x22a   : > { %v3383_v32 = vpop.f32.mrf.mxu0  ;;  %v3513_v35 = vpop.f32.mrf.mxu1 }
 0x22b   : > { %v11426_v48 = vadd.f32 %v3511_v39, %v3382_v6  ;;  %v355_v39 = vld [vmem:[%s10653_s26 + $0x148] sm:$0xff]  ;;  %v357_v6 = vld [vmem:[%s10653_s26 + $0x158] sm:$0xff]  ;;  %v354_v35 = vld [vmem:[%s10653_s26 + $0x140] sm:$0xff] }
 0x22c   : > { %v3386_v9 = vpop.f32.mrf.mxu0  ;;  %4405 = vmatmul.mubr.f32.gmra.mxu0 %v1239_v20  ;;  %v3516_v37 = vpop.f32.mrf.mxu1  ;;  %4535 = vmatmul.mubr.f32.gmra.mxu1 %v1241_v29 }
 0x22d   : > { %v3387_v41 = vadd.f32 %v3386_v9, %v11338_v24  ;;  %4409 = vmatprep.mubr.f32.mxu0 %v1367_v38  ;;  %4539 = vmatprep.mubr.f32.mxu1 %v1369_v36  ;;  %v356_v38 = vld [vmem:[%s10653_s26 + $0x150] sm:$0xff] }
 0x22e   : > { %v3388_v43 = vpop.f32.mrf.mxu0  ;;  %v3518_v45 = vpop.f32.mrf.mxu1 }
 0x22f   : > { %v11433_v49 = vadd.f32 %v3516_v37, %v3387_v41  ;;  %v231_v37 = vld [vmem:[%s10663_s28 + $0x160] sm:$0xff]  ;;  %v484_v43 = vld [vmem:[%s10653_s26 + $0x550] sm:$0xff] }
 0x230   : > { %v3391_v50 = vpop.f32.mrf.mxu0  ;;  %4410 = vmatmul.mubr.f32.gmra.mxu0 %v1366_v40  ;;  %v3521_v52 = vpop.f32.mrf.mxu1  ;;  %4540 = vmatmul.mubr.f32.gmra.mxu1 %v1368_v42  ;;  %v482_v41 = vld [vmem:[%s10653_s26 + $0x540] sm:$0xff]  ;;  %v233_v42 = vld [vmem:[%s10663_s28 + $0x170] sm:$0xff] }
 0x231   : > { %v3392_v24 = vadd.f32 %v3391_v50, %v11345_v33  ;;  %4414 = vmatprep.mubr.f32.mxu0 %v1494_v46  ;;  %4544 = vmatprep.mubr.f32.mxu1 %v1496_v47  ;;  %v236_v46 = vld [vmem:[%s10663_s28 + $0x188] sm:$0xff]  ;;  %v238_v47 = vld [vmem:[%s10663_s28 + $0x198] sm:$0xff] }
 0x232   : > { %v3393_v55 = vpop.f32.mrf.mxu0  ;;  %v3523_v56 = vpop.f32.mrf.mxu1 }
 0x233   : > { %v11440_v58 = vadd.f32 %v3521_v52, %v3392_v24  ;;  %v481_v52 = vld [vmem:[%s10653_s26 + $0x538] sm:$0xff]  ;;  %v483_v24 = vld [vmem:[%s10653_s26 + $0x548] sm:$0xff] }
 0x234   : > { %v3591_v61 = vpop.f32.mrf.mxu0  ;;  %4415 = vmatmul.mubr.f32.gmra.mxu0 %v1493_v51  ;;  %v3721_v62 = vpop.f32.mrf.mxu1  ;;  %4545 = vmatmul.mubr.f32.gmra.mxu1 %v1495_v53  ;;  %v609_v55 = vld [vmem:[%s10653_s26 + $0x938] sm:$0xff]  ;;  %v611_v56 = vld [vmem:[%s10653_s26 + $0x948] sm:$0xff] }
 0x235   : > { %v3592_v33 = vadd.f32 %v3591_v61, %v11352_v44  ;;  %4419 = vmatprep.mubr.f32.mxu0 %v1621_v60  ;;  %4549 = vmatprep.mubr.f32.mxu1 %v1623_v59 }
 0x236   : > { %v3593_v2 = vpop.f32.mrf.mxu0  ;;  %v3723_v3 = vpop.f32.mrf.mxu1 }
 0x237   : > { %v11447_v7 = vadd.f32 %v3721_v62, %v3592_v33  ;;  %v608_v62 = vld [vmem:[%s10653_s26 + $0x930] sm:$0xff]  ;;  %v610_v33 = vld [vmem:[%s10653_s26 + $0x940] sm:$0xff] }
 0x238   : > { %v3596_v5 = vpop.f32.mrf.mxu0  ;;  %4420 = vmatmul.mubr.f32.gmra.mxu0 %v1620_v63  ;;  %v3726_v11 = vpop.f32.mrf.mxu1  ;;  %4550 = vmatmul.mubr.f32.gmra.mxu1 %v1622_v1  ;;  %v736_v2 = vld [vmem:[%s10653_s26 + $0xd30] sm:$0xff]  ;;  %v738_v3 = vld [vmem:[%s10653_s26 + $0xd40] sm:$0xff] }
 0x239   : > { %v3597_v44 = vadd.f32 %v3596_v5, %v11359_v54  ;;  %4424 = vmatprep.mubr.f32.mxu0 %v1748_v0  ;;  %4554 = vmatprep.mubr.f32.mxu1 %v1750_v4 }
 0x23a   : > { %v3598_v57 = vpop.f32.mrf.mxu0  ;;  %v3728_v14 = vpop.f32.mrf.mxu1 }
 0x23b   : > { %v11454_v18 = vadd.f32 %v3726_v11, %v3597_v44  ;;  %v735_v11 = vld [vmem:[%s10653_s26 + $0xd28] sm:$0xff]  ;;  %v737_v44 = vld [vmem:[%s10653_s26 + $0xd38] sm:$0xff] }
 0x23c   : > { %v3601_v21 = vpop.f32.mrf.mxu0  ;;  %4425 = vmatmul.mubr.f32.gmra.mxu0 %v1747_v13  ;;  %v3731_v17 = vpop.f32.mrf.mxu1  ;;  %4555 = vmatmul.mubr.f32.gmra.mxu1 %v1749_v12  ;;  %v863_v57 = vld [vmem:[%s10653_s26 + $0x1128] sm:$0xff]  ;;  %v865_v14 = vld [vmem:[%s10653_s26 + $0x1138] sm:$0xff] }
 0x23d   : > { %v3602_v54 = vadd.f32 %v3601_v21, %v11366_v31  ;;  %4429 = vmatprep.mubr.f32.mxu0 %v1875_v10  ;;  %4559 = vmatprep.mubr.f32.mxu1 %v1877_v16 }
 0x23e   : > { %v3603_v25 = vpop.f32.mrf.mxu0  ;;  %v3733_v27 = vpop.f32.mrf.mxu1 }
 0x23f   : > { %v11461_v20 = vadd.f32 %v3731_v17, %v3602_v54  ;;  %v862_v17 = vld [vmem:[%s10653_s26 + $0x1120] sm:$0xff]  ;;  %v864_v54 = vld [vmem:[%s10653_s26 + $0x1130] sm:$0xff] }
 0x240   : > { %v3606_v29 = vpop.f32.mrf.mxu0  ;;  %4430 = vmatmul.mubr.f32.gmra.mxu0 %v1874_v22  ;;  %v3736_v32 = vpop.f32.mrf.mxu1  ;;  %4560 = vmatmul.mubr.f32.gmra.mxu1 %v1876_v23  ;;  %v990_v25 = vld [vmem:[%s10653_s26 + $0x1520] sm:$0xff]  ;;  %v992_v27 = vld [vmem:[%s10653_s26 + $0x1530] sm:$0xff] }
 0x241   : > { %v3607_v31 = vadd.f32 %v3606_v29, %v11373_v30  ;;  %4629 = vmatprep.mubr.f32.mxu0 %v355_v39  ;;  %4759 = vmatprep.mubr.f32.mxu1 %v357_v6 }
 0x242   : > { %v3608_v36 = vpop.f32.mrf.mxu0  ;;  %v3738_v9 = vpop.f32.mrf.mxu1 }
 0x243   : > { %v11468_v40 = vadd.f32 %v3736_v32, %v3607_v31  ;;  %v989_v32 = vld [vmem:[%s10653_s26 + $0x1518] sm:$0xff]  ;;  %v991_v31 = vld [vmem:[%s10653_s26 + $0x1528] sm:$0xff] }
 0x244   : > { %v3611_v45 = vpop.f32.mrf.mxu0  ;;  %4630 = vmatmul.mubr.f32.vlgmr.msra.gmra.mxu0 %v354_v35  ;;  %v3741_v30 = vpop.f32.mrf.mxu1  ;;  %4760 = vmatmul.mubr.f32.vlgmr.msra.gmra.mxu1 %v356_v38  ;;  %v1117_v36 = vld [vmem:[%s10653_s26 + $0x1918] sm:$0xff]  ;;  %v1119_v9 = vld [vmem:[%s10653_s26 + $0x1928] sm:$0xff] }
 0x245   : > { %v3612_v50 = vadd.f32 %v3611_v45, %v11384_v34  ;;  %4856 = vmatpush1.xpose.msra.mxu0 %v231_v37  ;;  %4634 = vmatprep.mubr.f32.mxu0 %v482_v41  ;;  %v1118_v45 = vld [vmem:[%s10653_s26 + $0x1920] sm:$0xff] }
 0x246   : > { %v3613_v51 = vpop.f32.mrf.mxu0  ;;  %v3743_v53 = vpop.f32.mrf.mxu1  ;;  %4986 = vmatpush1.xpose.msra.mxu1 %v233_v42  ;;  %4764 = vmatprep.mubr.f32.mxu1 %v484_v43  ;;  %v1116_v43 = vld [vmem:[%s10653_s26 + $0x1910] sm:$0xff] }
 0x247   : > { %v11479_v60 = vadd.f32 %v3741_v30, %v3612_v50  ;;  %5115 = vmatprep.subr.mxu0 %v236_v46  ;;  %5245 = vmatprep.subr.mxu1 %v238_v47  ;;  %v1244_v47 = vld [vmem:[%s10653_s26 + $0x1d10] sm:$0xff]  ;;  %v1246_v50 = vld [vmem:[%s10653_s26 + $0x1d20] sm:$0xff]  ;;  %v1243_v53 = vld [vmem:[%s10653_s26 + $0x1d08] sm:$0xff] }
 0x248   : > { %v3616_v59 = vpop.f32.mrf.mxu0  ;;  %4635 = vmatmul.mubr.f32.gmra.mxu0 %v481_v52  ;;  %v3746_v34 = vpop.f32.mrf.mxu1  ;;  %4765 = vmatmul.mubr.f32.gmra.mxu1 %v483_v24 }
 0x249   : > { %v3617_v61 = vadd.f32 %v3616_v59, %v11391_v8  ;;  %4639 = vmatprep.mubr.f32.mxu0 %v609_v55  ;;  %4769 = vmatprep.mubr.f32.mxu1 %v611_v56  ;;  %v1245_v55 = vld [vmem:[%s10653_s26 + $0x1d18] sm:$0xff] }
 0x24a   : > { %v3618_v63 = vpop.f32.mrf.mxu0  ;;  %v3748_v1 = vpop.f32.mrf.mxu1 }
 0x24b   : > { %v11486_v0 = vadd.f32 %v3746_v34, %v3617_v61  ;;  %v1371_v34 = vld [vmem:[%s10653_s26 + $0x2108] sm:$0xff]  ;;  %v1373_v61 = vld [vmem:[%s10653_s26 + $0x2118] sm:$0xff]  ;;  %v1370_v1 = vld [vmem:[%s10653_s26 + $0x2100] sm:$0xff] }
 0x24c   : > { %v3621_v4 = vpop.f32.mrf.mxu0  ;;  %4640 = vmatmul.mubr.f32.gmra.mxu0 %v608_v62  ;;  %v3751_v5 = vpop.f32.mrf.mxu1  ;;  %4770 = vmatmul.mubr.f32.gmra.mxu1 %v610_v33 }
 0x24d   : > { %v3622_v8 = vadd.f32 %v3621_v4, %v11398_v19  ;;  %4644 = vmatprep.mubr.f32.mxu0 %v736_v2  ;;  %4774 = vmatprep.mubr.f32.mxu1 %v738_v3  ;;  %v1372_v2 = vld [vmem:[%s10653_s26 + $0x2110] sm:$0xff] }
 0x24e   : > { %v3623_v13 = vpop.f32.mrf.mxu0  ;;  %v3753_v12 = vpop.f32.mrf.mxu1 }
 0x24f   : > { %v11493_v10 = vadd.f32 %v3751_v5, %v3622_v8  ;;  %v1498_v5 = vld [vmem:[%s10653_s26 + $0x2500] sm:$0xff]  ;;  %v1500_v8 = vld [vmem:[%s10653_s26 + $0x2510] sm:$0xff]  ;;  %v1497_v12 = vld [vmem:[%s10653_s26 + $0x24f8] sm:$0xff] }
 0x250   : > { %v3626_v16 = vpop.f32.mrf.mxu0  ;;  %4645 = vmatmul.mubr.f32.gmra.mxu0 %v735_v11  ;;  %v3756_v21 = vpop.f32.mrf.mxu1  ;;  %4775 = vmatmul.mubr.f32.gmra.mxu1 %v737_v44 }
 0x251   : > { %v3627_v19 = vadd.f32 %v3626_v16, %v11405_v28  ;;  %4649 = vmatprep.mubr.f32.mxu0 %v863_v57  ;;  %4779 = vmatprep.mubr.f32.mxu1 %v865_v14  ;;  %v1499_v57 = vld [vmem:[%s10653_s26 + $0x2508] sm:$0xff] }
 0x252   : > { %v3628_v22 = vpop.f32.mrf.mxu0  ;;  %v3758_v23 = vpop.f32.mrf.mxu1 }
 0x253   : > { %v11500_v39 = vadd.f32 %v3756_v21, %v3627_v19  ;;  %v1625_v21 = vld [vmem:[%s10653_s26 + $0x28f8] sm:$0xff]  ;;  %v1627_v19 = vld [vmem:[%s10653_s26 + $0x2908] sm:$0xff]  ;;  %v1624_v23 = vld [vmem:[%s10653_s26 + $0x28f0] sm:$0xff] }
 0x254   : > { %v3631_v6 = vpop.f32.mrf.mxu0  ;;  %4650 = vmatmul.mubr.f32.gmra.mxu0 %v862_v17  ;;  %v3761_v29 = vpop.f32.mrf.mxu1  ;;  %4780 = vmatmul.mubr.f32.gmra.mxu1 %v864_v54 }
 0x255   : > { %v3632_v28 = vadd.f32 %v3631_v6, %v11412_v15  ;;  %4654 = vmatprep.mubr.f32.mxu0 %v990_v25  ;;  %4784 = vmatprep.mubr.f32.mxu1 %v992_v27  ;;  %v1626_v25 = vld [vmem:[%s10653_s26 + $0x2900] sm:$0xff] }
 0x256   : > { %v3633_v35 = vpop.f32.mrf.mxu0  ;;  %v3763_v38 = vpop.f32.mrf.mxu1 }
 0x257   : > { %v11507_v37 = vadd.f32 %v3761_v29, %v3632_v28  ;;  %v1752_v29 = vld [vmem:[%s10653_s26 + $0x2cf0] sm:$0xff]  ;;  %v1754_v28 = vld [vmem:[%s10653_s26 + $0x2d00] sm:$0xff]  ;;  %v1751_v38 = vld [vmem:[%s10653_s26 + $0x2ce8] sm:$0xff] }
 0x258   : > { %v3636_v41 = vpop.f32.mrf.mxu0  ;;  %4655 = vmatmul.mubr.f32.gmra.mxu0 %v989_v32  ;;  %v3766_v42 = vpop.f32.mrf.mxu1  ;;  %4785 = vmatmul.mubr.f32.gmra.mxu1 %v991_v31 }
 0x259   : > { %v3637_v15 = vadd.f32 %v3636_v41, %v11419_v26  ;;  %4659 = vmatprep.mubr.f32.mxu0 %v1117_v36  ;;  %4789 = vmatprep.mubr.f32.mxu1 %v1119_v9  ;;  %v1753_v36 = vld [vmem:[%s10653_s26 + $0x2cf8] sm:$0xff] }
 0x25a   : > { %v3638_v30 = vpop.f32.mrf.mxu0  ;;  %v3768_v46 = vpop.f32.mrf.mxu1 }
 0x25b   : > { %v11514_v52 = vadd.f32 %v3766_v42, %v3637_v15  ;;  %v1879_v42 = vld [vmem:[%s10653_s26 + $0x30e8] sm:$0xf]  ;;  %v1881_v15 = vld [vmem:[%s10653_s26 + $0x30f8] sm:$0xf]  ;;  %v1878_v46 = vld [vmem:[%s10653_s26 + $0x30e0] sm:$0xf] }
 0x25c   : > { %v3641_v24 = vpop.f32.mrf.mxu0  ;;  %4660 = vmatmul.mubr.f32.gmra.mxu0 %v1116_v43  ;;  %v3771_v51 = vpop.f32.mrf.mxu1  ;;  %4790 = vmatmul.mubr.f32.gmra.mxu1 %v1118_v45 }
 0x25d   : > { %v3642_v26 = vadd.f32 %v3641_v24, %v11426_v48  ;;  %4664 = vmatprep.mubr.f32.mxu0 %v1244_v47  ;;  %4794 = vmatprep.mubr.f32.mxu1 %v1246_v50  ;;  %v1880_v47 = vld [vmem:[%s10653_s26 + $0x30f0] sm:$0xf] }
 0x25e   : > { %v3643_v56 = vpop.f32.mrf.mxu0  ;;  %v3773_v59 = vpop.f32.mrf.mxu1 }
 0x25f   : > { %v11521_v62 = vadd.f32 %v3771_v51, %v3642_v26  ;;  %v359_v51 = vld [vmem:[%s10653_s26 + $0x168] sm:$0xff]  ;;  %v361_v26 = vld [vmem:[%s10653_s26 + $0x178] sm:$0xff]  ;;  %v358_v59 = vld [vmem:[%s10653_s26 + $0x160] sm:$0xff] }
 0x260   : > { %v3646_v33 = vpop.f32.mrf.mxu0  ;;  %4665 = vmatmul.mubr.f32.gmra.mxu0 %v1243_v53  ;;  %v3776_v63 = vpop.f32.mrf.mxu1  ;;  %4795 = vmatmul.mubr.f32.gmra.mxu1 %v1245_v55 }
 0x261   : > { %v3647_v48 = vadd.f32 %v3646_v33, %v11433_v49  ;;  %4669 = vmatprep.mubr.f32.mxu0 %v1371_v34  ;;  %4799 = vmatprep.mubr.f32.mxu1 %v1373_v61  ;;  %v360_v34 = vld [vmem:[%s10653_s26 + $0x170] sm:$0xff] }
 0x262   : > { %v3648_v3 = vpop.f32.mrf.mxu0  ;;  %v3778_v4 = vpop.f32.mrf.mxu1 }
 0x263   : > { %v11528_v11 = vadd.f32 %v3776_v63, %v3647_v48  ;;  %v235_v63 = vld [vmem:[%s10663_s28 + $0x180] sm:$0xff]  ;;  %v488_v3 = vld [vmem:[%s10653_s26 + $0x570] sm:$0xff] }
 0x264   : > { %v3651_v44 = vpop.f32.mrf.mxu0  ;;  %4670 = vmatmul.mubr.f32.gmra.mxu0 %v1370_v1  ;;  %v3781_v13 = vpop.f32.mrf.mxu1  ;;  %4800 = vmatmul.mubr.f32.gmra.mxu1 %v1372_v2  ;;  %v486_v48 = vld [vmem:[%s10653_s26 + $0x560] sm:$0xff]  ;;  %v237_v2 = vld [vmem:[%s10663_s28 + $0x190] sm:$0xff] }
 0x265   : > { %v3652_v49 = vadd.f32 %v3651_v44, %v11440_v58  ;;  %4674 = vmatprep.mubr.f32.mxu0 %v1498_v5  ;;  %4804 = vmatprep.mubr.f32.mxu1 %v1500_v8  ;;  %v240_v5 = vld [vmem:[%s10663_s28 + $0x1a8] sm:$0xff]  ;;  %v242_v8 = vld [vmem:[%s10663_s28 + $0x1b8] sm:$0xff] }
 0x266   : > { %v3653_v14 = vpop.f32.mrf.mxu0  ;;  %v3783_v16 = vpop.f32.mrf.mxu1 }
 0x267   : > { %v11535_v17 = vadd.f32 %v3781_v13, %v3652_v49  ;;  %v485_v13 = vld [vmem:[%s10653_s26 + $0x558] sm:$0xff]  ;;  %v487_v49 = vld [vmem:[%s10653_s26 + $0x568] sm:$0xff] }
 0x268   : > { %v3851_v54 = vpop.f32.mrf.mxu0  ;;  %4675 = vmatmul.mubr.f32.gmra.mxu0 %v1497_v12  ;;  %v3981_v22 = vpop.f32.mrf.mxu1  ;;  %4805 = vmatmul.mubr.f32.gmra.mxu1 %v1499_v57  ;;  %v613_v14 = vld [vmem:[%s10653_s26 + $0x958] sm:$0xff]  ;;  %v615_v16 = vld [vmem:[%s10653_s26 + $0x968] sm:$0xff] }
 0x269   : > { %v3852_v58 = vadd.f32 %v3851_v54, %v11447_v7  ;;  %4679 = vmatprep.mubr.f32.mxu0 %v1625_v21  ;;  %4809 = vmatprep.mubr.f32.mxu1 %v1627_v19 }
 0x26a   : > { %v3853_v27 = vpop.f32.mrf.mxu0  ;;  %v3983_v6 = vpop.f32.mrf.mxu1 }
 0x26b   : > { %v11542_v32 = vadd.f32 %v3981_v22, %v3852_v58  ;;  %v612_v22 = vld [vmem:[%s10653_s26 + $0x950] sm:$0xff]  ;;  %v614_v58 = vld [vmem:[%s10653_s26 + $0x960] sm:$0xff] }
 0x26c   : > { %v3856_v31 = vpop.f32.mrf.mxu0  ;;  %4680 = vmatmul.mubr.f32.gmra.mxu0 %v1624_v23  ;;  %v3986_v35 = vpop.f32.mrf.mxu1  ;;  %4810 = vmatmul.mubr.f32.gmra.mxu1 %v1626_v25  ;;  %v740_v27 = vld [vmem:[%s10653_s26 + $0xd50] sm:$0xff]  ;;  %v742_v6 = vld [vmem:[%s10653_s26 + $0xd60] sm:$0xff] }
 0x26d   : > { %v3857_v7 = vadd.f32 %v3856_v31, %v11454_v18  ;;  %4684 = vmatprep.mubr.f32.mxu0 %v1752_v29  ;;  %4814 = vmatprep.mubr.f32.mxu1 %v1754_v28 }
 0x26e   : > { %v3858_v9 = vpop.f32.mrf.mxu0  ;;  %v3988_v41 = vpop.f32.mrf.mxu1 }
 0x26f   : > { %v11549_v43 = vadd.f32 %v3986_v35, %v3857_v7  ;;  %v739_v35 = vld [vmem:[%s10653_s26 + $0xd48] sm:$0xff]  ;;  %v741_v7 = vld [vmem:[%s10653_s26 + $0xd58] sm:$0xff] }
 0x270   : > { %v3861_v45 = vpop.f32.mrf.mxu0  ;;  %4685 = vmatmul.mubr.f32.gmra.mxu0 %v1751_v38  ;;  %v3991_v30 = vpop.f32.mrf.mxu1  ;;  %4815 = vmatmul.mubr.f32.gmra.mxu1 %v1753_v36  ;;  %v867_v9 = vld [vmem:[%s10653_s26 + $0x1148] sm:$0xff]  ;;  %v869_v41 = vld [vmem:[%s10653_s26 + $0x1158] sm:$0xff] }
 0x271   : > { %v3862_v18 = vadd.f32 %v3861_v45, %v11461_v20  ;;  %4689 = vmatprep.mubr.f32.mxu0 %v1879_v42  ;;  %4819 = vmatprep.mubr.f32.mxu1 %v1881_v15 }
 0x272   : > { %v3863_v50 = vpop.f32.mrf.mxu0  ;;  %v3993_v24 = vpop.f32.mrf.mxu1 }
 0x273   : > { %v11556_v53 = vadd.f32 %v3991_v30, %v3862_v18  ;;  %v866_v30 = vld [vmem:[%s10653_s26 + $0x1140] sm:$0xff]  ;;  %v868_v18 = vld [vmem:[%s10653_s26 + $0x1150] sm:$0xff] }
 0x274   : > { %v3866_v55 = vpop.f32.mrf.mxu0  ;;  %4690 = vmatmul.mubr.f32.gmra.mxu0 %v1878_v46  ;;  %v3996_v56 = vpop.f32.mrf.mxu1  ;;  %4820 = vmatmul.mubr.f32.gmra.mxu1 %v1880_v47  ;;  %v994_v50 = vld [vmem:[%s10653_s26 + $0x1540] sm:$0xff]  ;;  %v996_v24 = vld [vmem:[%s10653_s26 + $0x1550] sm:$0xff] }
 0x275   : > { %v3867_v20 = vadd.f32 %v3866_v55, %v11468_v40  ;;  %4889 = vmatprep.mubr.f32.mxu0 %v359_v51  ;;  %5019 = vmatprep.mubr.f32.mxu1 %v361_v26 }
 0x276   : > { %v3868_v61 = vpop.f32.mrf.mxu0  ;;  %v3998_v33 = vpop.f32.mrf.mxu1 }
 0x277   : > { %v11563_v1 = vadd.f32 %v3996_v56, %v3867_v20  ;;  %v993_v56 = vld [vmem:[%s10653_s26 + $0x1538] sm:$0xff]  ;;  %v995_v20 = vld [vmem:[%s10653_s26 + $0x1548] sm:$0xff] }
 0x278   : > { %v3871_v4 = vpop.f32.mrf.mxu0  ;;  %4890 = vmatmul.mubr.f32.vlgmr.msra.gmra.mxu0 %v358_v59  ;;  %v4001_v40 = vpop.f32.mrf.mxu1  ;;  %5020 = vmatmul.mubr.f32.vlgmr.msra.gmra.mxu1 %v360_v34  ;;  %v1121_v61 = vld [vmem:[%s10653_s26 + $0x1938] sm:$0xff]  ;;  %v1123_v33 = vld [vmem:[%s10653_s26 + $0x1948] sm:$0xff] }
 0x279   : > { %v3872_v44 = vadd.f32 %v3871_v4, %v11479_v60  ;;  %5116 = vmatpush1.xpose.msra.mxu0 %v235_v63  ;;  %4894 = vmatprep.mubr.f32.mxu0 %v486_v48  ;;  %v1122_v4 = vld [vmem:[%s10653_s26 + $0x1940] sm:$0xff] }
 0x27a   : > { %v3873_v12 = vpop.f32.mrf.mxu0  ;;  %v4003_v57 = vpop.f32.mrf.mxu1  ;;  %5246 = vmatpush1.xpose.msra.mxu1 %v237_v2  ;;  %5024 = vmatprep.mubr.f32.mxu1 %v488_v3  ;;  %v1120_v3 = vld [vmem:[%s10653_s26 + $0x1930] sm:$0xff] }
 0x27b   : > { %v11574_v21 = vadd.f32 %v4001_v40, %v3872_v44  ;;  %5375 = vmatprep.subr.mxu0 %v240_v5  ;;  %5505 = vmatprep.subr.mxu1 %v242_v8  ;;  %v1248_v8 = vld [vmem:[%s10653_s26 + $0x1d30] sm:$0xff]  ;;  %v1250_v44 = vld [vmem:[%s10653_s26 + $0x1d40] sm:$0xff]  ;;  %v1247_v57 = vld [vmem:[%s10653_s26 + $0x1d28] sm:$0xff] }
 0x27c   : > { %v3876_v19 = vpop.f32.mrf.mxu0  ;;  %4895 = vmatmul.mubr.f32.gmra.mxu0 %v485_v13  ;;  %v4006_v60 = vpop.f32.mrf.mxu1  ;;  %5025 = vmatmul.mubr.f32.gmra.mxu1 %v487_v49 }
 0x27d   : > { %v3877_v54 = vadd.f32 %v3876_v19, %v11486_v0  ;;  %4899 = vmatprep.mubr.f32.mxu0 %v613_v14  ;;  %5029 = vmatprep.mubr.f32.mxu1 %v615_v16  ;;  %v1249_v14 = vld [vmem:[%s10653_s26 + $0x1d38] sm:$0xff] }
 0x27e   : > { %v3878_v23 = vpop.f32.mrf.mxu0  ;;  %v4008_v25 = vpop.f32.mrf.mxu1 }
 0x27f   : > { %v11581_v29 = vadd.f32 %v4006_v60, %v3877_v54  ;;  %v1375_v60 = vld [vmem:[%s10653_s26 + $0x2128] sm:$0xff]  ;;  %v1377_v54 = vld [vmem:[%s10653_s26 + $0x2138] sm:$0xff]  ;;  %v1374_v25 = vld [vmem:[%s10653_s26 + $0x2120] sm:$0xff] }
 0x280   : > { %v3881_v28 = vpop.f32.mrf.mxu0  ;;  %4900 = vmatmul.mubr.f32.gmra.mxu0 %v612_v22  ;;  %v4011_v31 = vpop.f32.mrf.mxu1  ;;  %5030 = vmatmul.mubr.f32.gmra.mxu1 %v614_v58 }
 0x281   : > { %v3882_v0 = vadd.f32 %v3881_v28, %v11493_v10  ;;  %4904 = vmatprep.mubr.f32.mxu0 %v740_v27  ;;  %5034 = vmatprep.mubr.f32.mxu1 %v742_v6  ;;  %v1376_v27 = vld [vmem:[%s10653_s26 + $0x2130] sm:$0xff] }
 0x282   : > { %v3883_v38 = vpop.f32.mrf.mxu0  ;;  %v4013_v36 = vpop.f32.mrf.mxu1 }
 0x283   : > { %v11588_v42 = vadd.f32 %v4011_v31, %v3882_v0  ;;  %v1502_v31 = vld [vmem:[%s10653_s26 + $0x2520] sm:$0xff]  ;;  %v1504_v0 = vld [vmem:[%s10653_s26 + $0x2530] sm:$0xff]  ;;  %v1501_v36 = vld [vmem:[%s10653_s26 + $0x2518] sm:$0xff] }
 0x284   : > { %v3886_v15 = vpop.f32.mrf.mxu0  ;;  %4905 = vmatmul.mubr.f32.gmra.mxu0 %v739_v35  ;;  %v4016_v45 = vpop.f32.mrf.mxu1  ;;  %5035 = vmatmul.mubr.f32.gmra.mxu1 %v741_v7 }
 0x285   : > { %v3887_v10 = vadd.f32 %v3886_v15, %v11500_v39  ;;  %4909 = vmatprep.mubr.f32.mxu0 %v867_v9  ;;  %5039 = vmatprep.mubr.f32.mxu1 %v869_v41  ;;  %v1503_v9 = vld [vmem:[%s10653_s26 + $0x2528] sm:$0xff] }
 0x286   : > { %v3888_v46 = vpop.f32.mrf.mxu0  ;;  %v4018_v47 = vpop.f32.mrf.mxu1 }
 0x287   : > { %v11595_v51 = vadd.f32 %v4016_v45, %v3887_v10  ;;  %v1629_v45 = vld [vmem:[%s10653_s26 + $0x2918] sm:$0xff]  ;;  %v1631_v10 = vld [vmem:[%s10653_s26 + $0x2928] sm:$0xff]  ;;  %v1628_v47 = vld [vmem:[%s10653_s26 + $0x2910] sm:$0xff] }
 0x288   : > { %v3891_v26 = vpop.f32.mrf.mxu0  ;;  %4910 = vmatmul.mubr.f32.gmra.mxu0 %v866_v30  ;;  %v4021_v55 = vpop.f32.mrf.mxu1  ;;  %5040 = vmatmul.mubr.f32.gmra.mxu1 %v868_v18 }
 0x289   : > { %v3892_v39 = vadd.f32 %v3891_v26, %v11507_v37  ;;  %4914 = vmatprep.mubr.f32.mxu0 %v994_v50  ;;  %5044 = vmatprep.mubr.f32.mxu1 %v996_v24  ;;  %v1630_v50 = vld [vmem:[%s10653_s26 + $0x2920] sm:$0xff] }
 0x28a   : > { %v3893_v59 = vpop.f32.mrf.mxu0  ;;  %v4023_v34 = vpop.f32.mrf.mxu1 }
 0x28b   : > { %v11602_v63 = vadd.f32 %v4021_v55, %v3892_v39  ;;  %v1756_v55 = vld [vmem:[%s10653_s26 + $0x2d10] sm:$0xff]  ;;  %v1758_v39 = vld [vmem:[%s10653_s26 + $0x2d20] sm:$0xff]  ;;  %v1755_v34 = vld [vmem:[%s10653_s26 + $0x2d08] sm:$0xff] }
 0x28c   : > { %v3896_v48 = vpop.f32.mrf.mxu0  ;;  %4915 = vmatmul.mubr.f32.gmra.mxu0 %v993_v56  ;;  %v4026_v2 = vpop.f32.mrf.mxu1  ;;  %5045 = vmatmul.mubr.f32.gmra.mxu1 %v995_v20 }
 0x28d   : > { %v3897_v37 = vadd.f32 %v3896_v48, %v11514_v52  ;;  %4919 = vmatprep.mubr.f32.mxu0 %v1121_v61  ;;  %5049 = vmatprep.mubr.f32.mxu1 %v1123_v33  ;;  %v1757_v61 = vld [vmem:[%s10653_s26 + $0x2d18] sm:$0xff] }
 0x28e   : > { %v3898_v40 = vpop.f32.mrf.mxu0  ;;  %v4028_v5 = vpop.f32.mrf.mxu1 }
 0x28f   : > { %v11609_v13 = vadd.f32 %v4026_v2, %v3897_v37  ;;  %v1883_v2 = vld [vmem:[%s10653_s26 + $0x3108] sm:$0xf]  ;;  %v1885_v37 = vld [vmem:[%s10653_s26 + $0x3118] sm:$0xf]  ;;  %v1882_v5 = vld [vmem:[%s10653_s26 + $0x3100] sm:$0xf] }
 0x290   : > { %v3901_v49 = vpop.f32.mrf.mxu0  ;;  %4920 = vmatmul.mubr.f32.gmra.mxu0 %v1120_v3  ;;  %v4031_v12 = vpop.f32.mrf.mxu1  ;;  %5050 = vmatmul.mubr.f32.gmra.mxu1 %v1122_v4 }
 0x291   : > { %v3902_v52 = vadd.f32 %v3901_v49, %v11521_v62  ;;  %4924 = vmatprep.mubr.f32.mxu0 %v1248_v8  ;;  %5054 = vmatprep.mubr.f32.mxu1 %v1250_v44  ;;  %v1884_v8 = vld [vmem:[%s10653_s26 + $0x3110] sm:$0xf] }
 0x292   : > { %v3903_v16 = vpop.f32.mrf.mxu0  ;;  %v4033_v19 = vpop.f32.mrf.mxu1 }
 0x293   : > { %v11616_v22 = vadd.f32 %v4031_v12, %v3902_v52  ;;  %v363_v12 = vld [vmem:[%s10653_s26 + $0x188] sm:$0xff]  ;;  %v365_v52 = vld [vmem:[%s10653_s26 + $0x198] sm:$0xff]  ;;  %v362_v19 = vld [vmem:[%s10653_s26 + $0x180] sm:$0xff] }
 0x294   : > { %v3906_v58 = vpop.f32.mrf.mxu0  ;;  %4925 = vmatmul.mubr.f32.gmra.mxu0 %v1247_v57  ;;  %v4036_v23 = vpop.f32.mrf.mxu1  ;;  %5055 = vmatmul.mubr.f32.gmra.mxu1 %v1249_v14 }
 0x295   : > { %v3907_v62 = vadd.f32 %v3906_v58, %v11528_v11  ;;  %4929 = vmatprep.mubr.f32.mxu0 %v1375_v60  ;;  %5059 = vmatprep.mubr.f32.mxu1 %v1377_v54  ;;  %v364_v60 = vld [vmem:[%s10653_s26 + $0x190] sm:$0xff] }
 0x296   : > { %v3908_v6 = vpop.f32.mrf.mxu0  ;;  %v4038_v28 = vpop.f32.mrf.mxu1 }
 0x297   : > { %v11623_v35 = vadd.f32 %v4036_v23, %v3907_v62  ;;  %v239_v23 = vld [vmem:[%s10663_s28 + $0x1a0] sm:$0xff]  ;;  %v492_v6 = vld [vmem:[%s10653_s26 + $0x590] sm:$0xff] }
 0x298   : > { %v3911_v7 = vpop.f32.mrf.mxu0  ;;  %4930 = vmatmul.mubr.f32.gmra.mxu0 %v1374_v25  ;;  %v4041_v38 = vpop.f32.mrf.mxu1  ;;  %5060 = vmatmul.mubr.f32.gmra.mxu1 %v1376_v27  ;;  %v490_v62 = vld [vmem:[%s10653_s26 + $0x580] sm:$0xff]  ;;  %v241_v27 = vld [vmem:[%s10663_s28 + $0x1b0] sm:$0xff] }
 0x299   : > { %v3912_v11 = vadd.f32 %v3911_v7, %v11535_v17  ;;  %4934 = vmatprep.mubr.f32.mxu0 %v1502_v31  ;;  %5064 = vmatprep.mubr.f32.mxu1 %v1504_v0  ;;  %v244_v31 = vld [vmem:[%s10663_s28 + $0x1c8] sm:$0xff]  ;;  %v246_v0 = vld [vmem:[%s10663_s28 + $0x1d8] sm:$0xff] }
 0x29a   : > { %v3913_v41 = vpop.f32.mrf.mxu0  ;;  %v4043_v15 = vpop.f32.mrf.mxu1 }
 0x29b   : > { %v11630_v30 = vadd.f32 %v4041_v38, %v3912_v11  ;;  %v489_v38 = vld [vmem:[%s10653_s26 + $0x578] sm:$0xff]  ;;  %v491_v11 = vld [vmem:[%s10653_s26 + $0x588] sm:$0xff] }
 0x29c   : > { %v4111_v18 = vpop.f32.mrf.mxu0  ;;  %4935 = vmatmul.mubr.f32.gmra.mxu0 %v1501_v36  ;;  %v4241_v46 = vpop.f32.mrf.mxu1  ;;  %5065 = vmatmul.mubr.f32.gmra.mxu1 %v1503_v9  ;;  %v617_v41 = vld [vmem:[%s10653_s26 + $0x978] sm:$0xff]  ;;  %v619_v15 = vld [vmem:[%s10653_s26 + $0x988] sm:$0xff] }
 0x29d   : > { %v4112_v17 = vadd.f32 %v4111_v18, %v11542_v32  ;;  %4939 = vmatprep.mubr.f32.mxu0 %v1629_v45  ;;  %5069 = vmatprep.mubr.f32.mxu1 %v1631_v10 }
 0x29e   : > { %v4113_v24 = vpop.f32.mrf.mxu0  ;;  %v4243_v26 = vpop.f32.mrf.mxu1 }
 0x29f   : > { %v11637_v56 = vadd.f32 %v4241_v46, %v4112_v17  ;;  %v616_v46 = vld [vmem:[%s10653_s26 + $0x970] sm:$0xff]  ;;  %v618_v17 = vld [vmem:[%s10653_s26 + $0x980] sm:$0xff] }
 0x2a0   : > { %v4116_v20 = vpop.f32.mrf.mxu0  ;;  %4940 = vmatmul.mubr.f32.gmra.mxu0 %v1628_v47  ;;  %v4246_v59 = vpop.f32.mrf.mxu1  ;;  %5070 = vmatmul.mubr.f32.gmra.mxu1 %v1630_v50  ;;  %v744_v24 = vld [vmem:[%s10653_s26 + $0xd70] sm:$0xff]  ;;  %v746_v26 = vld [vmem:[%s10653_s26 + $0xd80] sm:$0xff] }
 0x2a1   : > { %v4117_v32 = vadd.f32 %v4116_v20, %v11549_v43  ;;  %4944 = vmatprep.mubr.f32.mxu0 %v1756_v55  ;;  %5074 = vmatprep.mubr.f32.mxu1 %v1758_v39 }
 0x2a2   : > { %v4118_v33 = vpop.f32.mrf.mxu0  ;;  %v4248_v48 = vpop.f32.mrf.mxu1 }
 0x2a3   : > { %v11644_v3 = vadd.f32 %v4246_v59, %v4117_v32  ;;  %v743_v59 = vld [vmem:[%s10653_s26 + $0xd68] sm:$0xff]  ;;  %v745_v32 = vld [vmem:[%s10653_s26 + $0xd78] sm:$0xff] }
 0x2a4   : > { %v4121_v4 = vpop.f32.mrf.mxu0  ;;  %4945 = vmatmul.mubr.f32.gmra.mxu0 %v1755_v34  ;;  %v4251_v40 = vpop.f32.mrf.mxu1  ;;  %5075 = vmatmul.mubr.f32.gmra.mxu1 %v1757_v61  ;;  %v871_v33 = vld [vmem:[%s10653_s26 + $0x1168] sm:$0xff]  ;;  %v873_v48 = vld [vmem:[%s10653_s26 + $0x1178] sm:$0xff] }
 0x2a5   : > { %v4122_v43 = vadd.f32 %v4121_v4, %v11556_v53  ;;  %4949 = vmatprep.mubr.f32.mxu0 %v1883_v2  ;;  %5079 = vmatprep.mubr.f32.mxu1 %v1885_v37 }
 0x2a6   : > { %v4123_v44 = vpop.f32.mrf.mxu0  ;;  %v4253_v49 = vpop.f32.mrf.mxu1 }
 0x2a7   : > { %v11651_v57 = vadd.f32 %v4251_v40, %v4122_v43  ;;  %v870_v40 = vld [vmem:[%s10653_s26 + $0x1160] sm:$0xff]  ;;  %v872_v43 = vld [vmem:[%s10653_s26 + $0x1170] sm:$0xff] }
 0x2a8   : > { %v4126_v14 = vpop.f32.mrf.mxu0  ;;  %4950 = vmatmul.mubr.f32.gmra.mxu0 %v1882_v5  ;;  %v4256_v16 = vpop.f32.mrf.mxu1  ;;  %5080 = vmatmul.mubr.f32.gmra.mxu1 %v1884_v8  ;;  %v998_v44 = vld [vmem:[%s10653_s26 + $0x1560] sm:$0xff]  ;;  %v1000_v49 = vld [vmem:[%s10653_s26 + $0x1570] sm:$0xff] }
 0x2a9   : > { %v4127_v53 = vadd.f32 %v4126_v14, %v11563_v1  ;;  %5149 = vmatprep.mubr.f32.mxu0 %v363_v12  ;;  %5279 = vmatprep.mubr.f32.mxu1 %v365_v52 }
 0x2aa   : > { %v4128_v54 = vpop.f32.mrf.mxu0  ;;  %v4258_v58 = vpop.f32.mrf.mxu1 }
 0x2ab   : > { %v11658_v25 = vadd.f32 %v4256_v16, %v4127_v53  ;;  %v997_v16 = vld [vmem:[%s10653_s26 + $0x1558] sm:$0xff]  ;;  %v999_v53 = vld [vmem:[%s10653_s26 + $0x1568] sm:$0xff] }
 0x2ac   : > { %v4131_v28 = vpop.f32.mrf.mxu0  ;;  %5150 = vmatmul.mubr.f32.vlgmr.msra.gmra.mxu0 %v362_v19  ;;  %v4261_v1 = vpop.f32.mrf.mxu1  ;;  %5280 = vmatmul.mubr.f32.vlgmr.msra.gmra.mxu1 %v364_v60  ;;  %v1125_v54 = vld [vmem:[%s10653_s26 + $0x1958] sm:$0xff]  ;;  %v1127_v58 = vld [vmem:[%s10653_s26 + $0x1968] sm:$0xff] }
 0x2ad   : > { %v4132_v7 = vadd.f32 %v4131_v28, %v11574_v21  ;;  %5376 = vmatpush1.xpose.msra.mxu0 %v239_v23  ;;  %5154 = vmatprep.mubr.f32.mxu0 %v490_v62  ;;  %v1126_v28 = vld [vmem:[%s10653_s26 + $0x1960] sm:$0xff] }
 0x2ae   : > { %v4133_v36 = vpop.f32.mrf.mxu0  ;;  %v4263_v9 = vpop.f32.mrf.mxu1  ;;  %5506 = vmatpush1.xpose.msra.mxu1 %v241_v27  ;;  %5284 = vmatprep.mubr.f32.mxu1 %v492_v6  ;;  %v1124_v6 = vld [vmem:[%s10653_s26 + $0x1950] sm:$0xff] }
 0x2af   : > { %v11669_v45 = vadd.f32 %v4261_v1, %v4132_v7  ;;  %5635 = vmatprep.subr.mxu0 %v244_v31  ;;  %5765 = vmatprep.subr.mxu1 %v246_v0  ;;  %v1252_v0 = vld [vmem:[%s10653_s26 + $0x1d50] sm:$0xff]  ;;  %v1254_v7 = vld [vmem:[%s10653_s26 + $0x1d60] sm:$0xff]  ;;  %v1251_v9 = vld [vmem:[%s10653_s26 + $0x1d48] sm:$0xff] }
 0x2b0   : > { %v4136_v10 = vpop.f32.mrf.mxu0  ;;  %5155 = vmatmul.mubr.f32.gmra.mxu0 %v489_v38  ;;  %v4266_v21 = vpop.f32.mrf.mxu1  ;;  %5285 = vmatmul.mubr.f32.gmra.mxu1 %v491_v11 }
 0x2b1   : > { %v4137_v18 = vadd.f32 %v4136_v10, %v11581_v29  ;;  %5159 = vmatprep.mubr.f32.mxu0 %v617_v41  ;;  %5289 = vmatprep.mubr.f32.mxu1 %v619_v15  ;;  %v1253_v41 = vld [vmem:[%s10653_s26 + $0x1d58] sm:$0xff] }
 0x2b2   : > { %v4138_v47 = vpop.f32.mrf.mxu0  ;;  %v4268_v50 = vpop.f32.mrf.mxu1 }
 0x2b3   : > { %v11676_v55 = vadd.f32 %v4266_v21, %v4137_v18  ;;  %v1379_v21 = vld [vmem:[%s10653_s26 + $0x2148] sm:$0xff]  ;;  %v1381_v18 = vld [vmem:[%s10653_s26 + $0x2158] sm:$0xff]  ;;  %v1378_v50 = vld [vmem:[%s10653_s26 + $0x2140] sm:$0xff] }
 0x2b4   : > { %v4141_v39 = vpop.f32.mrf.mxu0  ;;  %5160 = vmatmul.mubr.f32.gmra.mxu0 %v616_v46  ;;  %v4271_v20 = vpop.f32.mrf.mxu1  ;;  %5290 = vmatmul.mubr.f32.gmra.mxu1 %v618_v17 }
 0x2b5   : > { %v4142_v29 = vadd.f32 %v4141_v39, %v11588_v42  ;;  %5164 = vmatprep.mubr.f32.mxu0 %v744_v24  ;;  %5294 = vmatprep.mubr.f32.mxu1 %v746_v26  ;;  %v1380_v24 = vld [vmem:[%s10653_s26 + $0x2150] sm:$0xff] }
 0x2b6   : > { %v4143_v34 = vpop.f32.mrf.mxu0  ;;  %v4273_v61 = vpop.f32.mrf.mxu1 }
 0x2b7   : > { %v11683_v2 = vadd.f32 %v4271_v20, %v4142_v29  ;;  %v1506_v20 = vld [vmem:[%s10653_s26 + $0x2540] sm:$0xff]  ;;  %v1508_v29 = vld [vmem:[%s10653_s26 + $0x2550] sm:$0xff]  ;;  %v1505_v61 = vld [vmem:[%s10653_s26 + $0x2538] sm:$0xff] }
 0x2b8   : > { %v4146_v37 = vpop.f32.mrf.mxu0  ;;  %5165 = vmatmul.mubr.f32.gmra.mxu0 %v743_v59  ;;  %v4276_v4 = vpop.f32.mrf.mxu1  ;;  %5295 = vmatmul.mubr.f32.gmra.mxu1 %v745_v32 }
 0x2b9   : > { %v4147_v42 = vadd.f32 %v4146_v37, %v11595_v51  ;;  %5169 = vmatprep.mubr.f32.mxu0 %v871_v33  ;;  %5299 = vmatprep.mubr.f32.mxu1 %v873_v48  ;;  %v1507_v33 = vld [vmem:[%s10653_s26 + $0x2548] sm:$0xff] }
 0x2ba   : > { %v4148_v5 = vpop.f32.mrf.mxu0  ;;  %v4278_v8 = vpop.f32.mrf.mxu1 }
 0x2bb   : > { %v11690_v12 = vadd.f32 %v4276_v4, %v4147_v42  ;;  %v1633_v4 = vld [vmem:[%s10653_s26 + $0x2938] sm:$0xff]  ;;  %v1635_v42 = vld [vmem:[%s10653_s26 + $0x2948] sm:$0xff]  ;;  %v1632_v8 = vld [vmem:[%s10653_s26 + $0x2930] sm:$0xff] }
 0x2bc   : > { %v4151_v52 = vpop.f32.mrf.mxu0  ;;  %5170 = vmatmul.mubr.f32.gmra.mxu0 %v870_v40  ;;  %v4281_v14 = vpop.f32.mrf.mxu1  ;;  %5300 = vmatmul.mubr.f32.gmra.mxu1 %v872_v43 }
 0x2bd   : > { %v4152_v51 = vadd.f32 %v4151_v52, %v11602_v63  ;;  %5174 = vmatprep.mubr.f32.mxu0 %v998_v44  ;;  %5304 = vmatprep.mubr.f32.mxu1 %v1000_v49  ;;  %v1634_v44 = vld [vmem:[%s10653_s26 + $0x2940] sm:$0xff] }
 0x2be   : > { %v4153_v19 = vpop.f32.mrf.mxu0  ;;  %v4283_v60 = vpop.f32.mrf.mxu1 }
 0x2bf   : > { %v11697_v23 = vadd.f32 %v4281_v14, %v4152_v51  ;;  %v1760_v14 = vld [vmem:[%s10653_s26 + $0x2d30] sm:$0xff]  ;;  %v1762_v51 = vld [vmem:[%s10653_s26 + $0x2d40] sm:$0xff]  ;;  %v1759_v60 = vld [vmem:[%s10653_s26 + $0x2d28] sm:$0xff] }
 0x2c0   : > { %v4156_v62 = vpop.f32.mrf.mxu0  ;;  %5175 = vmatmul.mubr.f32.gmra.mxu0 %v997_v16  ;;  %v4286_v27 = vpop.f32.mrf.mxu1  ;;  %5305 = vmatmul.mubr.f32.gmra.mxu1 %v999_v53 }
 0x2c1   : > { %v4157_v63 = vadd.f32 %v4156_v62, %v11609_v13  ;;  %5179 = vmatprep.mubr.f32.mxu0 %v1125_v54  ;;  %5309 = vmatprep.mubr.f32.mxu1 %v1127_v58  ;;  %v1761_v54 = vld [vmem:[%s10653_s26 + $0x2d38] sm:$0xff] }
 0x2c2   : > { %v4158_v1 = vpop.f32.mrf.mxu0  ;;  %v4288_v31 = vpop.f32.mrf.mxu1 }
 0x2c3   : > { %v11704_v38 = vadd.f32 %v4286_v27, %v4157_v63  ;;  %v1887_v27 = vld [vmem:[%s10653_s26 + $0x3128] sm:$0xf]  ;;  %v1889_v63 = vld [vmem:[%s10653_s26 + $0x3138] sm:$0xf]  ;;  %v1886_v31 = vld [vmem:[%s10653_s26 + $0x3120] sm:$0xf] }
 0x2c4   : > { %v4161_v11 = vpop.f32.mrf.mxu0  ;;  %5180 = vmatmul.mubr.f32.gmra.mxu0 %v1124_v6  ;;  %v4291_v36 = vpop.f32.mrf.mxu1  ;;  %5310 = vmatmul.mubr.f32.gmra.mxu1 %v1126_v28 }
 0x2c5   : > { %v4162_v13 = vadd.f32 %v4161_v11, %v11616_v22  ;;  %5184 = vmatprep.mubr.f32.mxu0 %v1252_v0  ;;  %5314 = vmatprep.mubr.f32.mxu1 %v1254_v7  ;;  %v1888_v0 = vld [vmem:[%s10653_s26 + $0x3130] sm:$0xf] }
 0x2c6   : > { %v4163_v15 = vpop.f32.mrf.mxu0  ;;  %v4293_v10 = vpop.f32.mrf.mxu1 }
 0x2c7   : > { %v11711_v46 = vadd.f32 %v4291_v36, %v4162_v13  ;;  %v367_v36 = vld [vmem:[%s10653_s26 + $0x1a8] sm:$0xff]  ;;  %v369_v13 = vld [vmem:[%s10653_s26 + $0x1b8] sm:$0xff]  ;;  %v366_v10 = vld [vmem:[%s10653_s26 + $0x1a0] sm:$0xff] }
 0x2c8   : > { %v4166_v17 = vpop.f32.mrf.mxu0  ;;  %5185 = vmatmul.mubr.f32.gmra.mxu0 %v1251_v9  ;;  %v4296_v47 = vpop.f32.mrf.mxu1  ;;  %5315 = vmatmul.mubr.f32.gmra.mxu1 %v1253_v41 }
 0x2c9   : > { %v4167_v22 = vadd.f32 %v4166_v17, %v11623_v35  ;;  %5189 = vmatprep.mubr.f32.mxu0 %v1379_v21  ;;  %5319 = vmatprep.mubr.f32.mxu1 %v1381_v18  ;;  %v368_v21 = vld [vmem:[%s10653_s26 + $0x1b0] sm:$0xff] }
 0x2ca   : > { %v4168_v26 = vpop.f32.mrf.mxu0  ;;  %v4298_v39 = vpop.f32.mrf.mxu1 }
 0x2cb   : > { %v11718_v59 = vadd.f32 %v4296_v47, %v4167_v22  ;;  %v243_v47 = vld [vmem:[%s10663_s28 + $0x1c0] sm:$0xff]  ;;  %v496_v26 = vld [vmem:[%s10653_s26 + $0x5b0] sm:$0xff] }
 0x2cc   : > { %v4171_v32 = vpop.f32.mrf.mxu0  ;;  %5190 = vmatmul.mubr.f32.gmra.mxu0 %v1378_v50  ;;  %v4301_v34 = vpop.f32.mrf.mxu1  ;;  %5320 = vmatmul.mubr.f32.gmra.mxu1 %v1380_v24  ;;  %v494_v22 = vld [vmem:[%s10653_s26 + $0x5a0] sm:$0xff]  ;;  %v245_v24 = vld [vmem:[%s10663_s28 + $0x1d0] sm:$0xff] }
 0x2cd   : > { %v4172_v35 = vadd.f32 %v4171_v32, %v11630_v30  ;;  %5194 = vmatprep.mubr.f32.mxu0 %v1506_v20  ;;  %5324 = vmatprep.mubr.f32.mxu1 %v1508_v29  ;;  %v248_v20 = vld [vmem:[%s10663_s28 + $0x1e8] sm:$0xff]  ;;  %v250_v29 = vld [vmem:[%s10663_s28 + $0x1f8] sm:$0xff] }
 0x2ce   : > { %v4173_v48 = vpop.f32.mrf.mxu0  ;;  %v4303_v37 = vpop.f32.mrf.mxu1 }
 0x2cf   : > { %v11725_v40 = vadd.f32 %v4301_v34, %v4172_v35  ;;  %v493_v34 = vld [vmem:[%s10653_s26 + $0x598] sm:$0xff]  ;;  %v495_v35 = vld [vmem:[%s10653_s26 + $0x5a8] sm:$0xff] }
 0x2d0   : > { %v4371_v43 = vpop.f32.mrf.mxu0  ;;  %5195 = vmatmul.mubr.f32.gmra.mxu0 %v1505_v61  ;;  %v4501_v5 = vpop.f32.mrf.mxu1  ;;  %5325 = vmatmul.mubr.f32.gmra.mxu1 %v1507_v33  ;;  %v621_v48 = vld [vmem:[%s10653_s26 + $0x998] sm:$0xff]  ;;  %v623_v37 = vld [vmem:[%s10653_s26 + $0x9a8] sm:$0xff] }
 0x2d1   : > { %v4372_v30 = vadd.f32 %v4371_v43, %v11637_v56  ;;  %5199 = vmatprep.mubr.f32.mxu0 %v1633_v4  ;;  %5329 = vmatprep.mubr.f32.mxu1 %v1635_v42 }
 0x2d2   : > { %v4373_v49 = vpop.f32.mrf.mxu0  ;;  %v4503_v52 = vpop.f32.mrf.mxu1 }
 0x2d3   : > { %v11732_v16 = vadd.f32 %v4501_v5, %v4372_v30  ;;  %v620_v5 = vld [vmem:[%s10653_s26 + $0x990] sm:$0xff]  ;;  %v622_v30 = vld [vmem:[%s10653_s26 + $0x9a0] sm:$0xff] }
 0x2d4   : > { %v4376_v53 = vpop.f32.mrf.mxu0  ;;  %5200 = vmatmul.mubr.f32.gmra.mxu0 %v1632_v8  ;;  %v4506_v19 = vpop.f32.mrf.mxu1  ;;  %5330 = vmatmul.mubr.f32.gmra.mxu1 %v1634_v44  ;;  %v748_v49 = vld [vmem:[%s10653_s26 + $0xd90] sm:$0xff]  ;;  %v750_v52 = vld [vmem:[%s10653_s26 + $0xda0] sm:$0xff] }
 0x2d5   : > { %v4377_v56 = vadd.f32 %v4376_v53, %v11644_v3  ;;  %5204 = vmatprep.mubr.f32.mxu0 %v1760_v14  ;;  %5334 = vmatprep.mubr.f32.mxu1 %v1762_v51 }
 0x2d6   : > { %v4378_v58 = vpop.f32.mrf.mxu0  ;;  %v4508_v62 = vpop.f32.mrf.mxu1 }
 0x2d7   : > { %v11739_v6 = vadd.f32 %v4506_v19, %v4377_v56  ;;  %v747_v19 = vld [vmem:[%s10653_s26 + $0xd88] sm:$0xff]  ;;  %v749_v56 = vld [vmem:[%s10653_s26 + $0xd98] sm:$0xff] }
 0x2d8   : > { %v4381_v28 = vpop.f32.mrf.mxu0  ;;  %5205 = vmatmul.mubr.f32.gmra.mxu0 %v1759_v60  ;;  %v4511_v1 = vpop.f32.mrf.mxu1  ;;  %5335 = vmatmul.mubr.f32.gmra.mxu1 %v1761_v54  ;;  %v875_v58 = vld [vmem:[%s10653_s26 + $0x1188] sm:$0xff]  ;;  %v877_v62 = vld [vmem:[%s10653_s26 + $0x1198] sm:$0xff] }
 0x2d9   : > { %v4382_v3 = vadd.f32 %v4381_v28, %v11651_v57  ;;  %5209 = vmatprep.mubr.f32.mxu0 %v1887_v27  ;;  %5339 = vmatprep.mubr.f32.mxu1 %v1889_v63 }
 0x2da   : > { %v4383_v7 = vpop.f32.mrf.mxu0  ;;  %v4513_v11 = vpop.f32.mrf.mxu1 }
 0x2db   : > { %v11746_v9 = vadd.f32 %v4511_v1, %v4382_v3  ;;  %v874_v1 = vld [vmem:[%s10653_s26 + $0x1180] sm:$0xff]  ;;  %v876_v3 = vld [vmem:[%s10653_s26 + $0x1190] sm:$0xff] }
 0x2dc   : > { %v4386_v41 = vpop.f32.mrf.mxu0  ;;  %5210 = vmatmul.mubr.f32.gmra.mxu0 %v1886_v31  ;;  %v4516_v15 = vpop.f32.mrf.mxu1  ;;  %5340 = vmatmul.mubr.f32.gmra.mxu1 %v1888_v0  ;;  %v1002_v7 = vld [vmem:[%s10653_s26 + $0x1580] sm:$0xff]  ;;  %v1004_v11 = vld [vmem:[%s10653_s26 + $0x1590] sm:$0xff] }
 0x2dd   : > { %v4387_v57 = vadd.f32 %v4386_v41, %v11658_v25  ;;  %5409 = vmatprep.mubr.f32.mxu0 %v367_v36  ;;  %5539 = vmatprep.mubr.f32.mxu1 %v369_v13 }
 0x2de   : > { %v4388_v18 = vpop.f32.mrf.mxu0  ;;  %v4518_v17 = vpop.f32.mrf.mxu1 }
 0x2df   : > { %v11753_v50 = vadd.f32 %v4516_v15, %v4387_v57  ;;  %v1001_v15 = vld [vmem:[%s10653_s26 + $0x1578] sm:$0xff]  ;;  %v1003_v57 = vld [vmem:[%s10653_s26 + $0x1588] sm:$0xff] }
 0x2e0   : > { %v4391_v39 = vpop.f32.mrf.mxu0  ;;  %5410 = vmatmul.mubr.f32.vlgmr.msra.gmra.mxu0 %v366_v10  ;;  %v4521_v25 = vpop.f32.mrf.mxu1  ;;  %5540 = vmatmul.mubr.f32.vlgmr.msra.gmra.mxu1 %v368_v21  ;;  %v1129_v18 = vld [vmem:[%s10653_s26 + $0x1978] sm:$0xff]  ;;  %v1131_v17 = vld [vmem:[%s10653_s26 + $0x1988] sm:$0xff] }
 0x2e1   : > { %v4392_v32 = vadd.f32 %v4391_v39, %v11669_v45  ;;  %5636 = vmatpush1.xpose.msra.mxu0 %v243_v47  ;;  %5414 = vmatprep.mubr.f32.mxu0 %v494_v22  ;;  %v1130_v39 = vld [vmem:[%s10653_s26 + $0x1980] sm:$0xff] }
 0x2e2   : > { %v4393_v61 = vpop.f32.mrf.mxu0  ;;  %v4523_v33 = vpop.f32.mrf.mxu1  ;;  %5766 = vmatpush1.xpose.msra.mxu1 %v245_v24  ;;  %5544 = vmatprep.mubr.f32.mxu1 %v496_v26  ;;  %v1128_v26 = vld [vmem:[%s10653_s26 + $0x1970] sm:$0xff] }
 0x2e3   : > { %v11764_v4 = vadd.f32 %v4521_v25, %v4392_v32  ;;  %5895 = vmatprep.subr.mxu0 %v248_v20  ;;  %6025 = vmatprep.subr.mxu1 %v250_v29  ;;  %v1256_v29 = vld [vmem:[%s10653_s26 + $0x1d70] sm:$0xff]  ;;  %v1258_v32 = vld [vmem:[%s10653_s26 + $0x1d80] sm:$0xff]  ;;  %v1255_v33 = vld [vmem:[%s10653_s26 + $0x1d68] sm:$0xff] }
 0x2e4   : > { %v4396_v42 = vpop.f32.mrf.mxu0  ;;  %5415 = vmatmul.mubr.f32.gmra.mxu0 %v493_v34  ;;  %v4526_v45 = vpop.f32.mrf.mxu1  ;;  %5545 = vmatmul.mubr.f32.gmra.mxu1 %v495_v35 }
 0x2e5   : > { %v4397_v43 = vadd.f32 %v4396_v42, %v11676_v55  ;;  %5419 = vmatprep.mubr.f32.mxu0 %v621_v48  ;;  %5549 = vmatprep.mubr.f32.mxu1 %v623_v37  ;;  %v1257_v48 = vld [vmem:[%s10653_s26 + $0x1d78] sm:$0xff] }
 0x2e6   : > { %v4398_v8 = vpop.f32.mrf.mxu0  ;;  %v4528_v44 = vpop.f32.mrf.mxu1 }
 0x2e7   : > { %v11771_v14 = vadd.f32 %v4526_v45, %v4397_v43  ;;  %v1383_v45 = vld [vmem:[%s10653_s26 + $0x2168] sm:$0xff]  ;;  %v1385_v43 = vld [vmem:[%s10653_s26 + $0x2178] sm:$0xff]  ;;  %v1382_v44 = vld [vmem:[%s10653_s26 + $0x2160] sm:$0xff] }
 0x2e8   : > { %v4401_v51 = vpop.f32.mrf.mxu0  ;;  %5420 = vmatmul.mubr.f32.gmra.mxu0 %v620_v5  ;;  %v4531_v53 = vpop.f32.mrf.mxu1  ;;  %5550 = vmatmul.mubr.f32.gmra.mxu1 %v622_v30 }
 0x2e9   : > { %v4402_v55 = vadd.f32 %v4401_v51, %v11683_v2  ;;  %5424 = vmatprep.mubr.f32.mxu0 %v748_v49  ;;  %5554 = vmatprep.mubr.f32.mxu1 %v750_v52  ;;  %v1384_v49 = vld [vmem:[%s10653_s26 + $0x2170] sm:$0xff] }
 0x2ea   : > { %v4403_v60 = vpop.f32.mrf.mxu0  ;;  %v4533_v54 = vpop.f32.mrf.mxu1 }
 0x2eb   : > { %v11778_v27 = vadd.f32 %v4531_v53, %v4402_v55  ;;  %v1510_v53 = vld [vmem:[%s10653_s26 + $0x2560] sm:$0xff]  ;;  %v1512_v55 = vld [vmem:[%s10653_s26 + $0x2570] sm:$0xff]  ;;  %v1509_v54 = vld [vmem:[%s10653_s26 + $0x2558] sm:$0xff] }
 0x2ec   : > { %v4406_v63 = vpop.f32.mrf.mxu0  ;;  %5425 = vmatmul.mubr.f32.gmra.mxu0 %v747_v19  ;;  %v4536_v28 = vpop.f32.mrf.mxu1  ;;  %5555 = vmatmul.mubr.f32.gmra.mxu1 %v749_v56 }
 0x2ed   : > { %v4407_v2 = vadd.f32 %v4406_v63, %v11690_v12  ;;  %5429 = vmatprep.mubr.f32.mxu0 %v875_v58  ;;  %5559 = vmatprep.mubr.f32.mxu1 %v877_v62  ;;  %v1511_v58 = vld [vmem:[%s10653_s26 + $0x2568] sm:$0xff] }
 0x2ee   : > { %v4408_v31 = vpop.f32.mrf.mxu0  ;;  %v4538_v0 = vpop.f32.mrf.mxu1 }
 0x2ef   : > { %v11785_v36 = vadd.f32 %v4536_v28, %v4407_v2  ;;  %v1637_v28 = vld [vmem:[%s10653_s26 + $0x2958] sm:$0xff]  ;;  %v1639_v2 = vld [vmem:[%s10653_s26 + $0x2968] sm:$0xff]  ;;  %v1636_v0 = vld [vmem:[%s10653_s26 + $0x2950] sm:$0xff] }
 0x2f0   : > { %v4411_v13 = vpop.f32.mrf.mxu0  ;;  %5430 = vmatmul.mubr.f32.gmra.mxu0 %v874_v1  ;;  %v4541_v41 = vpop.f32.mrf.mxu1  ;;  %5560 = vmatmul.mubr.f32.gmra.mxu1 %v876_v3 }
 0x2f1   : > { %v4412_v12 = vadd.f32 %v4411_v13, %v11697_v23  ;;  %5434 = vmatprep.mubr.f32.mxu0 %v1002_v7  ;;  %5564 = vmatprep.mubr.f32.mxu1 %v1004_v11  ;;  %v1638_v7 = vld [vmem:[%s10653_s26 + $0x2960] sm:$0xff] }
 0x2f2   : > { %v4413_v10 = vpop.f32.mrf.mxu0  ;;  %v4543_v21 = vpop.f32.mrf.mxu1 }
 0x2f3   : > { %v11792_v47 = vadd.f32 %v4541_v41, %v4412_v12  ;;  %v1764_v41 = vld [vmem:[%s10653_s26 + $0x2d50] sm:$0xff]  ;;  %v1766_v12 = vld [vmem:[%s10653_s26 + $0x2d60] sm:$0xff]  ;;  %v1763_v21 = vld [vmem:[%s10653_s26 + $0x2d48] sm:$0xff] }
 0x2f4   : > { %v4416_v22 = vpop.f32.mrf.mxu0  ;;  %5435 = vmatmul.mubr.f32.gmra.mxu0 %v1001_v15  ;;  %v4546_v24 = vpop.f32.mrf.mxu1  ;;  %5565 = vmatmul.mubr.f32.gmra.mxu1 %v1003_v57 }
 0x2f5   : > { %v4417_v23 = vadd.f32 %v4416_v22, %v11704_v38  ;;  %5439 = vmatprep.mubr.f32.mxu0 %v1129_v18  ;;  %5569 = vmatprep.mubr.f32.mxu1 %v1131_v17  ;;  %v1765_v18 = vld [vmem:[%s10653_s26 + $0x2d58] sm:$0xff] }
 0x2f6   : > { %v4418_v25 = vpop.f32.mrf.mxu0  ;;  %v4548_v20 = vpop.f32.mrf.mxu1 }
 0x2f7   : > { %v11799_v34 = vadd.f32 %v4546_v24, %v4417_v23  ;;  %v1891_v24 = vld [vmem:[%s10653_s26 + $0x3148] sm:$0xf]  ;;  %v1893_v23 = vld [vmem:[%s10653_s26 + $0x3158] sm:$0xf]  ;;  %v1890_v20 = vld [vmem:[%s10653_s26 + $0x3140] sm:$0xf] }
 0x2f8   : > { %v4421_v35 = vpop.f32.mrf.mxu0  ;;  %5440 = vmatmul.mubr.f32.gmra.mxu0 %v1128_v26  ;;  %v4551_v61 = vpop.f32.mrf.mxu1  ;;  %5570 = vmatmul.mubr.f32.gmra.mxu1 %v1130_v39 }
 0x2f9   : > { %v4422_v38 = vadd.f32 %v4421_v35, %v11711_v46  ;;  %5444 = vmatprep.mubr.f32.mxu0 %v1256_v29  ;;  %5574 = vmatprep.mubr.f32.mxu1 %v1258_v32  ;;  %v1892_v29 = vld [vmem:[%s10653_s26 + $0x3150] sm:$0xf] }
 0x2fa   : > { %v4423_v37 = vpop.f32.mrf.mxu0  ;;  %v4553_v42 = vpop.f32.mrf.mxu1 }
 0x2fb   : > { %v11806_v5 = vadd.f32 %v4551_v61, %v4422_v38  ;;  %v371_v61 = vld [vmem:[%s10653_s26 + $0x1c8] sm:$0xff]  ;;  %v373_v38 = vld [vmem:[%s10653_s26 + $0x1d8] sm:$0xff]  ;;  %v370_v42 = vld [vmem:[%s10653_s26 + $0x1c0] sm:$0xff] }
 0x2fc   : > { %v4426_v30 = vpop.f32.mrf.mxu0  ;;  %5445 = vmatmul.mubr.f32.gmra.mxu0 %v1255_v33  ;;  %v4556_v8 = vpop.f32.mrf.mxu1  ;;  %5575 = vmatmul.mubr.f32.gmra.mxu1 %v1257_v48 }
 0x2fd   : > { %v4427_v46 = vadd.f32 %v4426_v30, %v11718_v59  ;;  %5449 = vmatprep.mubr.f32.mxu0 %v1383_v45  ;;  %5579 = vmatprep.mubr.f32.mxu1 %v1385_v43  ;;  %v372_v45 = vld [vmem:[%s10653_s26 + $0x1d0] sm:$0xff] }
 0x2fe   : > { %v4428_v52 = vpop.f32.mrf.mxu0  ;;  %v4558_v51 = vpop.f32.mrf.mxu1 }
 0x2ff   : > { %v11813_v19 = vadd.f32 %v4556_v8, %v4427_v46  ;;  %v247_v8 = vld [vmem:[%s10663_s28 + $0x1e0] sm:$0xff]  ;;  %v500_v52 = vld [vmem:[%s10653_s26 + $0x5d0] sm:$0xff] }
 0x300   : > { %v4431_v56 = vpop.f32.mrf.mxu0  ;;  %5450 = vmatmul.mubr.f32.gmra.mxu0 %v1382_v44  ;;  %v4561_v60 = vpop.f32.mrf.mxu1  ;;  %5580 = vmatmul.mubr.f32.gmra.mxu1 %v1384_v49  ;;  %v498_v46 = vld [vmem:[%s10653_s26 + $0x5c0] sm:$0xff]  ;;  %v249_v49 = vld [vmem:[%s10663_s28 + $0x1f0] sm:$0xff] }
 0x301   : > { %v4432_v59 = vadd.f32 %v4431_v56, %v11725_v40  ;;  %5454 = vmatprep.mubr.f32.mxu0 %v1510_v53  ;;  %5584 = vmatprep.mubr.f32.mxu1 %v1512_v55  ;;  %v252_v53 = vld [vmem:[%s10663_s28 + $0x208] sm:$0xff]  ;;  %v254_v55 = vld [vmem:[%s10663_s28 + $0x218] sm:$0xff] }
 0x302   : > { %v4433_v62 = vpop.f32.mrf.mxu0  ;;  %v4563_v63 = vpop.f32.mrf.mxu1 }
 0x303   : > { %v11820_v1 = vadd.f32 %v4561_v60, %v4432_v59  ;;  %v497_v60 = vld [vmem:[%s10653_s26 + $0x5b8] sm:$0xff]  ;;  %v499_v59 = vld [vmem:[%s10653_s26 + $0x5c8] sm:$0xff] }
 0x304   : > { %v4631_v3 = vpop.f32.mrf.mxu0  ;;  %5455 = vmatmul.mubr.f32.gmra.mxu0 %v1509_v54  ;;  %v4761_v31 = vpop.f32.mrf.mxu1  ;;  %5585 = vmatmul.mubr.f32.gmra.mxu1 %v1511_v58  ;;  %v625_v62 = vld [vmem:[%s10653_s26 + $0x9b8] sm:$0xff]  ;;  %v627_v63 = vld [vmem:[%s10653_s26 + $0x9c8] sm:$0xff] }
 0x305   : > { %v4632_v40 = vadd.f32 %v4631_v3, %v11732_v16  ;;  %5459 = vmatprep.mubr.f32.mxu0 %v1637_v28  ;;  %5589 = vmatprep.mubr.f32.mxu1 %v1639_v2 }
 0x306   : > { %v4633_v11 = vpop.f32.mrf.mxu0  ;;  %v4763_v13 = vpop.f32.mrf.mxu1 }
 0x307   : > { %v11827_v15 = vadd.f32 %v4761_v31, %v4632_v40  ;;  %v624_v31 = vld [vmem:[%s10653_s26 + $0x9b0] sm:$0xff]  ;;  %v626_v40 = vld [vmem:[%s10653_s26 + $0x9c0] sm:$0xff] }
 0x308   : > { %v4636_v57 = vpop.f32.mrf.mxu0  ;;  %5460 = vmatmul.mubr.f32.gmra.mxu0 %v1636_v0  ;;  %v4766_v10 = vpop.f32.mrf.mxu1  ;;  %5590 = vmatmul.mubr.f32.gmra.mxu1 %v1638_v7  ;;  %v752_v11 = vld [vmem:[%s10653_s26 + $0xdb0] sm:$0xff]  ;;  %v754_v13 = vld [vmem:[%s10653_s26 + $0xdc0] sm:$0xff] }
 0x309   : > { %v4637_v16 = vadd.f32 %v4636_v57, %v11739_v6  ;;  %5464 = vmatprep.mubr.f32.mxu0 %v1764_v41  ;;  %5594 = vmatprep.mubr.f32.mxu1 %v1766_v12 }
 0x30a   : > { %v4638_v17 = vpop.f32.mrf.mxu0  ;;  %v4768_v22 = vpop.f32.mrf.mxu1 }
 0x30b   : > { %v11834_v26 = vadd.f32 %v4766_v10, %v4637_v16  ;;  %v751_v10 = vld [vmem:[%s10653_s26 + $0xda8] sm:$0xff]  ;;  %v753_v16 = vld [vmem:[%s10653_s26 + $0xdb8] sm:$0xff] }
 0x30c   : > { %v4641_v39 = vpop.f32.mrf.mxu0  ;;  %5465 = vmatmul.mubr.f32.gmra.mxu0 %v1763_v21  ;;  %v4771_v25 = vpop.f32.mrf.mxu1  ;;  %5595 = vmatmul.mubr.f32.gmra.mxu1 %v1765_v18  ;;  %v879_v17 = vld [vmem:[%s10653_s26 + $0x11a8] sm:$0xff]  ;;  %v881_v22 = vld [vmem:[%s10653_s26 + $0x11b8] sm:$0xff] }
 0x30d   : > { %v4642_v6 = vadd.f32 %v4641_v39, %v11746_v9  ;;  %5469 = vmatprep.mubr.f32.mxu0 %v1891_v24  ;;  %5599 = vmatprep.mubr.f32.mxu1 %v1893_v23 }
 0x30e   : > { %v4643_v32 = vpop.f32.mrf.mxu0  ;;  %v4773_v35 = vpop.f32.mrf.mxu1 }
 0x30f   : > { %v11841_v33 = vadd.f32 %v4771_v25, %v4642_v6  ;;  %v878_v25 = vld [vmem:[%s10653_s26 + $0x11a0] sm:$0xff]  ;;  %v880_v6 = vld [vmem:[%s10653_s26 + $0x11b0] sm:$0xff] }
 0x310   : > { %v4646_v48 = vpop.f32.mrf.mxu0  ;;  %5470 = vmatmul.mubr.f32.gmra.mxu0 %v1890_v20  ;;  %v4776_v37 = vpop.f32.mrf.mxu1  ;;  %5600 = vmatmul.mubr.f32.gmra.mxu1 %v1892_v29  ;;  %v1006_v32 = vld [vmem:[%s10653_s26 + $0x15a0] sm:$0xff]  ;;  %v1008_v35 = vld [vmem:[%s10653_s26 + $0x15b0] sm:$0xff] }
 0x311   : > { %v4647_v9 = vadd.f32 %v4646_v48, %v11753_v50  ;;  %5669 = vmatprep.mubr.f32.mxu0 %v371_v61  ;;  %5799 = vmatprep.mubr.f32.mxu1 %v373_v38 }
 0x312   : > { %v4648_v43 = vpop.f32.mrf.mxu0  ;;  %v4778_v30 = vpop.f32.mrf.mxu1 }
 0x313   : > { %v11848_v44 = vadd.f32 %v4776_v37, %v4647_v9  ;;  %v1005_v37 = vld [vmem:[%s10653_s26 + $0x1598] sm:$0xff]  ;;  %v1007_v9 = vld [vmem:[%s10653_s26 + $0x15a8] sm:$0xff] }
 0x314   : > { %v4651_v51 = vpop.f32.mrf.mxu0  ;;  %5670 = vmatmul.mubr.f32.vlgmr.msra.gmra.mxu0 %v370_v42  ;;  %v4781_v50 = vpop.f32.mrf.mxu1  ;;  %5800 = vmatmul.mubr.f32.vlgmr.msra.gmra.mxu1 %v372_v45  ;;  %v1133_v43 = vld [vmem:[%s10653_s26 + $0x1998] sm:$0xff]  ;;  %v1135_v30 = vld [vmem:[%s10653_s26 + $0x19a8] sm:$0xff] }
 0x315   : > { %v4652_v56 = vadd.f32 %v4651_v51, %v11764_v4  ;;  %5896 = vmatpush1.xpose.msra.mxu0 %v247_v8  ;;  %5674 = vmatprep.mubr.f32.mxu0 %v498_v46  ;;  %v1134_v51 = vld [vmem:[%s10653_s26 + $0x19a0] sm:$0xff] }
 0x316   : > { %v4653_v54 = vpop.f32.mrf.mxu0  ;;  %v4783_v58 = vpop.f32.mrf.mxu1  ;;  %6026 = vmatpush1.xpose.msra.mxu1 %v249_v49  ;;  %5804 = vmatprep.mubr.f32.mxu1 %v500_v52  ;;  %v1132_v52 = vld [vmem:[%s10653_s26 + $0x1990] sm:$0xff] }
 0x317   : > { %v11859_v28 = vadd.f32 %v4781_v50, %v4652_v56  ;;  %6155 = vmatprep.subr.mxu0 %v252_v53  ;;  %6285 = vmatprep.subr.mxu1 %v254_v55  ;;  %v1260_v55 = vld [vmem:[%s10653_s26 + $0x1d90] sm:$0xff]  ;;  %v1262_v56 = vld [vmem:[%s10653_s26 + $0x1da0] sm:$0xff]  ;;  %v1259_v58 = vld [vmem:[%s10653_s26 + $0x1d88] sm:$0xff] }
 0x318   : > { %v4656_v2 = vpop.f32.mrf.mxu0  ;;  %5675 = vmatmul.mubr.f32.gmra.mxu0 %v497_v60  ;;  %v4786_v4 = vpop.f32.mrf.mxu1  ;;  %5805 = vmatmul.mubr.f32.gmra.mxu1 %v499_v59 }
 0x319   : > { %v4657_v3 = vadd.f32 %v4656_v2, %v11771_v14  ;;  %5679 = vmatprep.mubr.f32.mxu0 %v625_v62  ;;  %5809 = vmatprep.mubr.f32.mxu1 %v627_v63  ;;  %v1261_v62 = vld [vmem:[%s10653_s26 + $0x1d98] sm:$0xff] }
 0x31a   : > { %v4658_v0 = vpop.f32.mrf.mxu0  ;;  %v4788_v7 = vpop.f32.mrf.mxu1 }
 0x31b   : > { %v11866_v41 = vadd.f32 %v4786_v4, %v4657_v3  ;;  %v1387_v4 = vld [vmem:[%s10653_s26 + $0x2188] sm:$0xff]  ;;  %v1389_v3 = vld [vmem:[%s10653_s26 + $0x2198] sm:$0xff]  ;;  %v1386_v7 = vld [vmem:[%s10653_s26 + $0x2180] sm:$0xff] }
 0x31c   : > { %v4661_v12 = vpop.f32.mrf.mxu0  ;;  %5680 = vmatmul.mubr.f32.gmra.mxu0 %v624_v31  ;;  %v4791_v57 = vpop.f32.mrf.mxu1  ;;  %5810 = vmatmul.mubr.f32.gmra.mxu1 %v626_v40 }
 0x31d   : > { %v4662_v14 = vadd.f32 %v4661_v12, %v11778_v27  ;;  %5684 = vmatprep.mubr.f32.mxu0 %v752_v11  ;;  %5814 = vmatprep.mubr.f32.mxu1 %v754_v13  ;;  %v1388_v11 = vld [vmem:[%s10653_s26 + $0x2190] sm:$0xff] }
 0x31e   : > { %v4663_v21 = vpop.f32.mrf.mxu0  ;;  %v4793_v18 = vpop.f32.mrf.mxu1 }
 0x31f   : > { %v11873_v24 = vadd.f32 %v4791_v57, %v4662_v14  ;;  %v1514_v57 = vld [vmem:[%s10653_s26 + $0x2580] sm:$0xff]  ;;  %v1516_v14 = vld [vmem:[%s10653_s26 + $0x2590] sm:$0xff]  ;;  %v1513_v18 = vld [vmem:[%s10653_s26 + $0x2578] sm:$0xff] }
 0x320   : > { %v4666_v23 = vpop.f32.mrf.mxu0  ;;  %5685 = vmatmul.mubr.f32.gmra.mxu0 %v751_v10  ;;  %v4796_v39 = vpop.f32.mrf.mxu1  ;;  %5815 = vmatmul.mubr.f32.gmra.mxu1 %v753_v16 }
 0x321   : > { %v4667_v27 = vadd.f32 %v4666_v23, %v11785_v36  ;;  %5689 = vmatprep.mubr.f32.mxu0 %v879_v17  ;;  %5819 = vmatprep.mubr.f32.mxu1 %v881_v22  ;;  %v1515_v17 = vld [vmem:[%s10653_s26 + $0x2588] sm:$0xff] }
 0x322   : > { %v4668_v20 = vpop.f32.mrf.mxu0  ;;  %v4798_v29 = vpop.f32.mrf.mxu1 }
 0x323   : > { %v11880_v61 = vadd.f32 %v4796_v39, %v4667_v27  ;;  %v1641_v39 = vld [vmem:[%s10653_s26 + $0x2978] sm:$0xff]  ;;  %v1643_v27 = vld [vmem:[%s10653_s26 + $0x2988] sm:$0xff]  ;;  %v1640_v29 = vld [vmem:[%s10653_s26 + $0x2970] sm:$0xff] }
 0x324   : > { %v4671_v38 = vpop.f32.mrf.mxu0  ;;  %5690 = vmatmul.mubr.f32.gmra.mxu0 %v878_v25  ;;  %v4801_v48 = vpop.f32.mrf.mxu1  ;;  %5820 = vmatmul.mubr.f32.gmra.mxu1 %v880_v6 }
 0x325   : > { %v4672_v36 = vadd.f32 %v4671_v38, %v11792_v47  ;;  %5694 = vmatprep.mubr.f32.mxu0 %v1006_v32  ;;  %5824 = vmatprep.mubr.f32.mxu1 %v1008_v35  ;;  %v1642_v32 = vld [vmem:[%s10653_s26 + $0x2980] sm:$0xff] }
 0x326   : > { %v4673_v42 = vpop.f32.mrf.mxu0  ;;  %v4803_v45 = vpop.f32.mrf.mxu1 }
 0x327   : > { %v11887_v8 = vadd.f32 %v4801_v48, %v4672_v36  ;;  %v1768_v48 = vld [vmem:[%s10653_s26 + $0x2d70] sm:$0xff]  ;;  %v1770_v36 = vld [vmem:[%s10653_s26 + $0x2d80] sm:$0xff]  ;;  %v1767_v45 = vld [vmem:[%s10653_s26 + $0x2d68] sm:$0xff] }
 0x328   : > { %v4676_v46 = vpop.f32.mrf.mxu0  ;;  %5695 = vmatmul.mubr.f32.gmra.mxu0 %v1005_v37  ;;  %v4806_v49 = vpop.f32.mrf.mxu1  ;;  %5825 = vmatmul.mubr.f32.gmra.mxu1 %v1007_v9 }
 0x329   : > { %v4677_v47 = vadd.f32 %v4676_v46, %v11799_v34  ;;  %5699 = vmatprep.mubr.f32.mxu0 %v1133_v43  ;;  %5829 = vmatprep.mubr.f32.mxu1 %v1135_v30  ;;  %v1769_v43 = vld [vmem:[%s10653_s26 + $0x2d78] sm:$0xff] }
 0x32a   : > { %v4678_v50 = vpop.f32.mrf.mxu0  ;;  %v4808_v53 = vpop.f32.mrf.mxu1 }
 0x32b   : > { %v11894_v60 = vadd.f32 %v4806_v49, %v4677_v47  ;;  %v1895_v49 = vld [vmem:[%s10653_s26 + $0x3168] sm:$0xf]  ;;  %v1897_v47 = vld [vmem:[%s10653_s26 + $0x3178] sm:$0xf]  ;;  %v1894_v53 = vld [vmem:[%s10653_s26 + $0x3160] sm:$0xf] }
 0x32c   : > { %v4681_v59 = vpop.f32.mrf.mxu0  ;;  %5700 = vmatmul.mubr.f32.gmra.mxu0 %v1132_v52  ;;  %v4811_v54 = vpop.f32.mrf.mxu1  ;;  %5830 = vmatmul.mubr.f32.gmra.mxu1 %v1134_v51 }
 0x32d   : > { %v4682_v34 = vadd.f32 %v4681_v59, %v11806_v5  ;;  %5704 = vmatprep.mubr.f32.mxu0 %v1260_v55  ;;  %5834 = vmatprep.mubr.f32.mxu1 %v1262_v56  ;;  %v1896_v55 = vld [vmem:[%s10653_s26 + $0x3170] sm:$0xf] }
 0x32e   : > { %v4683_v63 = vpop.f32.mrf.mxu0  ;;  %v4813_v2 = vpop.f32.mrf.mxu1 }
 0x32f   : > { %v11901_v31 = vadd.f32 %v4811_v54, %v4682_v34  ;;  %v375_v54 = vld [vmem:[%s10653_s26 + $0x1e8] sm:$0xff]  ;;  %v377_v34 = vld [vmem:[%s10653_s26 + $0x1f8] sm:$0xff]  ;;  %v374_v2 = vld [vmem:[%s10653_s26 + $0x1e0] sm:$0xff] }
 0x330   : > { %v4686_v40 = vpop.f32.mrf.mxu0  ;;  %5705 = vmatmul.mubr.f32.gmra.mxu0 %v1259_v58  ;;  %v4816_v0 = vpop.f32.mrf.mxu1  ;;  %5835 = vmatmul.mubr.f32.gmra.mxu1 %v1261_v62 }
 0x331   : > { %v4687_v5 = vadd.f32 %v4686_v40, %v11813_v19  ;;  %5709 = vmatprep.mubr.f32.mxu0 %v1387_v4  ;;  %5839 = vmatprep.mubr.f32.mxu1 %v1389_v3  ;;  %v376_v4 = vld [vmem:[%s10653_s26 + $0x1f0] sm:$0xff] }
 0x332   : > { %v4688_v13 = vpop.f32.mrf.mxu0  ;;  %v4818_v12 = vpop.f32.mrf.mxu1 }
 0x333   : > { %v11908_v10 = vadd.f32 %v4816_v0, %v4687_v5  ;;  %v251_v0 = vld [vmem:[%s10663_s28 + $0x200] sm:$0xff]  ;;  %v504_v13 = vld [vmem:[%s10653_s26 + $0x5f0] sm:$0xff] }
 0x334   : > { %v4691_v16 = vpop.f32.mrf.mxu0  ;;  %5710 = vmatmul.mubr.f32.gmra.mxu0 %v1386_v7  ;;  %v4821_v21 = vpop.f32.mrf.mxu1  ;;  %5840 = vmatmul.mubr.f32.gmra.mxu1 %v1388_v11  ;;  %v502_v5 = vld [vmem:[%s10653_s26 + $0x5e0] sm:$0xff]  ;;  %v253_v11 = vld [vmem:[%s10663_s28 + $0x210] sm:$0xff] }
 0x335   : > { %v4692_v19 = vadd.f32 %v4691_v16, %v11820_v1  ;;  %5714 = vmatprep.mubr.f32.mxu0 %v1514_v57  ;;  %5844 = vmatprep.mubr.f32.mxu1 %v1516_v14  ;;  %v256_v57 = vld [vmem:[%s10663_s28 + $0x228] sm:$0xff]  ;;  %v258_v14 = vld [vmem:[%s10663_s28 + $0x238] sm:$0xff] }
 0x336   : > { %v4693_v22 = vpop.f32.mrf.mxu0  ;;  %v4823_v23 = vpop.f32.mrf.mxu1 }
 0x337   : > { %v11915_v25 = vadd.f32 %v4821_v21, %v4692_v19  ;;  %v501_v21 = vld [vmem:[%s10653_s26 + $0x5d8] sm:$0xff]  ;;  %v503_v19 = vld [vmem:[%s10653_s26 + $0x5e8] sm:$0xff] }
 0x338   : > { %v4891_v6 = vpop.f32.mrf.mxu0  ;;  %5715 = vmatmul.mubr.f32.gmra.mxu0 %v1513_v18  ;;  %v5021_v20 = vpop.f32.mrf.mxu1  ;;  %5845 = vmatmul.mubr.f32.gmra.mxu1 %v1515_v17  ;;  %v629_v22 = vld [vmem:[%s10653_s26 + $0x9d8] sm:$0xff]  ;;  %v631_v23 = vld [vmem:[%s10653_s26 + $0x9e8] sm:$0xff] }
 0x339   : > { %v4892_v1 = vadd.f32 %v4891_v6, %v11827_v15  ;;  %5719 = vmatprep.mubr.f32.mxu0 %v1641_v39  ;;  %5849 = vmatprep.mubr.f32.mxu1 %v1643_v27 }
 0x33a   : > { %v4893_v35 = vpop.f32.mrf.mxu0  ;;  %v5023_v38 = vpop.f32.mrf.mxu1 }
 0x33b   : > { %v11922_v37 = vadd.f32 %v5021_v20, %v4892_v1  ;;  %v628_v20 = vld [vmem:[%s10653_s26 + $0x9d0] sm:$0xff]  ;;  %v630_v1 = vld [vmem:[%s10653_s26 + $0x9e0] sm:$0xff] }
 0x33c   : > { %v4896_v9 = vpop.f32.mrf.mxu0  ;;  %5720 = vmatmul.mubr.f32.gmra.mxu0 %v1640_v29  ;;  %v5026_v42 = vpop.f32.mrf.mxu1  ;;  %5850 = vmatmul.mubr.f32.gmra.mxu1 %v1642_v32  ;;  %v756_v35 = vld [vmem:[%s10653_s26 + $0xdd0] sm:$0xff]  ;;  %v758_v38 = vld [vmem:[%s10653_s26 + $0xde0] sm:$0xff] }
 0x33d   : > { %v4897_v15 = vadd.f32 %v4896_v9, %v11834_v26  ;;  %5724 = vmatprep.mubr.f32.mxu0 %v1768_v48  ;;  %5854 = vmatprep.mubr.f32.mxu1 %v1770_v36 }
 0x33e   : > { %v4898_v30 = vpop.f32.mrf.mxu0  ;;  %v5028_v46 = vpop.f32.mrf.mxu1 }
 0x33f   : > { %v11929_v52 = vadd.f32 %v5026_v42, %v4897_v15  ;;  %v755_v42 = vld [vmem:[%s10653_s26 + $0xdc8] sm:$0xff]  ;;  %v757_v15 = vld [vmem:[%s10653_s26 + $0xdd8] sm:$0xff] }
 0x340   : > { %v4901_v51 = vpop.f32.mrf.mxu0  ;;  %5725 = vmatmul.mubr.f32.gmra.mxu0 %v1767_v45  ;;  %v5031_v50 = vpop.f32.mrf.mxu1  ;;  %5855 = vmatmul.mubr.f32.gmra.mxu1 %v1769_v43  ;;  %v883_v30 = vld [vmem:[%s10653_s26 + $0x11c8] sm:$0xff]  ;;  %v885_v46 = vld [vmem:[%s10653_s26 + $0x11d8] sm:$0xff] }
 0x341   : > { %v4902_v26 = vadd.f32 %v4901_v51, %v11841_v33  ;;  %5729 = vmatprep.mubr.f32.mxu0 %v1895_v49  ;;  %5859 = vmatprep.mubr.f32.mxu1 %v1897_v47 }
 0x342   : > { %v4903_v56 = vpop.f32.mrf.mxu0  ;;  %v5033_v59 = vpop.f32.mrf.mxu1 }
 0x343   : > { %v11936_v58 = vadd.f32 %v5031_v50, %v4902_v26  ;;  %v882_v50 = vld [vmem:[%s10653_s26 + $0x11c0] sm:$0xff]  ;;  %v884_v26 = vld [vmem:[%s10653_s26 + $0x11d0] sm:$0xff] }
 0x344   : > { %v4906_v62 = vpop.f32.mrf.mxu0  ;;  %5730 = vmatmul.mubr.f32.gmra.mxu0 %v1894_v53  ;;  %v5036_v63 = vpop.f32.mrf.mxu1  ;;  %5860 = vmatmul.mubr.f32.gmra.mxu1 %v1896_v55  ;;  %v1010_v56 = vld [vmem:[%s10653_s26 + $0x15c0] sm:$0xff]  ;;  %v1012_v59 = vld [vmem:[%s10653_s26 + $0x15d0] sm:$0xff] }
 0x345   : > { %v4907_v33 = vadd.f32 %v4906_v62, %v11848_v44  ;;  %5929 = vmatprep.mubr.f32.mxu0 %v375_v54  ;;  %6059 = vmatprep.mubr.f32.mxu1 %v377_v34 }
 0x346   : > { %v4908_v3 = vpop.f32.mrf.mxu0  ;;  %v5038_v40 = vpop.f32.mrf.mxu1 }
 0x347   : > { %v11943_v7 = vadd.f32 %v5036_v63, %v4907_v33  ;;  %v1009_v63 = vld [vmem:[%s10653_s26 + $0x15b8] sm:$0xff]  ;;  %v1011_v33 = vld [vmem:[%s10653_s26 + $0x15c8] sm:$0xff] }
 0x348   : > { %v4911_v12 = vpop.f32.mrf.mxu0  ;;  %5930 = vmatmul.mubr.f32.vlgmr.msra.gmra.mxu0 %v374_v2  ;;  %v5041_v44 = vpop.f32.mrf.mxu1  ;;  %6060 = vmatmul.mubr.f32.vlgmr.msra.gmra.mxu1 %v376_v4  ;;  %v1137_v3 = vld [vmem:[%s10653_s26 + $0x19b8] sm:$0xff]  ;;  %v1139_v40 = vld [vmem:[%s10653_s26 + $0x19c8] sm:$0xff] }
 0x349   : > { %v4912_v16 = vadd.f32 %v4911_v12, %v11859_v28  ;;  %6156 = vmatpush1.xpose.msra.mxu0 %v251_v0  ;;  %5934 = vmatprep.mubr.f32.mxu0 %v502_v5  ;;  %v1138_v12 = vld [vmem:[%s10653_s26 + $0x19c0] sm:$0xff] }
 0x34a   : > { %v4913_v18 = vpop.f32.mrf.mxu0  ;;  %v5043_v17 = vpop.f32.mrf.mxu1  ;;  %6286 = vmatpush1.xpose.msra.mxu1 %v253_v11  ;;  %6064 = vmatprep.mubr.f32.mxu1 %v504_v13  ;;  %v1136_v13 = vld [vmem:[%s10653_s26 + $0x19b0] sm:$0xff] }
 0x34b   : > { %v11954_v39 = vadd.f32 %v5041_v44, %v4912_v16  ;;  %6415 = vmatprep.subr.mxu0 %v256_v57  ;;  %6545 = vmatprep.subr.mxu1 %v258_v14  ;;  %v1264_v14 = vld [vmem:[%s10653_s26 + $0x1db0] sm:$0xff]  ;;  %v1266_v16 = vld [vmem:[%s10653_s26 + $0x1dc0] sm:$0xff]  ;;  %v1263_v17 = vld [vmem:[%s10653_s26 + $0x1da8] sm:$0xff] }
 0x34c   : > { %v4916_v27 = vpop.f32.mrf.mxu0  ;;  %5935 = vmatmul.mubr.f32.gmra.mxu0 %v501_v21  ;;  %v5046_v28 = vpop.f32.mrf.mxu1  ;;  %6065 = vmatmul.mubr.f32.gmra.mxu1 %v503_v19 }
 0x34d   : > { %v4917_v6 = vadd.f32 %v4916_v27, %v11866_v41  ;;  %5939 = vmatprep.mubr.f32.mxu0 %v629_v22  ;;  %6069 = vmatprep.mubr.f32.mxu1 %v631_v23  ;;  %v1265_v22 = vld [vmem:[%s10653_s26 + $0x1db8] sm:$0xff] }
 0x34e   : > { %v4918_v29 = vpop.f32.mrf.mxu0  ;;  %v5048_v32 = vpop.f32.mrf.mxu1 }
 0x34f   : > { %v11961_v48 = vadd.f32 %v5046_v28, %v4917_v6  ;;  %v1391_v28 = vld [vmem:[%s10653_s26 + $0x21a8] sm:$0xff]  ;;  %v1393_v6 = vld [vmem:[%s10653_s26 + $0x21b8] sm:$0xff]  ;;  %v1390_v32 = vld [vmem:[%s10653_s26 + $0x21a0] sm:$0xff] }
 0x350   : > { %v4921_v36 = vpop.f32.mrf.mxu0  ;;  %5940 = vmatmul.mubr.f32.gmra.mxu0 %v628_v20  ;;  %v5051_v9 = vpop.f32.mrf.mxu1  ;;  %6070 = vmatmul.mubr.f32.gmra.mxu1 %v630_v1 }
 0x351   : > { %v4922_v41 = vadd.f32 %v4921_v36, %v11873_v24  ;;  %5944 = vmatprep.mubr.f32.mxu0 %v756_v35  ;;  %6074 = vmatprep.mubr.f32.mxu1 %v758_v38  ;;  %v1392_v35 = vld [vmem:[%s10653_s26 + $0x21b0] sm:$0xff] }
 0x352   : > { %v4923_v45 = vpop.f32.mrf.mxu0  ;;  %v5053_v43 = vpop.f32.mrf.mxu1 }
 0x353   : > { %v11968_v49 = vadd.f32 %v5051_v9, %v4922_v41  ;;  %v1518_v9 = vld [vmem:[%s10653_s26 + $0x25a0] sm:$0xff]  ;;  %v1520_v41 = vld [vmem:[%s10653_s26 + $0x25b0] sm:$0xff]  ;;  %v1517_v43 = vld [vmem:[%s10653_s26 + $0x2598] sm:$0xff] }
 0x354   : > { %v4926_v47 = vpop.f32.mrf.mxu0  ;;  %5945 = vmatmul.mubr.f32.gmra.mxu0 %v755_v42  ;;  %v5056_v51 = vpop.f32.mrf.mxu1  ;;  %6075 = vmatmul.mubr.f32.gmra.mxu1 %v757_v15 }
 0x355   : > { %v4927_v24 = vadd.f32 %v4926_v47, %v11880_v61  ;;  %5949 = vmatprep.mubr.f32.mxu0 %v883_v30  ;;  %6079 = vmatprep.mubr.f32.mxu1 %v885_v46  ;;  %v1519_v30 = vld [vmem:[%s10653_s26 + $0x25a8] sm:$0xff] }
 0x356   : > { %v4928_v53 = vpop.f32.mrf.mxu0  ;;  %v5058_v55 = vpop.f32.mrf.mxu1 }
 0x357   : > { %v11975_v54 = vadd.f32 %v5056_v51, %v4927_v24  ;;  %v1645_v51 = vld [vmem:[%s10653_s26 + $0x2998] sm:$0xff]  ;;  %v1647_v24 = vld [vmem:[%s10653_s26 + $0x29a8] sm:$0xff]  ;;  %v1644_v55 = vld [vmem:[%s10653_s26 + $0x2990] sm:$0xff] }
 0x358   : > { %v4931_v34 = vpop.f32.mrf.mxu0  ;;  %5950 = vmatmul.mubr.f32.gmra.mxu0 %v882_v50  ;;  %v5061_v62 = vpop.f32.mrf.mxu1  ;;  %6080 = vmatmul.mubr.f32.gmra.mxu1 %v884_v26 }
 0x359   : > { %v4932_v61 = vadd.f32 %v4931_v34, %v11887_v8  ;;  %5954 = vmatprep.mubr.f32.mxu0 %v1010_v56  ;;  %6084 = vmatprep.mubr.f32.mxu1 %v1012_v59  ;;  %v1646_v56 = vld [vmem:[%s10653_s26 + $0x29a0] sm:$0xff] }
 0x35a   : > { %v4933_v2 = vpop.f32.mrf.mxu0  ;;  %v5063_v4 = vpop.f32.mrf.mxu1 }
 0x35b   : > { %v11982_v0 = vadd.f32 %v5061_v62, %v4932_v61  ;;  %v1772_v62 = vld [vmem:[%s10653_s26 + $0x2d90] sm:$0xff]  ;;  %v1774_v61 = vld [vmem:[%s10653_s26 + $0x2da0] sm:$0xff]  ;;  %v1771_v4 = vld [vmem:[%s10653_s26 + $0x2d88] sm:$0xff] }
 0x35c   : > { %v4936_v5 = vpop.f32.mrf.mxu0  ;;  %5955 = vmatmul.mubr.f32.gmra.mxu0 %v1009_v63  ;;  %v5066_v11 = vpop.f32.mrf.mxu1  ;;  %6085 = vmatmul.mubr.f32.gmra.mxu1 %v1011_v33 }
 0x35d   : > { %v4937_v8 = vadd.f32 %v4936_v5, %v11894_v60  ;;  %5959 = vmatprep.mubr.f32.mxu0 %v1137_v3  ;;  %6089 = vmatprep.mubr.f32.mxu1 %v1139_v40  ;;  %v1773_v3 = vld [vmem:[%s10653_s26 + $0x2d98] sm:$0xff] }
 0x35e   : > { %v4938_v44 = vpop.f32.mrf.mxu0  ;;  %v5068_v57 = vpop.f32.mrf.mxu1 }
 0x35f   : > { %v11989_v21 = vadd.f32 %v5066_v11, %v4937_v8  ;;  %v1899_v11 = vld [vmem:[%s10653_s26 + $0x3188] sm:$0xf]  ;;  %v1901_v8 = vld [vmem:[%s10653_s26 + $0x3198] sm:$0xf]  ;;  %v1898_v57 = vld [vmem:[%s10653_s26 + $0x3180] sm:$0xf] }
 0x360   : > { %v4941_v19 = vpop.f32.mrf.mxu0  ;;  %5960 = vmatmul.mubr.f32.gmra.mxu0 %v1136_v13  ;;  %v5071_v18 = vpop.f32.mrf.mxu1  ;;  %6090 = vmatmul.mubr.f32.gmra.mxu1 %v1138_v12 }
 0x361   : > { %v4942_v60 = vadd.f32 %v4941_v19, %v11901_v31  ;;  %5964 = vmatprep.mubr.f32.mxu0 %v1264_v14  ;;  %6094 = vmatprep.mubr.f32.mxu1 %v1266_v16  ;;  %v1900_v14 = vld [vmem:[%s10653_s26 + $0x3190] sm:$0xf] }
 0x362   : > { %v4943_v23 = vpop.f32.mrf.mxu0  ;;  %v5073_v27 = vpop.f32.mrf.mxu1 }
 0x363   : > { %v11996_v20 = vadd.f32 %v5071_v18, %v4942_v60  ;;  %v379_v18 = vld [vmem:[%s10653_s26 + $0x208] sm:$0xff]  ;;  %v381_v60 = vld [vmem:[%s10653_s26 + $0x218] sm:$0xff]  ;;  %v378_v27 = vld [vmem:[%s10653_s26 + $0x200] sm:$0xff] }
 0x364   : > { %v4946_v1 = vpop.f32.mrf.mxu0  ;;  %5965 = vmatmul.mubr.f32.gmra.mxu0 %v1263_v17  ;;  %v5076_v29 = vpop.f32.mrf.mxu1  ;;  %6095 = vmatmul.mubr.f32.gmra.mxu1 %v1265_v22 }
 0x365   : > { %v4947_v31 = vadd.f32 %v4946_v1, %v11908_v10  ;;  %5969 = vmatprep.mubr.f32.mxu0 %v1391_v28  ;;  %6099 = vmatprep.mubr.f32.mxu1 %v1393_v6  ;;  %v380_v28 = vld [vmem:[%s10653_s26 + $0x210] sm:$0xff] }
 0x366   : > { %v4948_v38 = vpop.f32.mrf.mxu0  ;;  %v5078_v36 = vpop.f32.mrf.mxu1 }
 0x367   : > { %v12003_v42 = vadd.f32 %v5076_v29, %v4947_v31  ;;  %v255_v29 = vld [vmem:[%s10663_s28 + $0x220] sm:$0xff]  ;;  %v508_v38 = vld [vmem:[%s10653_s26 + $0x610] sm:$0xff] }
 0x368   : > { %v4951_v15 = vpop.f32.mrf.mxu0  ;;  %5970 = vmatmul.mubr.f32.gmra.mxu0 %v1390_v32  ;;  %v5081_v45 = vpop.f32.mrf.mxu1  ;;  %6100 = vmatmul.mubr.f32.gmra.mxu1 %v1392_v35  ;;  %v506_v31 = vld [vmem:[%s10653_s26 + $0x600] sm:$0xff]  ;;  %v257_v35 = vld [vmem:[%s10663_s28 + $0x230] sm:$0xff] }
 0x369   : > { %v4952_v10 = vadd.f32 %v4951_v15, %v11915_v25  ;;  %5974 = vmatprep.mubr.f32.mxu0 %v1518_v9  ;;  %6104 = vmatprep.mubr.f32.mxu1 %v1520_v41  ;;  %v260_v9 = vld [vmem:[%s10663_s28 + $0x248] sm:$0xff]  ;;  %v262_v41 = vld [vmem:[%s10663_s28 + $0x258] sm:$0xff] }
 0x36a   : > { %v4953_v46 = vpop.f32.mrf.mxu0  ;;  %v5083_v47 = vpop.f32.mrf.mxu1 }
 0x36b   : > { %v12010_v50 = vadd.f32 %v5081_v45, %v4952_v10  ;;  %v505_v45 = vld [vmem:[%s10653_s26 + $0x5f8] sm:$0xff]  ;;  %v507_v10 = vld [vmem:[%s10653_s26 + $0x608] sm:$0xff] }
 0x36c   : > { %v5151_v26 = vpop.f32.mrf.mxu0  ;;  %5975 = vmatmul.mubr.f32.gmra.mxu0 %v1517_v43  ;;  %v5281_v53 = vpop.f32.mrf.mxu1  ;;  %6105 = vmatmul.mubr.f32.gmra.mxu1 %v1519_v30  ;;  %v633_v46 = vld [vmem:[%s10653_s26 + $0x9f8] sm:$0xff]  ;;  %v635_v47 = vld [vmem:[%s10653_s26 + $0xa08] sm:$0xff] }
 0x36d   : > { %v5152_v25 = vadd.f32 %v5151_v26, %v11922_v37  ;;  %5979 = vmatprep.mubr.f32.mxu0 %v1645_v51  ;;  %6109 = vmatprep.mubr.f32.mxu1 %v1647_v24 }
 0x36e   : > { %v5153_v59 = vpop.f32.mrf.mxu0  ;;  %v5283_v34 = vpop.f32.mrf.mxu1 }
 0x36f   : > { %v12017_v63 = vadd.f32 %v5281_v53, %v5152_v25  ;;  %v632_v53 = vld [vmem:[%s10653_s26 + $0x9f0] sm:$0xff]  ;;  %v634_v25 = vld [vmem:[%s10653_s26 + $0xa00] sm:$0xff] }
 0x370   : > { %v5156_v33 = vpop.f32.mrf.mxu0  ;;  %5980 = vmatmul.mubr.f32.gmra.mxu0 %v1644_v55  ;;  %v5286_v2 = vpop.f32.mrf.mxu1  ;;  %6110 = vmatmul.mubr.f32.gmra.mxu1 %v1646_v56  ;;  %v760_v59 = vld [vmem:[%s10653_s26 + $0xdf0] sm:$0xff]  ;;  %v762_v34 = vld [vmem:[%s10653_s26 + $0xe00] sm:$0xff] }
 0x371   : > { %v5157_v37 = vadd.f32 %v5156_v33, %v11929_v52  ;;  %5984 = vmatprep.mubr.f32.mxu0 %v1772_v62  ;;  %6114 = vmatprep.mubr.f32.mxu1 %v1774_v61 }
 0x372   : > { %v5158_v40 = vpop.f32.mrf.mxu0  ;;  %v5288_v5 = vpop.f32.mrf.mxu1 }
 0x373   : > { %v12024_v13 = vadd.f32 %v5286_v2, %v5157_v37  ;;  %v759_v2 = vld [vmem:[%s10653_s26 + $0xde8] sm:$0xff]  ;;  %v761_v37 = vld [vmem:[%s10653_s26 + $0xdf8] sm:$0xff] }
 0x374   : > { %v5161_v12 = vpop.f32.mrf.mxu0  ;;  %5985 = vmatmul.mubr.f32.gmra.mxu0 %v1771_v4  ;;  %v5291_v44 = vpop.f32.mrf.mxu1  ;;  %6115 = vmatmul.mubr.f32.gmra.mxu1 %v1773_v3  ;;  %v887_v40 = vld [vmem:[%s10653_s26 + $0x11e8] sm:$0xff]  ;;  %v889_v5 = vld [vmem:[%s10653_s26 + $0x11f8] sm:$0xff] }
 0x375   : > { %v5162_v52 = vadd.f32 %v5161_v12, %v11936_v58  ;;  %5989 = vmatprep.mubr.f32.mxu0 %v1899_v11  ;;  %6119 = vmatprep.mubr.f32.mxu1 %v1901_v8 }
 0x376   : > { %v5163_v16 = vpop.f32.mrf.mxu0  ;;  %v5293_v19 = vpop.f32.mrf.mxu1 }
 0x377   : > { %v12031_v17 = vadd.f32 %v5291_v44, %v5162_v52  ;;  %v886_v44 = vld [vmem:[%s10653_s26 + $0x11e0] sm:$0xff]  ;;  %v888_v52 = vld [vmem:[%s10653_s26 + $0x11f0] sm:$0xff] }
 0x378   : > { %v5166_v22 = vpop.f32.mrf.mxu0  ;;  %5990 = vmatmul.mubr.f32.gmra.mxu0 %v1898_v57  ;;  %v5296_v23 = vpop.f32.mrf.mxu1  ;;  %6120 = vmatmul.mubr.f32.gmra.mxu1 %v1900_v14  ;;  %v1014_v16 = vld [vmem:[%s10653_s26 + $0x15e0] sm:$0xff]  ;;  %v1016_v19 = vld [vmem:[%s10653_s26 + $0x15f0] sm:$0xff] }
 0x379   : > { %v5167_v58 = vadd.f32 %v5166_v22, %v11943_v7  ;;  %6189 = vmatprep.mubr.f32.mxu0 %v379_v18  ;;  %6319 = vmatprep.mubr.f32.mxu1 %v381_v60 }
 0x37a   : > { %v5168_v6 = vpop.f32.mrf.mxu0  ;;  %v5298_v1 = vpop.f32.mrf.mxu1 }
 0x37b   : > { %v12038_v32 = vadd.f32 %v5296_v23, %v5167_v58  ;;  %v1013_v23 = vld [vmem:[%s10653_s26 + $0x15d8] sm:$0xff]  ;;  %v1015_v58 = vld [vmem:[%s10653_s26 + $0x15e8] sm:$0xff] }
 0x37c   : > { %v5171_v36 = vpop.f32.mrf.mxu0  ;;  %6190 = vmatmul.mubr.f32.vlgmr.msra.gmra.mxu0 %v378_v27  ;;  %v5301_v7 = vpop.f32.mrf.mxu1  ;;  %6320 = vmatmul.mubr.f32.vlgmr.msra.gmra.mxu1 %v380_v28  ;;  %v1141_v6 = vld [vmem:[%s10653_s26 + $0x19d8] sm:$0xff]  ;;  %v1143_v1 = vld [vmem:[%s10653_s26 + $0x19e8] sm:$0xff] }
 0x37d   : > { %v5172_v15 = vadd.f32 %v5171_v36, %v11954_v39  ;;  %6416 = vmatpush1.xpose.msra.mxu0 %v255_v29  ;;  %6194 = vmatprep.mubr.f32.mxu0 %v506_v31  ;;  %v1142_v36 = vld [vmem:[%s10653_s26 + $0x19e0] sm:$0xff] }
 0x37e   : > { %v5173_v43 = vpop.f32.mrf.mxu0  ;;  %v5303_v30 = vpop.f32.mrf.mxu1  ;;  %6546 = vmatpush1.xpose.msra.mxu1 %v257_v35  ;;  %6324 = vmatprep.mubr.f32.mxu1 %v508_v38  ;;  %v1140_v38 = vld [vmem:[%s10653_s26 + $0x19d0] sm:$0xff] }
 0x37f   : > { %v12049_v51 = vadd.f32 %v5301_v7, %v5172_v15  ;;  %6675 = vmatprep.subr.mxu0 %v260_v9  ;;  %6805 = vmatprep.subr.mxu1 %v262_v41  ;;  %v1268_v41 = vld [vmem:[%s10653_s26 + $0x1dd0] sm:$0xff]  ;;  %v1270_v15 = vld [vmem:[%s10653_s26 + $0x1de0] sm:$0xff]  ;;  %v1267_v30 = vld [vmem:[%s10653_s26 + $0x1dc8] sm:$0xff] }
 0x380   : > { %v5176_v24 = vpop.f32.mrf.mxu0  ;;  %6195 = vmatmul.mubr.f32.gmra.mxu0 %v505_v45  ;;  %v5306_v39 = vpop.f32.mrf.mxu1  ;;  %6325 = vmatmul.mubr.f32.gmra.mxu1 %v507_v10 }
 0x381   : > { %v5177_v26 = vadd.f32 %v5176_v24, %v11961_v48  ;;  %6199 = vmatprep.mubr.f32.mxu0 %v633_v46  ;;  %6329 = vmatprep.mubr.f32.mxu1 %v635_v47  ;;  %v1269_v46 = vld [vmem:[%s10653_s26 + $0x1dd8] sm:$0xff] }
 0x382   : > { %v5178_v55 = vpop.f32.mrf.mxu0  ;;  %v5308_v56 = vpop.f32.mrf.mxu1 }
 0x383   : > { %v12056_v62 = vadd.f32 %v5306_v39, %v5177_v26  ;;  %v1395_v39 = vld [vmem:[%s10653_s26 + $0x21c8] sm:$0xff]  ;;  %v1397_v26 = vld [vmem:[%s10653_s26 + $0x21d8] sm:$0xff]  ;;  %v1394_v56 = vld [vmem:[%s10653_s26 + $0x21c0] sm:$0xff] }
 0x384   : > { %v5181_v61 = vpop.f32.mrf.mxu0  ;;  %6200 = vmatmul.mubr.f32.gmra.mxu0 %v632_v53  ;;  %v5311_v33 = vpop.f32.mrf.mxu1  ;;  %6330 = vmatmul.mubr.f32.gmra.mxu1 %v634_v25 }
 0x385   : > { %v5182_v48 = vadd.f32 %v5181_v61, %v11968_v49  ;;  %6204 = vmatprep.mubr.f32.mxu0 %v760_v59  ;;  %6334 = vmatprep.mubr.f32.mxu1 %v762_v34  ;;  %v1396_v59 = vld [vmem:[%s10653_s26 + $0x21d0] sm:$0xff] }
 0x386   : > { %v5183_v4 = vpop.f32.mrf.mxu0  ;;  %v5313_v3 = vpop.f32.mrf.mxu1 }
 0x387   : > { %v12063_v11 = vadd.f32 %v5311_v33, %v5182_v48  ;;  %v1522_v33 = vld [vmem:[%s10653_s26 + $0x25c0] sm:$0xff]  ;;  %v1524_v48 = vld [vmem:[%s10653_s26 + $0x25d0] sm:$0xff]  ;;  %v1521_v3 = vld [vmem:[%s10653_s26 + $0x25b8] sm:$0xff] }
 0x388   : > { %v5186_v8 = vpop.f32.mrf.mxu0  ;;  %6205 = vmatmul.mubr.f32.gmra.mxu0 %v759_v2  ;;  %v5316_v12 = vpop.f32.mrf.mxu1  ;;  %6335 = vmatmul.mubr.f32.gmra.mxu1 %v761_v37 }
 0x389   : > { %v5187_v49 = vadd.f32 %v5186_v8, %v11975_v54  ;;  %6209 = vmatprep.mubr.f32.mxu0 %v887_v40  ;;  %6339 = vmatprep.mubr.f32.mxu1 %v889_v5  ;;  %v1523_v40 = vld [vmem:[%s10653_s26 + $0x25c8] sm:$0xff] }
 0x38a   : > { %v5188_v57 = vpop.f32.mrf.mxu0  ;;  %v5318_v14 = vpop.f32.mrf.mxu1 }
 0x38b   : > { %v12070_v18 = vadd.f32 %v5316_v12, %v5187_v49  ;;  %v1649_v12 = vld [vmem:[%s10653_s26 + $0x29b8] sm:$0xff]  ;;  %v1651_v49 = vld [vmem:[%s10653_s26 + $0x29c8] sm:$0xff]  ;;  %v1648_v14 = vld [vmem:[%s10653_s26 + $0x29b0] sm:$0xff] }
 0x38c   : > { %v5191_v60 = vpop.f32.mrf.mxu0  ;;  %6210 = vmatmul.mubr.f32.gmra.mxu0 %v886_v44  ;;  %v5321_v22 = vpop.f32.mrf.mxu1  ;;  %6340 = vmatmul.mubr.f32.gmra.mxu1 %v888_v52 }
 0x38d   : > { %v5192_v54 = vadd.f32 %v5191_v60, %v11982_v0  ;;  %6214 = vmatprep.mubr.f32.mxu0 %v1014_v16  ;;  %6344 = vmatprep.mubr.f32.mxu1 %v1016_v19  ;;  %v1650_v16 = vld [vmem:[%s10653_s26 + $0x29c0] sm:$0xff] }
 0x38e   : > { %v5193_v27 = vpop.f32.mrf.mxu0  ;;  %v5323_v28 = vpop.f32.mrf.mxu1 }
 0x38f   : > { %v12077_v29 = vadd.f32 %v5321_v22, %v5192_v54  ;;  %v1776_v22 = vld [vmem:[%s10653_s26 + $0x2db0] sm:$0xff]  ;;  %v1778_v54 = vld [vmem:[%s10653_s26 + $0x2dc0] sm:$0xff]  ;;  %v1775_v28 = vld [vmem:[%s10653_s26 + $0x2da8] sm:$0xff] }
 0x390   : > { %v5196_v31 = vpop.f32.mrf.mxu0  ;;  %6215 = vmatmul.mubr.f32.gmra.mxu0 %v1013_v23  ;;  %v5326_v35 = vpop.f32.mrf.mxu1  ;;  %6345 = vmatmul.mubr.f32.gmra.mxu1 %v1015_v58 }
 0x391   : > { %v5197_v0 = vadd.f32 %v5196_v31, %v11989_v21  ;;  %6219 = vmatprep.mubr.f32.mxu0 %v1141_v6  ;;  %6349 = vmatprep.mubr.f32.mxu1 %v1143_v1  ;;  %v1777_v6 = vld [vmem:[%s10653_s26 + $0x2db8] sm:$0xff] }
 0x392   : > { %v5198_v7 = vpop.f32.mrf.mxu0  ;;  %v5328_v9 = vpop.f32.mrf.mxu1 }
 0x393   : > { %v12084_v45 = vadd.f32 %v5326_v35, %v5197_v0  ;;  %v1903_v35 = vld [vmem:[%s10653_s26 + $0x31a8] sm:$0xf]  ;;  %v1905_v0 = vld [vmem:[%s10653_s26 + $0x31b8] sm:$0xf]  ;;  %v1902_v9 = vld [vmem:[%s10653_s26 + $0x31a0] sm:$0xf] }
 0x394   : > { %v5201_v10 = vpop.f32.mrf.mxu0  ;;  %6220 = vmatmul.mubr.f32.gmra.mxu0 %v1140_v38  ;;  %v5331_v43 = vpop.f32.mrf.mxu1  ;;  %6350 = vmatmul.mubr.f32.gmra.mxu1 %v1142_v36 }
 0x395   : > { %v5202_v21 = vadd.f32 %v5201_v10, %v11996_v20  ;;  %6224 = vmatprep.mubr.f32.mxu0 %v1268_v41  ;;  %6354 = vmatprep.mubr.f32.mxu1 %v1270_v15  ;;  %v1904_v41 = vld [vmem:[%s10653_s26 + $0x31b0] sm:$0xf] }
 0x396   : > { %v5203_v47 = vpop.f32.mrf.mxu0  ;;  %v5333_v24 = vpop.f32.mrf.mxu1 }
 0x397   : > { %v12091_v53 = vadd.f32 %v5331_v43, %v5202_v21  ;;  %v383_v43 = vld [vmem:[%s10653_s26 + $0x228] sm:$0xff]  ;;  %v385_v21 = vld [vmem:[%s10653_s26 + $0x238] sm:$0xff]  ;;  %v382_v24 = vld [vmem:[%s10653_s26 + $0x220] sm:$0xff] }
 0x398   : > { %v5206_v25 = vpop.f32.mrf.mxu0  ;;  %6225 = vmatmul.mubr.f32.gmra.mxu0 %v1267_v30  ;;  %v5336_v55 = vpop.f32.mrf.mxu1  ;;  %6355 = vmatmul.mubr.f32.gmra.mxu1 %v1269_v46 }
 0x399   : > { %v5207_v20 = vadd.f32 %v5206_v25, %v12003_v42  ;;  %6229 = vmatprep.mubr.f32.mxu0 %v1395_v39  ;;  %6359 = vmatprep.mubr.f32.mxu1 %v1397_v26  ;;  %v384_v39 = vld [vmem:[%s10653_s26 + $0x230] sm:$0xff] }
 0x39a   : > { %v5208_v34 = vpop.f32.mrf.mxu0  ;;  %v5338_v61 = vpop.f32.mrf.mxu1 }
 0x39b   : > { %v12098_v2 = vadd.f32 %v5336_v55, %v5207_v20  ;;  %v259_v55 = vld [vmem:[%s10663_s28 + $0x240] sm:$0xff]  ;;  %v512_v34 = vld [vmem:[%s10653_s26 + $0x630] sm:$0xff] }
 0x39c   : > { %v5211_v37 = vpop.f32.mrf.mxu0  ;;  %6230 = vmatmul.mubr.f32.gmra.mxu0 %v1394_v56  ;;  %v5341_v4 = vpop.f32.mrf.mxu1  ;;  %6360 = vmatmul.mubr.f32.gmra.mxu1 %v1396_v59  ;;  %v510_v20 = vld [vmem:[%s10653_s26 + $0x620] sm:$0xff]  ;;  %v261_v59 = vld [vmem:[%s10663_s28 + $0x250] sm:$0xff] }
 0x39d   : > { %v5212_v42 = vadd.f32 %v5211_v37, %v12010_v50  ;;  %6234 = vmatprep.mubr.f32.mxu0 %v1522_v33  ;;  %6364 = vmatprep.mubr.f32.mxu1 %v1524_v48  ;;  %v264_v33 = vld [vmem:[%s10663_s28 + $0x268] sm:$0xff]  ;;  %v266_v48 = vld [vmem:[%s10663_s28 + $0x278] sm:$0xff] }
 0x39e   : > { %v5213_v5 = vpop.f32.mrf.mxu0  ;;  %v5343_v8 = vpop.f32.mrf.mxu1 }
 0x39f   : > { %v12105_v44 = vadd.f32 %v5341_v4, %v5212_v42  ;;  %v509_v4 = vld [vmem:[%s10653_s26 + $0x618] sm:$0xff]  ;;  %v511_v42 = vld [vmem:[%s10653_s26 + $0x628] sm:$0xff] }
 0x3a0   : > { %v5411_v52 = vpop.f32.mrf.mxu0  ;;  %6235 = vmatmul.mubr.f32.gmra.mxu0 %v1521_v3  ;;  %v5541_v57 = vpop.f32.mrf.mxu1  ;;  %6365 = vmatmul.mubr.f32.gmra.mxu1 %v1523_v40  ;;  %v637_v5 = vld [vmem:[%s10653_s26 + $0xa18] sm:$0xff]  ;;  %v639_v8 = vld [vmem:[%s10653_s26 + $0xa28] sm:$0xff] }
 0x3a1   : > { %v5412_v50 = vadd.f32 %v5411_v52, %v12017_v63  ;;  %6239 = vmatprep.mubr.f32.mxu0 %v1649_v12  ;;  %6369 = vmatprep.mubr.f32.mxu1 %v1651_v49 }
 0x3a2   : > { %v5413_v19 = vpop.f32.mrf.mxu0  ;;  %v5543_v60 = vpop.f32.mrf.mxu1 }
 0x3a3   : > { %v12112_v23 = vadd.f32 %v5541_v57, %v5412_v50  ;;  %v636_v57 = vld [vmem:[%s10653_s26 + $0xa10] sm:$0xff]  ;;  %v638_v50 = vld [vmem:[%s10653_s26 + $0xa20] sm:$0xff] }
 0x3a4   : > { %v5416_v58 = vpop.f32.mrf.mxu0  ;;  %6240 = vmatmul.mubr.f32.gmra.mxu0 %v1648_v14  ;;  %v5546_v27 = vpop.f32.mrf.mxu1  ;;  %6370 = vmatmul.mubr.f32.gmra.mxu1 %v1650_v16  ;;  %v764_v19 = vld [vmem:[%s10653_s26 + $0xe10] sm:$0xff]  ;;  %v766_v60 = vld [vmem:[%s10653_s26 + $0xe20] sm:$0xff] }
 0x3a5   : > { %v5417_v63 = vadd.f32 %v5416_v58, %v12024_v13  ;;  %6244 = vmatprep.mubr.f32.mxu0 %v1776_v22  ;;  %6374 = vmatprep.mubr.f32.mxu1 %v1778_v54 }
 0x3a6   : > { %v5418_v1 = vpop.f32.mrf.mxu0  ;;  %v5548_v31 = vpop.f32.mrf.mxu1 }
 0x3a7   : > { %v12119_v38 = vadd.f32 %v5546_v27, %v5417_v63  ;;  %v763_v27 = vld [vmem:[%s10653_s26 + $0xe08] sm:$0xff]  ;;  %v765_v63 = vld [vmem:[%s10653_s26 + $0xe18] sm:$0xff] }
 0x3a8   : > { %v5421_v36 = vpop.f32.mrf.mxu0  ;;  %6245 = vmatmul.mubr.f32.gmra.mxu0 %v1775_v28  ;;  %v5551_v7 = vpop.f32.mrf.mxu1  ;;  %6375 = vmatmul.mubr.f32.gmra.mxu1 %v1777_v6  ;;  %v891_v1 = vld [vmem:[%s10653_s26 + $0x1208] sm:$0xff]  ;;  %v893_v31 = vld [vmem:[%s10653_s26 + $0x1218] sm:$0xff] }
 0x3a9   : > { %v5422_v13 = vadd.f32 %v5421_v36, %v12031_v17  ;;  %6249 = vmatprep.mubr.f32.mxu0 %v1903_v35  ;;  %6379 = vmatprep.mubr.f32.mxu1 %v1905_v0 }
 0x3aa   : > { %v5423_v15 = vpop.f32.mrf.mxu0  ;;  %v5553_v10 = vpop.f32.mrf.mxu1 }
 0x3ab   : > { %v12126_v30 = vadd.f32 %v5551_v7, %v5422_v13  ;;  %v890_v7 = vld [vmem:[%s10653_s26 + $0x1200] sm:$0xff]  ;;  %v892_v13 = vld [vmem:[%s10653_s26 + $0x1210] sm:$0xff] }
 0x3ac   : > { %v5426_v46 = vpop.f32.mrf.mxu0  ;;  %6250 = vmatmul.mubr.f32.gmra.mxu0 %v1902_v9  ;;  %v5556_v47 = vpop.f32.mrf.mxu1  ;;  %6380 = vmatmul.mubr.f32.gmra.mxu1 %v1904_v41  ;;  %v1018_v15 = vld [vmem:[%s10653_s26 + $0x1600] sm:$0xff]  ;;  %v1020_v10 = vld [vmem:[%s10653_s26 + $0x1610] sm:$0xff] }
 0x3ad   : > { %v5427_v17 = vadd.f32 %v5426_v46, %v12038_v32  ;;  %6449 = vmatprep.mubr.f32.mxu0 %v383_v43  ;;  %6579 = vmatprep.mubr.f32.mxu1 %v385_v21 }
 0x3ae   : > { %v5428_v26 = vpop.f32.mrf.mxu0  ;;  %v5558_v25 = vpop.f32.mrf.mxu1 }
 0x3af   : > { %v12133_v56 = vadd.f32 %v5556_v47, %v5427_v17  ;;  %v1017_v47 = vld [vmem:[%s10653_s26 + $0x15f8] sm:$0xff]  ;;  %v1019_v17 = vld [vmem:[%s10653_s26 + $0x1608] sm:$0xff] }
 0x3b0   : > { %v5431_v61 = vpop.f32.mrf.mxu0  ;;  %6450 = vmatmul.mubr.f32.vlgmr.msra.gmra.mxu0 %v382_v24  ;;  %v5561_v32 = vpop.f32.mrf.mxu1  ;;  %6580 = vmatmul.mubr.f32.vlgmr.msra.gmra.mxu1 %v384_v39  ;;  %v1145_v26 = vld [vmem:[%s10653_s26 + $0x19f8] sm:$0xff]  ;;  %v1147_v25 = vld [vmem:[%s10653_s26 + $0x1a08] sm:$0xff] }
 0x3b1   : > { %v5432_v37 = vadd.f32 %v5431_v61, %v12049_v51  ;;  %6676 = vmatpush1.xpose.msra.mxu0 %v259_v55  ;;  %6454 = vmatprep.mubr.f32.mxu0 %v510_v20  ;;  %v1146_v61 = vld [vmem:[%s10653_s26 + $0x1a00] sm:$0xff] }
 0x3b2   : > { %v5433_v3 = vpop.f32.mrf.mxu0  ;;  %v5563_v40 = vpop.f32.mrf.mxu1  ;;  %6806 = vmatpush1.xpose.msra.mxu1 %v261_v59  ;;  %6584 = vmatprep.mubr.f32.mxu1 %v512_v34  ;;  %v1144_v34 = vld [vmem:[%s10653_s26 + $0x19f0] sm:$0xff] }
 0x3b3   : > { %v12144_v12 = vadd.f32 %v5561_v32, %v5432_v37  ;;  %6935 = vmatprep.subr.mxu0 %v264_v33  ;;  %7065 = vmatprep.subr.mxu1 %v266_v48  ;;  %v1272_v48 = vld [vmem:[%s10653_s26 + $0x1df0] sm:$0xff]  ;;  %v1274_v37 = vld [vmem:[%s10653_s26 + $0x1e00] sm:$0xff]  ;;  %v1271_v40 = vld [vmem:[%s10653_s26 + $0x1de8] sm:$0xff] }
 0x3b4   : > { %v5436_v49 = vpop.f32.mrf.mxu0  ;;  %6455 = vmatmul.mubr.f32.gmra.mxu0 %v509_v4  ;;  %v5566_v51 = vpop.f32.mrf.mxu1  ;;  %6585 = vmatmul.mubr.f32.gmra.mxu1 %v511_v42 }
 0x3b5   : > { %v5437_v52 = vadd.f32 %v5436_v49, %v12056_v62  ;;  %6459 = vmatprep.mubr.f32.mxu0 %v637_v5  ;;  %6589 = vmatprep.mubr.f32.mxu1 %v639_v8  ;;  %v1273_v5 = vld [vmem:[%s10653_s26 + $0x1df8] sm:$0xff] }
 0x3b6   : > { %v5438_v14 = vpop.f32.mrf.mxu0  ;;  %v5568_v16 = vpop.f32.mrf.mxu1 }
 0x3b7   : > { %v12151_v22 = vadd.f32 %v5566_v51, %v5437_v52  ;;  %v1399_v51 = vld [vmem:[%s10653_s26 + $0x21e8] sm:$0xff]  ;;  %v1401_v52 = vld [vmem:[%s10653_s26 + $0x21f8] sm:$0xff]  ;;  %v1398_v16 = vld [vmem:[%s10653_s26 + $0x21e0] sm:$0xff] }
 0x3b8   : > { %v5441_v54 = vpop.f32.mrf.mxu0  ;;  %6460 = vmatmul.mubr.f32.gmra.mxu0 %v636_v57  ;;  %v5571_v58 = vpop.f32.mrf.mxu1  ;;  %6590 = vmatmul.mubr.f32.gmra.mxu1 %v638_v50 }
 0x3b9   : > { %v5442_v62 = vadd.f32 %v5441_v54, %v12063_v11  ;;  %6464 = vmatprep.mubr.f32.mxu0 %v764_v19  ;;  %6594 = vmatprep.mubr.f32.mxu1 %v766_v60  ;;  %v1400_v19 = vld [vmem:[%s10653_s26 + $0x21f0] sm:$0xff] }
 0x3ba   : > { %v5443_v28 = vpop.f32.mrf.mxu0  ;;  %v5573_v6 = vpop.f32.mrf.mxu1 }
 0x3bb   : > { %v12158_v35 = vadd.f32 %v5571_v58, %v5442_v62  ;;  %v1526_v58 = vld [vmem:[%s10653_s26 + $0x25e0] sm:$0xff]  ;;  %v1528_v62 = vld [vmem:[%s10653_s26 + $0x25f0] sm:$0xff]  ;;  %v1525_v6 = vld [vmem:[%s10653_s26 + $0x25d8] sm:$0xff] }
 0x3bc   : > { %v5446_v0 = vpop.f32.mrf.mxu0  ;;  %6465 = vmatmul.mubr.f32.gmra.mxu0 %v763_v27  ;;  %v5576_v36 = vpop.f32.mrf.mxu1  ;;  %6595 = vmatmul.mubr.f32.gmra.mxu1 %v765_v63 }
 0x3bd   : > { %v5447_v11 = vadd.f32 %v5446_v0, %v12070_v18  ;;  %6469 = vmatprep.mubr.f32.mxu0 %v891_v1  ;;  %6599 = vmatprep.mubr.f32.mxu1 %v893_v31  ;;  %v1527_v1 = vld [vmem:[%s10653_s26 + $0x25e8] sm:$0xff] }
 0x3be   : > { %v5448_v9 = vpop.f32.mrf.mxu0  ;;  %v5578_v41 = vpop.f32.mrf.mxu1 }
 0x3bf   : > { %v12165_v43 = vadd.f32 %v5576_v36, %v5447_v11  ;;  %v1653_v36 = vld [vmem:[%s10653_s26 + $0x29d8] sm:$0xff]  ;;  %v1655_v11 = vld [vmem:[%s10653_s26 + $0x29e8] sm:$0xff]  ;;  %v1652_v41 = vld [vmem:[%s10653_s26 + $0x29d0] sm:$0xff] }
 0x3c0   : > { %v5451_v21 = vpop.f32.mrf.mxu0  ;;  %6470 = vmatmul.mubr.f32.gmra.mxu0 %v890_v7  ;;  %v5581_v46 = vpop.f32.mrf.mxu1  ;;  %6600 = vmatmul.mubr.f32.gmra.mxu1 %v892_v13 }
 0x3c1   : > { %v5452_v18 = vadd.f32 %v5451_v21, %v12077_v29  ;;  %6474 = vmatprep.mubr.f32.mxu0 %v1018_v15  ;;  %6604 = vmatprep.mubr.f32.mxu1 %v1020_v10  ;;  %v1654_v15 = vld [vmem:[%s10653_s26 + $0x29e0] sm:$0xff] }
 0x3c2   : > { %v5453_v24 = vpop.f32.mrf.mxu0  ;;  %v5583_v39 = vpop.f32.mrf.mxu1 }
 0x3c3   : > { %v12172_v55 = vadd.f32 %v5581_v46, %v5452_v18  ;;  %v1780_v46 = vld [vmem:[%s10653_s26 + $0x2dd0] sm:$0xff]  ;;  %v1782_v18 = vld [vmem:[%s10653_s26 + $0x2de0] sm:$0xff]  ;;  %v1779_v39 = vld [vmem:[%s10653_s26 + $0x2dc8] sm:$0xff] }
 0x3c4   : > { %v5456_v20 = vpop.f32.mrf.mxu0  ;;  %6475 = vmatmul.mubr.f32.gmra.mxu0 %v1017_v47  ;;  %v5586_v59 = vpop.f32.mrf.mxu1  ;;  %6605 = vmatmul.mubr.f32.gmra.mxu1 %v1019_v17 }
 0x3c5   : > { %v5457_v29 = vadd.f32 %v5456_v20, %v12084_v45  ;;  %6479 = vmatprep.mubr.f32.mxu0 %v1145_v26  ;;  %6609 = vmatprep.mubr.f32.mxu1 %v1147_v25  ;;  %v1781_v26 = vld [vmem:[%s10653_s26 + $0x2dd8] sm:$0xff] }
 0x3c6   : > { %v5458_v32 = vpop.f32.mrf.mxu0  ;;  %v5588_v33 = vpop.f32.mrf.mxu1 }
 0x3c7   : > { %v12179_v4 = vadd.f32 %v5586_v59, %v5457_v29  ;;  %v1907_v59 = vld [vmem:[%s10653_s26 + $0x31c8] sm:$0xf]  ;;  %v1909_v29 = vld [vmem:[%s10653_s26 + $0x31d8] sm:$0xf]  ;;  %v1906_v33 = vld [vmem:[%s10653_s26 + $0x31c0] sm:$0xf] }
 0x3c8   : > { %v5461_v42 = vpop.f32.mrf.mxu0  ;;  %6480 = vmatmul.mubr.f32.gmra.mxu0 %v1144_v34  ;;  %v5591_v3 = vpop.f32.mrf.mxu1  ;;  %6610 = vmatmul.mubr.f32.gmra.mxu1 %v1146_v61 }
 0x3c9   : > { %v5462_v45 = vadd.f32 %v5461_v42, %v12091_v53  ;;  %6484 = vmatprep.mubr.f32.mxu0 %v1272_v48  ;;  %6614 = vmatprep.mubr.f32.mxu1 %v1274_v37  ;;  %v1908_v48 = vld [vmem:[%s10653_s26 + $0x31d0] sm:$0xf] }
 0x3ca   : > { %v5463_v8 = vpop.f32.mrf.mxu0  ;;  %v5593_v49 = vpop.f32.mrf.mxu1 }
 0x3cb   : > { %v12186_v57 = vadd.f32 %v5591_v3, %v5462_v45  ;;  %v387_v3 = vld [vmem:[%s10653_s26 + $0x248] sm:$0xff]  ;;  %v389_v45 = vld [vmem:[%s10653_s26 + $0x258] sm:$0xff]  ;;  %v386_v49 = vld [vmem:[%s10653_s26 + $0x240] sm:$0xff] }
 0x3cc   : > { %v5466_v50 = vpop.f32.mrf.mxu0  ;;  %6485 = vmatmul.mubr.f32.gmra.mxu0 %v1271_v40  ;;  %v5596_v14 = vpop.f32.mrf.mxu1  ;;  %6615 = vmatmul.mubr.f32.gmra.mxu1 %v1273_v5 }
 0x3cd   : > { %v5467_v53 = vadd.f32 %v5466_v50, %v12098_v2  ;;  %6489 = vmatprep.mubr.f32.mxu0 %v1399_v51  ;;  %6619 = vmatprep.mubr.f32.mxu1 %v1401_v52  ;;  %v388_v51 = vld [vmem:[%s10653_s26 + $0x250] sm:$0xff] }
 0x3ce   : > { %v5468_v60 = vpop.f32.mrf.mxu0  ;;  %v5598_v54 = vpop.f32.mrf.mxu1 }
 0x3cf   : > { %v12193_v27 = vadd.f32 %v5596_v14, %v5467_v53  ;;  %v263_v14 = vld [vmem:[%s10663_s28 + $0x260] sm:$0xff]  ;;  %v516_v60 = vld [vmem:[%s10653_s26 + $0x650] sm:$0xff] }
 0x3d0   : > { %v5471_v63 = vpop.f32.mrf.mxu0  ;;  %6490 = vmatmul.mubr.f32.gmra.mxu0 %v1398_v16  ;;  %v5601_v28 = vpop.f32.mrf.mxu1  ;;  %6620 = vmatmul.mubr.f32.gmra.mxu1 %v1400_v19  ;;  %v514_v53 = vld [vmem:[%s10653_s26 + $0x640] sm:$0xff]  ;;  %v265_v19 = vld [vmem:[%s10663_s28 + $0x270] sm:$0xff] }
 0x3d1   : > { %v5472_v2 = vadd.f32 %v5471_v63, %v12105_v44  ;;  %6494 = vmatprep.mubr.f32.mxu0 %v1526_v58  ;;  %6624 = vmatprep.mubr.f32.mxu1 %v1528_v62  ;;  %v268_v58 = vld [vmem:[%s10663_s28 + $0x288] sm:$0xff]  ;;  %v270_v62 = vld [vmem:[%s10663_s28 + $0x298] sm:$0xff] }
 0x3d2   : > { %v5473_v31 = vpop.f32.mrf.mxu0  ;;  %v5603_v0 = vpop.f32.mrf.mxu1 }
 0x3d3   : > { %v12200_v7 = vadd.f32 %v5601_v28, %v5472_v2  ;;  %v513_v28 = vld [vmem:[%s10653_s26 + $0x638] sm:$0xff]  ;;  %v515_v2 = vld [vmem:[%s10653_s26 + $0x648] sm:$0xff] }
 0x3d4   : > { %v5671_v13 = vpop.f32.mrf.mxu0  ;;  %6495 = vmatmul.mubr.f32.gmra.mxu0 %v1525_v6  ;;  %v5801_v9 = vpop.f32.mrf.mxu1  ;;  %6625 = vmatmul.mubr.f32.gmra.mxu1 %v1527_v1  ;;  %v641_v31 = vld [vmem:[%s10653_s26 + $0xa38] sm:$0xff]  ;;  %v643_v0 = vld [vmem:[%s10653_s26 + $0xa48] sm:$0xff] }
 0x3d5   : > { %v5672_v44 = vadd.f32 %v5671_v13, %v12112_v23  ;;  %6499 = vmatprep.mubr.f32.mxu0 %v1653_v36  ;;  %6629 = vmatprep.mubr.f32.mxu1 %v1655_v11 }
 0x3d6   : > { %v5673_v10 = vpop.f32.mrf.mxu0  ;;  %v5803_v21 = vpop.f32.mrf.mxu1 }
 0x3d7   : > { %v12207_v47 = vadd.f32 %v5801_v9, %v5672_v44  ;;  %v640_v9 = vld [vmem:[%s10653_s26 + $0xa30] sm:$0xff]  ;;  %v642_v44 = vld [vmem:[%s10653_s26 + $0xa40] sm:$0xff] }
 0x3d8   : > { %v5676_v17 = vpop.f32.mrf.mxu0  ;;  %6500 = vmatmul.mubr.f32.gmra.mxu0 %v1652_v41  ;;  %v5806_v24 = vpop.f32.mrf.mxu1  ;;  %6630 = vmatmul.mubr.f32.gmra.mxu1 %v1654_v15  ;;  %v768_v10 = vld [vmem:[%s10653_s26 + $0xe30] sm:$0xff]  ;;  %v770_v21 = vld [vmem:[%s10653_s26 + $0xe40] sm:$0xff] }
 0x3d9   : > { %v5677_v23 = vadd.f32 %v5676_v17, %v12119_v38  ;;  %6504 = vmatprep.mubr.f32.mxu0 %v1780_v46  ;;  %6634 = vmatprep.mubr.f32.mxu1 %v1782_v18 }
 0x3da   : > { %v5678_v25 = vpop.f32.mrf.mxu0  ;;  %v5808_v20 = vpop.f32.mrf.mxu1 }
 0x3db   : > { %v12214_v34 = vadd.f32 %v5806_v24, %v5677_v23  ;;  %v767_v24 = vld [vmem:[%s10653_s26 + $0xe28] sm:$0xff]  ;;  %v769_v23 = vld [vmem:[%s10653_s26 + $0xe38] sm:$0xff] }
 0x3dc   : > { %v5681_v61 = vpop.f32.mrf.mxu0  ;;  %6505 = vmatmul.mubr.f32.gmra.mxu0 %v1779_v39  ;;  %v5811_v32 = vpop.f32.mrf.mxu1  ;;  %6635 = vmatmul.mubr.f32.gmra.mxu1 %v1781_v26  ;;  %v895_v25 = vld [vmem:[%s10653_s26 + $0x1228] sm:$0xff]  ;;  %v897_v20 = vld [vmem:[%s10653_s26 + $0x1238] sm:$0xff] }
 0x3dd   : > { %v5682_v38 = vadd.f32 %v5681_v61, %v12126_v30  ;;  %6509 = vmatprep.mubr.f32.mxu0 %v1907_v59  ;;  %6639 = vmatprep.mubr.f32.mxu1 %v1909_v29 }
 0x3de   : > { %v5683_v37 = vpop.f32.mrf.mxu0  ;;  %v5813_v42 = vpop.f32.mrf.mxu1 }
 0x3df   : > { %v12221_v40 = vadd.f32 %v5811_v32, %v5682_v38  ;;  %v894_v32 = vld [vmem:[%s10653_s26 + $0x1220] sm:$0xff]  ;;  %v896_v38 = vld [vmem:[%s10653_s26 + $0x1230] sm:$0xff] }
 0x3e0   : > { %v5686_v5 = vpop.f32.mrf.mxu0  ;;  %6510 = vmatmul.mubr.f32.gmra.mxu0 %v1906_v33  ;;  %v5816_v8 = vpop.f32.mrf.mxu1  ;;  %6640 = vmatmul.mubr.f32.gmra.mxu1 %v1908_v48  ;;  %v1022_v37 = vld [vmem:[%s10653_s26 + $0x1620] sm:$0xff]  ;;  %v1024_v42 = vld [vmem:[%s10653_s26 + $0x1630] sm:$0xff] }
 0x3e1   : > { %v5687_v30 = vadd.f32 %v5686_v5, %v12133_v56  ;;  %6709 = vmatprep.mubr.f32.mxu0 %v387_v3  ;;  %6839 = vmatprep.mubr.f32.mxu1 %v389_v45 }
 0x3e2   : > { %v5688_v52 = vpop.f32.mrf.mxu0  ;;  %v5818_v50 = vpop.f32.mrf.mxu1 }
 0x3e3   : > { %v12228_v16 = vadd.f32 %v5816_v8, %v5687_v30  ;;  %v1021_v8 = vld [vmem:[%s10653_s26 + $0x1618] sm:$0xff]  ;;  %v1023_v30 = vld [vmem:[%s10653_s26 + $0x1628] sm:$0xff] }
 0x3e4   : > { %v5691_v54 = vpop.f32.mrf.mxu0  ;;  %6710 = vmatmul.mubr.f32.vlgmr.msra.gmra.mxu0 %v386_v49  ;;  %v5821_v56 = vpop.f32.mrf.mxu1  ;;  %6840 = vmatmul.mubr.f32.vlgmr.msra.gmra.mxu1 %v388_v51  ;;  %v1149_v52 = vld [vmem:[%s10653_s26 + $0x1a18] sm:$0xff]  ;;  %v1151_v50 = vld [vmem:[%s10653_s26 + $0x1a28] sm:$0xff] }
 0x3e5   : > { %v5692_v63 = vadd.f32 %v5691_v54, %v12144_v12  ;;  %6936 = vmatpush1.xpose.msra.mxu0 %v263_v14  ;;  %6714 = vmatprep.mubr.f32.mxu0 %v514_v53  ;;  %v1150_v54 = vld [vmem:[%s10653_s26 + $0x1a20] sm:$0xff] }
 0x3e6   : > { %v5693_v6 = vpop.f32.mrf.mxu0  ;;  %v5823_v1 = vpop.f32.mrf.mxu1  ;;  %7066 = vmatpush1.xpose.msra.mxu1 %v265_v19  ;;  %6844 = vmatprep.mubr.f32.mxu1 %v516_v60  ;;  %v1148_v60 = vld [vmem:[%s10653_s26 + $0x1a10] sm:$0xff] }
 0x3e7   : > { %v12239_v36 = vadd.f32 %v5821_v56, %v5692_v63  ;;  %7195 = vmatprep.subr.mxu0 %v268_v58  ;;  %7325 = vmatprep.subr.mxu1 %v270_v62  ;;  %v1276_v62 = vld [vmem:[%s10653_s26 + $0x1e10] sm:$0xff]  ;;  %v1278_v63 = vld [vmem:[%s10653_s26 + $0x1e20] sm:$0xff]  ;;  %v1275_v1 = vld [vmem:[%s10653_s26 + $0x1e08] sm:$0xff] }
 0x3e8   : > { %v5696_v11 = vpop.f32.mrf.mxu0  ;;  %6715 = vmatmul.mubr.f32.gmra.mxu0 %v513_v28  ;;  %v5826_v12 = vpop.f32.mrf.mxu1  ;;  %6845 = vmatmul.mubr.f32.gmra.mxu1 %v515_v2 }
 0x3e9   : > { %v5697_v13 = vadd.f32 %v5696_v11, %v12151_v22  ;;  %6719 = vmatprep.mubr.f32.mxu0 %v641_v31  ;;  %6849 = vmatprep.mubr.f32.mxu1 %v643_v0  ;;  %v1277_v31 = vld [vmem:[%s10653_s26 + $0x1e18] sm:$0xff] }
 0x3ea   : > { %v5698_v41 = vpop.f32.mrf.mxu0  ;;  %v5828_v15 = vpop.f32.mrf.mxu1 }
 0x3eb   : > { %v12246_v46 = vadd.f32 %v5826_v12, %v5697_v13  ;;  %v1403_v12 = vld [vmem:[%s10653_s26 + $0x2208] sm:$0xff]  ;;  %v1405_v13 = vld [vmem:[%s10653_s26 + $0x2218] sm:$0xff]  ;;  %v1402_v15 = vld [vmem:[%s10653_s26 + $0x2200] sm:$0xff] }
 0x3ec   : > { %v5701_v18 = vpop.f32.mrf.mxu0  ;;  %6720 = vmatmul.mubr.f32.gmra.mxu0 %v640_v9  ;;  %v5831_v17 = vpop.f32.mrf.mxu1  ;;  %6850 = vmatmul.mubr.f32.gmra.mxu1 %v642_v44 }
 0x3ed   : > { %v5702_v22 = vadd.f32 %v5701_v18, %v12158_v35  ;;  %6724 = vmatprep.mubr.f32.mxu0 %v768_v10  ;;  %6854 = vmatprep.mubr.f32.mxu1 %v770_v21  ;;  %v1404_v10 = vld [vmem:[%s10653_s26 + $0x2210] sm:$0xff] }
 0x3ee   : > { %v5703_v39 = vpop.f32.mrf.mxu0  ;;  %v5833_v26 = vpop.f32.mrf.mxu1 }
 0x3ef   : > { %v12253_v59 = vadd.f32 %v5831_v17, %v5702_v22  ;;  %v1530_v17 = vld [vmem:[%s10653_s26 + $0x2600] sm:$0xff]  ;;  %v1532_v22 = vld [vmem:[%s10653_s26 + $0x2610] sm:$0xff]  ;;  %v1529_v26 = vld [vmem:[%s10653_s26 + $0x25f8] sm:$0xff] }
 0x3f0   : > { %v5706_v29 = vpop.f32.mrf.mxu0  ;;  %6725 = vmatmul.mubr.f32.gmra.mxu0 %v767_v24  ;;  %v5836_v61 = vpop.f32.mrf.mxu1  ;;  %6855 = vmatmul.mubr.f32.gmra.mxu1 %v769_v23 }
 0x3f1   : > { %v5707_v35 = vadd.f32 %v5706_v29, %v12165_v43  ;;  %6729 = vmatprep.mubr.f32.mxu0 %v895_v25  ;;  %6859 = vmatprep.mubr.f32.mxu1 %v897_v20  ;;  %v1531_v25 = vld [vmem:[%s10653_s26 + $0x2608] sm:$0xff] }
 0x3f2   : > { %v5708_v33 = vpop.f32.mrf.mxu0  ;;  %v5838_v48 = vpop.f32.mrf.mxu1 }
 0x3f3   : > { %v12260_v3 = vadd.f32 %v5836_v61, %v5707_v35  ;;  %v1657_v61 = vld [vmem:[%s10653_s26 + $0x29f8] sm:$0xff]  ;;  %v1659_v35 = vld [vmem:[%s10653_s26 + $0x2a08] sm:$0xff]  ;;  %v1656_v48 = vld [vmem:[%s10653_s26 + $0x29f0] sm:$0xff] }
 0x3f4   : > { %v5711_v45 = vpop.f32.mrf.mxu0  ;;  %6730 = vmatmul.mubr.f32.gmra.mxu0 %v894_v32  ;;  %v5841_v5 = vpop.f32.mrf.mxu1  ;;  %6860 = vmatmul.mubr.f32.gmra.mxu1 %v896_v38 }
 0x3f5   : > { %v5712_v43 = vadd.f32 %v5711_v45, %v12172_v55  ;;  %6734 = vmatprep.mubr.f32.mxu0 %v1022_v37  ;;  %6864 = vmatprep.mubr.f32.mxu1 %v1024_v42  ;;  %v1658_v37 = vld [vmem:[%s10653_s26 + $0x2a00] sm:$0xff] }
 0x3f6   : > { %v5713_v49 = vpop.f32.mrf.mxu0  ;;  %v5843_v51 = vpop.f32.mrf.mxu1 }
 0x3f7   : > { %v12267_v14 = vadd.f32 %v5841_v5, %v5712_v43  ;;  %v1784_v5 = vld [vmem:[%s10653_s26 + $0x2df0] sm:$0xff]  ;;  %v1786_v43 = vld [vmem:[%s10653_s26 + $0x2e00] sm:$0xff]  ;;  %v1783_v51 = vld [vmem:[%s10653_s26 + $0x2de8] sm:$0xff] }
 0x3f8   : > { %v5716_v53 = vpop.f32.mrf.mxu0  ;;  %6735 = vmatmul.mubr.f32.gmra.mxu0 %v1021_v8  ;;  %v5846_v19 = vpop.f32.mrf.mxu1  ;;  %6865 = vmatmul.mubr.f32.gmra.mxu1 %v1023_v30 }
 0x3f9   : > { %v5717_v55 = vadd.f32 %v5716_v53, %v12179_v4  ;;  %6739 = vmatprep.mubr.f32.mxu0 %v1149_v52  ;;  %6869 = vmatprep.mubr.f32.mxu1 %v1151_v50  ;;  %v1785_v52 = vld [vmem:[%s10653_s26 + $0x2df8] sm:$0xff] }
 0x3fa   : > { %v5718_v56 = vpop.f32.mrf.mxu0  ;;  %v5848_v58 = vpop.f32.mrf.mxu1 }
 0x3fb   : > { %v12274_v28 = vadd.f32 %v5846_v19, %v5717_v55  ;;  %v1911_v19 = vld [vmem:[%s10653_s26 + $0x31e8] sm:$0xf]  ;;  %v1913_v55 = vld [vmem:[%s10653_s26 + $0x31f8] sm:$0xf]  ;;  %v1910_v58 = vld [vmem:[%s10653_s26 + $0x31e0] sm:$0xf] }
 0x3fc   : > { %v5721_v2 = vpop.f32.mrf.mxu0  ;;  %6740 = vmatmul.mubr.f32.gmra.mxu0 %v1148_v60  ;;  %v5851_v6 = vpop.f32.mrf.mxu1  ;;  %6870 = vmatmul.mubr.f32.gmra.mxu1 %v1150_v54 }
 0x3fd   : > { %v5722_v4 = vadd.f32 %v5721_v2, %v12186_v57  ;;  %6744 = vmatprep.mubr.f32.mxu0 %v1276_v62  ;;  %6874 = vmatprep.mubr.f32.mxu1 %v1278_v63  ;;  %v1912_v62 = vld [vmem:[%s10653_s26 + $0x31f0] sm:$0xf] }
 0x3fe   : > { %v5723_v0 = vpop.f32.mrf.mxu0  ;;  %v5853_v11 = vpop.f32.mrf.mxu1 }
 0x3ff   : > { %v12281_v9 = vadd.f32 %v5851_v6, %v5722_v4  ;;  %v391_v6 = vld [vmem:[%s10653_s26 + $0x268] sm:$0xff]  ;;  %v393_v4 = vld [vmem:[%s10653_s26 + $0x278] sm:$0xff]  ;;  %v390_v11 = vld [vmem:[%s10653_s26 + $0x260] sm:$0xff] }
 0x400   : > { %v5726_v44 = vpop.f32.mrf.mxu0  ;;  %6745 = vmatmul.mubr.f32.gmra.mxu0 %v1275_v1  ;;  %v5856_v41 = vpop.f32.mrf.mxu1  ;;  %6875 = vmatmul.mubr.f32.gmra.mxu1 %v1277_v31 }
 0x401   : > { %v5727_v57 = vadd.f32 %v5726_v44, %v12193_v27  ;;  %6749 = vmatprep.mubr.f32.mxu0 %v1403_v12  ;;  %6879 = vmatprep.mubr.f32.mxu1 %v1405_v13  ;;  %v392_v12 = vld [vmem:[%s10653_s26 + $0x270] sm:$0xff] }
 0x402   : > { %v5728_v21 = vpop.f32.mrf.mxu0  ;;  %v5858_v18 = vpop.f32.mrf.mxu1 }
 0x403   : > { %v12288_v24 = vadd.f32 %v5856_v41, %v5727_v57  ;;  %v267_v41 = vld [vmem:[%s10663_s28 + $0x280] sm:$0xff]  ;;  %v520_v21 = vld [vmem:[%s10653_s26 + $0x670] sm:$0xff] }
 0x404   : > { %v5731_v23 = vpop.f32.mrf.mxu0  ;;  %6750 = vmatmul.mubr.f32.gmra.mxu0 %v1402_v15  ;;  %v5861_v39 = vpop.f32.mrf.mxu1  ;;  %6880 = vmatmul.mubr.f32.gmra.mxu1 %v1404_v10  ;;  %v518_v57 = vld [vmem:[%s10653_s26 + $0x660] sm:$0xff]  ;;  %v269_v10 = vld [vmem:[%s10663_s28 + $0x290] sm:$0xff] }
 0x405   : > { %v5732_v27 = vadd.f32 %v5731_v23, %v12200_v7  ;;  %6754 = vmatprep.mubr.f32.mxu0 %v1530_v17  ;;  %6884 = vmatprep.mubr.f32.mxu1 %v1532_v22  ;;  %v272_v17 = vld [vmem:[%s10663_s28 + $0x2a8] sm:$0xff]  ;;  %v274_v22 = vld [vmem:[%s10663_s28 + $0x2b8] sm:$0xff] }
 0x406   : > { %v5733_v20 = vpop.f32.mrf.mxu0  ;;  %v5863_v29 = vpop.f32.mrf.mxu1 }
 0x407   : > { %v12295_v32 = vadd.f32 %v5861_v39, %v5732_v27  ;;  %v517_v39 = vld [vmem:[%s10653_s26 + $0x658] sm:$0xff]  ;;  %v519_v27 = vld [vmem:[%s10653_s26 + $0x668] sm:$0xff] }
 0x408   : > { %v5931_v38 = vpop.f32.mrf.mxu0  ;;  %6755 = vmatmul.mubr.f32.gmra.mxu0 %v1529_v26  ;;  %v6061_v33 = vpop.f32.mrf.mxu1  ;;  %6885 = vmatmul.mubr.f32.gmra.mxu1 %v1531_v25  ;;  %v645_v20 = vld [vmem:[%s10653_s26 + $0xa58] sm:$0xff]  ;;  %v647_v29 = vld [vmem:[%s10653_s26 + $0xa68] sm:$0xff] }
 0x409   : > { %v5932_v7 = vadd.f32 %v5931_v38, %v12207_v47  ;;  %6759 = vmatprep.mubr.f32.mxu0 %v1657_v61  ;;  %6889 = vmatprep.mubr.f32.mxu1 %v1659_v35 }
 0x40a   : > { %v5933_v42 = vpop.f32.mrf.mxu0  ;;  %v6063_v45 = vpop.f32.mrf.mxu1 }
 0x40b   : > { %v12302_v8 = vadd.f32 %v6061_v33, %v5932_v7  ;;  %v644_v33 = vld [vmem:[%s10653_s26 + $0xa50] sm:$0xff]  ;;  %v646_v7 = vld [vmem:[%s10653_s26 + $0xa60] sm:$0xff] }
 0x40c   : > { %v5936_v30 = vpop.f32.mrf.mxu0  ;;  %6760 = vmatmul.mubr.f32.gmra.mxu0 %v1656_v48  ;;  %v6066_v49 = vpop.f32.mrf.mxu1  ;;  %6890 = vmatmul.mubr.f32.gmra.mxu1 %v1658_v37  ;;  %v772_v42 = vld [vmem:[%s10653_s26 + $0xe50] sm:$0xff]  ;;  %v774_v45 = vld [vmem:[%s10653_s26 + $0xe60] sm:$0xff] }
 0x40d   : > { %v5937_v47 = vadd.f32 %v5936_v30, %v12214_v34  ;;  %6764 = vmatprep.mubr.f32.mxu0 %v1784_v5  ;;  %6894 = vmatprep.mubr.f32.mxu1 %v1786_v43 }
 0x40e   : > { %v5938_v50 = vpop.f32.mrf.mxu0  ;;  %v6068_v53 = vpop.f32.mrf.mxu1 }
 0x40f   : > { %v12309_v60 = vadd.f32 %v6066_v49, %v5937_v47  ;;  %v771_v49 = vld [vmem:[%s10653_s26 + $0xe48] sm:$0xff]  ;;  %v773_v47 = vld [vmem:[%s10653_s26 + $0xe58] sm:$0xff] }
 0x410   : > { %v5941_v54 = vpop.f32.mrf.mxu0  ;;  %6765 = vmatmul.mubr.f32.gmra.mxu0 %v1783_v51  ;;  %v6071_v56 = vpop.f32.mrf.mxu1  ;;  %6895 = vmatmul.mubr.f32.gmra.mxu1 %v1785_v52  ;;  %v899_v50 = vld [vmem:[%s10653_s26 + $0x1248] sm:$0xff]  ;;  %v901_v53 = vld [vmem:[%s10653_s26 + $0x1258] sm:$0xff] }
 0x411   : > { %v5942_v34 = vadd.f32 %v5941_v54, %v12221_v40  ;;  %6769 = vmatprep.mubr.f32.mxu0 %v1911_v19  ;;  %6899 = vmatprep.mubr.f32.mxu1 %v1913_v55 }
 0x412   : > { %v5943_v63 = vpop.f32.mrf.mxu0  ;;  %v6073_v2 = vpop.f32.mrf.mxu1 }
 0x413   : > { %v12316_v1 = vadd.f32 %v6071_v56, %v5942_v34  ;;  %v898_v56 = vld [vmem:[%s10653_s26 + $0x1240] sm:$0xff]  ;;  %v900_v34 = vld [vmem:[%s10653_s26 + $0x1250] sm:$0xff] }
 0x414   : > { %v5946_v31 = vpop.f32.mrf.mxu0  ;;  %6770 = vmatmul.mubr.f32.gmra.mxu0 %v1910_v58  ;;  %v6076_v0 = vpop.f32.mrf.mxu1  ;;  %6900 = vmatmul.mubr.f32.gmra.mxu1 %v1912_v62  ;;  %v1026_v63 = vld [vmem:[%s10653_s26 + $0x1640] sm:$0xff]  ;;  %v1028_v2 = vld [vmem:[%s10653_s26 + $0x1650] sm:$0xff] }
 0x415   : > { %v5947_v40 = vadd.f32 %v5946_v31, %v12228_v16  ;;  %6969 = vmatprep.mubr.f32.mxu0 %v391_v6  ;;  %7099 = vmatprep.mubr.f32.mxu1 %v393_v4 }
 0x416   : > { %v5948_v13 = vpop.f32.mrf.mxu0  ;;  %v6078_v44 = vpop.f32.mrf.mxu1 }
 0x417   : > { %v12323_v15 = vadd.f32 %v6076_v0, %v5947_v40  ;;  %v1025_v0 = vld [vmem:[%s10653_s26 + $0x1638] sm:$0xff]  ;;  %v1027_v40 = vld [vmem:[%s10653_s26 + $0x1648] sm:$0xff] }
 0x418   : > { %v5951_v18 = vpop.f32.mrf.mxu0  ;;  %6970 = vmatmul.mubr.f32.vlgmr.msra.gmra.mxu0 %v390_v11  ;;  %v6081_v16 = vpop.f32.mrf.mxu1  ;;  %7100 = vmatmul.mubr.f32.vlgmr.msra.gmra.mxu1 %v392_v12  ;;  %v1153_v13 = vld [vmem:[%s10653_s26 + $0x1a38] sm:$0xff]  ;;  %v1155_v44 = vld [vmem:[%s10653_s26 + $0x1a48] sm:$0xff] }
 0x419   : > { %v5952_v23 = vadd.f32 %v5951_v18, %v12239_v36  ;;  %7196 = vmatpush1.xpose.msra.mxu0 %v267_v41  ;;  %6974 = vmatprep.mubr.f32.mxu0 %v518_v57  ;;  %v1154_v18 = vld [vmem:[%s10653_s26 + $0x1a40] sm:$0xff] }
 0x41a   : > { %v5953_v26 = vpop.f32.mrf.mxu0  ;;  %v6083_v25 = vpop.f32.mrf.mxu1  ;;  %7326 = vmatpush1.xpose.msra.mxu1 %v269_v10  ;;  %7104 = vmatprep.mubr.f32.mxu1 %v520_v21  ;;  %v1152_v21 = vld [vmem:[%s10653_s26 + $0x1a30] sm:$0xff] }
 0x41b   : > { %v12334_v61 = vadd.f32 %v6081_v16, %v5952_v23  ;;  %7455 = vmatprep.subr.mxu0 %v272_v17  ;;  %7585 = vmatprep.subr.mxu1 %v274_v22  ;;  %v1280_v22 = vld [vmem:[%s10653_s26 + $0x1e30] sm:$0xff]  ;;  %v1282_v23 = vld [vmem:[%s10653_s26 + $0x1e40] sm:$0xff]  ;;  %v1279_v25 = vld [vmem:[%s10653_s26 + $0x1e28] sm:$0xff] }
 0x41c   : > { %v5956_v35 = vpop.f32.mrf.mxu0  ;;  %6975 = vmatmul.mubr.f32.gmra.mxu0 %v517_v39  ;;  %v6086_v36 = vpop.f32.mrf.mxu1  ;;  %7105 = vmatmul.mubr.f32.gmra.mxu1 %v519_v27 }
 0x41d   : > { %v5957_v38 = vadd.f32 %v5956_v35, %v12246_v46  ;;  %6979 = vmatprep.mubr.f32.mxu0 %v645_v20  ;;  %7109 = vmatprep.mubr.f32.mxu1 %v647_v29  ;;  %v1281_v20 = vld [vmem:[%s10653_s26 + $0x1e38] sm:$0xff] }
 0x41e   : > { %v5958_v48 = vpop.f32.mrf.mxu0  ;;  %v6088_v37 = vpop.f32.mrf.mxu1 }
 0x41f   : > { %v12341_v5 = vadd.f32 %v6086_v36, %v5957_v38  ;;  %v1407_v36 = vld [vmem:[%s10653_s26 + $0x2228] sm:$0xff]  ;;  %v1409_v38 = vld [vmem:[%s10653_s26 + $0x2238] sm:$0xff]  ;;  %v1406_v37 = vld [vmem:[%s10653_s26 + $0x2220] sm:$0xff] }
 0x420   : > { %v5961_v43 = vpop.f32.mrf.mxu0  ;;  %6980 = vmatmul.mubr.f32.gmra.mxu0 %v644_v33  ;;  %v6091_v30 = vpop.f32.mrf.mxu1  ;;  %7110 = vmatmul.mubr.f32.gmra.mxu1 %v646_v7 }
 0x421   : > { %v5962_v46 = vadd.f32 %v5961_v43, %v12253_v59  ;;  %6984 = vmatprep.mubr.f32.mxu0 %v772_v42  ;;  %7114 = vmatprep.mubr.f32.mxu1 %v774_v45  ;;  %v1408_v42 = vld [vmem:[%s10653_s26 + $0x2230] sm:$0xff] }
 0x422   : > { %v5963_v51 = vpop.f32.mrf.mxu0  ;;  %v6093_v52 = vpop.f32.mrf.mxu1 }
 0x423   : > { %v12348_v19 = vadd.f32 %v6091_v30, %v5962_v46  ;;  %v1534_v30 = vld [vmem:[%s10653_s26 + $0x2620] sm:$0xff]  ;;  %v1536_v46 = vld [vmem:[%s10653_s26 + $0x2630] sm:$0xff]  ;;  %v1533_v52 = vld [vmem:[%s10653_s26 + $0x2618] sm:$0xff] }
 0x424   : > { %v5966_v55 = vpop.f32.mrf.mxu0  ;;  %6985 = vmatmul.mubr.f32.gmra.mxu0 %v771_v49  ;;  %v6096_v54 = vpop.f32.mrf.mxu1  ;;  %7115 = vmatmul.mubr.f32.gmra.mxu1 %v773_v47 }
 0x425   : > { %v5967_v59 = vadd.f32 %v5966_v55, %v12260_v3  ;;  %6989 = vmatprep.mubr.f32.mxu0 %v899_v50  ;;  %7119 = vmatprep.mubr.f32.mxu1 %v901_v53  ;;  %v1535_v50 = vld [vmem:[%s10653_s26 + $0x2628] sm:$0xff] }
 0x426   : > { %v5968_v58 = vpop.f32.mrf.mxu0  ;;  %v6098_v62 = vpop.f32.mrf.mxu1 }
 0x427   : > { %v12355_v6 = vadd.f32 %v6096_v54, %v5967_v59  ;;  %v1661_v54 = vld [vmem:[%s10653_s26 + $0x2a18] sm:$0xff]  ;;  %v1663_v59 = vld [vmem:[%s10653_s26 + $0x2a28] sm:$0xff]  ;;  %v1660_v62 = vld [vmem:[%s10653_s26 + $0x2a10] sm:$0xff] }
 0x428   : > { %v5971_v4 = vpop.f32.mrf.mxu0  ;;  %6990 = vmatmul.mubr.f32.gmra.mxu0 %v898_v56  ;;  %v6101_v31 = vpop.f32.mrf.mxu1  ;;  %7120 = vmatmul.mubr.f32.gmra.mxu1 %v900_v34 }
 0x429   : > { %v5972_v3 = vadd.f32 %v5971_v4, %v12267_v14  ;;  %6994 = vmatprep.mubr.f32.mxu0 %v1026_v63  ;;  %7124 = vmatprep.mubr.f32.mxu1 %v1028_v2  ;;  %v1662_v63 = vld [vmem:[%s10653_s26 + $0x2a20] sm:$0xff] }
 0x42a   : > { %v5973_v11 = vpop.f32.mrf.mxu0  ;;  %v6103_v12 = vpop.f32.mrf.mxu1 }
 0x42b   : > { %v12362_v41 = vadd.f32 %v6101_v31, %v5972_v3  ;;  %v1788_v31 = vld [vmem:[%s10653_s26 + $0x2e10] sm:$0xff]  ;;  %v1790_v3 = vld [vmem:[%s10653_s26 + $0x2e20] sm:$0xff]  ;;  %v1787_v12 = vld [vmem:[%s10653_s26 + $0x2e08] sm:$0xff] }
 0x42c   : > { %v5976_v57 = vpop.f32.mrf.mxu0  ;;  %6995 = vmatmul.mubr.f32.gmra.mxu0 %v1025_v0  ;;  %v6106_v10 = vpop.f32.mrf.mxu1  ;;  %7125 = vmatmul.mubr.f32.gmra.mxu1 %v1027_v40 }
 0x42d   : > { %v5977_v14 = vadd.f32 %v5976_v57, %v12274_v28  ;;  %6999 = vmatprep.mubr.f32.mxu0 %v1153_v13  ;;  %7129 = vmatprep.mubr.f32.mxu1 %v1155_v44  ;;  %v1789_v13 = vld [vmem:[%s10653_s26 + $0x2e18] sm:$0xff] }
 0x42e   : > { %v5978_v16 = vpop.f32.mrf.mxu0  ;;  %v6108_v17 = vpop.f32.mrf.mxu1 }
 0x42f   : > { %v12369_v39 = vadd.f32 %v6106_v10, %v5977_v14  ;;  %v1915_v10 = vld [vmem:[%s10653_s26 + $0x3208] sm:$0xf]  ;;  %v1917_v14 = vld [vmem:[%s10653_s26 + $0x3218] sm:$0xf]  ;;  %v1914_v17 = vld [vmem:[%s10653_s26 + $0x3200] sm:$0xf] }
 0x430   : > { %v5981_v27 = vpop.f32.mrf.mxu0  ;;  %7000 = vmatmul.mubr.f32.gmra.mxu0 %v1152_v21  ;;  %v6111_v26 = vpop.f32.mrf.mxu1  ;;  %7130 = vmatmul.mubr.f32.gmra.mxu1 %v1154_v18 }
 0x431   : > { %v5982_v28 = vadd.f32 %v5981_v27, %v12281_v9  ;;  %7004 = vmatprep.mubr.f32.mxu0 %v1280_v22  ;;  %7134 = vmatprep.mubr.f32.mxu1 %v1282_v23  ;;  %v1916_v22 = vld [vmem:[%s10653_s26 + $0x3210] sm:$0xf] }
 0x432   : > { %v5983_v29 = vpop.f32.mrf.mxu0  ;;  %v6113_v35 = vpop.f32.mrf.mxu1 }
 0x433   : > { %v12376_v33 = vadd.f32 %v6111_v26, %v5982_v28  ;;  %v395_v26 = vld [vmem:[%s10653_s26 + $0x288] sm:$0xff]  ;;  %v397_v28 = vld [vmem:[%s10653_s26 + $0x298] sm:$0xff]  ;;  %v394_v35 = vld [vmem:[%s10653_s26 + $0x280] sm:$0xff] }
 0x434   : > { %v5986_v7 = vpop.f32.mrf.mxu0  ;;  %7005 = vmatmul.mubr.f32.gmra.mxu0 %v1279_v25  ;;  %v6116_v48 = vpop.f32.mrf.mxu1  ;;  %7135 = vmatmul.mubr.f32.gmra.mxu1 %v1281_v20 }
 0x435   : > { %v5987_v9 = vadd.f32 %v5986_v7, %v12288_v24  ;;  %7009 = vmatprep.mubr.f32.mxu0 %v1407_v36  ;;  %7139 = vmatprep.mubr.f32.mxu1 %v1409_v38  ;;  %v396_v36 = vld [vmem:[%s10653_s26 + $0x290] sm:$0xff] }
 0x436   : > { %v5988_v45 = vpop.f32.mrf.mxu0  ;;  %v6118_v43 = vpop.f32.mrf.mxu1 }
 0x437   : > { %v12383_v49 = vadd.f32 %v6116_v48, %v5987_v9  ;;  %v271_v48 = vld [vmem:[%s10663_s28 + $0x2a0] sm:$0xff]  ;;  %v524_v45 = vld [vmem:[%s10653_s26 + $0x690] sm:$0xff] }
 0x438   : > { %v5991_v47 = vpop.f32.mrf.mxu0  ;;  %7010 = vmatmul.mubr.f32.gmra.mxu0 %v1406_v37  ;;  %v6121_v51 = vpop.f32.mrf.mxu1  ;;  %7140 = vmatmul.mubr.f32.gmra.mxu1 %v1408_v42  ;;  %v522_v9 = vld [vmem:[%s10653_s26 + $0x680] sm:$0xff]  ;;  %v273_v42 = vld [vmem:[%s10663_s28 + $0x2b0] sm:$0xff] }
 0x439   : > { %v5992_v24 = vadd.f32 %v5991_v47, %v12295_v32  ;;  %7014 = vmatprep.mubr.f32.mxu0 %v1534_v30  ;;  %7144 = vmatprep.mubr.f32.mxu1 %v1536_v46  ;;  %v276_v30 = vld [vmem:[%s10663_s28 + $0x2c8] sm:$0xff]  ;;  %v278_v46 = vld [vmem:[%s10663_s28 + $0x2d8] sm:$0xff] }
 0x43a   : > { %v5993_v53 = vpop.f32.mrf.mxu0  ;;  %v6123_v55 = vpop.f32.mrf.mxu1 }
 0x43b   : > { %v12390_v56 = vadd.f32 %v6121_v51, %v5992_v24  ;;  %v521_v51 = vld [vmem:[%s10653_s26 + $0x678] sm:$0xff]  ;;  %v523_v24 = vld [vmem:[%s10653_s26 + $0x688] sm:$0xff] }
 0x43c   : > { %v6191_v34 = vpop.f32.mrf.mxu0  ;;  %7015 = vmatmul.mubr.f32.gmra.mxu0 %v1533_v52  ;;  %v6321_v58 = vpop.f32.mrf.mxu1  ;;  %7145 = vmatmul.mubr.f32.gmra.mxu1 %v1535_v50  ;;  %v649_v53 = vld [vmem:[%s10653_s26 + $0xa78] sm:$0xff]  ;;  %v651_v55 = vld [vmem:[%s10653_s26 + $0xa88] sm:$0xff] }
 0x43d   : > { %v6192_v32 = vadd.f32 %v6191_v34, %v12302_v8  ;;  %7019 = vmatprep.mubr.f32.mxu0 %v1661_v54  ;;  %7149 = vmatprep.mubr.f32.mxu1 %v1663_v59 }
 0x43e   : > { %v6193_v2 = vpop.f32.mrf.mxu0  ;;  %v6323_v4 = vpop.f32.mrf.mxu1 }
 0x43f   : > { %v12397_v0 = vadd.f32 %v6321_v58, %v6192_v32  ;;  %v648_v58 = vld [vmem:[%s10653_s26 + $0xa70] sm:$0xff]  ;;  %v650_v32 = vld [vmem:[%s10653_s26 + $0xa80] sm:$0xff] }
 0x440   : > { %v6196_v40 = vpop.f32.mrf.mxu0  ;;  %7020 = vmatmul.mubr.f32.gmra.mxu0 %v1660_v62  ;;  %v6326_v11 = vpop.f32.mrf.mxu1  ;;  %7150 = vmatmul.mubr.f32.gmra.mxu1 %v1662_v63  ;;  %v776_v2 = vld [vmem:[%s10653_s26 + $0xe70] sm:$0xff]  ;;  %v778_v4 = vld [vmem:[%s10653_s26 + $0xe80] sm:$0xff] }
 0x441   : > { %v6197_v8 = vadd.f32 %v6196_v40, %v12309_v60  ;;  %7024 = vmatprep.mubr.f32.mxu0 %v1788_v31  ;;  %7154 = vmatprep.mubr.f32.mxu1 %v1790_v3 }
 0x442   : > { %v6198_v44 = vpop.f32.mrf.mxu0  ;;  %v6328_v57 = vpop.f32.mrf.mxu1 }
 0x443   : > { %v12404_v21 = vadd.f32 %v6326_v11, %v6197_v8  ;;  %v775_v11 = vld [vmem:[%s10653_s26 + $0xe68] sm:$0xff]  ;;  %v777_v8 = vld [vmem:[%s10653_s26 + $0xe78] sm:$0xff] }
 0x444   : > { %v6201_v18 = vpop.f32.mrf.mxu0  ;;  %7025 = vmatmul.mubr.f32.gmra.mxu0 %v1787_v12  ;;  %v6331_v16 = vpop.f32.mrf.mxu1  ;;  %7155 = vmatmul.mubr.f32.gmra.mxu1 %v1789_v13  ;;  %v903_v44 = vld [vmem:[%s10653_s26 + $0x1268] sm:$0xff]  ;;  %v905_v57 = vld [vmem:[%s10653_s26 + $0x1278] sm:$0xff] }
 0x445   : > { %v6202_v60 = vadd.f32 %v6201_v18, %v12316_v1  ;;  %7029 = vmatprep.mubr.f32.mxu0 %v1915_v10  ;;  %7159 = vmatprep.mubr.f32.mxu1 %v1917_v14 }
 0x446   : > { %v6203_v23 = vpop.f32.mrf.mxu0  ;;  %v6333_v27 = vpop.f32.mrf.mxu1 }
 0x447   : > { %v12411_v25 = vadd.f32 %v6331_v16, %v6202_v60  ;;  %v902_v16 = vld [vmem:[%s10653_s26 + $0x1260] sm:$0xff]  ;;  %v904_v60 = vld [vmem:[%s10653_s26 + $0x1270] sm:$0xff] }
 0x448   : > { %v6206_v20 = vpop.f32.mrf.mxu0  ;;  %7030 = vmatmul.mubr.f32.gmra.mxu0 %v1914_v17  ;;  %v6336_v29 = vpop.f32.mrf.mxu1  ;;  %7160 = vmatmul.mubr.f32.gmra.mxu1 %v1916_v22  ;;  %v1030_v23 = vld [vmem:[%s10653_s26 + $0x1660] sm:$0xff]  ;;  %v1032_v27 = vld [vmem:[%s10653_s26 + $0x1670] sm:$0xff] }
 0x449   : > { %v6207_v1 = vadd.f32 %v6206_v20, %v12323_v15  ;;  %7229 = vmatprep.mubr.f32.mxu0 %v395_v26  ;;  %7359 = vmatprep.mubr.f32.mxu1 %v397_v28 }
 0x44a   : > { %v6208_v38 = vpop.f32.mrf.mxu0  ;;  %v6338_v7 = vpop.f32.mrf.mxu1 }
 0x44b   : > { %v12418_v37 = vadd.f32 %v6336_v29, %v6207_v1  ;;  %v1029_v29 = vld [vmem:[%s10653_s26 + $0x1658] sm:$0xff]  ;;  %v1031_v1 = vld [vmem:[%s10653_s26 + $0x1668] sm:$0xff] }
 0x44c   : > { %v6211_v43 = vpop.f32.mrf.mxu0  ;;  %7230 = vmatmul.mubr.f32.vlgmr.msra.gmra.mxu0 %v394_v35  ;;  %v6341_v15 = vpop.f32.mrf.mxu1  ;;  %7360 = vmatmul.mubr.f32.vlgmr.msra.gmra.mxu1 %v396_v36  ;;  %v1157_v38 = vld [vmem:[%s10653_s26 + $0x1a58] sm:$0xff]  ;;  %v1159_v7 = vld [vmem:[%s10653_s26 + $0x1a68] sm:$0xff] }
 0x44d   : > { %v6212_v47 = vadd.f32 %v6211_v43, %v12334_v61  ;;  %7456 = vmatpush1.xpose.msra.mxu0 %v271_v48  ;;  %7234 = vmatprep.mubr.f32.mxu0 %v522_v9  ;;  %v1158_v43 = vld [vmem:[%s10653_s26 + $0x1a60] sm:$0xff] }
 0x44e   : > { %v6213_v52 = vpop.f32.mrf.mxu0  ;;  %v6343_v50 = vpop.f32.mrf.mxu1  ;;  %7586 = vmatpush1.xpose.msra.mxu1 %v273_v42  ;;  %7364 = vmatprep.mubr.f32.mxu1 %v524_v45  ;;  %v1156_v45 = vld [vmem:[%s10653_s26 + $0x1a50] sm:$0xff] }
 0x44f   : > { %v12429_v54 = vadd.f32 %v6341_v15, %v6212_v47  ;;  %7715 = vmatprep.subr.mxu0 %v276_v30  ;;  %7845 = vmatprep.subr.mxu1 %v278_v46  ;;  %v1284_v46 = vld [vmem:[%s10653_s26 + $0x1e50] sm:$0xff]  ;;  %v1286_v47 = vld [vmem:[%s10653_s26 + $0x1e60] sm:$0xff]  ;;  %v1283_v50 = vld [vmem:[%s10653_s26 + $0x1e48] sm:$0xff] }
 0x450   : > { %v6216_v59 = vpop.f32.mrf.mxu0  ;;  %7235 = vmatmul.mubr.f32.gmra.mxu0 %v521_v51  ;;  %v6346_v61 = vpop.f32.mrf.mxu1  ;;  %7365 = vmatmul.mubr.f32.gmra.mxu1 %v523_v24 }
 0x451   : > { %v6217_v34 = vadd.f32 %v6216_v59, %v12341_v5  ;;  %7239 = vmatprep.mubr.f32.mxu0 %v649_v53  ;;  %7369 = vmatprep.mubr.f32.mxu1 %v651_v55  ;;  %v1285_v53 = vld [vmem:[%s10653_s26 + $0x1e58] sm:$0xff] }
 0x452   : > { %v6218_v62 = vpop.f32.mrf.mxu0  ;;  %v6348_v63 = vpop.f32.mrf.mxu1 }
 0x453   : > { %v12436_v31 = vadd.f32 %v6346_v61, %v6217_v34  ;;  %v1411_v61 = vld [vmem:[%s10653_s26 + $0x2248] sm:$0xff]  ;;  %v1413_v34 = vld [vmem:[%s10653_s26 + $0x2258] sm:$0xff]  ;;  %v1410_v63 = vld [vmem:[%s10653_s26 + $0x2240] sm:$0xff] }
 0x454   : > { %v6221_v3 = vpop.f32.mrf.mxu0  ;;  %7240 = vmatmul.mubr.f32.gmra.mxu0 %v648_v58  ;;  %v6351_v40 = vpop.f32.mrf.mxu1  ;;  %7370 = vmatmul.mubr.f32.gmra.mxu1 %v650_v32 }
 0x455   : > { %v6222_v5 = vadd.f32 %v6221_v3, %v12348_v19  ;;  %7244 = vmatprep.mubr.f32.mxu0 %v776_v2  ;;  %7374 = vmatprep.mubr.f32.mxu1 %v778_v4  ;;  %v1412_v2 = vld [vmem:[%s10653_s26 + $0x2250] sm:$0xff] }
 0x456   : > { %v6223_v12 = vpop.f32.mrf.mxu0  ;;  %v6353_v13 = vpop.f32.mrf.mxu1 }
 0x457   : > { %v12443_v10 = vadd.f32 %v6351_v40, %v6222_v5  ;;  %v1538_v40 = vld [vmem:[%s10653_s26 + $0x2640] sm:$0xff]  ;;  %v1540_v5 = vld [vmem:[%s10653_s26 + $0x2650] sm:$0xff]  ;;  %v1537_v13 = vld [vmem:[%s10653_s26 + $0x2638] sm:$0xff] }
 0x458   : > { %v6226_v14 = vpop.f32.mrf.mxu0  ;;  %7245 = vmatmul.mubr.f32.gmra.mxu0 %v775_v11  ;;  %v6356_v18 = vpop.f32.mrf.mxu1  ;;  %7375 = vmatmul.mubr.f32.gmra.mxu1 %v777_v8 }
 0x459   : > { %v6227_v19 = vadd.f32 %v6226_v14, %v12355_v6  ;;  %7249 = vmatprep.mubr.f32.mxu0 %v903_v44  ;;  %7379 = vmatprep.mubr.f32.mxu1 %v905_v57  ;;  %v1539_v44 = vld [vmem:[%s10653_s26 + $0x2648] sm:$0xff] }
 0x45a   : > { %v6228_v17 = vpop.f32.mrf.mxu0  ;;  %v6358_v22 = vpop.f32.mrf.mxu1 }
 0x45b   : > { %v12450_v26 = vadd.f32 %v6356_v18, %v6227_v19  ;;  %v1665_v18 = vld [vmem:[%s10653_s26 + $0x2a38] sm:$0xff]  ;;  %v1667_v19 = vld [vmem:[%s10653_s26 + $0x2a48] sm:$0xff]  ;;  %v1664_v22 = vld [vmem:[%s10653_s26 + $0x2a30] sm:$0xff] }
 0x45c   : > { %v6231_v28 = vpop.f32.mrf.mxu0  ;;  %7250 = vmatmul.mubr.f32.gmra.mxu0 %v902_v16  ;;  %v6361_v20 = vpop.f32.mrf.mxu1  ;;  %7380 = vmatmul.mubr.f32.gmra.mxu1 %v904_v60 }
 0x45d   : > { %v6232_v6 = vadd.f32 %v6231_v28, %v12362_v41  ;;  %7254 = vmatprep.mubr.f32.mxu0 %v1030_v23  ;;  %7384 = vmatprep.mubr.f32.mxu1 %v1032_v27  ;;  %v1666_v23 = vld [vmem:[%s10653_s26 + $0x2a40] sm:$0xff] }
 0x45e   : > { %v6233_v35 = vpop.f32.mrf.mxu0  ;;  %v6363_v36 = vpop.f32.mrf.mxu1 }
 0x45f   : > { %v12457_v48 = vadd.f32 %v6361_v20, %v6232_v6  ;;  %v1792_v20 = vld [vmem:[%s10653_s26 + $0x2e30] sm:$0xff]  ;;  %v1794_v6 = vld [vmem:[%s10653_s26 + $0x2e40] sm:$0xff]  ;;  %v1791_v36 = vld [vmem:[%s10653_s26 + $0x2e28] sm:$0xff] }
 0x460   : > { %v6236_v9 = vpop.f32.mrf.mxu0  ;;  %7255 = vmatmul.mubr.f32.gmra.mxu0 %v1029_v29  ;;  %v6366_v42 = vpop.f32.mrf.mxu1  ;;  %7385 = vmatmul.mubr.f32.gmra.mxu1 %v1031_v1 }
 0x461   : > { %v6237_v41 = vadd.f32 %v6236_v9, %v12369_v39  ;;  %7259 = vmatprep.mubr.f32.mxu0 %v1157_v38  ;;  %7389 = vmatprep.mubr.f32.mxu1 %v1159_v7  ;;  %v1793_v38 = vld [vmem:[%s10653_s26 + $0x2e38] sm:$0xff] }
 0x462   : > { %v6238_v15 = vpop.f32.mrf.mxu0  ;;  %v6368_v30 = vpop.f32.mrf.mxu1 }
 0x463   : > { %v12464_v51 = vadd.f32 %v6366_v42, %v6237_v41  ;;  %v1919_v42 = vld [vmem:[%s10653_s26 + $0x3228] sm:$0xf]  ;;  %v1921_v41 = vld [vmem:[%s10653_s26 + $0x3238] sm:$0xf]  ;;  %v1918_v30 = vld [vmem:[%s10653_s26 + $0x3220] sm:$0xf] }
 0x464   : > { %v6241_v24 = vpop.f32.mrf.mxu0  ;;  %7260 = vmatmul.mubr.f32.gmra.mxu0 %v1156_v45  ;;  %v6371_v52 = vpop.f32.mrf.mxu1  ;;  %7390 = vmatmul.mubr.f32.gmra.mxu1 %v1158_v43 }
 0x465   : > { %v6242_v39 = vadd.f32 %v6241_v24, %v12376_v33  ;;  %7264 = vmatprep.mubr.f32.mxu0 %v1284_v46  ;;  %7394 = vmatprep.mubr.f32.mxu1 %v1286_v47  ;;  %v1920_v46 = vld [vmem:[%s10653_s26 + $0x3230] sm:$0xf] }
 0x466   : > { %v6243_v55 = vpop.f32.mrf.mxu0  ;;  %v6373_v59 = vpop.f32.mrf.mxu1 }
 0x467   : > { %v12471_v58 = vadd.f32 %v6371_v52, %v6242_v39  ;;  %v399_v52 = vld [vmem:[%s10653_s26 + $0x2a8] sm:$0xff]  ;;  %v401_v39 = vld [vmem:[%s10653_s26 + $0x2b8] sm:$0xff]  ;;  %v398_v59 = vld [vmem:[%s10653_s26 + $0x2a0] sm:$0xff] }
 0x468   : > { %v6246_v32 = vpop.f32.mrf.mxu0  ;;  %7265 = vmatmul.mubr.f32.gmra.mxu0 %v1283_v50  ;;  %v6376_v62 = vpop.f32.mrf.mxu1  ;;  %7395 = vmatmul.mubr.f32.gmra.mxu1 %v1285_v53 }
 0x469   : > { %v6247_v33 = vadd.f32 %v6246_v32, %v12383_v49  ;;  %7269 = vmatprep.mubr.f32.mxu0 %v1411_v61  ;;  %7399 = vmatprep.mubr.f32.mxu1 %v1413_v34  ;;  %v400_v61 = vld [vmem:[%s10653_s26 + $0x2b0] sm:$0xff] }
 0x46a   : > { %v6248_v4 = vpop.f32.mrf.mxu0  ;;  %v6378_v3 = vpop.f32.mrf.mxu1 }
 0x46b   : > { %v12478_v11 = vadd.f32 %v6376_v62, %v6247_v33  ;;  %v275_v62 = vld [vmem:[%s10663_s28 + $0x2c0] sm:$0xff]  ;;  %v528_v4 = vld [vmem:[%s10653_s26 + $0x6b0] sm:$0xff] }
 0x46c   : > { %v6251_v8 = vpop.f32.mrf.mxu0  ;;  %7270 = vmatmul.mubr.f32.gmra.mxu0 %v1410_v63  ;;  %v6381_v12 = vpop.f32.mrf.mxu1  ;;  %7400 = vmatmul.mubr.f32.gmra.mxu1 %v1412_v2  ;;  %v526_v33 = vld [vmem:[%s10653_s26 + $0x6a0] sm:$0xff]  ;;  %v277_v2 = vld [vmem:[%s10663_s28 + $0x2d0] sm:$0xff] }
 0x46d   : > { %v6252_v49 = vadd.f32 %v6251_v8, %v12390_v56  ;;  %7274 = vmatprep.mubr.f32.mxu0 %v1538_v40  ;;  %7404 = vmatprep.mubr.f32.mxu1 %v1540_v5  ;;  %v280_v40 = vld [vmem:[%s10663_s28 + $0x2e8] sm:$0xff]  ;;  %v282_v5 = vld [vmem:[%s10663_s28 + $0x2f8] sm:$0xff] }
 0x46e   : > { %v6253_v57 = vpop.f32.mrf.mxu0  ;;  %v6383_v14 = vpop.f32.mrf.mxu1 }
 0x46f   : > { %v12485_v16 = vadd.f32 %v6381_v12, %v6252_v49  ;;  %v525_v12 = vld [vmem:[%s10653_s26 + $0x698] sm:$0xff]  ;;  %v527_v49 = vld [vmem:[%s10653_s26 + $0x6a8] sm:$0xff] }
 0x470   : > { %v6451_v60 = vpop.f32.mrf.mxu0  ;;  %7275 = vmatmul.mubr.f32.gmra.mxu0 %v1537_v13  ;;  %v6581_v17 = vpop.f32.mrf.mxu1  ;;  %7405 = vmatmul.mubr.f32.gmra.mxu1 %v1539_v44  ;;  %v653_v57 = vld [vmem:[%s10653_s26 + $0xa98] sm:$0xff]  ;;  %v655_v14 = vld [vmem:[%s10653_s26 + $0xaa8] sm:$0xff] }
 0x471   : > { %v6452_v56 = vadd.f32 %v6451_v60, %v12397_v0  ;;  %7279 = vmatprep.mubr.f32.mxu0 %v1665_v18  ;;  %7409 = vmatprep.mubr.f32.mxu1 %v1667_v19 }
 0x472   : > { %v6453_v27 = vpop.f32.mrf.mxu0  ;;  %v6583_v28 = vpop.f32.mrf.mxu1 }
 0x473   : > { %v12492_v29 = vadd.f32 %v6581_v17, %v6452_v56  ;;  %v652_v17 = vld [vmem:[%s10653_s26 + $0xa90] sm:$0xff]  ;;  %v654_v56 = vld [vmem:[%s10653_s26 + $0xaa0] sm:$0xff] }
 0x474   : > { %v6456_v1 = vpop.f32.mrf.mxu0  ;;  %7280 = vmatmul.mubr.f32.gmra.mxu0 %v1664_v22  ;;  %v6586_v35 = vpop.f32.mrf.mxu1  ;;  %7410 = vmatmul.mubr.f32.gmra.mxu1 %v1666_v23  ;;  %v780_v27 = vld [vmem:[%s10653_s26 + $0xe90] sm:$0xff]  ;;  %v782_v28 = vld [vmem:[%s10653_s26 + $0xea0] sm:$0xff] }
 0x475   : > { %v6457_v0 = vadd.f32 %v6456_v1, %v12404_v21  ;;  %7284 = vmatprep.mubr.f32.mxu0 %v1792_v20  ;;  %7414 = vmatprep.mubr.f32.mxu1 %v1794_v6 }
 0x476   : > { %v6458_v7 = vpop.f32.mrf.mxu0  ;;  %v6588_v9 = vpop.f32.mrf.mxu1 }
 0x477   : > { %v12499_v45 = vadd.f32 %v6586_v35, %v6457_v0  ;;  %v779_v35 = vld [vmem:[%s10653_s26 + $0xe88] sm:$0xff]  ;;  %v781_v0 = vld [vmem:[%s10653_s26 + $0xe98] sm:$0xff] }
 0x478   : > { %v6461_v43 = vpop.f32.mrf.mxu0  ;;  %7285 = vmatmul.mubr.f32.gmra.mxu0 %v1791_v36  ;;  %v6591_v15 = vpop.f32.mrf.mxu1  ;;  %7415 = vmatmul.mubr.f32.gmra.mxu1 %v1793_v38  ;;  %v907_v7 = vld [vmem:[%s10653_s26 + $0x1288] sm:$0xff]  ;;  %v909_v9 = vld [vmem:[%s10653_s26 + $0x1298] sm:$0xff] }
 0x479   : > { %v6462_v21 = vadd.f32 %v6461_v43, %v12411_v25  ;;  %7289 = vmatprep.mubr.f32.mxu0 %v1919_v42  ;;  %7419 = vmatprep.mubr.f32.mxu1 %v1921_v41 }
 0x47a   : > { %v6463_v47 = vpop.f32.mrf.mxu0  ;;  %v6593_v24 = vpop.f32.mrf.mxu1 }
 0x47b   : > { %v12506_v50 = vadd.f32 %v6591_v15, %v6462_v21  ;;  %v906_v15 = vld [vmem:[%s10653_s26 + $0x1280] sm:$0xff]  ;;  %v908_v21 = vld [vmem:[%s10653_s26 + $0x1290] sm:$0xff] }
 0x47c   : > { %v6466_v53 = vpop.f32.mrf.mxu0  ;;  %7290 = vmatmul.mubr.f32.gmra.mxu0 %v1918_v30  ;;  %v6596_v55 = vpop.f32.mrf.mxu1  ;;  %7420 = vmatmul.mubr.f32.gmra.mxu1 %v1920_v46  ;;  %v1034_v47 = vld [vmem:[%s10653_s26 + $0x1680] sm:$0xff]  ;;  %v1036_v24 = vld [vmem:[%s10653_s26 + $0x1690] sm:$0xff] }
 0x47d   : > { %v6467_v25 = vadd.f32 %v6466_v53, %v12418_v37  ;;  %7489 = vmatprep.mubr.f32.mxu0 %v399_v52  ;;  %7619 = vmatprep.mubr.f32.mxu1 %v401_v39 }
 0x47e   : > { %v6468_v34 = vpop.f32.mrf.mxu0  ;;  %v6598_v32 = vpop.f32.mrf.mxu1 }
 0x47f   : > { %v12513_v63 = vadd.f32 %v6596_v55, %v6467_v25  ;;  %v1033_v55 = vld [vmem:[%s10653_s26 + $0x1678] sm:$0xff]  ;;  %v1035_v25 = vld [vmem:[%s10653_s26 + $0x1688] sm:$0xff] }
 0x480   : > { %v6471_v3 = vpop.f32.mrf.mxu0  ;;  %7490 = vmatmul.mubr.f32.vlgmr.msra.gmra.mxu0 %v398_v59  ;;  %v6601_v37 = vpop.f32.mrf.mxu1  ;;  %7620 = vmatmul.mubr.f32.vlgmr.msra.gmra.mxu1 %v400_v61  ;;  %v1161_v34 = vld [vmem:[%s10653_s26 + $0x1a78] sm:$0xff]  ;;  %v1163_v32 = vld [vmem:[%s10653_s26 + $0x1a88] sm:$0xff] }
 0x481   : > { %v6472_v8 = vadd.f32 %v6471_v3, %v12429_v54  ;;  %7716 = vmatpush1.xpose.msra.mxu0 %v275_v62  ;;  %7494 = vmatprep.mubr.f32.mxu0 %v526_v33  ;;  %v1162_v3 = vld [vmem:[%s10653_s26 + $0x1a80] sm:$0xff] }
 0x482   : > { %v6473_v13 = vpop.f32.mrf.mxu0  ;;  %v6603_v44 = vpop.f32.mrf.mxu1  ;;  %7846 = vmatpush1.xpose.msra.mxu1 %v277_v2  ;;  %7624 = vmatprep.mubr.f32.mxu1 %v528_v4  ;;  %v1160_v4 = vld [vmem:[%s10653_s26 + $0x1a70] sm:$0xff] }
 0x483   : > { %v12524_v18 = vadd.f32 %v6601_v37, %v6472_v8  ;;  %7975 = vmatprep.subr.mxu0 %v280_v40  ;;  %8105 = vmatprep.subr.mxu1 %v282_v5  ;;  %v1288_v5 = vld [vmem:[%s10653_s26 + $0x1e70] sm:$0xff]  ;;  %v1290_v8 = vld [vmem:[%s10653_s26 + $0x1e80] sm:$0xff]  ;;  %v1287_v44 = vld [vmem:[%s10653_s26 + $0x1e68] sm:$0xff] }
 0x484   : > { %v6476_v19 = vpop.f32.mrf.mxu0  ;;  %7495 = vmatmul.mubr.f32.gmra.mxu0 %v525_v12  ;;  %v6606_v54 = vpop.f32.mrf.mxu1  ;;  %7625 = vmatmul.mubr.f32.gmra.mxu1 %v527_v49 }
 0x485   : > { %v6477_v60 = vadd.f32 %v6476_v19, %v12436_v31  ;;  %7499 = vmatprep.mubr.f32.mxu0 %v653_v57  ;;  %7629 = vmatprep.mubr.f32.mxu1 %v655_v14  ;;  %v1289_v57 = vld [vmem:[%s10653_s26 + $0x1e78] sm:$0xff] }
 0x486   : > { %v6478_v22 = vpop.f32.mrf.mxu0  ;;  %v6608_v23 = vpop.f32.mrf.mxu1 }
 0x487   : > { %v12531_v20 = vadd.f32 %v6606_v54, %v6477_v60  ;;  %v1415_v54 = vld [vmem:[%s10653_s26 + $0x2268] sm:$0xff]  ;;  %v1417_v60 = vld [vmem:[%s10653_s26 + $0x2278] sm:$0xff]  ;;  %v1414_v23 = vld [vmem:[%s10653_s26 + $0x2260] sm:$0xff] }
 0x488   : > { %v6481_v6 = vpop.f32.mrf.mxu0  ;;  %7500 = vmatmul.mubr.f32.gmra.mxu0 %v652_v17  ;;  %v6611_v1 = vpop.f32.mrf.mxu1  ;;  %7630 = vmatmul.mubr.f32.gmra.mxu1 %v654_v56 }
 0x489   : > { %v6482_v31 = vadd.f32 %v6481_v6, %v12443_v10  ;;  %7504 = vmatprep.mubr.f32.mxu0 %v780_v27  ;;  %7634 = vmatprep.mubr.f32.mxu1 %v782_v28  ;;  %v1416_v27 = vld [vmem:[%s10653_s26 + $0x2270] sm:$0xff] }
 0x48a   : > { %v6483_v36 = vpop.f32.mrf.mxu0  ;;  %v6613_v38 = vpop.f32.mrf.mxu1 }
 0x48b   : > { %v12538_v42 = vadd.f32 %v6611_v1, %v6482_v31  ;;  %v1542_v1 = vld [vmem:[%s10653_s26 + $0x2660] sm:$0xff]  ;;  %v1544_v31 = vld [vmem:[%s10653_s26 + $0x2670] sm:$0xff]  ;;  %v1541_v38 = vld [vmem:[%s10653_s26 + $0x2658] sm:$0xff] }
 0x48c   : > { %v6486_v41 = vpop.f32.mrf.mxu0  ;;  %7505 = vmatmul.mubr.f32.gmra.mxu0 %v779_v35  ;;  %v6616_v43 = vpop.f32.mrf.mxu1  ;;  %7635 = vmatmul.mubr.f32.gmra.mxu1 %v781_v0 }
 0x48d   : > { %v6487_v10 = vadd.f32 %v6486_v41, %v12450_v26  ;;  %7509 = vmatprep.mubr.f32.mxu0 %v907_v7  ;;  %7639 = vmatprep.mubr.f32.mxu1 %v909_v9  ;;  %v1543_v7 = vld [vmem:[%s10653_s26 + $0x2668] sm:$0xff] }
 0x48e   : > { %v6488_v30 = vpop.f32.mrf.mxu0  ;;  %v6618_v46 = vpop.f32.mrf.mxu1 }
 0x48f   : > { %v12545_v52 = vadd.f32 %v6616_v43, %v6487_v10  ;;  %v1669_v43 = vld [vmem:[%s10653_s26 + $0x2a58] sm:$0xff]  ;;  %v1671_v10 = vld [vmem:[%s10653_s26 + $0x2a68] sm:$0xff]  ;;  %v1668_v46 = vld [vmem:[%s10653_s26 + $0x2a50] sm:$0xff] }
 0x490   : > { %v6491_v39 = vpop.f32.mrf.mxu0  ;;  %7510 = vmatmul.mubr.f32.gmra.mxu0 %v906_v15  ;;  %v6621_v53 = vpop.f32.mrf.mxu1  ;;  %7640 = vmatmul.mubr.f32.gmra.mxu1 %v908_v21 }
 0x491   : > { %v6492_v26 = vadd.f32 %v6491_v39, %v12457_v48  ;;  %7514 = vmatprep.mubr.f32.mxu0 %v1034_v47  ;;  %7644 = vmatprep.mubr.f32.mxu1 %v1036_v24  ;;  %v1670_v47 = vld [vmem:[%s10653_s26 + $0x2a60] sm:$0xff] }
 0x492   : > { %v6493_v59 = vpop.f32.mrf.mxu0  ;;  %v6623_v61 = vpop.f32.mrf.mxu1 }
 0x493   : > { %v12552_v62 = vadd.f32 %v6621_v53, %v6492_v26  ;;  %v1796_v53 = vld [vmem:[%s10653_s26 + $0x2e50] sm:$0xff]  ;;  %v1798_v26 = vld [vmem:[%s10653_s26 + $0x2e60] sm:$0xff]  ;;  %v1795_v61 = vld [vmem:[%s10653_s26 + $0x2e48] sm:$0xff] }
 0x494   : > { %v6496_v33 = vpop.f32.mrf.mxu0  ;;  %7515 = vmatmul.mubr.f32.gmra.mxu0 %v1033_v55  ;;  %v6626_v2 = vpop.f32.mrf.mxu1  ;;  %7645 = vmatmul.mubr.f32.gmra.mxu1 %v1035_v25 }
 0x495   : > { %v6497_v48 = vadd.f32 %v6496_v33, %v12464_v51  ;;  %7519 = vmatprep.mubr.f32.mxu0 %v1161_v34  ;;  %7649 = vmatprep.mubr.f32.mxu1 %v1163_v32  ;;  %v1797_v34 = vld [vmem:[%s10653_s26 + $0x2e58] sm:$0xff] }
 0x496   : > { %v6498_v37 = vpop.f32.mrf.mxu0  ;;  %v6628_v40 = vpop.f32.mrf.mxu1 }
 0x497   : > { %v12559_v12 = vadd.f32 %v6626_v2, %v6497_v48  ;;  %v1923_v2 = vld [vmem:[%s10653_s26 + $0x3248] sm:$0xf]  ;;  %v1925_v48 = vld [vmem:[%s10653_s26 + $0x3258] sm:$0xf]  ;;  %v1922_v40 = vld [vmem:[%s10653_s26 + $0x3240] sm:$0xf] }
 0x498   : > { %v6501_v49 = vpop.f32.mrf.mxu0  ;;  %7520 = vmatmul.mubr.f32.gmra.mxu0 %v1160_v4  ;;  %v6631_v13 = vpop.f32.mrf.mxu1  ;;  %7650 = vmatmul.mubr.f32.gmra.mxu1 %v1162_v3 }
 0x499   : > { %v6502_v51 = vadd.f32 %v6501_v49, %v12471_v58  ;;  %7524 = vmatprep.mubr.f32.mxu0 %v1288_v5  ;;  %7654 = vmatprep.mubr.f32.mxu1 %v1290_v8  ;;  %v1924_v5 = vld [vmem:[%s10653_s26 + $0x3250] sm:$0xf] }
 0x49a   : > { %v6503_v14 = vpop.f32.mrf.mxu0  ;;  %v6633_v19 = vpop.f32.mrf.mxu1 }
 0x49b   : > { %v12566_v17 = vadd.f32 %v6631_v13, %v6502_v51  ;;  %v403_v13 = vld [vmem:[%s10653_s26 + $0x2c8] sm:$0xff]  ;;  %v405_v51 = vld [vmem:[%s10653_s26 + $0x2d8] sm:$0xff]  ;;  %v402_v19 = vld [vmem:[%s10653_s26 + $0x2c0] sm:$0xff] }
 0x49c   : > { %v6506_v56 = vpop.f32.mrf.mxu0  ;;  %7525 = vmatmul.mubr.f32.gmra.mxu0 %v1287_v44  ;;  %v6636_v22 = vpop.f32.mrf.mxu1  ;;  %7655 = vmatmul.mubr.f32.gmra.mxu1 %v1289_v57 }
 0x49d   : > { %v6507_v58 = vadd.f32 %v6506_v56, %v12478_v11  ;;  %7529 = vmatprep.mubr.f32.mxu0 %v1415_v54  ;;  %7659 = vmatprep.mubr.f32.mxu1 %v1417_v60  ;;  %v404_v54 = vld [vmem:[%s10653_s26 + $0x2d0] sm:$0xff] }
 0x49e   : > { %v6508_v28 = vpop.f32.mrf.mxu0  ;;  %v6638_v6 = vpop.f32.mrf.mxu1 }
 0x49f   : > { %v12573_v35 = vadd.f32 %v6636_v22, %v6507_v58  ;;  %v279_v22 = vld [vmem:[%s10663_s28 + $0x2e0] sm:$0xff]  ;;  %v532_v28 = vld [vmem:[%s10653_s26 + $0x6d0] sm:$0xff] }
 0x4a0   : > { %v6511_v0 = vpop.f32.mrf.mxu0  ;;  %7530 = vmatmul.mubr.f32.gmra.mxu0 %v1414_v23  ;;  %v6641_v36 = vpop.f32.mrf.mxu1  ;;  %7660 = vmatmul.mubr.f32.gmra.mxu1 %v1416_v27  ;;  %v530_v58 = vld [vmem:[%s10653_s26 + $0x6c0] sm:$0xff]  ;;  %v281_v27 = vld [vmem:[%s10663_s28 + $0x2f0] sm:$0xff] }
 0x4a1   : > { %v6512_v11 = vadd.f32 %v6511_v0, %v12485_v16  ;;  %7534 = vmatprep.mubr.f32.mxu0 %v1542_v1  ;;  %7664 = vmatprep.mubr.f32.mxu1 %v1544_v31  ;;  %v284_v1 = vld [vmem:[%s10663_s28 + $0x308] sm:$0xff]  ;;  %v286_v31 = vld [vmem:[%s10663_s28 + $0x318] sm:$0xff] }
 0x4a2   : > { %v6513_v9 = vpop.f32.mrf.mxu0  ;;  %v6643_v41 = vpop.f32.mrf.mxu1 }
 0x4a3   : > { %v12580_v15 = vadd.f32 %v6641_v36, %v6512_v11  ;;  %v529_v36 = vld [vmem:[%s10653_s26 + $0x6b8] sm:$0xff]  ;;  %v531_v11 = vld [vmem:[%s10653_s26 + $0x6c8] sm:$0xff] }
 0x4a4   : > { %v6711_v21 = vpop.f32.mrf.mxu0  ;;  %7535 = vmatmul.mubr.f32.gmra.mxu0 %v1541_v38  ;;  %v6841_v30 = vpop.f32.mrf.mxu1  ;;  %7665 = vmatmul.mubr.f32.gmra.mxu1 %v1543_v7  ;;  %v657_v9 = vld [vmem:[%s10653_s26 + $0xab8] sm:$0xff]  ;;  %v659_v41 = vld [vmem:[%s10653_s26 + $0xac8] sm:$0xff] }
 0x4a5   : > { %v6712_v16 = vadd.f32 %v6711_v21, %v12492_v29  ;;  %7539 = vmatprep.mubr.f32.mxu0 %v1669_v43  ;;  %7669 = vmatprep.mubr.f32.mxu1 %v1671_v10 }
 0x4a6   : > { %v6713_v24 = vpop.f32.mrf.mxu0  ;;  %v6843_v39 = vpop.f32.mrf.mxu1 }
 0x4a7   : > { %v12587_v55 = vadd.f32 %v6841_v30, %v6712_v16  ;;  %v656_v30 = vld [vmem:[%s10653_s26 + $0xab0] sm:$0xff]  ;;  %v658_v16 = vld [vmem:[%s10653_s26 + $0xac0] sm:$0xff] }
 0x4a8   : > { %v6716_v25 = vpop.f32.mrf.mxu0  ;;  %7540 = vmatmul.mubr.f32.gmra.mxu0 %v1668_v46  ;;  %v6846_v59 = vpop.f32.mrf.mxu1  ;;  %7670 = vmatmul.mubr.f32.gmra.mxu1 %v1670_v47  ;;  %v784_v24 = vld [vmem:[%s10653_s26 + $0xeb0] sm:$0xff]  ;;  %v786_v39 = vld [vmem:[%s10653_s26 + $0xec0] sm:$0xff] }
 0x4a9   : > { %v6717_v29 = vadd.f32 %v6716_v25, %v12499_v45  ;;  %7544 = vmatprep.mubr.f32.mxu0 %v1796_v53  ;;  %7674 = vmatprep.mubr.f32.mxu1 %v1798_v26 }
 0x4aa   : > { %v6718_v32 = vpop.f32.mrf.mxu0  ;;  %v6848_v33 = vpop.f32.mrf.mxu1 }
 0x4ab   : > { %v12594_v4 = vadd.f32 %v6846_v59, %v6717_v29  ;;  %v783_v59 = vld [vmem:[%s10653_s26 + $0xea8] sm:$0xff]  ;;  %v785_v29 = vld [vmem:[%s10653_s26 + $0xeb8] sm:$0xff] }
 0x4ac   : > { %v6721_v3 = vpop.f32.mrf.mxu0  ;;  %7545 = vmatmul.mubr.f32.gmra.mxu0 %v1795_v61  ;;  %v6851_v37 = vpop.f32.mrf.mxu1  ;;  %7675 = vmatmul.mubr.f32.gmra.mxu1 %v1797_v34  ;;  %v911_v32 = vld [vmem:[%s10653_s26 + $0x12a8] sm:$0xff]  ;;  %v913_v33 = vld [vmem:[%s10653_s26 + $0x12b8] sm:$0xff] }
 0x4ad   : > { %v6722_v45 = vadd.f32 %v6721_v3, %v12506_v50  ;;  %7549 = vmatprep.mubr.f32.mxu0 %v1923_v2  ;;  %7679 = vmatprep.mubr.f32.mxu1 %v1925_v48 }
 0x4ae   : > { %v6723_v8 = vpop.f32.mrf.mxu0  ;;  %v6853_v49 = vpop.f32.mrf.mxu1 }
 0x4af   : > { %v12601_v44 = vadd.f32 %v6851_v37, %v6722_v45  ;;  %v910_v37 = vld [vmem:[%s10653_s26 + $0x12a0] sm:$0xff]  ;;  %v912_v45 = vld [vmem:[%s10653_s26 + $0x12b0] sm:$0xff] }
 0x4b0   : > { %v6726_v57 = vpop.f32.mrf.mxu0  ;;  %7550 = vmatmul.mubr.f32.gmra.mxu0 %v1922_v40  ;;  %v6856_v14 = vpop.f32.mrf.mxu1  ;;  %7680 = vmatmul.mubr.f32.gmra.mxu1 %v1924_v5  ;;  %v1038_v8 = vld [vmem:[%s10653_s26 + $0x16a0] sm:$0xff]  ;;  %v1040_v49 = vld [vmem:[%s10653_s26 + $0x16b0] sm:$0xff] }
 0x4b1   : > { %v6727_v50 = vadd.f32 %v6726_v57, %v12513_v63  ;;  %7749 = vmatprep.mubr.f32.mxu0 %v403_v13  ;;  %7879 = vmatprep.mubr.f32.mxu1 %v405_v51 }
 0x4b2   : > { %v6728_v60 = vpop.f32.mrf.mxu0  ;;  %v6858_v56 = vpop.f32.mrf.mxu1 }
 0x4b3   : > { %v12608_v23 = vadd.f32 %v6856_v14, %v6727_v50  ;;  %v1037_v14 = vld [vmem:[%s10653_s26 + $0x1698] sm:$0xff]  ;;  %v1039_v50 = vld [vmem:[%s10653_s26 + $0x16a8] sm:$0xff] }
 0x4b4   : > { %v6731_v6 = vpop.f32.mrf.mxu0  ;;  %7750 = vmatmul.mubr.f32.vlgmr.msra.gmra.mxu0 %v402_v19  ;;  %v6861_v63 = vpop.f32.mrf.mxu1  ;;  %7880 = vmatmul.mubr.f32.vlgmr.msra.gmra.mxu1 %v404_v54  ;;  %v1165_v60 = vld [vmem:[%s10653_s26 + $0x1a98] sm:$0xff]  ;;  %v1167_v56 = vld [vmem:[%s10653_s26 + $0x1aa8] sm:$0xff] }
 0x4b5   : > { %v6732_v0 = vadd.f32 %v6731_v6, %v12524_v18  ;;  %7976 = vmatpush1.xpose.msra.mxu0 %v279_v22  ;;  %7754 = vmatprep.mubr.f32.mxu0 %v530_v58  ;;  %v1166_v6 = vld [vmem:[%s10653_s26 + $0x1aa0] sm:$0xff] }
 0x4b6   : > { %v6733_v38 = vpop.f32.mrf.mxu0  ;;  %v6863_v7 = vpop.f32.mrf.mxu1  ;;  %8106 = vmatpush1.xpose.msra.mxu1 %v281_v27  ;;  %7884 = vmatprep.mubr.f32.mxu1 %v532_v28  ;;  %v1164_v28 = vld [vmem:[%s10653_s26 + $0x1a90] sm:$0xff] }
 0x4b7   : > { %v12619_v43 = vadd.f32 %v6861_v63, %v6732_v0  ;;  %8235 = vmatprep.subr.mxu0 %v284_v1  ;;  %8365 = vmatprep.subr.mxu1 %v286_v31  ;;  %v1292_v31 = vld [vmem:[%s10653_s26 + $0x1e90] sm:$0xff]  ;;  %v1294_v0 = vld [vmem:[%s10653_s26 + $0x1ea0] sm:$0xff]  ;;  %v1291_v7 = vld [vmem:[%s10653_s26 + $0x1e88] sm:$0xff] }
 0x4b8   : > { %v6736_v10 = vpop.f32.mrf.mxu0  ;;  %7755 = vmatmul.mubr.f32.gmra.mxu0 %v529_v36  ;;  %v6866_v18 = vpop.f32.mrf.mxu1  ;;  %7885 = vmatmul.mubr.f32.gmra.mxu1 %v531_v11 }
 0x4b9   : > { %v6737_v21 = vadd.f32 %v6736_v10, %v12531_v20  ;;  %7759 = vmatprep.mubr.f32.mxu0 %v657_v9  ;;  %7889 = vmatprep.mubr.f32.mxu1 %v659_v41  ;;  %v1293_v9 = vld [vmem:[%s10653_s26 + $0x1e98] sm:$0xff] }
 0x4ba   : > { %v6738_v46 = vpop.f32.mrf.mxu0  ;;  %v6868_v47 = vpop.f32.mrf.mxu1 }
 0x4bb   : > { %v12626_v53 = vadd.f32 %v6866_v18, %v6737_v21  ;;  %v1419_v18 = vld [vmem:[%s10653_s26 + $0x2288] sm:$0xff]  ;;  %v1421_v21 = vld [vmem:[%s10653_s26 + $0x2298] sm:$0xff]  ;;  %v1418_v47 = vld [vmem:[%s10653_s26 + $0x2280] sm:$0xff] }
 0x4bc   : > { %v6741_v26 = vpop.f32.mrf.mxu0  ;;  %7760 = vmatmul.mubr.f32.gmra.mxu0 %v656_v30  ;;  %v6871_v25 = vpop.f32.mrf.mxu1  ;;  %7890 = vmatmul.mubr.f32.gmra.mxu1 %v658_v16 }
 0x4bd   : > { %v6742_v20 = vadd.f32 %v6741_v26, %v12538_v42  ;;  %7764 = vmatprep.mubr.f32.mxu0 %v784_v24  ;;  %7894 = vmatprep.mubr.f32.mxu1 %v786_v39  ;;  %v1420_v24 = vld [vmem:[%s10653_s26 + $0x2290] sm:$0xff] }
 0x4be   : > { %v6743_v61 = vpop.f32.mrf.mxu0  ;;  %v6873_v34 = vpop.f32.mrf.mxu1 }
 0x4bf   : > { %v12633_v2 = vadd.f32 %v6871_v25, %v6742_v20  ;;  %v1546_v25 = vld [vmem:[%s10653_s26 + $0x2680] sm:$0xff]  ;;  %v1548_v20 = vld [vmem:[%s10653_s26 + $0x2690] sm:$0xff]  ;;  %v1545_v34 = vld [vmem:[%s10653_s26 + $0x2678] sm:$0xff] }
 0x4c0   : > { %v6746_v48 = vpop.f32.mrf.mxu0  ;;  %7765 = vmatmul.mubr.f32.gmra.mxu0 %v783_v59  ;;  %v6876_v3 = vpop.f32.mrf.mxu1  ;;  %7895 = vmatmul.mubr.f32.gmra.mxu1 %v785_v29 }
 0x4c1   : > { %v6747_v42 = vadd.f32 %v6746_v48, %v12545_v52  ;;  %7769 = vmatprep.mubr.f32.mxu0 %v911_v32  ;;  %7899 = vmatprep.mubr.f32.mxu1 %v913_v33  ;;  %v1547_v32 = vld [vmem:[%s10653_s26 + $0x2688] sm:$0xff] }
 0x4c2   : > { %v6748_v40 = vpop.f32.mrf.mxu0  ;;  %v6878_v5 = vpop.f32.mrf.mxu1 }
 0x4c3   : > { %v12640_v13 = vadd.f32 %v6876_v3, %v6747_v42  ;;  %v1673_v3 = vld [vmem:[%s10653_s26 + $0x2a78] sm:$0xff]  ;;  %v1675_v42 = vld [vmem:[%s10653_s26 + $0x2a88] sm:$0xff]  ;;  %v1672_v5 = vld [vmem:[%s10653_s26 + $0x2a70] sm:$0xff] }
 0x4c4   : > { %v6751_v51 = vpop.f32.mrf.mxu0  ;;  %7770 = vmatmul.mubr.f32.gmra.mxu0 %v910_v37  ;;  %v6881_v57 = vpop.f32.mrf.mxu1  ;;  %7900 = vmatmul.mubr.f32.gmra.mxu1 %v912_v45 }
 0x4c5   : > { %v6752_v52 = vadd.f32 %v6751_v51, %v12552_v62  ;;  %7774 = vmatprep.mubr.f32.mxu0 %v1038_v8  ;;  %7904 = vmatprep.mubr.f32.mxu1 %v1040_v49  ;;  %v1674_v8 = vld [vmem:[%s10653_s26 + $0x2a80] sm:$0xff] }
 0x4c6   : > { %v6753_v19 = vpop.f32.mrf.mxu0  ;;  %v6883_v54 = vpop.f32.mrf.mxu1 }
 0x4c7   : > { %v12647_v22 = vadd.f32 %v6881_v57, %v6752_v52  ;;  %v1800_v57 = vld [vmem:[%s10653_s26 + $0x2e70] sm:$0xff]  ;;  %v1802_v52 = vld [vmem:[%s10653_s26 + $0x2e80] sm:$0xff]  ;;  %v1799_v54 = vld [vmem:[%s10653_s26 + $0x2e68] sm:$0xff] }
 0x4c8   : > { %v6756_v58 = vpop.f32.mrf.mxu0  ;;  %7775 = vmatmul.mubr.f32.gmra.mxu0 %v1037_v14  ;;  %v6886_v27 = vpop.f32.mrf.mxu1  ;;  %7905 = vmatmul.mubr.f32.gmra.mxu1 %v1039_v50 }
 0x4c9   : > { %v6757_v62 = vadd.f32 %v6756_v58, %v12559_v12  ;;  %7779 = vmatprep.mubr.f32.mxu0 %v1165_v60  ;;  %7909 = vmatprep.mubr.f32.mxu1 %v1167_v56  ;;  %v1801_v60 = vld [vmem:[%s10653_s26 + $0x2e78] sm:$0xff] }
 0x4ca   : > { %v6758_v63 = vpop.f32.mrf.mxu0  ;;  %v6888_v1 = vpop.f32.mrf.mxu1 }
 0x4cb   : > { %v12654_v36 = vadd.f32 %v6886_v27, %v6757_v62  ;;  %v1927_v27 = vld [vmem:[%s10653_s26 + $0x3268] sm:$0xf]  ;;  %v1929_v62 = vld [vmem:[%s10653_s26 + $0x3278] sm:$0xf]  ;;  %v1926_v1 = vld [vmem:[%s10653_s26 + $0x3260] sm:$0xf] }
 0x4cc   : > { %v6761_v11 = vpop.f32.mrf.mxu0  ;;  %7780 = vmatmul.mubr.f32.gmra.mxu0 %v1164_v28  ;;  %v6891_v38 = vpop.f32.mrf.mxu1  ;;  %7910 = vmatmul.mubr.f32.gmra.mxu1 %v1166_v6 }
 0x4cd   : > { %v6762_v12 = vadd.f32 %v6761_v11, %v12566_v17  ;;  %7784 = vmatprep.mubr.f32.mxu0 %v1292_v31  ;;  %7914 = vmatprep.mubr.f32.mxu1 %v1294_v0  ;;  %v1928_v31 = vld [vmem:[%s10653_s26 + $0x3270] sm:$0xf] }
 0x4ce   : > { %v6763_v41 = vpop.f32.mrf.mxu0  ;;  %v6893_v10 = vpop.f32.mrf.mxu1 }
 0x4cf   : > { %v12661_v30 = vadd.f32 %v6891_v38, %v6762_v12  ;;  %v407_v38 = vld [vmem:[%s10653_s26 + $0x2e8] sm:$0xff]  ;;  %v409_v12 = vld [vmem:[%s10653_s26 + $0x2f8] sm:$0xff]  ;;  %v406_v10 = vld [vmem:[%s10653_s26 + $0x2e0] sm:$0xff] }
 0x4d0   : > { %v6766_v16 = vpop.f32.mrf.mxu0  ;;  %7785 = vmatmul.mubr.f32.gmra.mxu0 %v1291_v7  ;;  %v6896_v46 = vpop.f32.mrf.mxu1  ;;  %7915 = vmatmul.mubr.f32.gmra.mxu1 %v1293_v9 }
 0x4d1   : > { %v6767_v17 = vadd.f32 %v6766_v16, %v12573_v35  ;;  %7789 = vmatprep.mubr.f32.mxu0 %v1419_v18  ;;  %7919 = vmatprep.mubr.f32.mxu1 %v1421_v21  ;;  %v408_v18 = vld [vmem:[%s10653_s26 + $0x2f0] sm:$0xff] }
 0x4d2   : > { %v6768_v39 = vpop.f32.mrf.mxu0  ;;  %v6898_v26 = vpop.f32.mrf.mxu1 }
 0x4d3   : > { %v12668_v59 = vadd.f32 %v6896_v46, %v6767_v17  ;;  %v283_v46 = vld [vmem:[%s10663_s28 + $0x300] sm:$0xff]  ;;  %v536_v39 = vld [vmem:[%s10653_s26 + $0x6f0] sm:$0xff] }
 0x4d4   : > { %v6771_v29 = vpop.f32.mrf.mxu0  ;;  %7790 = vmatmul.mubr.f32.gmra.mxu0 %v1418_v47  ;;  %v6901_v61 = vpop.f32.mrf.mxu1  ;;  %7920 = vmatmul.mubr.f32.gmra.mxu1 %v1420_v24  ;;  %v534_v17 = vld [vmem:[%s10653_s26 + $0x6e0] sm:$0xff]  ;;  %v285_v24 = vld [vmem:[%s10663_s28 + $0x310] sm:$0xff] }
 0x4d5   : > { %v6772_v35 = vadd.f32 %v6771_v29, %v12580_v15  ;;  %7794 = vmatprep.mubr.f32.mxu0 %v1546_v25  ;;  %7924 = vmatprep.mubr.f32.mxu1 %v1548_v20  ;;  %v288_v25 = vld [vmem:[%s10663_s28 + $0x328] sm:$0xff]  ;;  %v290_v20 = vld [vmem:[%s10663_s28 + $0x338] sm:$0xff] }
 0x4d6   : > { %v6773_v33 = vpop.f32.mrf.mxu0  ;;  %v6903_v48 = vpop.f32.mrf.mxu1 }
 0x4d7   : > { %v12675_v37 = vadd.f32 %v6901_v61, %v6772_v35  ;;  %v533_v61 = vld [vmem:[%s10653_s26 + $0x6d8] sm:$0xff]  ;;  %v535_v35 = vld [vmem:[%s10653_s26 + $0x6e8] sm:$0xff] }
 0x4d8   : > { %v6971_v45 = vpop.f32.mrf.mxu0  ;;  %7795 = vmatmul.mubr.f32.gmra.mxu0 %v1545_v34  ;;  %v7101_v40 = vpop.f32.mrf.mxu1  ;;  %7925 = vmatmul.mubr.f32.gmra.mxu1 %v1547_v32  ;;  %v661_v33 = vld [vmem:[%s10653_s26 + $0xad8] sm:$0xff]  ;;  %v663_v48 = vld [vmem:[%s10653_s26 + $0xae8] sm:$0xff] }
 0x4d9   : > { %v6972_v15 = vadd.f32 %v6971_v45, %v12587_v55  ;;  %7799 = vmatprep.mubr.f32.mxu0 %v1673_v3  ;;  %7929 = vmatprep.mubr.f32.mxu1 %v1675_v42 }
 0x4da   : > { %v6973_v49 = vpop.f32.mrf.mxu0  ;;  %v7103_v51 = vpop.f32.mrf.mxu1 }
 0x4db   : > { %v12682_v14 = vadd.f32 %v7101_v40, %v6972_v15  ;;  %v660_v40 = vld [vmem:[%s10653_s26 + $0xad0] sm:$0xff]  ;;  %v662_v15 = vld [vmem:[%s10653_s26 + $0xae0] sm:$0xff] }
 0x4dc   : > { %v6976_v50 = vpop.f32.mrf.mxu0  ;;  %7800 = vmatmul.mubr.f32.gmra.mxu0 %v1672_v5  ;;  %v7106_v19 = vpop.f32.mrf.mxu1  ;;  %7930 = vmatmul.mubr.f32.gmra.mxu1 %v1674_v8  ;;  %v788_v49 = vld [vmem:[%s10653_s26 + $0xed0] sm:$0xff]  ;;  %v790_v51 = vld [vmem:[%s10653_s26 + $0xee0] sm:$0xff] }
 0x4dd   : > { %v6977_v55 = vadd.f32 %v6976_v50, %v12594_v4  ;;  %7804 = vmatprep.mubr.f32.mxu0 %v1800_v57  ;;  %7934 = vmatprep.mubr.f32.mxu1 %v1802_v52 }
 0x4de   : > { %v6978_v56 = vpop.f32.mrf.mxu0  ;;  %v7108_v58 = vpop.f32.mrf.mxu1 }
 0x4df   : > { %v12689_v28 = vadd.f32 %v7106_v19, %v6977_v55  ;;  %v787_v19 = vld [vmem:[%s10653_s26 + $0xec8] sm:$0xff]  ;;  %v789_v55 = vld [vmem:[%s10653_s26 + $0xed8] sm:$0xff] }
 0x4e0   : > { %v6981_v6 = vpop.f32.mrf.mxu0  ;;  %7805 = vmatmul.mubr.f32.gmra.mxu0 %v1799_v54  ;;  %v7111_v63 = vpop.f32.mrf.mxu1  ;;  %7935 = vmatmul.mubr.f32.gmra.mxu1 %v1801_v60  ;;  %v915_v56 = vld [vmem:[%s10653_s26 + $0x12c8] sm:$0xff]  ;;  %v917_v58 = vld [vmem:[%s10653_s26 + $0x12d8] sm:$0xff] }
 0x4e1   : > { %v6982_v4 = vadd.f32 %v6981_v6, %v12601_v44  ;;  %7809 = vmatprep.mubr.f32.mxu0 %v1927_v27  ;;  %7939 = vmatprep.mubr.f32.mxu1 %v1929_v62 }
 0x4e2   : > { %v6983_v0 = vpop.f32.mrf.mxu0  ;;  %v7113_v11 = vpop.f32.mrf.mxu1 }
 0x4e3   : > { %v12696_v7 = vadd.f32 %v7111_v63, %v6982_v4  ;;  %v914_v63 = vld [vmem:[%s10653_s26 + $0x12c0] sm:$0xff]  ;;  %v916_v4 = vld [vmem:[%s10653_s26 + $0x12d0] sm:$0xff] }
 0x4e4   : > { %v6986_v9 = vpop.f32.mrf.mxu0  ;;  %7810 = vmatmul.mubr.f32.gmra.mxu0 %v1926_v1  ;;  %v7116_v41 = vpop.f32.mrf.mxu1  ;;  %7940 = vmatmul.mubr.f32.gmra.mxu1 %v1928_v31  ;;  %v1042_v0 = vld [vmem:[%s10653_s26 + $0x16c0] sm:$0xff]  ;;  %v1044_v11 = vld [vmem:[%s10653_s26 + $0x16d0] sm:$0xff] }
 0x4e5   : > { %v6987_v44 = vadd.f32 %v6986_v9, %v12608_v23  ;;  %8009 = vmatprep.mubr.f32.mxu0 %v407_v38  ;;  %8139 = vmatprep.mubr.f32.mxu1 %v409_v12 }
 0x4e6   : > { %v6988_v21 = vpop.f32.mrf.mxu0  ;;  %v7118_v16 = vpop.f32.mrf.mxu1 }
 0x4e7   : > { %v12703_v47 = vadd.f32 %v7116_v41, %v6987_v44  ;;  %v1041_v41 = vld [vmem:[%s10653_s26 + $0x16b8] sm:$0xff]  ;;  %v1043_v44 = vld [vmem:[%s10653_s26 + $0x16c8] sm:$0xff] }
 0x4e8   : > { %v6991_v26 = vpop.f32.mrf.mxu0  ;;  %8010 = vmatmul.mubr.f32.vlgmr.msra.gmra.mxu0 %v406_v10  ;;  %v7121_v23 = vpop.f32.mrf.mxu1  ;;  %8140 = vmatmul.mubr.f32.vlgmr.msra.gmra.mxu1 %v408_v18  ;;  %v1169_v21 = vld [vmem:[%s10653_s26 + $0x1ab8] sm:$0xff]  ;;  %v1171_v16 = vld [vmem:[%s10653_s26 + $0x1ac8] sm:$0xff] }
 0x4e9   : > { %v6992_v29 = vadd.f32 %v6991_v26, %v12619_v43  ;;  %8236 = vmatpush1.xpose.msra.mxu0 %v283_v46  ;;  %8014 = vmatprep.mubr.f32.mxu0 %v534_v17  ;;  %v1170_v26 = vld [vmem:[%s10653_s26 + $0x1ac0] sm:$0xff] }
 0x4ea   : > { %v6993_v34 = vpop.f32.mrf.mxu0  ;;  %v7123_v32 = vpop.f32.mrf.mxu1  ;;  %8366 = vmatpush1.xpose.msra.mxu1 %v285_v24  ;;  %8144 = vmatprep.mubr.f32.mxu1 %v536_v39  ;;  %v1168_v39 = vld [vmem:[%s10653_s26 + $0x1ab0] sm:$0xff] }
 0x4eb   : > { %v12714_v3 = vadd.f32 %v7121_v23, %v6992_v29  ;;  %8495 = vmatprep.subr.mxu0 %v288_v25  ;;  %8625 = vmatprep.subr.mxu1 %v290_v20  ;;  %v1296_v20 = vld [vmem:[%s10653_s26 + $0x1eb0] sm:$0xff]  ;;  %v1298_v29 = vld [vmem:[%s10653_s26 + $0x1ec0] sm:$0xff]  ;;  %v1295_v32 = vld [vmem:[%s10653_s26 + $0x1ea8] sm:$0xff] }
 0x4ec   : > { %v6996_v42 = vpop.f32.mrf.mxu0  ;;  %8015 = vmatmul.mubr.f32.gmra.mxu0 %v533_v61  ;;  %v7126_v43 = vpop.f32.mrf.mxu1  ;;  %8145 = vmatmul.mubr.f32.gmra.mxu1 %v535_v35 }
 0x4ed   : > { %v6997_v45 = vadd.f32 %v6996_v42, %v12626_v53  ;;  %8019 = vmatprep.mubr.f32.mxu0 %v661_v33  ;;  %8149 = vmatprep.mubr.f32.mxu1 %v663_v48  ;;  %v1297_v33 = vld [vmem:[%s10653_s26 + $0x1eb8] sm:$0xff] }
 0x4ee   : > { %v6998_v5 = vpop.f32.mrf.mxu0  ;;  %v7128_v8 = vpop.f32.mrf.mxu1 }
 0x4ef   : > { %v12721_v57 = vadd.f32 %v7126_v43, %v6997_v45  ;;  %v1423_v43 = vld [vmem:[%s10653_s26 + $0x22a8] sm:$0xff]  ;;  %v1425_v45 = vld [vmem:[%s10653_s26 + $0x22b8] sm:$0xff]  ;;  %v1422_v8 = vld [vmem:[%s10653_s26 + $0x22a0] sm:$0xff] }
 0x4f0   : > { %v7001_v52 = vpop.f32.mrf.mxu0  ;;  %8020 = vmatmul.mubr.f32.gmra.mxu0 %v660_v40  ;;  %v7131_v50 = vpop.f32.mrf.mxu1  ;;  %8150 = vmatmul.mubr.f32.gmra.mxu1 %v662_v15 }
 0x4f1   : > { %v7002_v53 = vadd.f32 %v7001_v52, %v12633_v2  ;;  %8024 = vmatprep.mubr.f32.mxu0 %v788_v49  ;;  %8154 = vmatprep.mubr.f32.mxu1 %v790_v51  ;;  %v1424_v49 = vld [vmem:[%s10653_s26 + $0x22b0] sm:$0xff] }
 0x4f2   : > { %v7003_v54 = vpop.f32.mrf.mxu0  ;;  %v7133_v60 = vpop.f32.mrf.mxu1 }
 0x4f3   : > { %v12728_v27 = vadd.f32 %v7131_v50, %v7002_v53  ;;  %v1550_v50 = vld [vmem:[%s10653_s26 + $0x26a0] sm:$0xff]  ;;  %v1552_v53 = vld [vmem:[%s10653_s26 + $0x26b0] sm:$0xff]  ;;  %v1549_v60 = vld [vmem:[%s10653_s26 + $0x2698] sm:$0xff] }
 0x4f4   : > { %v7006_v62 = vpop.f32.mrf.mxu0  ;;  %8025 = vmatmul.mubr.f32.gmra.mxu0 %v787_v19  ;;  %v7136_v6 = vpop.f32.mrf.mxu1  ;;  %8155 = vmatmul.mubr.f32.gmra.mxu1 %v789_v55 }
 0x4f5   : > { %v7007_v2 = vadd.f32 %v7006_v62, %v12640_v13  ;;  %8029 = vmatprep.mubr.f32.mxu0 %v915_v56  ;;  %8159 = vmatprep.mubr.f32.mxu1 %v917_v58  ;;  %v1551_v56 = vld [vmem:[%s10653_s26 + $0x26a8] sm:$0xff] }
 0x4f6   : > { %v7008_v1 = vpop.f32.mrf.mxu0  ;;  %v7138_v31 = vpop.f32.mrf.mxu1 }
 0x4f7   : > { %v12735_v38 = vadd.f32 %v7136_v6, %v7007_v2  ;;  %v1677_v6 = vld [vmem:[%s10653_s26 + $0x2a98] sm:$0xff]  ;;  %v1679_v2 = vld [vmem:[%s10653_s26 + $0x2aa8] sm:$0xff]  ;;  %v1676_v31 = vld [vmem:[%s10653_s26 + $0x2a90] sm:$0xff] }
 0x4f8   : > { %v7011_v12 = vpop.f32.mrf.mxu0  ;;  %8030 = vmatmul.mubr.f32.gmra.mxu0 %v914_v63  ;;  %v7141_v9 = vpop.f32.mrf.mxu1  ;;  %8160 = vmatmul.mubr.f32.gmra.mxu1 %v916_v4 }
 0x4f9   : > { %v7012_v13 = vadd.f32 %v7011_v12, %v12647_v22  ;;  %8034 = vmatprep.mubr.f32.mxu0 %v1042_v0  ;;  %8164 = vmatprep.mubr.f32.mxu1 %v1044_v11  ;;  %v1678_v0 = vld [vmem:[%s10653_s26 + $0x2aa0] sm:$0xff] }
 0x4fa   : > { %v7013_v10 = vpop.f32.mrf.mxu0  ;;  %v7143_v18 = vpop.f32.mrf.mxu1 }
 0x4fb   : > { %v12742_v46 = vadd.f32 %v7141_v9, %v7012_v13  ;;  %v1804_v9 = vld [vmem:[%s10653_s26 + $0x2e90] sm:$0xff]  ;;  %v1806_v13 = vld [vmem:[%s10653_s26 + $0x2ea0] sm:$0xff]  ;;  %v1803_v18 = vld [vmem:[%s10653_s26 + $0x2e88] sm:$0xff] }
 0x4fc   : > { %v7016_v17 = vpop.f32.mrf.mxu0  ;;  %8035 = vmatmul.mubr.f32.gmra.mxu0 %v1041_v41  ;;  %v7146_v24 = vpop.f32.mrf.mxu1  ;;  %8165 = vmatmul.mubr.f32.gmra.mxu1 %v1043_v44 }
 0x4fd   : > { %v7017_v22 = vadd.f32 %v7016_v17, %v12654_v36  ;;  %8039 = vmatprep.mubr.f32.mxu0 %v1169_v21  ;;  %8169 = vmatprep.mubr.f32.mxu1 %v1171_v16  ;;  %v1805_v21 = vld [vmem:[%s10653_s26 + $0x2e98] sm:$0xff] }
 0x4fe   : > { %v7018_v23 = vpop.f32.mrf.mxu0  ;;  %v7148_v25 = vpop.f32.mrf.mxu1 }
 0x4ff   : > { %v12749_v61 = vadd.f32 %v7146_v24, %v7017_v22  ;;  %v1931_v24 = vld [vmem:[%s10653_s26 + $0x3288] sm:$0xf]  ;;  %v1933_v22 = vld [vmem:[%s10653_s26 + $0x3298] sm:$0xf]  ;;  %v1930_v25 = vld [vmem:[%s10653_s26 + $0x3280] sm:$0xf] }
 0x500   : > { %v7021_v35 = vpop.f32.mrf.mxu0  ;;  %8040 = vmatmul.mubr.f32.gmra.mxu0 %v1168_v39  ;;  %v7151_v34 = vpop.f32.mrf.mxu1  ;;  %8170 = vmatmul.mubr.f32.gmra.mxu1 %v1170_v26 }
 0x501   : > { %v7022_v36 = vadd.f32 %v7021_v35, %v12661_v30  ;;  %8044 = vmatprep.mubr.f32.mxu0 %v1296_v20  ;;  %8174 = vmatprep.mubr.f32.mxu1 %v1298_v29  ;;  %v1932_v20 = vld [vmem:[%s10653_s26 + $0x3290] sm:$0xf] }
 0x502   : > { %v7023_v48 = vpop.f32.mrf.mxu0  ;;  %v7153_v42 = vpop.f32.mrf.mxu1 }
 0x503   : > { %v12756_v40 = vadd.f32 %v7151_v34, %v7022_v36  ;;  %v411_v34 = vld [vmem:[%s10653_s26 + $0x308] sm:$0xff]  ;;  %v413_v36 = vld [vmem:[%s10653_s26 + $0x318] sm:$0xff]  ;;  %v410_v42 = vld [vmem:[%s10653_s26 + $0x300] sm:$0xff] }
 0x504   : > { %v7026_v15 = vpop.f32.mrf.mxu0  ;;  %8045 = vmatmul.mubr.f32.gmra.mxu0 %v1295_v32  ;;  %v7156_v5 = vpop.f32.mrf.mxu1  ;;  %8175 = vmatmul.mubr.f32.gmra.mxu1 %v1297_v33 }
 0x505   : > { %v7027_v30 = vadd.f32 %v7026_v15, %v12668_v59  ;;  %8049 = vmatprep.mubr.f32.mxu0 %v1423_v43  ;;  %8179 = vmatprep.mubr.f32.mxu1 %v1425_v45  ;;  %v412_v43 = vld [vmem:[%s10653_s26 + $0x310] sm:$0xff] }
 0x506   : > { %v7028_v51 = vpop.f32.mrf.mxu0  ;;  %v7158_v52 = vpop.f32.mrf.mxu1 }
 0x507   : > { %v12763_v19 = vadd.f32 %v7156_v5, %v7027_v30  ;;  %v287_v5 = vld [vmem:[%s10663_s28 + $0x320] sm:$0xff]  ;;  %v540_v51 = vld [vmem:[%s10653_s26 + $0x710] sm:$0xff] }
 0x508   : > { %v7031_v55 = vpop.f32.mrf.mxu0  ;;  %8050 = vmatmul.mubr.f32.gmra.mxu0 %v1422_v8  ;;  %v7161_v54 = vpop.f32.mrf.mxu1  ;;  %8180 = vmatmul.mubr.f32.gmra.mxu1 %v1424_v49  ;;  %v538_v30 = vld [vmem:[%s10653_s26 + $0x700] sm:$0xff]  ;;  %v289_v49 = vld [vmem:[%s10663_s28 + $0x330] sm:$0xff] }
 0x509   : > { %v7032_v59 = vadd.f32 %v7031_v55, %v12675_v37  ;;  %8054 = vmatprep.mubr.f32.mxu0 %v1550_v50  ;;  %8184 = vmatprep.mubr.f32.mxu1 %v1552_v53  ;;  %v292_v50 = vld [vmem:[%s10663_s28 + $0x348] sm:$0xff]  ;;  %v294_v53 = vld [vmem:[%s10663_s28 + $0x358] sm:$0xff] }
 0x50a   : > { %v7033_v58 = vpop.f32.mrf.mxu0  ;;  %v7163_v62 = vpop.f32.mrf.mxu1 }
 0x50b   : > { %v12770_v63 = vadd.f32 %v7161_v54, %v7032_v59  ;;  %v537_v54 = vld [vmem:[%s10653_s26 + $0x6f8] sm:$0xff]  ;;  %v539_v59 = vld [vmem:[%s10653_s26 + $0x708] sm:$0xff] }
 0x50c   : > { %v7231_v4 = vpop.f32.mrf.mxu0  ;;  %8055 = vmatmul.mubr.f32.gmra.mxu0 %v1549_v60  ;;  %v7361_v1 = vpop.f32.mrf.mxu1  ;;  %8185 = vmatmul.mubr.f32.gmra.mxu1 %v1551_v56  ;;  %v665_v58 = vld [vmem:[%s10653_s26 + $0xaf8] sm:$0xff]  ;;  %v667_v62 = vld [vmem:[%s10653_s26 + $0xb08] sm:$0xff] }
 0x50d   : > { %v7232_v37 = vadd.f32 %v7231_v4, %v12682_v14  ;;  %8059 = vmatprep.mubr.f32.mxu0 %v1677_v6  ;;  %8189 = vmatprep.mubr.f32.mxu1 %v1679_v2 }
 0x50e   : > { %v7233_v11 = vpop.f32.mrf.mxu0  ;;  %v7363_v12 = vpop.f32.mrf.mxu1 }
 0x50f   : > { %v12777_v41 = vadd.f32 %v7361_v1, %v7232_v37  ;;  %v664_v1 = vld [vmem:[%s10653_s26 + $0xaf0] sm:$0xff]  ;;  %v666_v37 = vld [vmem:[%s10653_s26 + $0xb00] sm:$0xff] }
 0x510   : > { %v7236_v44 = vpop.f32.mrf.mxu0  ;;  %8060 = vmatmul.mubr.f32.gmra.mxu0 %v1676_v31  ;;  %v7366_v10 = vpop.f32.mrf.mxu1  ;;  %8190 = vmatmul.mubr.f32.gmra.mxu1 %v1678_v0  ;;  %v792_v11 = vld [vmem:[%s10653_s26 + $0xef0] sm:$0xff]  ;;  %v794_v12 = vld [vmem:[%s10653_s26 + $0xf00] sm:$0xff] }
 0x511   : > { %v7237_v14 = vadd.f32 %v7236_v44, %v12689_v28  ;;  %8064 = vmatprep.mubr.f32.mxu0 %v1804_v9  ;;  %8194 = vmatprep.mubr.f32.mxu1 %v1806_v13 }
 0x512   : > { %v7238_v16 = vpop.f32.mrf.mxu0  ;;  %v7368_v17 = vpop.f32.mrf.mxu1 }
 0x513   : > { %v12784_v39 = vadd.f32 %v7366_v10, %v7237_v14  ;;  %v791_v10 = vld [vmem:[%s10653_s26 + $0xee8] sm:$0xff]  ;;  %v793_v14 = vld [vmem:[%s10653_s26 + $0xef8] sm:$0xff] }
 0x514   : > { %v7241_v26 = vpop.f32.mrf.mxu0  ;;  %8065 = vmatmul.mubr.f32.gmra.mxu0 %v1803_v18  ;;  %v7371_v23 = vpop.f32.mrf.mxu1  ;;  %8195 = vmatmul.mubr.f32.gmra.mxu1 %v1805_v21  ;;  %v919_v16 = vld [vmem:[%s10653_s26 + $0x12e8] sm:$0xff]  ;;  %v921_v17 = vld [vmem:[%s10653_s26 + $0x12f8] sm:$0xff] }
 0x515   : > { %v7242_v28 = vadd.f32 %v7241_v26, %v12696_v7  ;;  %8069 = vmatprep.mubr.f32.mxu0 %v1931_v24  ;;  %8199 = vmatprep.mubr.f32.mxu1 %v1933_v22 }
 0x516   : > { %v7243_v29 = vpop.f32.mrf.mxu0  ;;  %v7373_v35 = vpop.f32.mrf.mxu1 }
 0x517   : > { %v12791_v32 = vadd.f32 %v7371_v23, %v7242_v28  ;;  %v918_v23 = vld [vmem:[%s10653_s26 + $0x12e0] sm:$0xff]  ;;  %v920_v28 = vld [vmem:[%s10653_s26 + $0x12f0] sm:$0xff] }
 0x518   : > { %v7246_v33 = vpop.f32.mrf.mxu0  ;;  %8070 = vmatmul.mubr.f32.gmra.mxu0 %v1930_v25  ;;  %v7376_v48 = vpop.f32.mrf.mxu1  ;;  %8200 = vmatmul.mubr.f32.gmra.mxu1 %v1932_v20  ;;  %v1046_v29 = vld [vmem:[%s10653_s26 + $0x16e0] sm:$0xff]  ;;  %v1048_v35 = vld [vmem:[%s10653_s26 + $0x16f0] sm:$0xff] }
 0x519   : > { %v7247_v7 = vadd.f32 %v7246_v33, %v12703_v47  ;;  %8269 = vmatprep.mubr.f32.mxu0 %v411_v34  ;;  %8399 = vmatprep.mubr.f32.mxu1 %v413_v36 }
 0x51a   : > { %v7248_v45 = vpop.f32.mrf.mxu0  ;;  %v7378_v15 = vpop.f32.mrf.mxu1 }
 0x51b   : > { %v12798_v8 = vadd.f32 %v7376_v48, %v7247_v7  ;;  %v1045_v48 = vld [vmem:[%s10653_s26 + $0x16d8] sm:$0xff]  ;;  %v1047_v7 = vld [vmem:[%s10653_s26 + $0x16e8] sm:$0xff] }
 0x51c   : > { %v7251_v52 = vpop.f32.mrf.mxu0  ;;  %8270 = vmatmul.mubr.f32.vlgmr.msra.gmra.mxu0 %v410_v42  ;;  %v7381_v47 = vpop.f32.mrf.mxu1  ;;  %8400 = vmatmul.mubr.f32.vlgmr.msra.gmra.mxu1 %v412_v43  ;;  %v1173_v45 = vld [vmem:[%s10653_s26 + $0x1ad8] sm:$0xff]  ;;  %v1175_v15 = vld [vmem:[%s10653_s26 + $0x1ae8] sm:$0xff] }
 0x51d   : > { %v7252_v55 = vadd.f32 %v7251_v52, %v12714_v3  ;;  %8496 = vmatpush1.xpose.msra.mxu0 %v287_v5  ;;  %8274 = vmatprep.mubr.f32.mxu0 %v538_v30  ;;  %v1174_v52 = vld [vmem:[%s10653_s26 + $0x1ae0] sm:$0xff] }
 0x51e   : > { %v7253_v60 = vpop.f32.mrf.mxu0  ;;  %v7383_v56 = vpop.f32.mrf.mxu1  ;;  %8626 = vmatpush1.xpose.msra.mxu1 %v289_v49  ;;  %8404 = vmatprep.mubr.f32.mxu1 %v540_v51  ;;  %v1172_v51 = vld [vmem:[%s10653_s26 + $0x1ad0] sm:$0xff] }
 0x51f   : > { %v12809_v6 = vadd.f32 %v7381_v47, %v7252_v55  ;;  %8755 = vmatprep.subr.mxu0 %v292_v50  ;;  %8885 = vmatprep.subr.mxu1 %v294_v53  ;;  %v1300_v53 = vld [vmem:[%s10653_s26 + $0x1ed0] sm:$0xff]  ;;  %v1302_v55 = vld [vmem:[%s10653_s26 + $0x1ee0] sm:$0xff]  ;;  %v1299_v56 = vld [vmem:[%s10653_s26 + $0x1ec8] sm:$0xff] }
 0x520   : > { %v7256_v2 = vpop.f32.mrf.mxu0  ;;  %8275 = vmatmul.mubr.f32.gmra.mxu0 %v537_v54  ;;  %v7386_v3 = vpop.f32.mrf.mxu1  ;;  %8405 = vmatmul.mubr.f32.gmra.mxu1 %v539_v59 }
 0x521   : > { %v7257_v4 = vadd.f32 %v7256_v2, %v12721_v57  ;;  %8279 = vmatprep.mubr.f32.mxu0 %v665_v58  ;;  %8409 = vmatprep.mubr.f32.mxu1 %v667_v62  ;;  %v1301_v58 = vld [vmem:[%s10653_s26 + $0x1ed8] sm:$0xff] }
 0x522   : > { %v7258_v31 = vpop.f32.mrf.mxu0  ;;  %v7388_v0 = vpop.f32.mrf.mxu1 }
 0x523   : > { %v12816_v9 = vadd.f32 %v7386_v3, %v7257_v4  ;;  %v1427_v3 = vld [vmem:[%s10653_s26 + $0x22c8] sm:$0xff]  ;;  %v1429_v4 = vld [vmem:[%s10653_s26 + $0x22d8] sm:$0xff]  ;;  %v1426_v0 = vld [vmem:[%s10653_s26 + $0x22c0] sm:$0xff] }
 0x524   : > { %v7261_v13 = vpop.f32.mrf.mxu0  ;;  %8280 = vmatmul.mubr.f32.gmra.mxu0 %v664_v1  ;;  %v7391_v44 = vpop.f32.mrf.mxu1  ;;  %8410 = vmatmul.mubr.f32.gmra.mxu1 %v666_v37 }
 0x525   : > { %v7262_v57 = vadd.f32 %v7261_v13, %v12728_v27  ;;  %8284 = vmatprep.mubr.f32.mxu0 %v792_v11  ;;  %8414 = vmatprep.mubr.f32.mxu1 %v794_v12  ;;  %v1428_v11 = vld [vmem:[%s10653_s26 + $0x22d0] sm:$0xff] }
 0x526   : > { %v7263_v18 = vpop.f32.mrf.mxu0  ;;  %v7393_v21 = vpop.f32.mrf.mxu1 }
 0x527   : > { %v12823_v24 = vadd.f32 %v7391_v44, %v7262_v57  ;;  %v1554_v44 = vld [vmem:[%s10653_s26 + $0x26c0] sm:$0xff]  ;;  %v1556_v57 = vld [vmem:[%s10653_s26 + $0x26d0] sm:$0xff]  ;;  %v1553_v21 = vld [vmem:[%s10653_s26 + $0x26b8] sm:$0xff] }
 0x528   : > { %v7266_v22 = vpop.f32.mrf.mxu0  ;;  %8285 = vmatmul.mubr.f32.gmra.mxu0 %v791_v10  ;;  %v7396_v26 = vpop.f32.mrf.mxu1  ;;  %8415 = vmatmul.mubr.f32.gmra.mxu1 %v793_v14 }
 0x529   : > { %v7267_v27 = vadd.f32 %v7266_v22, %v12735_v38  ;;  %8289 = vmatprep.mubr.f32.mxu0 %v919_v16  ;;  %8419 = vmatprep.mubr.f32.mxu1 %v921_v17  ;;  %v1555_v16 = vld [vmem:[%s10653_s26 + $0x26c8] sm:$0xff] }
 0x52a   : > { %v7268_v25 = vpop.f32.mrf.mxu0  ;;  %v7398_v20 = vpop.f32.mrf.mxu1 }
 0x52b   : > { %v12830_v34 = vadd.f32 %v7396_v26, %v7267_v27  ;;  %v1681_v26 = vld [vmem:[%s10653_s26 + $0x2ab8] sm:$0xff]  ;;  %v1683_v27 = vld [vmem:[%s10653_s26 + $0x2ac8] sm:$0xff]  ;;  %v1680_v20 = vld [vmem:[%s10653_s26 + $0x2ab0] sm:$0xff] }
 0x52c   : > { %v7271_v36 = vpop.f32.mrf.mxu0  ;;  %8290 = vmatmul.mubr.f32.gmra.mxu0 %v918_v23  ;;  %v7401_v33 = vpop.f32.mrf.mxu1  ;;  %8420 = vmatmul.mubr.f32.gmra.mxu1 %v920_v28 }
 0x52d   : > { %v7272_v38 = vadd.f32 %v7271_v36, %v12742_v46  ;;  %8294 = vmatprep.mubr.f32.mxu0 %v1046_v29  ;;  %8424 = vmatprep.mubr.f32.mxu1 %v1048_v35  ;;  %v1682_v29 = vld [vmem:[%s10653_s26 + $0x2ac0] sm:$0xff] }
 0x52e   : > { %v7273_v42 = vpop.f32.mrf.mxu0  ;;  %v7403_v43 = vpop.f32.mrf.mxu1 }
 0x52f   : > { %v12837_v5 = vadd.f32 %v7401_v33, %v7272_v38  ;;  %v1808_v33 = vld [vmem:[%s10653_s26 + $0x2eb0] sm:$0xff]  ;;  %v1810_v38 = vld [vmem:[%s10653_s26 + $0x2ec0] sm:$0xff]  ;;  %v1807_v43 = vld [vmem:[%s10653_s26 + $0x2ea8] sm:$0xff] }
 0x530   : > { %v7276_v30 = vpop.f32.mrf.mxu0  ;;  %8295 = vmatmul.mubr.f32.gmra.mxu0 %v1045_v48  ;;  %v7406_v49 = vpop.f32.mrf.mxu1  ;;  %8425 = vmatmul.mubr.f32.gmra.mxu1 %v1047_v7 }
 0x531   : > { %v7277_v46 = vadd.f32 %v7276_v30, %v12749_v61  ;;  %8299 = vmatprep.mubr.f32.mxu0 %v1173_v45  ;;  %8429 = vmatprep.mubr.f32.mxu1 %v1175_v15  ;;  %v1809_v45 = vld [vmem:[%s10653_s26 + $0x2eb8] sm:$0xff] }
 0x532   : > { %v7278_v47 = vpop.f32.mrf.mxu0  ;;  %v7408_v50 = vpop.f32.mrf.mxu1 }
 0x533   : > { %v12844_v54 = vadd.f32 %v7406_v49, %v7277_v46  ;;  %v1935_v49 = vld [vmem:[%s10653_s26 + $0x32a8] sm:$0xf]  ;;  %v1937_v46 = vld [vmem:[%s10653_s26 + $0x32b8] sm:$0xf]  ;;  %v1934_v50 = vld [vmem:[%s10653_s26 + $0x32a0] sm:$0xf] }
 0x534   : > { %v7281_v59 = vpop.f32.mrf.mxu0  ;;  %8300 = vmatmul.mubr.f32.gmra.mxu0 %v1172_v51  ;;  %v7411_v60 = vpop.f32.mrf.mxu1  ;;  %8430 = vmatmul.mubr.f32.gmra.mxu1 %v1174_v52 }
 0x535   : > { %v7282_v61 = vadd.f32 %v7281_v59, %v12756_v40  ;;  %8304 = vmatprep.mubr.f32.mxu0 %v1300_v53  ;;  %8434 = vmatprep.mubr.f32.mxu1 %v1302_v55  ;;  %v1936_v53 = vld [vmem:[%s10653_s26 + $0x32b0] sm:$0xf] }
 0x536   : > { %v7283_v62 = vpop.f32.mrf.mxu0  ;;  %v7413_v2 = vpop.f32.mrf.mxu1 }
 0x537   : > { %v12851_v1 = vadd.f32 %v7411_v60, %v7282_v61  ;;  %v415_v60 = vld [vmem:[%s10653_s26 + $0x328] sm:$0xff]  ;;  %v417_v61 = vld [vmem:[%s10653_s26 + $0x338] sm:$0xff]  ;;  %v414_v2 = vld [vmem:[%s10653_s26 + $0x320] sm:$0xff] }
 0x538   : > { %v7286_v37 = vpop.f32.mrf.mxu0  ;;  %8305 = vmatmul.mubr.f32.gmra.mxu0 %v1299_v56  ;;  %v7416_v31 = vpop.f32.mrf.mxu1  ;;  %8435 = vmatmul.mubr.f32.gmra.mxu1 %v1301_v58 }
 0x539   : > { %v7287_v40 = vadd.f32 %v7286_v37, %v12763_v19  ;;  %8309 = vmatprep.mubr.f32.mxu0 %v1427_v3  ;;  %8439 = vmatprep.mubr.f32.mxu1 %v1429_v4  ;;  %v416_v3 = vld [vmem:[%s10653_s26 + $0x330] sm:$0xff] }
 0x53a   : > { %v7288_v12 = vpop.f32.mrf.mxu0  ;;  %v7418_v13 = vpop.f32.mrf.mxu1 }
 0x53b   : > { %v12858_v10 = vadd.f32 %v7416_v31, %v7287_v40  ;;  %v291_v31 = vld [vmem:[%s10663_s28 + $0x340] sm:$0xff]  ;;  %v544_v12 = vld [vmem:[%s10653_s26 + $0x730] sm:$0xff] }
 0x53c   : > { %v7291_v14 = vpop.f32.mrf.mxu0  ;;  %8310 = vmatmul.mubr.f32.gmra.mxu0 %v1426_v0  ;;  %v7421_v18 = vpop.f32.mrf.mxu1  ;;  %8440 = vmatmul.mubr.f32.gmra.mxu1 %v1428_v11  ;;  %v542_v40 = vld [vmem:[%s10653_s26 + $0x720] sm:$0xff]  ;;  %v293_v11 = vld [vmem:[%s10663_s28 + $0x350] sm:$0xff] }
 0x53d   : > { %v7292_v19 = vadd.f32 %v7291_v14, %v12770_v63  ;;  %8314 = vmatprep.mubr.f32.mxu0 %v1554_v44  ;;  %8444 = vmatprep.mubr.f32.mxu1 %v1556_v57  ;;  %v296_v44 = vld [vmem:[%s10663_s28 + $0x368] sm:$0xff]  ;;  %v298_v57 = vld [vmem:[%s10663_s28 + $0x378] sm:$0xff] }
 0x53e   : > { %v7293_v17 = vpop.f32.mrf.mxu0  ;;  %v7423_v22 = vpop.f32.mrf.mxu1 }
 0x53f   : > { %v12865_v23 = vadd.f32 %v7421_v18, %v7292_v19  ;;  %v541_v18 = vld [vmem:[%s10653_s26 + $0x718] sm:$0xff]  ;;  %v543_v19 = vld [vmem:[%s10653_s26 + $0x728] sm:$0xff] }
 0x540   : > { %v7491_v28 = vpop.f32.mrf.mxu0  ;;  %8315 = vmatmul.mubr.f32.gmra.mxu0 %v1553_v21  ;;  %v7621_v25 = vpop.f32.mrf.mxu1  ;;  %8445 = vmatmul.mubr.f32.gmra.mxu1 %v1555_v16  ;;  %v669_v17 = vld [vmem:[%s10653_s26 + $0xb18] sm:$0xff]  ;;  %v671_v22 = vld [vmem:[%s10653_s26 + $0xb28] sm:$0xff] }
 0x541   : > { %v7492_v63 = vadd.f32 %v7491_v28, %v12777_v41  ;;  %8319 = vmatprep.mubr.f32.mxu0 %v1681_v26  ;;  %8449 = vmatprep.mubr.f32.mxu1 %v1683_v27 }
 0x542   : > { %v7493_v35 = vpop.f32.mrf.mxu0  ;;  %v7623_v36 = vpop.f32.mrf.mxu1 }
 0x543   : > { %v12872_v48 = vadd.f32 %v7621_v25, %v7492_v63  ;;  %v668_v25 = vld [vmem:[%s10653_s26 + $0xb10] sm:$0xff]  ;;  %v670_v63 = vld [vmem:[%s10653_s26 + $0xb20] sm:$0xff] }
 0x544   : > { %v7496_v7 = vpop.f32.mrf.mxu0  ;;  %8320 = vmatmul.mubr.f32.gmra.mxu0 %v1680_v20  ;;  %v7626_v42 = vpop.f32.mrf.mxu1  ;;  %8450 = vmatmul.mubr.f32.gmra.mxu1 %v1682_v29  ;;  %v796_v35 = vld [vmem:[%s10653_s26 + $0xf10] sm:$0xff]  ;;  %v798_v36 = vld [vmem:[%s10653_s26 + $0xf20] sm:$0xff] }
 0x545   : > { %v7497_v41 = vadd.f32 %v7496_v7, %v12784_v39  ;;  %8324 = vmatprep.mubr.f32.mxu0 %v1808_v33  ;;  %8454 = vmatprep.mubr.f32.mxu1 %v1810_v38 }
 0x546   : > { %v7498_v15 = vpop.f32.mrf.mxu0  ;;  %v7628_v30 = vpop.f32.mrf.mxu1 }
 0x547   : > { %v12879_v51 = vadd.f32 %v7626_v42, %v7497_v41  ;;  %v795_v42 = vld [vmem:[%s10653_s26 + $0xf08] sm:$0xff]  ;;  %v797_v41 = vld [vmem:[%s10653_s26 + $0xf18] sm:$0xff] }
 0x548   : > { %v7501_v52 = vpop.f32.mrf.mxu0  ;;  %8325 = vmatmul.mubr.f32.gmra.mxu0 %v1807_v43  ;;  %v7631_v47 = vpop.f32.mrf.mxu1  ;;  %8455 = vmatmul.mubr.f32.gmra.mxu1 %v1809_v45  ;;  %v923_v15 = vld [vmem:[%s10653_s26 + $0x1308] sm:$0xff]  ;;  %v925_v30 = vld [vmem:[%s10653_s26 + $0x1318] sm:$0xff] }
 0x549   : > { %v7502_v39 = vadd.f32 %v7501_v52, %v12791_v32  ;;  %8329 = vmatprep.mubr.f32.mxu0 %v1935_v49  ;;  %8459 = vmatprep.mubr.f32.mxu1 %v1937_v46 }
 0x54a   : > { %v7503_v55 = vpop.f32.mrf.mxu0  ;;  %v7633_v59 = vpop.f32.mrf.mxu1 }
 0x54b   : > { %v12886_v56 = vadd.f32 %v7631_v47, %v7502_v39  ;;  %v922_v47 = vld [vmem:[%s10653_s26 + $0x1300] sm:$0xff]  ;;  %v924_v39 = vld [vmem:[%s10653_s26 + $0x1310] sm:$0xff] }
 0x54c   : > { %v7506_v58 = vpop.f32.mrf.mxu0  ;;  %8330 = vmatmul.mubr.f32.gmra.mxu0 %v1934_v50  ;;  %v7636_v62 = vpop.f32.mrf.mxu1  ;;  %8460 = vmatmul.mubr.f32.gmra.mxu1 %v1936_v53  ;;  %v1050_v55 = vld [vmem:[%s10653_s26 + $0x1700] sm:$0xff]  ;;  %v1052_v59 = vld [vmem:[%s10653_s26 + $0x1710] sm:$0xff] }
 0x54d   : > { %v7507_v32 = vadd.f32 %v7506_v58, %v12798_v8  ;;  %8529 = vmatprep.mubr.f32.mxu0 %v415_v60  ;;  %8659 = vmatprep.mubr.f32.mxu1 %v417_v61 }
 0x54e   : > { %v7508_v4 = vpop.f32.mrf.mxu0  ;;  %v7638_v37 = vpop.f32.mrf.mxu1 }
 0x54f   : > { %v12893_v0 = vadd.f32 %v7636_v62, %v7507_v32  ;;  %v1049_v62 = vld [vmem:[%s10653_s26 + $0x16f8] sm:$0xff]  ;;  %v1051_v32 = vld [vmem:[%s10653_s26 + $0x1708] sm:$0xff] }
 0x550   : > { %v7511_v13 = vpop.f32.mrf.mxu0  ;;  %8530 = vmatmul.mubr.f32.vlgmr.msra.gmra.mxu0 %v414_v2  ;;  %v7641_v8 = vpop.f32.mrf.mxu1  ;;  %8660 = vmatmul.mubr.f32.vlgmr.msra.gmra.mxu1 %v416_v3  ;;  %v1177_v4 = vld [vmem:[%s10653_s26 + $0x1af8] sm:$0xff]  ;;  %v1179_v37 = vld [vmem:[%s10653_s26 + $0x1b08] sm:$0xff] }
 0x551   : > { %v7512_v14 = vadd.f32 %v7511_v13, %v12809_v6  ;;  %8756 = vmatpush1.xpose.msra.mxu0 %v291_v31  ;;  %8534 = vmatprep.mubr.f32.mxu0 %v542_v40  ;;  %v1178_v13 = vld [vmem:[%s10653_s26 + $0x1b00] sm:$0xff] }
 0x552   : > { %v7513_v21 = vpop.f32.mrf.mxu0  ;;  %v7643_v16 = vpop.f32.mrf.mxu1  ;;  %8886 = vmatpush1.xpose.msra.mxu1 %v293_v11  ;;  %8664 = vmatprep.mubr.f32.mxu1 %v544_v12  ;;  %v1176_v12 = vld [vmem:[%s10653_s26 + $0x1af0] sm:$0xff] }
 0x553   : > { %v12904_v26 = vadd.f32 %v7641_v8, %v7512_v14  ;;  %9015 = vmatprep.subr.mxu0 %v296_v44  ;;  %9145 = vmatprep.subr.mxu1 %v298_v57  ;;  %v1304_v57 = vld [vmem:[%s10653_s26 + $0x1ef0] sm:$0xff]  ;;  %v1306_v14 = vld [vmem:[%s10653_s26 + $0x1f00] sm:$0xff]  ;;  %v1303_v16 = vld [vmem:[%s10653_s26 + $0x1ee8] sm:$0xff] }
 0x554   : > { %v7516_v27 = vpop.f32.mrf.mxu0  ;;  %8535 = vmatmul.mubr.f32.gmra.mxu0 %v541_v18  ;;  %v7646_v6 = vpop.f32.mrf.mxu1  ;;  %8665 = vmatmul.mubr.f32.gmra.mxu1 %v543_v19 }
 0x555   : > { %v7517_v28 = vadd.f32 %v7516_v27, %v12816_v9  ;;  %8539 = vmatprep.mubr.f32.mxu0 %v669_v17  ;;  %8669 = vmatprep.mubr.f32.mxu1 %v671_v22  ;;  %v1305_v17 = vld [vmem:[%s10653_s26 + $0x1ef8] sm:$0xff] }
 0x556   : > { %v7518_v20 = vpop.f32.mrf.mxu0  ;;  %v7648_v29 = vpop.f32.mrf.mxu1 }
 0x557   : > { %v12911_v33 = vadd.f32 %v7646_v6, %v7517_v28  ;;  %v1431_v6 = vld [vmem:[%s10653_s26 + $0x22e8] sm:$0xff]  ;;  %v1433_v28 = vld [vmem:[%s10653_s26 + $0x22f8] sm:$0xff]  ;;  %v1430_v29 = vld [vmem:[%s10653_s26 + $0x22e0] sm:$0xff] }
 0x558   : > { %v7521_v38 = vpop.f32.mrf.mxu0  ;;  %8540 = vmatmul.mubr.f32.gmra.mxu0 %v668_v25  ;;  %v7651_v7 = vpop.f32.mrf.mxu1  ;;  %8670 = vmatmul.mubr.f32.gmra.mxu1 %v670_v63 }
 0x559   : > { %v7522_v9 = vadd.f32 %v7521_v38, %v12823_v24  ;;  %8544 = vmatprep.mubr.f32.mxu0 %v796_v35  ;;  %8674 = vmatprep.mubr.f32.mxu1 %v798_v36  ;;  %v1432_v35 = vld [vmem:[%s10653_s26 + $0x22f0] sm:$0xff] }
 0x55a   : > { %v7523_v43 = vpop.f32.mrf.mxu0  ;;  %v7653_v45 = vpop.f32.mrf.mxu1 }
 0x55b   : > { %v12918_v49 = vadd.f32 %v7651_v7, %v7522_v9  ;;  %v1558_v7 = vld [vmem:[%s10653_s26 + $0x26e0] sm:$0xff]  ;;  %v1560_v9 = vld [vmem:[%s10653_s26 + $0x26f0] sm:$0xff]  ;;  %v1557_v45 = vld [vmem:[%s10653_s26 + $0x26d8] sm:$0xff] }
 0x55c   : > { %v7526_v46 = vpop.f32.mrf.mxu0  ;;  %8545 = vmatmul.mubr.f32.gmra.mxu0 %v795_v42  ;;  %v7656_v52 = vpop.f32.mrf.mxu1  ;;  %8675 = vmatmul.mubr.f32.gmra.mxu1 %v797_v41 }
 0x55d   : > { %v7527_v24 = vadd.f32 %v7526_v46, %v12830_v34  ;;  %8549 = vmatprep.mubr.f32.mxu0 %v923_v15  ;;  %8679 = vmatprep.mubr.f32.mxu1 %v925_v30  ;;  %v1559_v15 = vld [vmem:[%s10653_s26 + $0x26e8] sm:$0xff] }
 0x55e   : > { %v7528_v50 = vpop.f32.mrf.mxu0  ;;  %v7658_v53 = vpop.f32.mrf.mxu1 }
 0x55f   : > { %v12925_v60 = vadd.f32 %v7656_v52, %v7527_v24  ;;  %v1685_v52 = vld [vmem:[%s10653_s26 + $0x2ad8] sm:$0xff]  ;;  %v1687_v24 = vld [vmem:[%s10653_s26 + $0x2ae8] sm:$0xff]  ;;  %v1684_v53 = vld [vmem:[%s10653_s26 + $0x2ad0] sm:$0xff] }
 0x560   : > { %v7531_v61 = vpop.f32.mrf.mxu0  ;;  %8550 = vmatmul.mubr.f32.gmra.mxu0 %v922_v47  ;;  %v7661_v58 = vpop.f32.mrf.mxu1  ;;  %8680 = vmatmul.mubr.f32.gmra.mxu1 %v924_v39 }
 0x561   : > { %v7532_v34 = vadd.f32 %v7531_v61, %v12837_v5  ;;  %8554 = vmatprep.mubr.f32.mxu0 %v1050_v55  ;;  %8684 = vmatprep.mubr.f32.mxu1 %v1052_v59  ;;  %v1686_v55 = vld [vmem:[%s10653_s26 + $0x2ae0] sm:$0xff] }
 0x562   : > { %v7533_v2 = vpop.f32.mrf.mxu0  ;;  %v7663_v3 = vpop.f32.mrf.mxu1 }
 0x563   : > { %v12932_v31 = vadd.f32 %v7661_v58, %v7532_v34  ;;  %v1812_v58 = vld [vmem:[%s10653_s26 + $0x2ed0] sm:$0xff]  ;;  %v1814_v34 = vld [vmem:[%s10653_s26 + $0x2ee0] sm:$0xff]  ;;  %v1811_v3 = vld [vmem:[%s10653_s26 + $0x2ec8] sm:$0xff] }
 0x564   : > { %v7536_v40 = vpop.f32.mrf.mxu0  ;;  %8555 = vmatmul.mubr.f32.gmra.mxu0 %v1049_v62  ;;  %v7666_v11 = vpop.f32.mrf.mxu1  ;;  %8685 = vmatmul.mubr.f32.gmra.mxu1 %v1051_v32 }
 0x565   : > { %v7537_v5 = vadd.f32 %v7536_v40, %v12844_v54  ;;  %8559 = vmatprep.mubr.f32.mxu0 %v1177_v4  ;;  %8689 = vmatprep.mubr.f32.mxu1 %v1179_v37  ;;  %v1813_v4 = vld [vmem:[%s10653_s26 + $0x2ed8] sm:$0xff] }
 0x566   : > { %v7538_v8 = vpop.f32.mrf.mxu0  ;;  %v7668_v44 = vpop.f32.mrf.mxu1 }
 0x567   : > { %v12939_v18 = vadd.f32 %v7666_v11, %v7537_v5  ;;  %v1939_v11 = vld [vmem:[%s10653_s26 + $0x32c8] sm:$0xf]  ;;  %v1941_v5 = vld [vmem:[%s10653_s26 + $0x32d8] sm:$0xf]  ;;  %v1938_v44 = vld [vmem:[%s10653_s26 + $0x32c0] sm:$0xf] }
 0x568   : > { %v7541_v19 = vpop.f32.mrf.mxu0  ;;  %8560 = vmatmul.mubr.f32.gmra.mxu0 %v1176_v12  ;;  %v7671_v21 = vpop.f32.mrf.mxu1  ;;  %8690 = vmatmul.mubr.f32.gmra.mxu1 %v1178_v13 }
 0x569   : > { %v7542_v54 = vadd.f32 %v7541_v19, %v12851_v1  ;;  %8564 = vmatprep.mubr.f32.mxu0 %v1304_v57  ;;  %8694 = vmatprep.mubr.f32.mxu1 %v1306_v14  ;;  %v1940_v57 = vld [vmem:[%s10653_s26 + $0x32d0] sm:$0xf] }
 0x56a   : > { %v7543_v22 = vpop.f32.mrf.mxu0  ;;  %v7673_v27 = vpop.f32.mrf.mxu1 }
 0x56b   : > { %v12946_v25 = vadd.f32 %v7671_v21, %v7542_v54  ;;  %v419_v21 = vld [vmem:[%s10653_s26 + $0x348] sm:$0xff]  ;;  %v421_v54 = vld [vmem:[%s10653_s26 + $0x358] sm:$0xff]  ;;  %v418_v27 = vld [vmem:[%s10653_s26 + $0x340] sm:$0xff] }
 0x56c   : > { %v7546_v63 = vpop.f32.mrf.mxu0  ;;  %8565 = vmatmul.mubr.f32.gmra.mxu0 %v1303_v16  ;;  %v7676_v20 = vpop.f32.mrf.mxu1  ;;  %8695 = vmatmul.mubr.f32.gmra.mxu1 %v1305_v17 }
 0x56d   : > { %v7547_v1 = vadd.f32 %v7546_v63, %v12858_v10  ;;  %8569 = vmatprep.mubr.f32.mxu0 %v1431_v6  ;;  %8699 = vmatprep.mubr.f32.mxu1 %v1433_v28  ;;  %v420_v6 = vld [vmem:[%s10653_s26 + $0x350] sm:$0xff] }
 0x56e   : > { %v7548_v36 = vpop.f32.mrf.mxu0  ;;  %v7678_v38 = vpop.f32.mrf.mxu1 }
 0x56f   : > { %v12953_v42 = vadd.f32 %v7676_v20, %v7547_v1  ;;  %v295_v20 = vld [vmem:[%s10663_s28 + $0x360] sm:$0xff]  ;;  %v548_v36 = vld [vmem:[%s10653_s26 + $0x750] sm:$0xff] }
 0x570   : > { %v7551_v41 = vpop.f32.mrf.mxu0  ;;  %8570 = vmatmul.mubr.f32.gmra.mxu0 %v1430_v29  ;;  %v7681_v43 = vpop.f32.mrf.mxu1  ;;  %8700 = vmatmul.mubr.f32.gmra.mxu1 %v1432_v35  ;;  %v546_v1 = vld [vmem:[%s10653_s26 + $0x740] sm:$0xff]  ;;  %v297_v35 = vld [vmem:[%s10663_s28 + $0x370] sm:$0xff] }
 0x571   : > { %v7552_v10 = vadd.f32 %v7551_v41, %v12865_v23  ;;  %8574 = vmatprep.mubr.f32.mxu0 %v1558_v7  ;;  %8704 = vmatprep.mubr.f32.mxu1 %v1560_v9  ;;  %v300_v7 = vld [vmem:[%s10663_s28 + $0x388] sm:$0xff]  ;;  %v302_v9 = vld [vmem:[%s10663_s28 + $0x398] sm:$0xff] }
 0x572   : > { %v7553_v30 = vpop.f32.mrf.mxu0  ;;  %v7683_v46 = vpop.f32.mrf.mxu1 }
 0x573   : > { %v12960_v47 = vadd.f32 %v7681_v43, %v7552_v10  ;;  %v545_v43 = vld [vmem:[%s10653_s26 + $0x738] sm:$0xff]  ;;  %v547_v10 = vld [vmem:[%s10653_s26 + $0x748] sm:$0xff] }
 0x574   : > { %v7751_v39 = vpop.f32.mrf.mxu0  ;;  %8575 = vmatmul.mubr.f32.gmra.mxu0 %v1557_v45  ;;  %v7881_v50 = vpop.f32.mrf.mxu1  ;;  %8705 = vmatmul.mubr.f32.gmra.mxu1 %v1559_v15  ;;  %v673_v30 = vld [vmem:[%s10653_s26 + $0xb38] sm:$0xff]  ;;  %v675_v46 = vld [vmem:[%s10653_s26 + $0xb48] sm:$0xff] }
 0x575   : > { %v7752_v23 = vadd.f32 %v7751_v39, %v12872_v48  ;;  %8579 = vmatprep.mubr.f32.mxu0 %v1685_v52  ;;  %8709 = vmatprep.mubr.f32.mxu1 %v1687_v24 }
 0x576   : > { %v7753_v59 = vpop.f32.mrf.mxu0  ;;  %v7883_v61 = vpop.f32.mrf.mxu1 }
 0x577   : > { %v12967_v62 = vadd.f32 %v7881_v50, %v7752_v23  ;;  %v672_v50 = vld [vmem:[%s10653_s26 + $0xb30] sm:$0xff]  ;;  %v674_v23 = vld [vmem:[%s10653_s26 + $0xb40] sm:$0xff] }
 0x578   : > { %v7756_v32 = vpop.f32.mrf.mxu0  ;;  %8580 = vmatmul.mubr.f32.gmra.mxu0 %v1684_v53  ;;  %v7886_v2 = vpop.f32.mrf.mxu1  ;;  %8710 = vmatmul.mubr.f32.gmra.mxu1 %v1686_v55  ;;  %v800_v59 = vld [vmem:[%s10653_s26 + $0xf30] sm:$0xff]  ;;  %v802_v61 = vld [vmem:[%s10653_s26 + $0xf40] sm:$0xff] }
 0x579   : > { %v7757_v48 = vadd.f32 %v7756_v32, %v12879_v51  ;;  %8584 = vmatprep.mubr.f32.mxu0 %v1812_v58  ;;  %8714 = vmatprep.mubr.f32.mxu1 %v1814_v34 }
 0x57a   : > { %v7758_v37 = vpop.f32.mrf.mxu0  ;;  %v7888_v40 = vpop.f32.mrf.mxu1 }
 0x57b   : > { %v12974_v12 = vadd.f32 %v7886_v2, %v7757_v48  ;;  %v799_v2 = vld [vmem:[%s10653_s26 + $0xf28] sm:$0xff]  ;;  %v801_v48 = vld [vmem:[%s10653_s26 + $0xf38] sm:$0xff] }
 0x57c   : > { %v7761_v13 = vpop.f32.mrf.mxu0  ;;  %8585 = vmatmul.mubr.f32.gmra.mxu0 %v1811_v3  ;;  %v7891_v8 = vpop.f32.mrf.mxu1  ;;  %8715 = vmatmul.mubr.f32.gmra.mxu1 %v1813_v4  ;;  %v927_v37 = vld [vmem:[%s10653_s26 + $0x1328] sm:$0xff]  ;;  %v929_v40 = vld [vmem:[%s10653_s26 + $0x1338] sm:$0xff] }
 0x57d   : > { %v7762_v51 = vadd.f32 %v7761_v13, %v12886_v56  ;;  %8589 = vmatprep.mubr.f32.mxu0 %v1939_v11  ;;  %8719 = vmatprep.mubr.f32.mxu1 %v1941_v5 }
 0x57e   : > { %v7763_v14 = vpop.f32.mrf.mxu0  ;;  %v7893_v19 = vpop.f32.mrf.mxu1 }
 0x57f   : > { %v12981_v16 = vadd.f32 %v7891_v8, %v7762_v51  ;;  %v926_v8 = vld [vmem:[%s10653_s26 + $0x1320] sm:$0xff]  ;;  %v928_v51 = vld [vmem:[%s10653_s26 + $0x1330] sm:$0xff] }
 0x580   : > { %v7766_v17 = vpop.f32.mrf.mxu0  ;;  %8590 = vmatmul.mubr.f32.gmra.mxu0 %v1938_v44  ;;  %v7896_v22 = vpop.f32.mrf.mxu1  ;;  %8720 = vmatmul.mubr.f32.gmra.mxu1 %v1940_v57  ;;  %v1054_v14 = vld [vmem:[%s10653_s26 + $0x1720] sm:$0xff]  ;;  %v1056_v19 = vld [vmem:[%s10653_s26 + $0x1730] sm:$0xff] }
 0x581   : > { %v7767_v56 = vadd.f32 %v7766_v17, %v12893_v0  ;;  %8789 = vmatprep.mubr.f32.mxu0 %v419_v21  ;;  %8919 = vmatprep.mubr.f32.mxu1 %v421_v54 }
 0x582   : > { %v7768_v28 = vpop.f32.mrf.mxu0  ;;  %v7898_v63 = vpop.f32.mrf.mxu1 }
 0x583   : > { %v12988_v29 = vadd.f32 %v7896_v22, %v7767_v56  ;;  %v1053_v22 = vld [vmem:[%s10653_s26 + $0x1718] sm:$0xff]  ;;  %v1055_v56 = vld [vmem:[%s10653_s26 + $0x1728] sm:$0xff] }
 0x584   : > { %v7771_v38 = vpop.f32.mrf.mxu0  ;;  %8790 = vmatmul.mubr.f32.vlgmr.msra.gmra.mxu0 %v418_v27  ;;  %v7901_v0 = vpop.f32.mrf.mxu1  ;;  %8920 = vmatmul.mubr.f32.vlgmr.msra.gmra.mxu1 %v420_v6  ;;  %v1181_v28 = vld [vmem:[%s10653_s26 + $0x1b18] sm:$0xff]  ;;  %v1183_v63 = vld [vmem:[%s10653_s26 + $0x1b28] sm:$0xff] }
 0x585   : > { %v7772_v41 = vadd.f32 %v7771_v38, %v12904_v26  ;;  %9016 = vmatpush1.xpose.msra.mxu0 %v295_v20  ;;  %8794 = vmatprep.mubr.f32.mxu0 %v546_v1  ;;  %v1182_v38 = vld [vmem:[%s10653_s26 + $0x1b20] sm:$0xff] }
 0x586   : > { %v7773_v45 = vpop.f32.mrf.mxu0  ;;  %v7903_v15 = vpop.f32.mrf.mxu1  ;;  %9146 = vmatpush1.xpose.msra.mxu1 %v297_v35  ;;  %8924 = vmatprep.mubr.f32.mxu1 %v548_v36  ;;  %v1180_v36 = vld [vmem:[%s10653_s26 + $0x1b10] sm:$0xff] }
 0x587   : > { %v12999_v52 = vadd.f32 %v7901_v0, %v7772_v41  ;;  %9275 = vmatprep.subr.mxu0 %v300_v7  ;;  %9405 = vmatprep.subr.mxu1 %v302_v9  ;;  %v1308_v9 = vld [vmem:[%s10653_s26 + $0x1f10] sm:$0xff]  ;;  %v1310_v41 = vld [vmem:[%s10653_s26 + $0x1f20] sm:$0xff]  ;;  %v1307_v15 = vld [vmem:[%s10653_s26 + $0x1f08] sm:$0xff] }
 0x588   : > { %v7776_v24 = vpop.f32.mrf.mxu0  ;;  %8795 = vmatmul.mubr.f32.gmra.mxu0 %v545_v43  ;;  %v7906_v26 = vpop.f32.mrf.mxu1  ;;  %8925 = vmatmul.mubr.f32.gmra.mxu1 %v547_v10 }
 0x589   : > { %v7777_v39 = vadd.f32 %v7776_v24, %v12911_v33  ;;  %8799 = vmatprep.mubr.f32.mxu0 %v673_v30  ;;  %8929 = vmatprep.mubr.f32.mxu1 %v675_v46  ;;  %v1309_v30 = vld [vmem:[%s10653_s26 + $0x1f18] sm:$0xff] }
 0x58a   : > { %v7778_v53 = vpop.f32.mrf.mxu0  ;;  %v7908_v55 = vpop.f32.mrf.mxu1 }
 0x58b   : > { %v13006_v58 = vadd.f32 %v7906_v26, %v7777_v39  ;;  %v1435_v26 = vld [vmem:[%s10653_s26 + $0x2308] sm:$0xff]  ;;  %v1437_v39 = vld [vmem:[%s10653_s26 + $0x2318] sm:$0xff]  ;;  %v1434_v55 = vld [vmem:[%s10653_s26 + $0x2300] sm:$0xff] }
 0x58c   : > { %v7781_v34 = vpop.f32.mrf.mxu0  ;;  %8800 = vmatmul.mubr.f32.gmra.mxu0 %v672_v50  ;;  %v7911_v32 = vpop.f32.mrf.mxu1  ;;  %8930 = vmatmul.mubr.f32.gmra.mxu1 %v674_v23 }
 0x58d   : > { %v7782_v33 = vadd.f32 %v7781_v34, %v12918_v49  ;;  %8804 = vmatprep.mubr.f32.mxu0 %v800_v59  ;;  %8934 = vmatprep.mubr.f32.mxu1 %v802_v61  ;;  %v1436_v59 = vld [vmem:[%s10653_s26 + $0x2310] sm:$0xff] }
 0x58e   : > { %v7783_v3 = vpop.f32.mrf.mxu0  ;;  %v7913_v4 = vpop.f32.mrf.mxu1 }
 0x58f   : > { %v13013_v11 = vadd.f32 %v7911_v32, %v7782_v33  ;;  %v1562_v32 = vld [vmem:[%s10653_s26 + $0x2700] sm:$0xff]  ;;  %v1564_v33 = vld [vmem:[%s10653_s26 + $0x2710] sm:$0xff]  ;;  %v1561_v4 = vld [vmem:[%s10653_s26 + $0x26f8] sm:$0xff] }
 0x590   : > { %v7786_v5 = vpop.f32.mrf.mxu0  ;;  %8805 = vmatmul.mubr.f32.gmra.mxu0 %v799_v2  ;;  %v7916_v13 = vpop.f32.mrf.mxu1  ;;  %8935 = vmatmul.mubr.f32.gmra.mxu1 %v801_v48 }
 0x591   : > { %v7787_v49 = vadd.f32 %v7786_v5, %v12925_v60  ;;  %8809 = vmatprep.mubr.f32.mxu0 %v927_v37  ;;  %8939 = vmatprep.mubr.f32.mxu1 %v929_v40  ;;  %v1563_v37 = vld [vmem:[%s10653_s26 + $0x2708] sm:$0xff] }
 0x592   : > { %v7788_v44 = vpop.f32.mrf.mxu0  ;;  %v7918_v57 = vpop.f32.mrf.mxu1 }
 0x593   : > { %v13020_v21 = vadd.f32 %v7916_v13, %v7787_v49  ;;  %v1689_v13 = vld [vmem:[%s10653_s26 + $0x2af8] sm:$0xff]  ;;  %v1691_v49 = vld [vmem:[%s10653_s26 + $0x2b08] sm:$0xff]  ;;  %v1688_v57 = vld [vmem:[%s10653_s26 + $0x2af0] sm:$0xff] }
 0x594   : > { %v7791_v54 = vpop.f32.mrf.mxu0  ;;  %8810 = vmatmul.mubr.f32.gmra.mxu0 %v926_v8  ;;  %v7921_v17 = vpop.f32.mrf.mxu1  ;;  %8940 = vmatmul.mubr.f32.gmra.mxu1 %v928_v51 }
 0x595   : > { %v7792_v60 = vadd.f32 %v7791_v54, %v12932_v31  ;;  %8814 = vmatprep.mubr.f32.mxu0 %v1054_v14  ;;  %8944 = vmatprep.mubr.f32.mxu1 %v1056_v19  ;;  %v1690_v14 = vld [vmem:[%s10653_s26 + $0x2b00] sm:$0xff] }
 0x596   : > { %v7793_v27 = vpop.f32.mrf.mxu0  ;;  %v7923_v6 = vpop.f32.mrf.mxu1 }
 0x597   : > { %v13027_v20 = vadd.f32 %v7921_v17, %v7792_v60  ;;  %v1816_v17 = vld [vmem:[%s10653_s26 + $0x2ef0] sm:$0xff]  ;;  %v1818_v60 = vld [vmem:[%s10653_s26 + $0x2f00] sm:$0xff]  ;;  %v1815_v6 = vld [vmem:[%s10653_s26 + $0x2ee8] sm:$0xff] }
 0x598   : > { %v7796_v1 = vpop.f32.mrf.mxu0  ;;  %8815 = vmatmul.mubr.f32.gmra.mxu0 %v1053_v22  ;;  %v7926_v35 = vpop.f32.mrf.mxu1  ;;  %8945 = vmatmul.mubr.f32.gmra.mxu1 %v1055_v56 }
 0x599   : > { %v7797_v31 = vadd.f32 %v7796_v1, %v12939_v18  ;;  %8819 = vmatprep.mubr.f32.mxu0 %v1181_v28  ;;  %8949 = vmatprep.mubr.f32.mxu1 %v1183_v63  ;;  %v1817_v28 = vld [vmem:[%s10653_s26 + $0x2ef8] sm:$0xff] }
 0x59a   : > { %v7798_v0 = vpop.f32.mrf.mxu0  ;;  %v7928_v7 = vpop.f32.mrf.mxu1 }
 0x59b   : > { %v13034_v43 = vadd.f32 %v7926_v35, %v7797_v31  ;;  %v1943_v35 = vld [vmem:[%s10653_s26 + $0x32e8] sm:$0xf]  ;;  %v1945_v31 = vld [vmem:[%s10653_s26 + $0x32f8] sm:$0xf]  ;;  %v1942_v7 = vld [vmem:[%s10653_s26 + $0x32e0] sm:$0xf] }
 0x59c   : > { %v7801_v10 = vpop.f32.mrf.mxu0  ;;  %8820 = vmatmul.mubr.f32.gmra.mxu0 %v1180_v36  ;;  %v7931_v45 = vpop.f32.mrf.mxu1  ;;  %8950 = vmatmul.mubr.f32.gmra.mxu1 %v1182_v38 }
 0x59d   : > { %v7802_v18 = vadd.f32 %v7801_v10, %v12946_v25  ;;  %8824 = vmatprep.mubr.f32.mxu0 %v1308_v9  ;;  %8954 = vmatprep.mubr.f32.mxu1 %v1310_v41  ;;  %v1944_v9 = vld [vmem:[%s10653_s26 + $0x32f0] sm:$0xf] }
 0x59e   : > { %v7803_v46 = vpop.f32.mrf.mxu0  ;;  %v7933_v24 = vpop.f32.mrf.mxu1 }
 0x59f   : > { %v13041_v50 = vadd.f32 %v7931_v45, %v7802_v18  ;;  %v423_v45 = vld [vmem:[%s10653_s26 + $0x368] sm:$0xff]  ;;  %v425_v18 = vld [vmem:[%s10653_s26 + $0x378] sm:$0xff]  ;;  %v422_v24 = vld [vmem:[%s10653_s26 + $0x360] sm:$0xff] }
 0x5a0   : > { %v7806_v23 = vpop.f32.mrf.mxu0  ;;  %8825 = vmatmul.mubr.f32.gmra.mxu0 %v1307_v15  ;;  %v7936_v53 = vpop.f32.mrf.mxu1  ;;  %8955 = vmatmul.mubr.f32.gmra.mxu1 %v1309_v30 }
 0x5a1   : > { %v7807_v25 = vadd.f32 %v7806_v23, %v12953_v42  ;;  %8829 = vmatprep.mubr.f32.mxu0 %v1435_v26  ;;  %8959 = vmatprep.mubr.f32.mxu1 %v1437_v39  ;;  %v424_v26 = vld [vmem:[%s10653_s26 + $0x370] sm:$0xff] }
 0x5a2   : > { %v7808_v61 = vpop.f32.mrf.mxu0  ;;  %v7938_v34 = vpop.f32.mrf.mxu1 }
 0x5a3   : > { %v13048_v2 = vadd.f32 %v7936_v53, %v7807_v25  ;;  %v299_v53 = vld [vmem:[%s10663_s28 + $0x380] sm:$0xff]  ;;  %v552_v61 = vld [vmem:[%s10653_s26 + $0x770] sm:$0xff] }
 0x5a4   : > { %v7811_v48 = vpop.f32.mrf.mxu0  ;;  %8830 = vmatmul.mubr.f32.gmra.mxu0 %v1434_v55  ;;  %v7941_v3 = vpop.f32.mrf.mxu1  ;;  %8960 = vmatmul.mubr.f32.gmra.mxu1 %v1436_v59  ;;  %v550_v25 = vld [vmem:[%s10653_s26 + $0x760] sm:$0xff]  ;;  %v301_v59 = vld [vmem:[%s10663_s28 + $0x390] sm:$0xff] }
 0x5a5   : > { %v7812_v42 = vadd.f32 %v7811_v48, %v12960_v47  ;;  %8834 = vmatprep.mubr.f32.mxu0 %v1562_v32  ;;  %8964 = vmatprep.mubr.f32.mxu1 %v1564_v33  ;;  %v304_v32 = vld [vmem:[%s10663_s28 + $0x3a8] sm:$0xff]  ;;  %v306_v33 = vld [vmem:[%s10663_s28 + $0x3b8] sm:$0xff] }
 0x5a6   : > { %v7813_v40 = vpop.f32.mrf.mxu0  ;;  %v7943_v5 = vpop.f32.mrf.mxu1 }
 0x5a7   : > { %v13055_v8 = vadd.f32 %v7941_v3, %v7812_v42  ;;  %v549_v3 = vld [vmem:[%s10653_s26 + $0x758] sm:$0xff]  ;;  %v551_v42 = vld [vmem:[%s10653_s26 + $0x768] sm:$0xff] }
 0x5a8   : > { %v8011_v51 = vpop.f32.mrf.mxu0  ;;  %8835 = vmatmul.mubr.f32.gmra.mxu0 %v1561_v4  ;;  %v8141_v44 = vpop.f32.mrf.mxu1  ;;  %8965 = vmatmul.mubr.f32.gmra.mxu1 %v1563_v37  ;;  %v677_v40 = vld [vmem:[%s10653_s26 + $0xb58] sm:$0xff]  ;;  %v679_v5 = vld [vmem:[%s10653_s26 + $0xb68] sm:$0xff] }
 0x5a9   : > { %v8012_v47 = vadd.f32 %v8011_v51, %v12967_v62  ;;  %8839 = vmatprep.mubr.f32.mxu0 %v1689_v13  ;;  %8969 = vmatprep.mubr.f32.mxu1 %v1691_v49 }
 0x5aa   : > { %v8013_v19 = vpop.f32.mrf.mxu0  ;;  %v8143_v54 = vpop.f32.mrf.mxu1 }
 0x5ab   : > { %v13062_v22 = vadd.f32 %v8141_v44, %v8012_v47  ;;  %v676_v44 = vld [vmem:[%s10653_s26 + $0xb50] sm:$0xff]  ;;  %v678_v47 = vld [vmem:[%s10653_s26 + $0xb60] sm:$0xff] }
 0x5ac   : > { %v8016_v56 = vpop.f32.mrf.mxu0  ;;  %8840 = vmatmul.mubr.f32.gmra.mxu0 %v1688_v57  ;;  %v8146_v27 = vpop.f32.mrf.mxu1  ;;  %8970 = vmatmul.mubr.f32.gmra.mxu1 %v1690_v14  ;;  %v804_v19 = vld [vmem:[%s10653_s26 + $0xf50] sm:$0xff]  ;;  %v806_v54 = vld [vmem:[%s10653_s26 + $0xf60] sm:$0xff] }
 0x5ad   : > { %v8017_v62 = vadd.f32 %v8016_v56, %v12974_v12  ;;  %8844 = vmatprep.mubr.f32.mxu0 %v1816_v17  ;;  %8974 = vmatprep.mubr.f32.mxu1 %v1818_v60 }
 0x5ae   : > { %v8018_v63 = vpop.f32.mrf.mxu0  ;;  %v8148_v1 = vpop.f32.mrf.mxu1 }
 0x5af   : > { %v13069_v36 = vadd.f32 %v8146_v27, %v8017_v62  ;;  %v803_v27 = vld [vmem:[%s10653_s26 + $0xf48] sm:$0xff]  ;;  %v805_v62 = vld [vmem:[%s10653_s26 + $0xf58] sm:$0xff] }
 0x5b0   : > { %v8021_v38 = vpop.f32.mrf.mxu0  ;;  %8845 = vmatmul.mubr.f32.gmra.mxu0 %v1815_v6  ;;  %v8151_v0 = vpop.f32.mrf.mxu1  ;;  %8975 = vmatmul.mubr.f32.gmra.mxu1 %v1817_v28  ;;  %v931_v63 = vld [vmem:[%s10653_s26 + $0x1348] sm:$0xff]  ;;  %v933_v1 = vld [vmem:[%s10653_s26 + $0x1358] sm:$0xff] }
 0x5b1   : > { %v8022_v12 = vadd.f32 %v8021_v38, %v12981_v16  ;;  %8849 = vmatprep.mubr.f32.mxu0 %v1943_v35  ;;  %8979 = vmatprep.mubr.f32.mxu1 %v1945_v31 }
 0x5b2   : > { %v8023_v41 = vpop.f32.mrf.mxu0  ;;  %v8153_v10 = vpop.f32.mrf.mxu1 }
 0x5b3   : > { %v13076_v15 = vadd.f32 %v8151_v0, %v8022_v12  ;;  %v930_v0 = vld [vmem:[%s10653_s26 + $0x1340] sm:$0xff]  ;;  %v932_v12 = vld [vmem:[%s10653_s26 + $0x1350] sm:$0xff] }
 0x5b4   : > { %v8026_v30 = vpop.f32.mrf.mxu0  ;;  %8850 = vmatmul.mubr.f32.gmra.mxu0 %v1942_v7  ;;  %v8156_v46 = vpop.f32.mrf.mxu1  ;;  %8980 = vmatmul.mubr.f32.gmra.mxu1 %v1944_v9  ;;  %v1058_v41 = vld [vmem:[%s10653_s26 + $0x1740] sm:$0xff]  ;;  %v1060_v10 = vld [vmem:[%s10653_s26 + $0x1750] sm:$0xff] }
 0x5b5   : > { %v8027_v16 = vadd.f32 %v8026_v30, %v12988_v29  ;;  %9049 = vmatprep.mubr.f32.mxu0 %v423_v45  ;;  %9179 = vmatprep.mubr.f32.mxu1 %v425_v18 }
 0x5b6   : > { %v8028_v39 = vpop.f32.mrf.mxu0  ;;  %v8158_v23 = vpop.f32.mrf.mxu1 }
 0x5b7   : > { %v13083_v55 = vadd.f32 %v8156_v46, %v8027_v16  ;;  %v1057_v46 = vld [vmem:[%s10653_s26 + $0x1738] sm:$0xff]  ;;  %v1059_v16 = vld [vmem:[%s10653_s26 + $0x1748] sm:$0xff] }
 0x5b8   : > { %v8031_v34 = vpop.f32.mrf.mxu0  ;;  %9050 = vmatmul.mubr.f32.vlgmr.msra.gmra.mxu0 %v422_v24  ;;  %v8161_v29 = vpop.f32.mrf.mxu1  ;;  %9180 = vmatmul.mubr.f32.vlgmr.msra.gmra.mxu1 %v424_v26  ;;  %v1185_v39 = vld [vmem:[%s10653_s26 + $0x1b38] sm:$0xff]  ;;  %v1187_v23 = vld [vmem:[%s10653_s26 + $0x1b48] sm:$0xff] }
 0x5b9   : > { %v8032_v48 = vadd.f32 %v8031_v34, %v12999_v52  ;;  %9276 = vmatpush1.xpose.msra.mxu0 %v299_v53  ;;  %9054 = vmatprep.mubr.f32.mxu0 %v550_v25  ;;  %v1186_v34 = vld [vmem:[%s10653_s26 + $0x1b40] sm:$0xff] }
 0x5ba   : > { %v8033_v4 = vpop.f32.mrf.mxu0  ;;  %v8163_v37 = vpop.f32.mrf.mxu1  ;;  %9406 = vmatpush1.xpose.msra.mxu1 %v301_v59  ;;  %9184 = vmatprep.mubr.f32.mxu1 %v552_v61  ;;  %v1184_v61 = vld [vmem:[%s10653_s26 + $0x1b30] sm:$0xff] }
 0x5bb   : > { %v13094_v13 = vadd.f32 %v8161_v29, %v8032_v48  ;;  %9535 = vmatprep.subr.mxu0 %v304_v32  ;;  %9665 = vmatprep.subr.mxu1 %v306_v33  ;;  %v1312_v33 = vld [vmem:[%s10653_s26 + $0x1f30] sm:$0xff]  ;;  %v1314_v48 = vld [vmem:[%s10653_s26 + $0x1f40] sm:$0xff]  ;;  %v1311_v37 = vld [vmem:[%s10653_s26 + $0x1f28] sm:$0xff] }
 0x5bc   : > { %v8036_v49 = vpop.f32.mrf.mxu0  ;;  %9055 = vmatmul.mubr.f32.gmra.mxu0 %v549_v3  ;;  %v8166_v52 = vpop.f32.mrf.mxu1  ;;  %9185 = vmatmul.mubr.f32.gmra.mxu1 %v551_v42 }
 0x5bd   : > { %v8037_v51 = vadd.f32 %v8036_v49, %v13006_v58  ;;  %9059 = vmatprep.mubr.f32.mxu0 %v677_v40  ;;  %9189 = vmatprep.mubr.f32.mxu1 %v679_v5  ;;  %v1313_v40 = vld [vmem:[%s10653_s26 + $0x1f38] sm:$0xff] }
 0x5be   : > { %v8038_v57 = vpop.f32.mrf.mxu0  ;;  %v8168_v14 = vpop.f32.mrf.mxu1 }
 0x5bf   : > { %v13101_v17 = vadd.f32 %v8166_v52, %v8037_v51  ;;  %v1439_v52 = vld [vmem:[%s10653_s26 + $0x2328] sm:$0xff]  ;;  %v1441_v51 = vld [vmem:[%s10653_s26 + $0x2338] sm:$0xff]  ;;  %v1438_v14 = vld [vmem:[%s10653_s26 + $0x2320] sm:$0xff] }
 0x5c0   : > { %v8041_v60 = vpop.f32.mrf.mxu0  ;;  %9060 = vmatmul.mubr.f32.gmra.mxu0 %v676_v44  ;;  %v8171_v56 = vpop.f32.mrf.mxu1  ;;  %9190 = vmatmul.mubr.f32.gmra.mxu1 %v678_v47 }
 0x5c1   : > { %v8042_v58 = vadd.f32 %v8041_v60, %v13013_v11  ;;  %9064 = vmatprep.mubr.f32.mxu0 %v804_v19  ;;  %9194 = vmatprep.mubr.f32.mxu1 %v806_v54  ;;  %v1440_v19 = vld [vmem:[%s10653_s26 + $0x2330] sm:$0xff] }
 0x5c2   : > { %v8043_v6 = vpop.f32.mrf.mxu0  ;;  %v8173_v28 = vpop.f32.mrf.mxu1 }
 0x5c3   : > { %v13108_v35 = vadd.f32 %v8171_v56, %v8042_v58  ;;  %v1566_v56 = vld [vmem:[%s10653_s26 + $0x2720] sm:$0xff]  ;;  %v1568_v58 = vld [vmem:[%s10653_s26 + $0x2730] sm:$0xff]  ;;  %v1565_v28 = vld [vmem:[%s10653_s26 + $0x2718] sm:$0xff] }
 0x5c4   : > { %v8046_v31 = vpop.f32.mrf.mxu0  ;;  %9065 = vmatmul.mubr.f32.gmra.mxu0 %v803_v27  ;;  %v8176_v38 = vpop.f32.mrf.mxu1  ;;  %9195 = vmatmul.mubr.f32.gmra.mxu1 %v805_v62 }
 0x5c5   : > { %v8047_v11 = vadd.f32 %v8046_v31, %v13020_v21  ;;  %9069 = vmatprep.mubr.f32.mxu0 %v931_v63  ;;  %9199 = vmatprep.mubr.f32.mxu1 %v933_v1  ;;  %v1567_v63 = vld [vmem:[%s10653_s26 + $0x2728] sm:$0xff] }
 0x5c6   : > { %v8048_v7 = vpop.f32.mrf.mxu0  ;;  %v8178_v9 = vpop.f32.mrf.mxu1 }
 0x5c7   : > { %v13115_v45 = vadd.f32 %v8176_v38, %v8047_v11  ;;  %v1693_v38 = vld [vmem:[%s10653_s26 + $0x2b18] sm:$0xff]  ;;  %v1695_v11 = vld [vmem:[%s10653_s26 + $0x2b28] sm:$0xff]  ;;  %v1692_v9 = vld [vmem:[%s10653_s26 + $0x2b10] sm:$0xff] }
 0x5c8   : > { %v8051_v18 = vpop.f32.mrf.mxu0  ;;  %9070 = vmatmul.mubr.f32.gmra.mxu0 %v930_v0  ;;  %v8181_v30 = vpop.f32.mrf.mxu1  ;;  %9200 = vmatmul.mubr.f32.gmra.mxu1 %v932_v12 }
 0x5c9   : > { %v8052_v21 = vadd.f32 %v8051_v18, %v13027_v20  ;;  %9074 = vmatprep.mubr.f32.mxu0 %v1058_v41  ;;  %9204 = vmatprep.mubr.f32.mxu1 %v1060_v10  ;;  %v1694_v41 = vld [vmem:[%s10653_s26 + $0x2b20] sm:$0xff] }
 0x5ca   : > { %v8053_v24 = vpop.f32.mrf.mxu0  ;;  %v8183_v26 = vpop.f32.mrf.mxu1 }
 0x5cb   : > { %v13122_v53 = vadd.f32 %v8181_v30, %v8052_v21  ;;  %v1820_v30 = vld [vmem:[%s10653_s26 + $0x2f10] sm:$0xff]  ;;  %v1822_v21 = vld [vmem:[%s10653_s26 + $0x2f20] sm:$0xff]  ;;  %v1819_v26 = vld [vmem:[%s10653_s26 + $0x2f08] sm:$0xff] }
 0x5cc   : > { %v8056_v25 = vpop.f32.mrf.mxu0  ;;  %9075 = vmatmul.mubr.f32.gmra.mxu0 %v1057_v46  ;;  %v8186_v59 = vpop.f32.mrf.mxu1  ;;  %9205 = vmatmul.mubr.f32.gmra.mxu1 %v1059_v16 }
 0x5cd   : > { %v8057_v20 = vadd.f32 %v8056_v25, %v13034_v43  ;;  %9079 = vmatprep.mubr.f32.mxu0 %v1185_v39  ;;  %9209 = vmatprep.mubr.f32.mxu1 %v1187_v23  ;;  %v1821_v39 = vld [vmem:[%s10653_s26 + $0x2f18] sm:$0xff] }
 0x5ce   : > { %v8058_v29 = vpop.f32.mrf.mxu0  ;;  %v8188_v32 = vpop.f32.mrf.mxu1 }
 0x5cf   : > { %v13129_v3 = vadd.f32 %v8186_v59, %v8057_v20  ;;  %v1947_v59 = vld [vmem:[%s10653_s26 + $0x3308] sm:$0xf]  ;;  %v1949_v20 = vld [vmem:[%s10653_s26 + $0x3318] sm:$0xf]  ;;  %v1946_v32 = vld [vmem:[%s10653_s26 + $0x3300] sm:$0xf] }
 0x5d0   : > { %v8061_v42 = vpop.f32.mrf.mxu0  ;;  %9080 = vmatmul.mubr.f32.gmra.mxu0 %v1184_v61  ;;  %v8191_v4 = vpop.f32.mrf.mxu1  ;;  %9210 = vmatmul.mubr.f32.gmra.mxu1 %v1186_v34 }
 0x5d1   : > { %v8062_v43 = vadd.f32 %v8061_v42, %v13041_v50  ;;  %9084 = vmatprep.mubr.f32.mxu0 %v1312_v33  ;;  %9214 = vmatprep.mubr.f32.mxu1 %v1314_v48  ;;  %v1948_v33 = vld [vmem:[%s10653_s26 + $0x3310] sm:$0xf] }
 0x5d2   : > { %v8063_v5 = vpop.f32.mrf.mxu0  ;;  %v8193_v49 = vpop.f32.mrf.mxu1 }
 0x5d3   : > { %v13136_v44 = vadd.f32 %v8191_v4, %v8062_v43  ;;  %v427_v4 = vld [vmem:[%s10653_s26 + $0x388] sm:$0xff]  ;;  %v429_v43 = vld [vmem:[%s10653_s26 + $0x398] sm:$0xff]  ;;  %v426_v49 = vld [vmem:[%s10653_s26 + $0x380] sm:$0xff] }
 0x5d4   : > { %v8066_v47 = vpop.f32.mrf.mxu0  ;;  %9085 = vmatmul.mubr.f32.gmra.mxu0 %v1311_v37  ;;  %v8196_v57 = vpop.f32.mrf.mxu1  ;;  %9215 = vmatmul.mubr.f32.gmra.mxu1 %v1313_v40 }
 0x5d5   : > { %v8067_v50 = vadd.f32 %v8066_v47, %v13048_v2  ;;  %9089 = vmatprep.mubr.f32.mxu0 %v1439_v52  ;;  %9219 = vmatprep.mubr.f32.mxu1 %v1441_v51  ;;  %v428_v52 = vld [vmem:[%s10653_s26 + $0x390] sm:$0xff] }
 0x5d6   : > { %v8068_v54 = vpop.f32.mrf.mxu0  ;;  %v8198_v60 = vpop.f32.mrf.mxu1 }
 0x5d7   : > { %v13143_v27 = vadd.f32 %v8196_v57, %v8067_v50  ;;  %v303_v57 = vld [vmem:[%s10663_s28 + $0x3a0] sm:$0xff]  ;;  %v556_v54 = vld [vmem:[%s10653_s26 + $0x790] sm:$0xff] }
 0x5d8   : > { %v8071_v62 = vpop.f32.mrf.mxu0  ;;  %9090 = vmatmul.mubr.f32.gmra.mxu0 %v1438_v14  ;;  %v8201_v6 = vpop.f32.mrf.mxu1  ;;  %9220 = vmatmul.mubr.f32.gmra.mxu1 %v1440_v19  ;;  %v554_v50 = vld [vmem:[%s10653_s26 + $0x780] sm:$0xff]  ;;  %v305_v19 = vld [vmem:[%s10663_s28 + $0x3b0] sm:$0xff] }
 0x5d9   : > { %v8072_v2 = vadd.f32 %v8071_v62, %v13055_v8  ;;  %9094 = vmatprep.mubr.f32.mxu0 %v1566_v56  ;;  %9224 = vmatprep.mubr.f32.mxu1 %v1568_v58  ;;  %v308_v56 = vld [vmem:[%s10663_s28 + $0x3c8] sm:$0xff]  ;;  %v310_v58 = vld [vmem:[%s10663_s28 + $0x3d8] sm:$0xff] }
 0x5da   : > { %v8073_v1 = vpop.f32.mrf.mxu0  ;;  %v8203_v31 = vpop.f32.mrf.mxu1 }
 0x5db   : > { %v13150_v0 = vadd.f32 %v8201_v6, %v8072_v2  ;;  %v553_v6 = vld [vmem:[%s10653_s26 + $0x778] sm:$0xff]  ;;  %v555_v2 = vld [vmem:[%s10653_s26 + $0x788] sm:$0xff] }
 0x5dc   : > { %v8271_v12 = vpop.f32.mrf.mxu0  ;;  %9095 = vmatmul.mubr.f32.gmra.mxu0 %v1565_v28  ;;  %v8401_v7 = vpop.f32.mrf.mxu1  ;;  %9225 = vmatmul.mubr.f32.gmra.mxu1 %v1567_v63  ;;  %v681_v1 = vld [vmem:[%s10653_s26 + $0xb78] sm:$0xff]  ;;  %v683_v31 = vld [vmem:[%s10653_s26 + $0xb88] sm:$0xff] }
 0x5dd   : > { %v8272_v8 = vadd.f32 %v8271_v12, %v13062_v22  ;;  %9099 = vmatprep.mubr.f32.mxu0 %v1693_v38  ;;  %9229 = vmatprep.mubr.f32.mxu1 %v1695_v11 }
 0x5de   : > { %v8273_v10 = vpop.f32.mrf.mxu0  ;;  %v8403_v18 = vpop.f32.mrf.mxu1 }
 0x5df   : > { %v13157_v46 = vadd.f32 %v8401_v7, %v8272_v8  ;;  %v680_v7 = vld [vmem:[%s10653_s26 + $0xb70] sm:$0xff]  ;;  %v682_v8 = vld [vmem:[%s10653_s26 + $0xb80] sm:$0xff] }
 0x5e0   : > { %v8276_v16 = vpop.f32.mrf.mxu0  ;;  %9100 = vmatmul.mubr.f32.gmra.mxu0 %v1692_v9  ;;  %v8406_v24 = vpop.f32.mrf.mxu1  ;;  %9230 = vmatmul.mubr.f32.gmra.mxu1 %v1694_v41  ;;  %v808_v10 = vld [vmem:[%s10653_s26 + $0xf70] sm:$0xff]  ;;  %v810_v18 = vld [vmem:[%s10653_s26 + $0xf80] sm:$0xff] }
 0x5e1   : > { %v8277_v22 = vadd.f32 %v8276_v16, %v13069_v36  ;;  %9104 = vmatprep.mubr.f32.mxu0 %v1820_v30  ;;  %9234 = vmatprep.mubr.f32.mxu1 %v1822_v21 }
 0x5e2   : > { %v8278_v23 = vpop.f32.mrf.mxu0  ;;  %v8408_v25 = vpop.f32.mrf.mxu1 }
 0x5e3   : > { %v13164_v61 = vadd.f32 %v8406_v24, %v8277_v22  ;;  %v807_v24 = vld [vmem:[%s10653_s26 + $0xf68] sm:$0xff]  ;;  %v809_v22 = vld [vmem:[%s10653_s26 + $0xf78] sm:$0xff] }
 0x5e4   : > { %v8281_v34 = vpop.f32.mrf.mxu0  ;;  %9105 = vmatmul.mubr.f32.gmra.mxu0 %v1819_v26  ;;  %v8411_v29 = vpop.f32.mrf.mxu1  ;;  %9235 = vmatmul.mubr.f32.gmra.mxu1 %v1821_v39  ;;  %v935_v23 = vld [vmem:[%s10653_s26 + $0x1368] sm:$0xff]  ;;  %v937_v25 = vld [vmem:[%s10653_s26 + $0x1378] sm:$0xff] }
 0x5e5   : > { %v8282_v36 = vadd.f32 %v8281_v34, %v13076_v15  ;;  %9109 = vmatprep.mubr.f32.mxu0 %v1947_v59  ;;  %9239 = vmatprep.mubr.f32.mxu1 %v1949_v20 }
 0x5e6   : > { %v8283_v48 = vpop.f32.mrf.mxu0  ;;  %v8413_v42 = vpop.f32.mrf.mxu1 }
 0x5e7   : > { %v13171_v37 = vadd.f32 %v8411_v29, %v8282_v36  ;;  %v934_v29 = vld [vmem:[%s10653_s26 + $0x1360] sm:$0xff]  ;;  %v936_v36 = vld [vmem:[%s10653_s26 + $0x1370] sm:$0xff] }
 0x5e8   : > { %v8286_v40 = vpop.f32.mrf.mxu0  ;;  %9110 = vmatmul.mubr.f32.gmra.mxu0 %v1946_v32  ;;  %v8416_v5 = vpop.f32.mrf.mxu1  ;;  %9240 = vmatmul.mubr.f32.gmra.mxu1 %v1948_v33  ;;  %v1062_v48 = vld [vmem:[%s10653_s26 + $0x1760] sm:$0xff]  ;;  %v1064_v42 = vld [vmem:[%s10653_s26 + $0x1770] sm:$0xff] }
 0x5e9   : > { %v8287_v15 = vadd.f32 %v8286_v40, %v13083_v55  ;;  %9309 = vmatprep.mubr.f32.mxu0 %v427_v4  ;;  %9439 = vmatprep.mubr.f32.mxu1 %v429_v43 }
 0x5ea   : > { %v8288_v51 = vpop.f32.mrf.mxu0  ;;  %v8418_v47 = vpop.f32.mrf.mxu1 }
 0x5eb   : > { %v13178_v14 = vadd.f32 %v8416_v5, %v8287_v15  ;;  %v1061_v5 = vld [vmem:[%s10653_s26 + $0x1758] sm:$0xff]  ;;  %v1063_v15 = vld [vmem:[%s10653_s26 + $0x1768] sm:$0xff] }
 0x5ec   : > { %v8291_v60 = vpop.f32.mrf.mxu0  ;;  %9310 = vmatmul.mubr.f32.vlgmr.msra.gmra.mxu0 %v426_v49  ;;  %v8421_v55 = vpop.f32.mrf.mxu1  ;;  %9440 = vmatmul.mubr.f32.vlgmr.msra.gmra.mxu1 %v428_v52  ;;  %v1189_v51 = vld [vmem:[%s10653_s26 + $0x1b58] sm:$0xff]  ;;  %v1191_v47 = vld [vmem:[%s10653_s26 + $0x1b68] sm:$0xff] }
 0x5ed   : > { %v8292_v62 = vadd.f32 %v8291_v60, %v13094_v13  ;;  %9536 = vmatpush1.xpose.msra.mxu0 %v303_v57  ;;  %9314 = vmatprep.mubr.f32.mxu0 %v554_v50  ;;  %v1190_v60 = vld [vmem:[%s10653_s26 + $0x1b60] sm:$0xff] }
 0x5ee   : > { %v8293_v28 = vpop.f32.mrf.mxu0  ;;  %v8423_v63 = vpop.f32.mrf.mxu1  ;;  %9666 = vmatpush1.xpose.msra.mxu1 %v305_v19  ;;  %9444 = vmatprep.mubr.f32.mxu1 %v556_v54  ;;  %v1188_v54 = vld [vmem:[%s10653_s26 + $0x1b50] sm:$0xff] }
 0x5ef   : > { %v13189_v38 = vadd.f32 %v8421_v55, %v8292_v62  ;;  %9795 = vmatprep.subr.mxu0 %v308_v56  ;;  %9925 = vmatprep.subr.mxu1 %v310_v58  ;;  %v1316_v58 = vld [vmem:[%s10653_s26 + $0x1f50] sm:$0xff]  ;;  %v1318_v62 = vld [vmem:[%s10653_s26 + $0x1f60] sm:$0xff]  ;;  %v1315_v63 = vld [vmem:[%s10653_s26 + $0x1f48] sm:$0xff] }
 0x5f0   : > { %v8296_v11 = vpop.f32.mrf.mxu0  ;;  %9315 = vmatmul.mubr.f32.gmra.mxu0 %v553_v6  ;;  %v8426_v13 = vpop.f32.mrf.mxu1  ;;  %9445 = vmatmul.mubr.f32.gmra.mxu1 %v555_v2 }
 0x5f1   : > { %v8297_v12 = vadd.f32 %v8296_v11, %v13101_v17  ;;  %9319 = vmatprep.mubr.f32.mxu0 %v681_v1  ;;  %9449 = vmatprep.mubr.f32.mxu1 %v683_v31  ;;  %v1317_v1 = vld [vmem:[%s10653_s26 + $0x1f58] sm:$0xff] }
 0x5f2   : > { %v8298_v9 = vpop.f32.mrf.mxu0  ;;  %v8428_v41 = vpop.f32.mrf.mxu1 }
 0x5f3   : > { %v13196_v30 = vadd.f32 %v8426_v13, %v8297_v12  ;;  %v1443_v13 = vld [vmem:[%s10653_s26 + $0x2348] sm:$0xff]  ;;  %v1445_v12 = vld [vmem:[%s10653_s26 + $0x2358] sm:$0xff]  ;;  %v1442_v41 = vld [vmem:[%s10653_s26 + $0x2340] sm:$0xff] }
 0x5f4   : > { %v8301_v21 = vpop.f32.mrf.mxu0  ;;  %9320 = vmatmul.mubr.f32.gmra.mxu0 %v680_v7  ;;  %v8431_v16 = vpop.f32.mrf.mxu1  ;;  %9450 = vmatmul.mubr.f32.gmra.mxu1 %v682_v8 }
 0x5f5   : > { %v8302_v17 = vadd.f32 %v8301_v21, %v13108_v35  ;;  %9324 = vmatprep.mubr.f32.mxu0 %v808_v10  ;;  %9454 = vmatprep.mubr.f32.mxu1 %v810_v18  ;;  %v1444_v10 = vld [vmem:[%s10653_s26 + $0x2350] sm:$0xff] }
 0x5f6   : > { %v8303_v26 = vpop.f32.mrf.mxu0  ;;  %v8433_v39 = vpop.f32.mrf.mxu1 }
 0x5f7   : > { %v13203_v59 = vadd.f32 %v8431_v16, %v8302_v17  ;;  %v1570_v16 = vld [vmem:[%s10653_s26 + $0x2740] sm:$0xff]  ;;  %v1572_v17 = vld [vmem:[%s10653_s26 + $0x2750] sm:$0xff]  ;;  %v1569_v39 = vld [vmem:[%s10653_s26 + $0x2738] sm:$0xff] }
 0x5f8   : > { %v8306_v20 = vpop.f32.mrf.mxu0  ;;  %9325 = vmatmul.mubr.f32.gmra.mxu0 %v807_v24  ;;  %v8436_v34 = vpop.f32.mrf.mxu1  ;;  %9455 = vmatmul.mubr.f32.gmra.mxu1 %v809_v22 }
 0x5f9   : > { %v8307_v35 = vadd.f32 %v8306_v20, %v13115_v45  ;;  %9329 = vmatprep.mubr.f32.mxu0 %v935_v23  ;;  %9459 = vmatprep.mubr.f32.mxu1 %v937_v25  ;;  %v1571_v23 = vld [vmem:[%s10653_s26 + $0x2748] sm:$0xff] }
 0x5fa   : > { %v8308_v32 = vpop.f32.mrf.mxu0  ;;  %v8438_v33 = vpop.f32.mrf.mxu1 }
 0x5fb   : > { %v13210_v4 = vadd.f32 %v8436_v34, %v8307_v35  ;;  %v1697_v34 = vld [vmem:[%s10653_s26 + $0x2b38] sm:$0xff]  ;;  %v1699_v35 = vld [vmem:[%s10653_s26 + $0x2b48] sm:$0xff]  ;;  %v1696_v33 = vld [vmem:[%s10653_s26 + $0x2b30] sm:$0xff] }
 0x5fc   : > { %v8311_v43 = vpop.f32.mrf.mxu0  ;;  %9330 = vmatmul.mubr.f32.gmra.mxu0 %v934_v29  ;;  %v8441_v40 = vpop.f32.mrf.mxu1  ;;  %9460 = vmatmul.mubr.f32.gmra.mxu1 %v936_v36 }
 0x5fd   : > { %v8312_v45 = vadd.f32 %v8311_v43, %v13122_v53  ;;  %9334 = vmatprep.mubr.f32.mxu0 %v1062_v48  ;;  %9464 = vmatprep.mubr.f32.mxu1 %v1064_v42  ;;  %v1698_v48 = vld [vmem:[%s10653_s26 + $0x2b40] sm:$0xff] }
 0x5fe   : > { %v8313_v49 = vpop.f32.mrf.mxu0  ;;  %v8443_v52 = vpop.f32.mrf.mxu1 }
 0x5ff   : > { %v13217_v57 = vadd.f32 %v8441_v40, %v8312_v45  ;;  %v1824_v40 = vld [vmem:[%s10653_s26 + $0x2f30] sm:$0xff]  ;;  %v1826_v45 = vld [vmem:[%s10653_s26 + $0x2f40] sm:$0xff]  ;;  %v1823_v52 = vld [vmem:[%s10653_s26 + $0x2f28] sm:$0xff] }
 0x600   : > { %v8316_v50 = vpop.f32.mrf.mxu0  ;;  %9335 = vmatmul.mubr.f32.gmra.mxu0 %v1061_v5  ;;  %v8446_v19 = vpop.f32.mrf.mxu1  ;;  %9465 = vmatmul.mubr.f32.gmra.mxu1 %v1063_v15 }
 0x601   : > { %v8317_v53 = vadd.f32 %v8316_v50, %v13129_v3  ;;  %9339 = vmatprep.mubr.f32.mxu0 %v1189_v51  ;;  %9469 = vmatprep.mubr.f32.mxu1 %v1191_v47  ;;  %v1825_v51 = vld [vmem:[%s10653_s26 + $0x2f38] sm:$0xff] }
 0x602   : > { %v8318_v55 = vpop.f32.mrf.mxu0  ;;  %v8448_v56 = vpop.f32.mrf.mxu1 }
 0x603   : > { %v13224_v6 = vadd.f32 %v8446_v19, %v8317_v53  ;;  %v1951_v19 = vld [vmem:[%s10653_s26 + $0x3328] sm:$0xf]  ;;  %v1953_v53 = vld [vmem:[%s10653_s26 + $0x3338] sm:$0xf]  ;;  %v1950_v56 = vld [vmem:[%s10653_s26 + $0x3320] sm:$0xf] }
 0x604   : > { %v8321_v2 = vpop.f32.mrf.mxu0  ;;  %9340 = vmatmul.mubr.f32.gmra.mxu0 %v1188_v54  ;;  %v8451_v28 = vpop.f32.mrf.mxu1  ;;  %9470 = vmatmul.mubr.f32.gmra.mxu1 %v1190_v60 }
 0x605   : > { %v8322_v3 = vadd.f32 %v8321_v2, %v13136_v44  ;;  %9344 = vmatprep.mubr.f32.mxu0 %v1316_v58  ;;  %9474 = vmatprep.mubr.f32.mxu1 %v1318_v62  ;;  %v1952_v58 = vld [vmem:[%s10653_s26 + $0x3330] sm:$0xf] }
 0x606   : > { %v8323_v31 = vpop.f32.mrf.mxu0  ;;  %v8453_v11 = vpop.f32.mrf.mxu1 }
 0x607   : > { %v13231_v7 = vadd.f32 %v8451_v28, %v8322_v3  ;;  %v431_v28 = vld [vmem:[%s10653_s26 + $0x3a8] sm:$0xff]  ;;  %v433_v3 = vld [vmem:[%s10653_s26 + $0x3b8] sm:$0xff]  ;;  %v430_v11 = vld [vmem:[%s10653_s26 + $0x3a0] sm:$0xff] }
 0x608   : > { %v8326_v8 = vpop.f32.mrf.mxu0  ;;  %9345 = vmatmul.mubr.f32.gmra.mxu0 %v1315_v63  ;;  %v8456_v9 = vpop.f32.mrf.mxu1  ;;  %9475 = vmatmul.mubr.f32.gmra.mxu1 %v1317_v1 }
 0x609   : > { %v8327_v44 = vadd.f32 %v8326_v8, %v13143_v27  ;;  %9349 = vmatprep.mubr.f32.mxu0 %v1443_v13  ;;  %9479 = vmatprep.mubr.f32.mxu1 %v1445_v12  ;;  %v432_v13 = vld [vmem:[%s10653_s26 + $0x3b0] sm:$0xff] }
 0x60a   : > { %v8328_v18 = vpop.f32.mrf.mxu0  ;;  %v8458_v21 = vpop.f32.mrf.mxu1 }
 0x60b   : > { %v13238_v24 = vadd.f32 %v8456_v9, %v8327_v44  ;;  %v307_v9 = vld [vmem:[%s10663_s28 + $0x3c0] sm:$0xff]  ;;  %v560_v18 = vld [vmem:[%s10653_s26 + $0x7b0] sm:$0xff] }
 0x60c   : > { %v8331_v22 = vpop.f32.mrf.mxu0  ;;  %9350 = vmatmul.mubr.f32.gmra.mxu0 %v1442_v41  ;;  %v8461_v26 = vpop.f32.mrf.mxu1  ;;  %9480 = vmatmul.mubr.f32.gmra.mxu1 %v1444_v10  ;;  %v558_v44 = vld [vmem:[%s10653_s26 + $0x7a0] sm:$0xff]  ;;  %v309_v10 = vld [vmem:[%s10663_s28 + $0x3d0] sm:$0xff] }
 0x60d   : > { %v8332_v27 = vadd.f32 %v8331_v22, %v13150_v0  ;;  %9354 = vmatprep.mubr.f32.mxu0 %v1570_v16  ;;  %9484 = vmatprep.mubr.f32.mxu1 %v1572_v17  ;;  %v312_v16 = vld [vmem:[%s10663_s28 + $0x3e8] sm:$0xff]  ;;  %v557_v22 = vld [vmem:[%s10653_s26 + $0x798] sm:$0xff] }
 0x60e   : > { %v8333_v25 = vpop.f32.mrf.mxu0  ;;  %v8463_v20 = vpop.f32.mrf.mxu1 }
 0x60f   : > { %v13245_v29 = vadd.f32 %v8461_v26, %v8332_v27  ;;  %v559_v26 = vld [vmem:[%s10653_s26 + $0x7a8] sm:$0xff] }
 0x610   : > { %v8531_v36 = vpop.f32.mrf.mxu0  ;;  %9355 = vmatmul.mubr.f32.gmra.mxu0 %v1569_v39  ;;  %v8661_v32 = vpop.f32.mrf.mxu1  ;;  %9485 = vmatmul.mubr.f32.gmra.mxu1 %v1571_v23  ;;  %v685_v23 = vld [vmem:[%s10653_s26 + $0xb98] sm:$0xff]  ;;  %v687_v25 = vld [vmem:[%s10653_s26 + $0xba8] sm:$0xff] }
 0x611   : > { %v8532_v0 = vadd.f32 %v8531_v36, %v13157_v46  ;;  %9359 = vmatprep.mubr.f32.mxu0 %v1697_v34  ;;  %9489 = vmatprep.mubr.f32.mxu1 %v1699_v35  ;;  %v10559_v34 = vmov 0.0  }
 0x612   : > { %v8533_v42 = vpop.f32.mrf.mxu0  ;;  %v8663_v43 = vpop.f32.mrf.mxu1 }
 0x613   : > { %v13252_v5 = vadd.f32 %v8661_v32, %v8532_v0  ;;  %v684_v32 = vld [vmem:[%s10653_s26 + $0xb90] sm:$0xff]  ;;  %v686_v0 = vld [vmem:[%s10653_s26 + $0xba0] sm:$0xff] }
 0x614   : > { %v8536_v15 = vpop.f32.mrf.mxu0  ;;  %9360 = vmatmul.mubr.f32.gmra.mxu0 %v1696_v33  ;;  %v8666_v49 = vpop.f32.mrf.mxu1  ;;  %9490 = vmatmul.mubr.f32.gmra.mxu1 %v1698_v48  ;;  %v812_v42 = vld [vmem:[%s10653_s26 + $0xf90] sm:$0xff]  ;;  %v814_v43 = vld [vmem:[%s10653_s26 + $0xfa0] sm:$0xff] }
 0x615   : > { %v8537_v46 = vadd.f32 %v8536_v15, %v13164_v61  ;;  %9364 = vmatprep.mubr.f32.mxu0 %v1824_v40  ;;  %9494 = vmatprep.mubr.f32.mxu1 %v1826_v45 }
 0x616   : > { %v8538_v47 = vpop.f32.mrf.mxu0  ;;  %v8668_v50 = vpop.f32.mrf.mxu1 }
 0x617   : > { %v13259_v54 = vadd.f32 %v8666_v49, %v8537_v46  ;;  %v811_v49 = vld [vmem:[%s10653_s26 + $0xf88] sm:$0xff]  ;;  %v813_v46 = vld [vmem:[%s10653_s26 + $0xf98] sm:$0xff] }
 0x618   : > { %v8541_v60 = vpop.f32.mrf.mxu0  ;;  %9365 = vmatmul.mubr.f32.gmra.mxu0 %v1823_v52  ;;  %v8671_v55 = vpop.f32.mrf.mxu1  ;;  %9495 = vmatmul.mubr.f32.gmra.mxu1 %v1825_v51  ;;  %v939_v47 = vld [vmem:[%s10653_s26 + $0x1388] sm:$0xff]  ;;  %v941_v50 = vld [vmem:[%s10653_s26 + $0x1398] sm:$0xff] }
 0x619   : > { %v8542_v61 = vadd.f32 %v8541_v60, %v13171_v37  ;;  %9369 = vmatprep.mubr.f32.mxu0 %v1951_v19  ;;  %9499 = vmatprep.mubr.f32.mxu1 %v1953_v53 }
 0x61a   : > { %v8543_v62 = vpop.f32.mrf.mxu0  ;;  %v8673_v2 = vpop.f32.mrf.mxu1 }
 0x61b   : > { %v13266_v63 = vadd.f32 %v8671_v55, %v8542_v61  ;;  %v938_v55 = vld [vmem:[%s10653_s26 + $0x1380] sm:$0xff]  ;;  %v940_v61 = vld [vmem:[%s10653_s26 + $0x1390] sm:$0xff] }
 0x61c   : > { %v8546_v1 = vpop.f32.mrf.mxu0  ;;  %9370 = vmatmul.mubr.f32.gmra.mxu0 %v1950_v56  ;;  %v8676_v31 = vpop.f32.mrf.mxu1  ;;  %9500 = vmatmul.mubr.f32.gmra.mxu1 %v1952_v58  ;;  %v1066_v62 = vld [vmem:[%s10653_s26 + $0x1780] sm:$0xff]  ;;  %v1068_v2 = vld [vmem:[%s10653_s26 + $0x1790] sm:$0xff] }
 0x61d   : > { %v8547_v37 = vadd.f32 %v8546_v1, %v13178_v14  ;;  %9569 = vmatprep.mubr.f32.mxu0 %v431_v28  ;;  %9699 = vmatprep.mubr.f32.mxu1 %v433_v3 }
 0x61e   : > { %v8548_v12 = vpop.f32.mrf.mxu0  ;;  %v8678_v8 = vpop.f32.mrf.mxu1 }
 0x61f   : > { %v13273_v41 = vadd.f32 %v8676_v31, %v8547_v37  ;;  %v1065_v31 = vld [vmem:[%s10653_s26 + $0x1778] sm:$0xff]  ;;  %v1067_v37 = vld [vmem:[%s10653_s26 + $0x1788] sm:$0xff] }
 0x620   : > { %v8551_v21 = vpop.f32.mrf.mxu0  ;;  %9570 = vmatmul.mubr.f32.vlgmr.msra.gmra.mxu0 %v430_v11  ;;  %v8681_v14 = vpop.f32.mrf.mxu1  ;;  %9700 = vmatmul.mubr.f32.vlgmr.msra.gmra.mxu1 %v432_v13  ;;  %v1193_v12 = vld [vmem:[%s10653_s26 + $0x1b78] sm:$0xff]  ;;  %v1195_v8 = vld [vmem:[%s10653_s26 + $0x1b88] sm:$0xff] }
 0x621   : > { %v8552_v17 = vadd.f32 %v8551_v21, %v13189_v38  ;;  %9796 = vmatpush1.xpose.msra.mxu0 %v307_v9  ;;  %9574 = vmatprep.mubr.f32.mxu0 %v558_v44  ;;  %v1194_v21 = vld [vmem:[%s10653_s26 + $0x1b80] sm:$0xff] }
 0x622   : > { %v8553_v27 = vpop.f32.mrf.mxu0  ;;  %v8683_v39 = vpop.f32.mrf.mxu1  ;;  %9926 = vmatpush1.xpose.msra.mxu1 %v309_v10  ;;  %9704 = vmatprep.mubr.f32.mxu1 %v560_v18  ;;  %v1192_v18 = vld [vmem:[%s10653_s26 + $0x1b70] sm:$0xff] }
 0x623   : > { %v13283_v20 = vadd.f32 %v8681_v14, %v8552_v17  ;;  %10055 = vmatprep.subr.mxu0 %v312_v16  ;;  %10403 = vmatprep.subr.mxu1 %v10559_v34  ;;  %v1320_v17 = vld [vmem:[%s10653_s26 + $0x1f70] sm:$0xff] }
 0x624   : > { %v8556_v38 = vpop.f32.mrf.mxu0  ;;  %9575 = vmatmul.mubr.f32.gmra.mxu0 %v557_v22  ;;  %v8686_v35 = vpop.f32.mrf.mxu1  ;;  %9705 = vmatmul.mubr.f32.gmra.mxu1 %v559_v26  ;;  %v1322_v22 = vld [vmem:[%s10653_s26 + $0x1f80] sm:$0xff] }
 0x625   : > { %v8557_v36 = vadd.f32 %v8556_v38, %v13196_v30  ;;  %9579 = vmatprep.mubr.f32.mxu0 %v685_v23  ;;  %9709 = vmatprep.mubr.f32.mxu1 %v687_v25  ;;  %v1319_v23 = vld [vmem:[%s10653_s26 + $0x1f68] sm:$0xff]  ;;  %v1321_v25 = vld [vmem:[%s10653_s26 + $0x1f78] sm:$0xff] }
 0x626   : > { %v8558_v33 = vpop.f32.mrf.mxu0  ;;  %v8688_v48 = vpop.f32.mrf.mxu1 }
 0x627   : > { %v13291_v40 = vadd.f32 %v8686_v35, %v8557_v36  ;;  %v1447_v36 = vld [vmem:[%s10653_s26 + $0x2368] sm:$0xff] }
 0x628   : > { %v8561_v45 = vpop.f32.mrf.mxu0  ;;  %9580 = vmatmul.mubr.f32.gmra.mxu0 %v684_v32  ;;  %v8691_v15 = vpop.f32.mrf.mxu1  ;;  %9710 = vmatmul.mubr.f32.gmra.mxu1 %v686_v0  ;;  %v1449_v32 = vld [vmem:[%s10653_s26 + $0x2378] sm:$0xff] }
 0x629   : > { %v8562_v30 = vadd.f32 %v8561_v45, %v13203_v59  ;;  %9584 = vmatprep.mubr.f32.mxu0 %v812_v42  ;;  %9714 = vmatprep.mubr.f32.mxu1 %v814_v43  ;;  %v1446_v42 = vld [vmem:[%s10653_s26 + $0x2360] sm:$0xff]  ;;  %v1448_v43 = vld [vmem:[%s10653_s26 + $0x2370] sm:$0xff] }
 0x62a   : > { %v8563_v52 = vpop.f32.mrf.mxu0  ;;  %v8693_v51 = vpop.f32.mrf.mxu1 }
 0x62b   : > { %v13298_v19 = vadd.f32 %v8691_v15, %v8562_v30  ;;  %v1574_v30 = vld [vmem:[%s10653_s26 + $0x2760] sm:$0xff] }
 0x62c   : > { %v8566_v53 = vpop.f32.mrf.mxu0  ;;  %9585 = vmatmul.mubr.f32.gmra.mxu0 %v811_v49  ;;  %v8696_v60 = vpop.f32.mrf.mxu1  ;;  %9715 = vmatmul.mubr.f32.gmra.mxu1 %v813_v46  ;;  %v1576_v49 = vld [vmem:[%s10653_s26 + $0x2770] sm:$0xff] }
 0x62d   : > { %v8567_v59 = vadd.f32 %v8566_v53, %v13210_v4  ;;  %9589 = vmatprep.mubr.f32.mxu0 %v939_v47  ;;  %9719 = vmatprep.mubr.f32.mxu1 %v941_v50  ;;  %v1573_v47 = vld [vmem:[%s10653_s26 + $0x2758] sm:$0xff]  ;;  %v1575_v50 = vld [vmem:[%s10653_s26 + $0x2768] sm:$0xff] }
 0x62e   : > { %v8568_v56 = vpop.f32.mrf.mxu0  ;;  %v8698_v58 = vpop.f32.mrf.mxu1 }
 0x62f   : > { %v13305_v28 = vadd.f32 %v8696_v60, %v8567_v59  ;;  %v1701_v59 = vld [vmem:[%s10653_s26 + $0x2b58] sm:$0xff] }
 0x630   : > { %v8571_v3 = vpop.f32.mrf.mxu0  ;;  %9590 = vmatmul.mubr.f32.gmra.mxu0 %v938_v55  ;;  %v8701_v1 = vpop.f32.mrf.mxu1  ;;  %9720 = vmatmul.mubr.f32.gmra.mxu1 %v940_v61  ;;  %v1703_v55 = vld [vmem:[%s10653_s26 + $0x2b68] sm:$0xff] }
 0x631   : > { %v8572_v4 = vadd.f32 %v8571_v3, %v13217_v57  ;;  %9594 = vmatprep.mubr.f32.mxu0 %v1066_v62  ;;  %9724 = vmatprep.mubr.f32.mxu1 %v1068_v2  ;;  %v1700_v62 = vld [vmem:[%s10653_s26 + $0x2b50] sm:$0xff]  ;;  %v1702_v2 = vld [vmem:[%s10653_s26 + $0x2b60] sm:$0xff] }
 0x632   : > { %v8573_v11 = vpop.f32.mrf.mxu0  ;;  %v8703_v13 = vpop.f32.mrf.mxu1 }
 0x633   : > { %v13312_v9 = vadd.f32 %v8701_v1, %v8572_v4  ;;  %v1828_v4 = vld [vmem:[%s10653_s26 + $0x2f50] sm:$0xff] }
 0x634   : > { %v8576_v44 = vpop.f32.mrf.mxu0  ;;  %9595 = vmatmul.mubr.f32.gmra.mxu0 %v1065_v31  ;;  %v8706_v10 = vpop.f32.mrf.mxu1  ;;  %9725 = vmatmul.mubr.f32.gmra.mxu1 %v1067_v37  ;;  %v1830_v31 = vld [vmem:[%s10653_s26 + $0x2f60] sm:$0xff] }
 0x635   : > { %v8577_v57 = vadd.f32 %v8576_v44, %v13224_v6  ;;  %9599 = vmatprep.mubr.f32.mxu0 %v1193_v12  ;;  %9729 = vmatprep.mubr.f32.mxu1 %v1195_v8  ;;  %v1827_v12 = vld [vmem:[%s10653_s26 + $0x2f48] sm:$0xff]  ;;  %v1829_v8 = vld [vmem:[%s10653_s26 + $0x2f58] sm:$0xff] }
 0x636   : > { %v8578_v14 = vpop.f32.mrf.mxu0  ;;  %v8708_v16 = vpop.f32.mrf.mxu1 }
 0x637   : > { %v13319_v26 = vadd.f32 %v8706_v10, %v8577_v57  ;;  %v1955_v57 = vld [vmem:[%s10653_s26 + $0x3348] sm:$0xf] }
 0x638   : > { %v8581_v27 = vpop.f32.mrf.mxu0  ;;  %9600 = vmatmul.mubr.f32.gmra.mxu0 %v1192_v18  ;;  %v8711_v39 = vpop.f32.mrf.mxu1  ;;  %9730 = vmatmul.mubr.f32.gmra.mxu1 %v1194_v21  ;;  %v1957_v18 = vld [vmem:[%s10653_s26 + $0x3358] sm:$0xf] }
 0x639   : > { %v8582_v6 = vadd.f32 %v8581_v27, %v13231_v7  ;;  %9604 = vmatprep.mubr.f32.mxu0 %v1320_v17  ;;  %9734 = vmatprep.mubr.f32.mxu1 %v1322_v22  ;;  %v1954_v17 = vld [vmem:[%s10653_s26 + $0x3340] sm:$0xf]  ;;  %v1956_v22 = vld [vmem:[%s10653_s26 + $0x3350] sm:$0xf] }
 0x63a   : > { %v8583_v38 = vpop.f32.mrf.mxu0  ;;  %v8713_v35 = vpop.f32.mrf.mxu1 }
 0x63b   : > { %v13326_v0 = vadd.f32 %v8711_v39, %v8582_v6  ;;  %v435_v6 = vld [vmem:[%s10653_s26 + $0x3c8] sm:$0xff] }
 0x63c   : > { %v8586_v33 = vpop.f32.mrf.mxu0  ;;  %9605 = vmatmul.mubr.f32.gmra.mxu0 %v1319_v23  ;;  %v8716_v48 = vpop.f32.mrf.mxu1  ;;  %9735 = vmatmul.mubr.f32.gmra.mxu1 %v1321_v25  ;;  %v437_v23 = vld [vmem:[%s10653_s26 + $0x3d8] sm:$0xff] }
 0x63d   : > { %v8587_v7 = vadd.f32 %v8586_v33, %v13238_v24  ;;  %9609 = vmatprep.mubr.f32.mxu0 %v1447_v36  ;;  %9739 = vmatprep.mubr.f32.mxu1 %v1449_v32  ;;  %v434_v36 = vld [vmem:[%s10653_s26 + $0x3c0] sm:$0xff]  ;;  %v436_v32 = vld [vmem:[%s10653_s26 + $0x3d0] sm:$0xff] }
 0x63e   : > { %v8588_v45 = vpop.f32.mrf.mxu0  ;;  %v8718_v15 = vpop.f32.mrf.mxu1 }
 0x63f   : > { %v13333_v46 = vadd.f32 %v8716_v48, %v8587_v7  ;;  %v311_v7 = vld [vmem:[%s10663_s28 + $0x3e0] sm:$0xff]  ;;  %v313_v45 = vld [vmem:[%s10663_s28 + $0x3f0] sm:$0xff] }
 0x640   : > { %v8591_v52 = vpop.f32.mrf.mxu0  ;;  %9610 = vmatmul.mubr.f32.gmra.mxu0 %v1446_v42  ;;  %v8721_v51 = vpop.f32.mrf.mxu1  ;;  %9740 = vmatmul.mubr.f32.gmra.mxu1 %v1448_v43  ;;  %v562_v42 = vld [vmem:[%s10653_s26 + $0x7c0] sm:$0xff]  ;;  %v564_v15 = vld [vmem:[%s10653_s26 + $0x7d0] sm:$0xff] }
 0x641   : > { %v8592_v24 = vadd.f32 %v8591_v52, %v13245_v29  ;;  %9614 = vmatprep.mubr.f32.mxu0 %v1574_v30  ;;  %9744 = vmatprep.mubr.f32.mxu1 %v1576_v49  ;;  %v561_v52 = vld [vmem:[%s10653_s26 + $0x7b8] sm:$0xff] }
 0x642   : > { %v8593_v53 = vpop.f32.mrf.mxu0  ;;  %v8723_v60 = vpop.f32.mrf.mxu1 }
 0x643   : > { %v13340_v61 = vadd.f32 %v8721_v51, %v8592_v24  ;;  %v563_v51 = vld [vmem:[%s10653_s26 + $0x7c8] sm:$0xff] }
 0x644   : > { %v8791_v56 = vpop.f32.mrf.mxu0  ;;  %9615 = vmatmul.mubr.f32.gmra.mxu0 %v1573_v47  ;;  %v8921_v58 = vpop.f32.mrf.mxu1  ;;  %9745 = vmatmul.mubr.f32.gmra.mxu1 %v1575_v50  ;;  %v689_v50 = vld [vmem:[%s10653_s26 + $0xbb8] sm:$0xff]  ;;  %v691_v53 = vld [vmem:[%s10653_s26 + $0xbc8] sm:$0xff] }
 0x645   : > { %v8792_v29 = vadd.f32 %v8791_v56, %v13252_v5  ;;  %9619 = vmatprep.mubr.f32.mxu0 %v1701_v59  ;;  %9749 = vmatprep.mubr.f32.mxu1 %v1703_v55  ;;  %v688_v56 = vld [vmem:[%s10653_s26 + $0xbb0] sm:$0xff] }
 0x646   : > { %v8793_v3 = vpop.f32.mrf.mxu0  ;;  %v8923_v1 = vpop.f32.mrf.mxu1 }
 0x647   : > { %v13347_v37 = vadd.f32 %v8921_v58, %v8792_v29  ;;  %v690_v58 = vld [vmem:[%s10653_s26 + $0xbc0] sm:$0xff] }
 0x648   : > { %v8796_v11 = vpop.f32.mrf.mxu0  ;;  %9620 = vmatmul.mubr.f32.gmra.mxu0 %v1700_v62  ;;  %v8926_v13 = vpop.f32.mrf.mxu1  ;;  %9750 = vmatmul.mubr.f32.gmra.mxu1 %v1702_v2  ;;  %v816_v2 = vld [vmem:[%s10653_s26 + $0xfb0] sm:$0xff]  ;;  %v818_v3 = vld [vmem:[%s10653_s26 + $0xfc0] sm:$0xff] }
 0x649   : > { %v8797_v5 = vadd.f32 %v8796_v11, %v13259_v54  ;;  %9624 = vmatprep.mubr.f32.mxu0 %v1828_v4  ;;  %9754 = vmatprep.mubr.f32.mxu1 %v1830_v31  ;;  %v815_v11 = vld [vmem:[%s10653_s26 + $0xfa8] sm:$0xff] }
 0x64a   : > { %v8798_v44 = vpop.f32.mrf.mxu0  ;;  %v8928_v10 = vpop.f32.mrf.mxu1 }
 0x64b   : > { %v13354_v21 = vadd.f32 %v8926_v13, %v8797_v5  ;;  %v817_v13 = vld [vmem:[%s10653_s26 + $0xfb8] sm:$0xff] }
 0x64c   : > { %v8801_v14 = vpop.f32.mrf.mxu0  ;;  %9625 = vmatmul.mubr.f32.gmra.mxu0 %v1827_v12  ;;  %v8931_v16 = vpop.f32.mrf.mxu1  ;;  %9755 = vmatmul.mubr.f32.gmra.mxu1 %v1829_v8  ;;  %v943_v8 = vld [vmem:[%s10653_s26 + $0x13a8] sm:$0xff]  ;;  %v945_v44 = vld [vmem:[%s10653_s26 + $0x13b8] sm:$0xff] }
 0x64d   : > { %v8802_v54 = vadd.f32 %v8801_v14, %v13266_v63  ;;  %9629 = vmatprep.mubr.f32.mxu0 %v1955_v57  ;;  %9759 = vmatprep.mubr.f32.mxu1 %v1957_v18  ;;  %v942_v14 = vld [vmem:[%s10653_s26 + $0x13a0] sm:$0xff] }
 0x64e   : > { %v8803_v27 = vpop.f32.mrf.mxu0  ;;  %v8933_v39 = vpop.f32.mrf.mxu1 }
 0x64f   : > { %v13361_v25 = vadd.f32 %v8931_v16, %v8802_v54  ;;  %v944_v16 = vld [vmem:[%s10653_s26 + $0x13b0] sm:$0xff] }
 0x650   : > { %v8806_v38 = vpop.f32.mrf.mxu0  ;;  %9630 = vmatmul.mubr.f32.gmra.mxu0 %v1954_v17  ;;  %v8936_v35 = vpop.f32.mrf.mxu1  ;;  %9760 = vmatmul.mubr.f32.gmra.mxu1 %v1956_v22  ;;  %v1070_v22 = vld [vmem:[%s10653_s26 + $0x17a0] sm:$0xff]  ;;  %v1072_v27 = vld [vmem:[%s10653_s26 + $0x17b0] sm:$0xff] }
 0x651   : > { %v8807_v63 = vadd.f32 %v8806_v38, %v13273_v41  ;;  %9829 = vmatprep.mubr.f32.mxu0 %v435_v6  ;;  %9959 = vmatprep.mubr.f32.mxu1 %v437_v23  ;;  %v1069_v38 = vld [vmem:[%s10653_s26 + $0x1798] sm:$0xff] }
 0x652   : > { %v8808_v33 = vpop.f32.mrf.mxu0  ;;  %v8938_v48 = vpop.f32.mrf.mxu1 }
 0x653   : > { %v13368_v43 = vadd.f32 %v8936_v35, %v8807_v63  ;;  %v1071_v35 = vld [vmem:[%s10653_s26 + $0x17a8] sm:$0xff] }
 0x654   : > { %v8811_v30 = vpop.f32.mrf.mxu0  ;;  %9830 = vmatmul.mubr.f32.vlgmr.msra.gmra.mxu0 %v434_v36  ;;  %v8941_v49 = vpop.f32.mrf.mxu1  ;;  %9960 = vmatmul.mubr.f32.vlgmr.msra.gmra.mxu1 %v436_v32  ;;  %v1197_v32 = vld [vmem:[%s10653_s26 + $0x1b98] sm:$0xff]  ;;  %v1199_v33 = vld [vmem:[%s10653_s26 + $0x1ba8] sm:$0xff] }
 0x655   : > { %v8812_v41 = vadd.f32 %v8811_v30, %v13283_v20  ;;  %10056 = vmatpush1.xpose.msra.mxu0 %v311_v7  ;;  %9834 = vmatprep.mubr.f32.mxu0 %v562_v42 }
 0x656   : > { %v8813_v24 = vpop.f32.mrf.mxu0  ;;  %v8943_v47 = vpop.f32.mrf.mxu1  ;;  %10404 = vmatpush3.xpose.msra.mxu1 %v313_v45  ;;  %9964 = vmatprep.mubr.f32.mxu1 %v564_v15  ;;  %v1196_v45 = vld [vmem:[%s10653_s26 + $0x1b90] sm:$0xff]  ;;  %v1198_v15 = vld [vmem:[%s10653_s26 + $0x1ba0] sm:$0xff] }
 0x657   : > { %v13377_v60 = vadd.f32 %v8941_v49, %v8812_v41  ;;  %v1324_v41 = vld [vmem:[%s10653_s26 + $0x1f90] sm:$0xff] }
 0x658   : > { %v8816_v59 = vpop.f32.mrf.mxu0  ;;  %9835 = vmatmul.mubr.f32.gmra.mxu0 %v561_v52  ;;  %v8946_v55 = vpop.f32.mrf.mxu1  ;;  %9965 = vmatmul.mubr.f32.gmra.mxu1 %v563_v51  ;;  %v1326_v52 = vld [vmem:[%s10653_s26 + $0x1fa0] sm:$0xff] }
 0x659   : > { %v8817_v20 = vadd.f32 %v8816_v59, %v13291_v40  ;;  %9839 = vmatprep.mubr.f32.mxu0 %v689_v50  ;;  %9969 = vmatprep.mubr.f32.mxu1 %v691_v53  ;;  %v1323_v50 = vld [vmem:[%s10653_s26 + $0x1f88] sm:$0xff]  ;;  %v1325_v53 = vld [vmem:[%s10653_s26 + $0x1f98] sm:$0xff] }
 0x65a   : > { %v8818_v29 = vpop.f32.mrf.mxu0  ;;  %v8948_v62 = vpop.f32.mrf.mxu1 }
 0x65b   : > { %v13384_v1 = vadd.f32 %v8946_v55, %v8817_v20  ;;  %v1451_v20 = vld [vmem:[%s10653_s26 + $0x2388] sm:$0xff] }
 0x65c   : > { %v8821_v4 = vpop.f32.mrf.mxu0  ;;  %9840 = vmatmul.mubr.f32.gmra.mxu0 %v688_v56  ;;  %v8951_v31 = vpop.f32.mrf.mxu1  ;;  %9970 = vmatmul.mubr.f32.gmra.mxu1 %v690_v58  ;;  %v1453_v56 = vld [vmem:[%s10653_s26 + $0x2398] sm:$0xff] }
 0x65d   : > { %v8822_v40 = vadd.f32 %v8821_v4, %v13298_v19  ;;  %9844 = vmatprep.mubr.f32.mxu0 %v816_v2  ;;  %9974 = vmatprep.mubr.f32.mxu1 %v818_v3  ;;  %v1450_v2 = vld [vmem:[%s10653_s26 + $0x2380] sm:$0xff]  ;;  %v1452_v3 = vld [vmem:[%s10653_s26 + $0x2390] sm:$0xff] }
 0x65e   : > { %v8823_v5 = vpop.f32.mrf.mxu0  ;;  %v8953_v12 = vpop.f32.mrf.mxu1 }
 0x65f   : > { %v13391_v10 = vadd.f32 %v8951_v31, %v8822_v40  ;;  %v1578_v40 = vld [vmem:[%s10653_s26 + $0x2780] sm:$0xff] }
 0x660   : > { %v8826_v57 = vpop.f32.mrf.mxu0  ;;  %9845 = vmatmul.mubr.f32.gmra.mxu0 %v815_v11  ;;  %v8956_v18 = vpop.f32.mrf.mxu1  ;;  %9975 = vmatmul.mubr.f32.gmra.mxu1 %v817_v13  ;;  %v1580_v11 = vld [vmem:[%s10653_s26 + $0x2790] sm:$0xff] }
 0x661   : > { %v8827_v19 = vadd.f32 %v8826_v57, %v13305_v28  ;;  %9849 = vmatprep.mubr.f32.mxu0 %v943_v8  ;;  %9979 = vmatprep.mubr.f32.mxu1 %v945_v44  ;;  %v1577_v8 = vld [vmem:[%s10653_s26 + $0x2778] sm:$0xff]  ;;  %v1579_v44 = vld [vmem:[%s10653_s26 + $0x2788] sm:$0xff] }
 0x662   : > { %v8828_v54 = vpop.f32.mrf.mxu0  ;;  %v8958_v17 = vpop.f32.mrf.mxu1 }
 0x663   : > { %v13398_v39 = vadd.f32 %v8956_v18, %v8827_v19  ;;  %v1705_v19 = vld [vmem:[%s10653_s26 + $0x2b78] sm:$0xff] }
 0x664   : > { %v8831_v6 = vpop.f32.mrf.mxu0  ;;  %9850 = vmatmul.mubr.f32.gmra.mxu0 %v942_v14  ;;  %v8961_v23 = vpop.f32.mrf.mxu1  ;;  %9980 = vmatmul.mubr.f32.gmra.mxu1 %v944_v16  ;;  %v1707_v14 = vld [vmem:[%s10653_s26 + $0x2b88] sm:$0xff] }
 0x665   : > { %v8832_v28 = vadd.f32 %v8831_v6, %v13312_v9  ;;  %9854 = vmatprep.mubr.f32.mxu0 %v1070_v22  ;;  %9984 = vmatprep.mubr.f32.mxu1 %v1072_v27  ;;  %v1704_v22 = vld [vmem:[%s10653_s26 + $0x2b70] sm:$0xff]  ;;  %v1706_v27 = vld [vmem:[%s10653_s26 + $0x2b80] sm:$0xff] }
 0x666   : > { %v8833_v63 = vpop.f32.mrf.mxu0  ;;  %v8963_v36 = vpop.f32.mrf.mxu1 }
 0x667   : > { %v13405_v48 = vadd.f32 %v8961_v23, %v8832_v28  ;;  %v1832_v28 = vld [vmem:[%s10653_s26 + $0x2f70] sm:$0xff] }
 0x668   : > { %v8836_v7 = vpop.f32.mrf.mxu0  ;;  %9855 = vmatmul.mubr.f32.gmra.mxu0 %v1069_v38  ;;  %v8966_v42 = vpop.f32.mrf.mxu1  ;;  %9985 = vmatmul.mubr.f32.gmra.mxu1 %v1071_v35  ;;  %v1834_v38 = vld [vmem:[%s10653_s26 + $0x2f80] sm:$0xff] }
 0x669   : > { %v8837_v9 = vadd.f32 %v8836_v7, %v13319_v26  ;;  %9859 = vmatprep.mubr.f32.mxu0 %v1197_v32  ;;  %9989 = vmatprep.mubr.f32.mxu1 %v1199_v33  ;;  %v1831_v32 = vld [vmem:[%s10653_s26 + $0x2f68] sm:$0xff]  ;;  %v1833_v33 = vld [vmem:[%s10653_s26 + $0x2f78] sm:$0xff] }
 0x66a   : > { %v8838_v30 = vpop.f32.mrf.mxu0  ;;  %v8968_v49 = vpop.f32.mrf.mxu1 }
 0x66b   : > { %v13412_v51 = vadd.f32 %v8966_v42, %v8837_v9  ;;  %v1959_v9 = vld [vmem:[%s10653_s26 + $0x3368] sm:$0xf] }
 0x66c   : > { %v8841_v24 = vpop.f32.mrf.mxu0  ;;  %9860 = vmatmul.mubr.f32.gmra.mxu0 %v1196_v45  ;;  %v8971_v47 = vpop.f32.mrf.mxu1  ;;  %9990 = vmatmul.mubr.f32.gmra.mxu1 %v1198_v15  ;;  %v1961_v45 = vld [vmem:[%s10653_s26 + $0x3378] sm:$0xf] }
 0x66d   : > { %v8842_v26 = vadd.f32 %v8841_v24, %v13326_v0  ;;  %9864 = vmatprep.mubr.f32.mxu0 %v1324_v41  ;;  %9994 = vmatprep.mubr.f32.mxu1 %v1326_v52  ;;  %v1958_v41 = vld [vmem:[%s10653_s26 + $0x3360] sm:$0xf]  ;;  %v1960_v52 = vld [vmem:[%s10653_s26 + $0x3370] sm:$0xf] }
 0x66e   : > { %v8843_v59 = vpop.f32.mrf.mxu0  ;;  %v8973_v55 = vpop.f32.mrf.mxu1 }
 0x66f   : > { %v13419_v58 = vadd.f32 %v8971_v47, %v8842_v26  ;;  %v439_v26 = vld [vmem:[%s10653_s26 + $0x3e8] sm:$0xff] }
 0x670   : > { %v8846_v29 = vpop.f32.mrf.mxu0  ;;  %9865 = vmatmul.mubr.f32.gmra.mxu0 %v1323_v50  ;;  %v8976_v62 = vpop.f32.mrf.mxu1  ;;  %9995 = vmatmul.mubr.f32.gmra.mxu1 %v1325_v53 }
 0x671   : > { %v8847_v0 = vadd.f32 %v8846_v29, %v13333_v46  ;;  %9869 = vmatprep.mubr.f32.mxu0 %v1451_v20  ;;  %9999 = vmatprep.mubr.f32.mxu1 %v1453_v56  ;;  %v440_v20 = vld [vmem:[%s10653_s26 + $0x3f0] sm:$0xff] }
 0x672   : > { %v8848_v4 = vpop.f32.mrf.mxu0  ;;  %v8978_v31 = vpop.f32.mrf.mxu1 }
 0x673   : > { %v13426_v13 = vadd.f32 %v8976_v62, %v8847_v0  ;;  %v566_v62 = vld [vmem:[%s10653_s26 + $0x7e0] sm:$0xff]  ;;  %v565_v4 = vld [vmem:[%s10653_s26 + $0x7d8] sm:$0xff]  ;;  %v567_v31 = vld [vmem:[%s10653_s26 + $0x7e8] sm:$0xff] }
 0x674   : > { %v8851_v5 = vpop.f32.mrf.mxu0  ;;  %9870 = vmatmul.mubr.f32.gmra.mxu0 %v1450_v2  ;;  %v8981_v12 = vpop.f32.mrf.mxu1  ;;  %10000 = vmatmul.mubr.f32.gmra.mxu1 %v1452_v3 }
 0x675   : > { %v8852_v46 = vadd.f32 %v8851_v5, %v13340_v61  ;;  %9874 = vmatprep.mubr.f32.mxu0 %v1578_v40  ;;  %10004 = vmatprep.mubr.f32.mxu1 %v1580_v11  ;;  %v693_v5 = vld [vmem:[%s10653_s26 + $0xbd8] sm:$0xff] }
 0x676   : > { %v8853_v57 = vpop.f32.mrf.mxu0  ;;  %v8983_v18 = vpop.f32.mrf.mxu1 }
 0x677   : > { %v13433_v16 = vadd.f32 %v8981_v12, %v8852_v46  ;;  %v694_v57 = vld [vmem:[%s10653_s26 + $0xbe0] sm:$0xff] }
 0x678   : > { %v9051_v54 = vpop.f32.mrf.mxu0  ;;  %9875 = vmatmul.mubr.f32.gmra.mxu0 %v1577_v8  ;;  %v9181_v17 = vpop.f32.mrf.mxu1  ;;  %10005 = vmatmul.mubr.f32.gmra.mxu1 %v1579_v44  ;;  %v692_v44 = vld [vmem:[%s10653_s26 + $0xbd0] sm:$0xff] }
 0x679   : > { %v9052_v61 = vadd.f32 %v9051_v54, %v13347_v37  ;;  %9879 = vmatprep.mubr.f32.mxu0 %v1705_v19  ;;  %10009 = vmatprep.mubr.f32.mxu1 %v1707_v14  ;;  %v820_v14 = vld [vmem:[%s10653_s26 + $0xfd0] sm:$0xff] }
 0x67a   : > { %v9053_v6 = vpop.f32.mrf.mxu0  ;;  %v9183_v23 = vpop.f32.mrf.mxu1 }
 0x67b   : > { %v13440_v35 = vadd.f32 %v9181_v17, %v9052_v61 }
 0x67c   : > { %v9056_v63 = vpop.f32.mrf.mxu0  ;;  %9880 = vmatmul.mubr.f32.gmra.mxu0 %v1704_v22  ;;  %v9186_v36 = vpop.f32.mrf.mxu1  ;;  %10010 = vmatmul.mubr.f32.gmra.mxu1 %v1706_v27  ;;  %v819_v22 = vld [vmem:[%s10653_s26 + $0xfc8] sm:$0xff]  ;;  %v821_v27 = vld [vmem:[%s10653_s26 + $0xfd8] sm:$0xff] }
 0x67d   : > { %v9057_v37 = vadd.f32 %v9056_v63, %v13354_v21  ;;  %9884 = vmatprep.mubr.f32.mxu0 %v1832_v28  ;;  %10014 = vmatprep.mubr.f32.mxu1 %v1834_v38  ;;  %v947_v28 = vld [vmem:[%s10653_s26 + $0x13c8] sm:$0xff] }
 0x67e   : > { %v9058_v7 = vpop.f32.mrf.mxu0  ;;  %v9188_v42 = vpop.f32.mrf.mxu1 }
 0x67f   : > { %v13447_v15 = vadd.f32 %v9186_v36, %v9057_v37  ;;  %v946_v37 = vld [vmem:[%s10653_s26 + $0x13c0] sm:$0xff] }
 0x680   : > { %v9061_v30 = vpop.f32.mrf.mxu0  ;;  %9885 = vmatmul.mubr.f32.gmra.mxu0 %v1831_v32  ;;  %v9191_v49 = vpop.f32.mrf.mxu1  ;;  %10015 = vmatmul.mubr.f32.gmra.mxu1 %v1833_v33  ;;  %v948_v32 = vld [vmem:[%s10653_s26 + $0x13d0] sm:$0xff]  ;;  %v1074_v42 = vld [vmem:[%s10653_s26 + $0x17c0] sm:$0xff] }
 0x681   : > { %v9062_v21 = vadd.f32 %v9061_v30, %v13361_v25  ;;  %9889 = vmatprep.mubr.f32.mxu0 %v1959_v9  ;;  %10019 = vmatprep.mubr.f32.mxu1 %v1961_v45  ;;  %v438_v25 = vld [vmem:[%s10653_s26 + $0x3e0] sm:$0xff] }
 0x682   : > { %v9063_v24 = vpop.f32.mrf.mxu0  ;;  %v9193_v47 = vpop.f32.mrf.mxu1 }
 0x683   : > { %v13453_v50 = vadd.f32 %v9191_v49, %v9062_v21  ;;  %v1073_v49 = vld [vmem:[%s10653_s26 + $0x17b8] sm:$0xff]  ;;  %v1075_v21 = vld [vmem:[%s10653_s26 + $0x17c8] sm:$0xff] }
 0x684   : > { %v9066_v53 = vpop.f32.mrf.mxu0  ;;  %9890 = vmatmul.mubr.f32.gmra.mxu0 %v1958_v41  ;;  %v9196_v59 = vpop.f32.mrf.mxu1  ;;  %10020 = vmatmul.mubr.f32.gmra.mxu1 %v1960_v52  ;;  %v1201_v24 = vld [vmem:[%s10653_s26 + $0x1bb8] sm:$0xff] }
 0x685   : > { %v9067_v55 = vadd.f32 %v9066_v53, %v13368_v43  ;;  %10089 = vmatprep.mubr.f32.mxu0 %v439_v26  ;;  %10405 = vmatprep.mubr.msk.f32.mxu1 %vm10560_vm0, %v10559_v34 }
 0x686   : > { %v9068_v56 = vpop.f32.mrf.mxu0  ;;  %v9198_v29 = vpop.f32.mrf.mxu1 }
 0x687   : > { %v13461_v0 = vadd.f32 %v9196_v59, %v9067_v55  ;;  %v1200_v59 = vld [vmem:[%s10653_s26 + $0x1bb0] sm:$0xff]  ;;  %v1202_v55 = vld [vmem:[%s10653_s26 + $0x1bc0] sm:$0xff] }
 0x688   : > { %v9071_v2 = vpop.f32.mrf.mxu0  ;;  %10090 = vmatmul.mubr.f32.vlgmr.msra.gmra.mxu0 %v438_v25  ;;  %v9201_v3 = vpop.f32.mrf.mxu1  ;;  %10406 = vmatmul.mubr.f32.vlgmr.msra.gmra.mxu1 %v440_v20  ;;  %v1328_v56 = vld [vmem:[%s10653_s26 + $0x1fb0] sm:$0xff] }
 0x689   : > { %v9072_v43 = vadd.f32 %v9071_v2, %v13377_v60  ;;  %10094 = vmatprep.mubr.f32.mxu0 %v566_v62  ;;  %10408 = vmatprep.mubr.msk.f32.mxu1 %vm10560_vm0, %v10559_v34 }
 0x68a   : > { %v9073_v40 = vpop.f32.mrf.mxu0  ;;  %v9203_v11 = vpop.f32.mrf.mxu1 }
 0x68b   : > { %v13469_v12 = vadd.f32 %v9201_v3, %v9072_v43  ;;  %v1327_v3 = vld [vmem:[%s10653_s26 + $0x1fa8] sm:$0xff]  ;;  %v1329_v43 = vld [vmem:[%s10653_s26 + $0x1fb8] sm:$0xff] }
 0x68c   : > { %v9076_v46 = vpop.f32.mrf.mxu0  ;;  %10095 = vmatmul.mubr.f32.gmra.mxu0 %v565_v4  ;;  %v9206_v8 = vpop.f32.mrf.mxu1  ;;  %10409 = vmatmul.mubr.f32.gmra.mxu1 %v567_v31  ;;  %v1455_v40 = vld [vmem:[%s10653_s26 + $0x23a8] sm:$0xff] }
 0x68d   : > { %v9077_v60 = vadd.f32 %v9076_v46, %v13384_v1  ;;  %10099 = vmatprep.mubr.f32.mxu0 %v693_v5  ;;  %10411 = vmatprep.mubr.msk.f32.mxu1 %vm10560_vm0, %v10559_v34 }
 0x68e   : > { %v9078_v18 = vpop.f32.mrf.mxu0  ;;  %v9208_v19 = vpop.f32.mrf.mxu1 }
 0x68f   : > { %v13477_v54 = vadd.f32 %v9206_v8, %v9077_v60  ;;  %v1454_v8 = vld [vmem:[%s10653_s26 + $0x23a0] sm:$0xff]  ;;  %v1456_v60 = vld [vmem:[%s10653_s26 + $0x23b0] sm:$0xff] }
 0x690   : > { %v9081_v17 = vpop.f32.mrf.mxu0  ;;  %10100 = vmatmul.mubr.f32.gmra.mxu0 %v692_v44  ;;  %v9211_v61 = vpop.f32.mrf.mxu1  ;;  %10412 = vmatmul.mubr.f32.gmra.mxu1 %v694_v57  ;;  %v1582_v18 = vld [vmem:[%s10653_s26 + $0x27a0] sm:$0xff] }
 0x691   : > { %v9082_v1 = vadd.f32 %v9081_v17, %v13391_v10  ;;  %10104 = vmatprep.mubr.f32.mxu0 %v820_v14  ;;  %10414 = vmatprep.mubr.msk.f32.mxu1 %vm10560_vm0, %v10559_v34 }
 0x692   : > { %v9083_v6 = vpop.f32.mrf.mxu0  ;;  %v9213_v23 = vpop.f32.mrf.mxu1 }
 0x693   : > { %v13485_v38 = vadd.f32 %v9211_v61, %v9082_v1  ;;  %v1581_v61 = vld [vmem:[%s10653_s26 + $0x2798] sm:$0xff]  ;;  %v1583_v1 = vld [vmem:[%s10653_s26 + $0x27a8] sm:$0xff] }
 0x694   : > { %v9086_v63 = vpop.f32.mrf.mxu0  ;;  %10105 = vmatmul.mubr.f32.gmra.mxu0 %v819_v22  ;;  %v9216_v36 = vpop.f32.mrf.mxu1  ;;  %10415 = vmatmul.mubr.f32.gmra.mxu1 %v821_v27  ;;  %v1709_v6 = vld [vmem:[%s10653_s26 + $0x2b98] sm:$0xff] }
 0x695   : > { %v9087_v10 = vadd.f32 %v9086_v63, %v13398_v39  ;;  %10109 = vmatprep.mubr.f32.mxu0 %v947_v28  ;;  %10417 = vmatprep.mubr.msk.f32.mxu1 %vm10560_vm0, %v10559_v34 }
 0x696   : > { %v9088_v33 = vpop.f32.mrf.mxu0  ;;  %v9218_v7 = vpop.f32.mrf.mxu1 }
 0x697   : > { %v13493_v9 = vadd.f32 %v9216_v36, %v9087_v10  ;;  %v1708_v36 = vld [vmem:[%s10653_s26 + $0x2b90] sm:$0xff]  ;;  %v1710_v10 = vld [vmem:[%s10653_s26 + $0x2ba0] sm:$0xff] }
 0x698   : > { %v9091_v45 = vpop.f32.mrf.mxu0  ;;  %10110 = vmatmul.mubr.f32.gmra.mxu0 %v946_v37  ;;  %v9221_v30 = vpop.f32.mrf.mxu1  ;;  %10418 = vmatmul.mubr.f32.gmra.mxu1 %v948_v32  ;;  %v1836_v33 = vld [vmem:[%s10653_s26 + $0x2f90] sm:$0xff] }
 0x699   : > { %v9092_v39 = vadd.f32 %v9091_v45, %v13405_v48  ;;  %10114 = vmatprep.mubr.f32.mxu0 %v1074_v42  ;;  %10420 = vmatprep.mubr.msk.f32.mxu1 %vm10560_vm0, %v10559_v34 }
 0x69a   : > { %v9093_v41 = vpop.f32.mrf.mxu0  ;;  %v9223_v52 = vpop.f32.mrf.mxu1 }
 0x69b   : > { %v13501_v47 = vadd.f32 %v9221_v30, %v9092_v39  ;;  %v1835_v30 = vld [vmem:[%s10653_s26 + $0x2f88] sm:$0xff]  ;;  %v1837_v39 = vld [vmem:[%s10653_s26 + $0x2f98] sm:$0xff] }
 0x69c   : > { %v9096_v26 = vpop.f32.mrf.mxu0  ;;  %10115 = vmatmul.mubr.f32.gmra.mxu0 %v1073_v49  ;;  %v9226_v53 = vpop.f32.mrf.mxu1  ;;  %10421 = vmatmul.mubr.f32.gmra.mxu1 %v1075_v21  ;;  %v1963_v41 = vld [vmem:[%s10653_s26 + $0x3388] sm:$0xf] }
 0x69d   : > { %v9097_v48 = vadd.f32 %v9096_v26, %v13412_v51  ;;  %10119 = vmatprep.mubr.f32.mxu0 %v1201_v24  ;;  %10423 = vmatprep.mubr.msk.f32.mxu1 %vm10560_vm0, %v10559_v34 }
 0x69e   : > { %v9098_v25 = vpop.f32.mrf.mxu0  ;;  %v9228_v20 = vpop.f32.mrf.mxu1 }
 0x69f   : > { %v13509_v29 = vadd.f32 %v9226_v53, %v9097_v48  ;;  %v1964_v48 = vld [vmem:[%s10653_s26 + $0x3390] sm:$0xf] }
 0x6a0   : > { %v9101_v62 = vpop.f32.mrf.mxu0  ;;  %10120 = vmatmul.mubr.f32.gmra.mxu0 %v1200_v59  ;;  %v9231_v2 = vpop.f32.mrf.mxu1  ;;  %10424 = vmatmul.mubr.f32.gmra.mxu1 %v1202_v55 }
 0x6a1   : > { %v9102_v51 = vadd.f32 %v9101_v62, %v13419_v58  ;;  %10124 = vmatprep.mubr.f32.mxu0 %v1328_v56  ;;  %10426 = vmatprep.mubr.msk.f32.mxu1 %vm10560_vm0, %v10559_v34 }
 0x6a2   : > { %v9103_v4 = vpop.f32.mrf.mxu0  ;;  %v9233_v31 = vpop.f32.mrf.mxu1 }
 0x6a3   : > { %v13517_v11 = vadd.f32 %v9231_v2, %v9102_v51 }
 0x6a4   : > { %v9106_v5 = vpop.f32.mrf.mxu0  ;;  %10125 = vmatmul.mubr.f32.gmra.mxu0 %v1327_v3  ;;  %v9236_v46 = vpop.f32.mrf.mxu1  ;;  %10427 = vmatmul.mubr.f32.gmra.mxu1 %v1329_v43 }
 0x6a5   : > { %v9107_v58 = vadd.f32 %v9106_v5, %v13426_v13  ;;  %10129 = vmatprep.mubr.f32.mxu0 %v1455_v40  ;;  %10429 = vmatprep.mubr.msk.f32.mxu1 %vm10560_vm0, %v10559_v34 }
 0x6a6   : > { %v9108_v44 = vpop.f32.mrf.mxu0  ;;  %v9238_v57 = vpop.f32.mrf.mxu1 }
 0x6a7   : > { %v13525_v19 = vadd.f32 %v9236_v46, %v9107_v58 }
 0x6a8   : > { %v9111_v14 = vpop.f32.mrf.mxu0  ;;  %10130 = vmatmul.mubr.f32.gmra.mxu0 %v1454_v8  ;;  %v9241_v17 = vpop.f32.mrf.mxu1  ;;  %10430 = vmatmul.mubr.f32.gmra.mxu1 %v1456_v60 }
 0x6a9   : > { %v9112_v13 = vadd.f32 %v9111_v14, %v13433_v16  ;;  %10134 = vmatprep.mubr.f32.mxu0 %v1582_v18  ;;  %10432 = vmatprep.mubr.msk.f32.mxu1 %vm10560_vm0, %v10559_v34 }
 0x6aa   : > { %v9113_v22 = vpop.f32.mrf.mxu0  ;;  %v9243_v27 = vpop.f32.mrf.mxu1 }
 0x6ab   : > { %v13533_v23 = vadd.f32 %v9241_v17, %v9112_v13 }
 0x6ac   : > { %v9311_v28 = vpop.f32.mrf.mxu0  ;;  %10135 = vmatmul.mubr.f32.gmra.mxu0 %v1581_v61  ;;  %v9441_v63 = vpop.f32.mrf.mxu1  ;;  %10433 = vmatmul.mubr.f32.gmra.mxu1 %v1583_v1 }
 0x6ad   : > { %v9312_v16 = vadd.f32 %v9311_v28, %v13440_v35  ;;  %10139 = vmatprep.mubr.f32.mxu0 %v1709_v6  ;;  %10435 = vmatprep.mubr.msk.f32.mxu1 %vm10560_vm0, %v10559_v34 }
 0x6ae   : > { %v9313_v37 = vpop.f32.mrf.mxu0  ;;  %v9443_v32 = vpop.f32.mrf.mxu1 }
 0x6af   : > { %v13541_v7 = vadd.f32 %v9441_v63, %v9312_v16 }
 0x6b0   : > { %v9316_v42 = vpop.f32.mrf.mxu0  ;;  %10140 = vmatmul.mubr.f32.gmra.mxu0 %v1708_v36  ;;  %v9446_v45 = vpop.f32.mrf.mxu1  ;;  %10436 = vmatmul.mubr.f32.gmra.mxu1 %v1710_v10 }
 0x6b1   : > { %v9317_v35 = vadd.f32 %v9316_v42, %v13447_v15  ;;  %10144 = vmatprep.mubr.f32.mxu0 %v1836_v33  ;;  %10438 = vmatprep.mubr.msk.f32.mxu1 %vm10560_vm0, %v10559_v34  ;;  %v1962_v15 = vld [vmem:[%s10653_s26 + $0x3380] sm:$0xf] }
 0x6b2   : > { %v9318_v49 = vpop.f32.mrf.mxu0  ;;  %v9448_v21 = vpop.f32.mrf.mxu1 }
 0x6b3   : > { %v13549_v52 = vadd.f32 %v9446_v45, %v9317_v35 }
 0x6b4   : > { %v9321_v24 = vpop.f32.mrf.mxu0  ;;  %10145 = vmatmul.mubr.f32.gmra.mxu0 %v1835_v30  ;;  %v9451_v26 = vpop.f32.mrf.mxu1  ;;  %10439 = vmatmul.mubr.f32.gmra.mxu1 %v1837_v39 }
 0x6b5   : > { %v9322_v53 = vadd.f32 %v9321_v24, %v13453_v50  ;;  %10149 = vmatprep.mubr.f32.mxu0 %v1963_v41  ;;  %10441 = vmatprep.mubr.msk.f32.mxu1 %vm10560_vm0, %v10559_v34 }
 0x6b6   : > { %v9323_v59 = vpop.f32.mrf.mxu0  ;;  %v9453_v55 = vpop.f32.mrf.mxu1 }
 0x6b7   : > { %v13556_v25 = vadd.f32 %v9451_v26, %v9322_v53 }
 0x6b8   : > { %v9326_v20 = vpop.f32.mrf.mxu0  ;;  %10150 = vmatmul.mubr.f32.gmra.mxu0 %v1962_v15  ;;  %v9456_v56 = vpop.f32.mrf.mxu1  ;;  %10442 = vmatmul.mubr.f32.gmra.mxu1 %v1964_v48 }
 0x6b9   : > { %v9327_v62 = vadd.f32 %v9326_v20, %v13461_v0 }
 0x6ba   : > { %v9328_v2 = vpop.f32.mrf.mxu0  ;;  %v9458_v51 = vpop.f32.mrf.mxu1 }
 0x6bb   : > { %v13559_v3 = vadd.f32 %v9456_v56, %v9327_v62 }
 0x6bc   : > { %v9331_v50 = vpop.f32.mrf.mxu0  ;;  %v9461_v43 = vpop.f32.mrf.mxu1 }
 0x6bd   : > { %v9332_v4 = vadd.f32 %v9331_v50, %v13469_v12 }
 0x6be   : > { %v9333_v34 = vpop.f32.mrf.mxu0  ;;  %v9463_v31 = vpop.f32.mrf.mxu1 }
 0x6bf   : > { %v13562_v40 = vadd.f32 %v9461_v43, %v9332_v4 }
 0x6c0   : > { %v9336_v5 = vpop.f32.mrf.mxu0  ;;  %v9466_v46 = vpop.f32.mrf.mxu1 }
 0x6c1   : > { %v9337_v58 = vadd.f32 %v9336_v5, %v13477_v54 }
 0x6c2   : > { %v9338_v8 = vpop.f32.mrf.mxu0  ;;  %v9468_v60 = vpop.f32.mrf.mxu1 }
 0x6c3   : > { %v13565_v44 = vadd.f32 %v9466_v46, %v9337_v58 }
 0x6c4   : > { %v9341_v0 = vpop.f32.mrf.mxu0  ;;  %v9471_v57 = vpop.f32.mrf.mxu1 }
 0x6c5   : > { %v9342_v18 = vadd.f32 %v9341_v0, %v13485_v38 }
 0x6c6   : > { %v9343_v14 = vpop.f32.mrf.mxu0  ;;  %v9473_v17 = vpop.f32.mrf.mxu1 }
 0x6c7   : > { %v13568_v13 = vadd.f32 %v9471_v57, %v9342_v18 }
 0x6c8   : > { %v9346_v12 = vpop.f32.mrf.mxu0  ;;  %v9476_v61 = vpop.f32.mrf.mxu1 }
 0x6c9   : > { %v9347_v1 = vadd.f32 %v9346_v12, %v13493_v9 }
 0x6ca   : > { %v9348_v22 = vpop.f32.mrf.mxu0  ;;  %v9478_v27 = vpop.f32.mrf.mxu1 }
 0x6cb   : > { %v13571_v6 = vadd.f32 %v9476_v61, %v9347_v1 }
 0x6cc   : > { %v9351_v54 = vpop.f32.mrf.mxu0  ;;  %v9481_v28 = vpop.f32.mrf.mxu1 }
 0x6cd   : > { %v9352_v63 = vadd.f32 %v9351_v54, %v13501_v47 }
 0x6ce   : > { %v9353_v16 = vpop.f32.mrf.mxu0  ;;  %v9483_v36 = vpop.f32.mrf.mxu1 }
 0x6cf   : > { %v13574_v10 = vadd.f32 %v9481_v28, %v9352_v63 }
 0x6d0   : > { %v9356_v38 = vpop.f32.mrf.mxu0  ;;  %v9486_v37 = vpop.f32.mrf.mxu1 }
 0x6d1   : > { %v9357_v32 = vadd.f32 %v9356_v38, %v13509_v29 }
 0x6d2   : > { %v9358_v33 = vpop.f32.mrf.mxu0  ;;  %v9488_v42 = vpop.f32.mrf.mxu1 }
 0x6d3   : > { %v13577_v45 = vadd.f32 %v9486_v37, %v9357_v32 }
 0x6d4   : > { %v9361_v9 = vpop.f32.mrf.mxu0  ;;  %v9491_v35 = vpop.f32.mrf.mxu1 }
 0x6d5   : > { %v9362_v30 = vadd.f32 %v9361_v9, %v13517_v11 }
 0x6d6   : > { %v9363_v39 = vpop.f32.mrf.mxu0  ;;  %v9493_v49 = vpop.f32.mrf.mxu1 }
 0x6d7   : > { %v13580_v21 = vadd.f32 %v9491_v35, %v9362_v30 }
 0x6d8   : > { %v9366_v47 = vpop.f32.mrf.mxu0  ;;  %v9496_v41 = vpop.f32.mrf.mxu1 }
 0x6d9   : > { %v9367_v24 = vadd.f32 %v9366_v47, %v13525_v19 }
 0x6da   : > { %v9368_v26 = vpop.f32.mrf.mxu0  ;;  %v9498_v53 = vpop.f32.mrf.mxu1 }
 0x6db   : > { %v13583_v15 = vadd.f32 %v9496_v41, %v9367_v24 }
 0x6dc   : > { %v9371_v29 = vpop.f32.mrf.mxu0  ;;  %v9501_v48 = vpop.f32.mrf.mxu1 }
 0x6dd   : > { %v9372_v59 = vadd.f32 %v9371_v29, %v13533_v23 }
 0x6de   : > { %v9373_v55 = vpop.f32.mrf.mxu0  ;;  %v9503_v20 = vpop.f32.mrf.mxu1 }
 0x6df   : > { %v13586_v56 = vadd.f32 %v9501_v48, %v9372_v59 }
 0x6e0   : > { %v9571_v11 = vpop.f32.mrf.mxu0  ;;  %v9701_v62 = vpop.f32.mrf.mxu1 }
 0x6e1   : > { %v9572_v2 = vadd.f32 %v9571_v11, %v13541_v7 }
 0x6e2   : > { %v9573_v51 = vpop.f32.mrf.mxu0  ;;  %v9703_v50 = vpop.f32.mrf.mxu1 }
 0x6e3   : > { %v13589_v43 = vadd.f32 %v9701_v62, %v9572_v2 }
 0x6e4   : > { %v9576_v19 = vpop.f32.mrf.mxu0  ;;  %v9706_v4 = vpop.f32.mrf.mxu1 }
 0x6e5   : > { %v9577_v34 = vadd.f32 %v9576_v19, %v13549_v52 }
 0x6e6   : > { %v9578_v31 = vpop.f32.mrf.mxu0  ;;  %v9708_v5 = vpop.f32.mrf.mxu1 }
 0x6e7   : > { %v13592_v46 = vadd.f32 %v9706_v4, %v9577_v34 }
 0x6e8   : > { %v9581_v23 = vpop.f32.mrf.mxu0  ;;  %v9711_v58 = vpop.f32.mrf.mxu1 }
 0x6e9   : > { %v9582_v8 = vadd.f32 %v9581_v23, %v13556_v25 }
 0x6ea   : > { %v9583_v60 = vpop.f32.mrf.mxu0  ;;  %v9713_v0 = vpop.f32.mrf.mxu1 }
 0x6eb   : > { %v13595_v57 = vadd.f32 %v9711_v58, %v9582_v8 }
 0x6ec   : > { %v9586_v7 = vpop.f32.mrf.mxu0  ;;  %v9716_v18 = vpop.f32.mrf.mxu1 }
 0x6ed   : > { %v9587_v14 = vadd.f32 %v9586_v7, %v13559_v3 }
 0x6ee   : > { %v9588_v17 = vpop.f32.mrf.mxu0  ;;  %v9718_v12 = vpop.f32.mrf.mxu1 }
 0x6ef   : > { %v13598_v61 = vadd.f32 %v9716_v18, %v9587_v14 }
 0x6f0   : > { %v9591_v52 = vpop.f32.mrf.mxu0  ;;  %v9721_v1 = vpop.f32.mrf.mxu1 }
 0x6f1   : > { %v9592_v22 = vadd.f32 %v9591_v52, %v13562_v40 }
 0x6f2   : > { %v9593_v27 = vpop.f32.mrf.mxu0  ;;  %v9723_v54 = vpop.f32.mrf.mxu1 }
 0x6f3   : > { %v13601_v28 = vadd.f32 %v9721_v1, %v9592_v22 }
 0x6f4   : > { %v9596_v25 = vpop.f32.mrf.mxu0  ;;  %v9726_v63 = vpop.f32.mrf.mxu1 }
 0x6f5   : > { %v9597_v16 = vadd.f32 %v9596_v25, %v13565_v44 }
 0x6f6   : > { %v9598_v36 = vpop.f32.mrf.mxu0  ;;  %v9728_v38 = vpop.f32.mrf.mxu1 }
 0x6f7   : > { %v13604_v37 = vadd.f32 %v9726_v63, %v9597_v16 }
 0x6f8   : > { %v9601_v3 = vpop.f32.mrf.mxu0  ;;  %v9731_v32 = vpop.f32.mrf.mxu1 }
 0x6f9   : > { %v9602_v33 = vadd.f32 %v9601_v3, %v13568_v13 }
 0x6fa   : > { %v9603_v42 = vpop.f32.mrf.mxu0  ;;  %v9733_v9 = vpop.f32.mrf.mxu1 }
 0x6fb   : > { %v13607_v35 = vadd.f32 %v9731_v32, %v9602_v33 }
 0x6fc   : > { %v9606_v40 = vpop.f32.mrf.mxu0  ;;  %v9736_v30 = vpop.f32.mrf.mxu1 }
 0x6fd   : > { %v9607_v39 = vadd.f32 %v9606_v40, %v13571_v6 }
 0x6fe   : > { %v9608_v49 = vpop.f32.mrf.mxu0  ;;  %v9738_v47 = vpop.f32.mrf.mxu1 }
 0x6ff   : > { %v13610_v41 = vadd.f32 %v9736_v30, %v9607_v39 }
 0x700   : > { %v9611_v44 = vpop.f32.mrf.mxu0  ;;  %v9741_v24 = vpop.f32.mrf.mxu1 }
 0x701   : > { %v9612_v26 = vadd.f32 %v9611_v44, %v13574_v10 }
 0x702   : > { %v9613_v53 = vpop.f32.mrf.mxu0  ;;  %v9743_v29 = vpop.f32.mrf.mxu1 }
 0x703   : > { %v13613_v48 = vadd.f32 %v9741_v24, %v9612_v26 }
 0x704   : > { %v9616_v13 = vpop.f32.mrf.mxu0  ;;  %v9746_v59 = vpop.f32.mrf.mxu1 }
 0x705   : > { %v9617_v55 = vadd.f32 %v9616_v13, %v13577_v45 }
 0x706   : > { %v9618_v20 = vpop.f32.mrf.mxu0  ;;  %v9748_v11 = vpop.f32.mrf.mxu1 }
 0x707   : > { %v13616_v62 = vadd.f32 %v9746_v59, %v9617_v55 }
 0x708   : > { %v9621_v6 = vpop.f32.mrf.mxu0  ;;  %v9751_v2 = vpop.f32.mrf.mxu1 }
 0x709   : > { %v9622_v51 = vadd.f32 %v9621_v6, %v13580_v21 }
 0x70a   : > { %v9623_v50 = vpop.f32.mrf.mxu0  ;;  %v9753_v19 = vpop.f32.mrf.mxu1 }
 0x70b   : > { %v13619_v4 = vadd.f32 %v9751_v2, %v9622_v51 }
 0x70c   : > { %v9626_v10 = vpop.f32.mrf.mxu0  ;;  %v9756_v34 = vpop.f32.mrf.mxu1 }
 0x70d   : > { %v9627_v31 = vadd.f32 %v9626_v10, %v13583_v15 }
 0x70e   : > { %v9628_v5 = vpop.f32.mrf.mxu0  ;;  %v9758_v23 = vpop.f32.mrf.mxu1 }
 0x70f   : > { %v13622_v58 = vadd.f32 %v9756_v34, %v9627_v31 }
 0x710   : > { %v9631_v45 = vpop.f32.mrf.mxu0  ;;  %v9761_v8 = vpop.f32.mrf.mxu1 }
 0x711   : > { %v9632_v60 = vadd.f32 %v9631_v45, %v13586_v56 }
 0x712   : > { %v9633_v0 = vpop.f32.mrf.mxu0  ;;  %v9763_v7 = vpop.f32.mrf.mxu1 }
 0x713   : > { %v13625_v18 = vadd.f32 %v9761_v8, %v9632_v60 }
 0x714   : > { %v9831_v21 = vpop.f32.mrf.mxu0  ;;  %v9961_v14 = vpop.f32.mrf.mxu1 }
 0x715   : > { %v9832_v60 = vadd.f32 %v9831_v21, %v13589_v43 }
 0x716   : > { %v9833_v17 = vpop.f32.mrf.mxu0  ;;  %v9963_v12 = vpop.f32.mrf.mxu1 }
 0x718   : > { %v9836_v52 = vpop.f32.mrf.mxu0  ;;  %v9966_v1 = vpop.f32.mrf.mxu1 }
 0x71a   : > { %v9838_v22 = vpop.f32.mrf.mxu0  ;;  %v9968_v15 = vpop.f32.mrf.mxu1 }
 0x71b   : > { %v9962_v22 = vadd.f32 %v9961_v14, %v9832_v60  ;;  %v9837_v15 = vadd.f32 %v9836_v52, %v13592_v46 }
 0x71c   : > { %v9841_v27 = vpop.f32.mrf.mxu0  ;;  %v13627_v54 = vpop.f32.mrf.mxu1 }
 0x71e   : > { %v9843_v25 = vpop.f32.mrf.mxu0  ;;  %v9973_v63 = vpop.f32.mrf.mxu1 }
 0x720   : > { %v13629_v16 = vpop.f32.mrf.mxu0  ;;  %v13631_v56 = vpop.f32.mrf.mxu1 }
 0x722   : > { %v9848_v36 = vpop.f32.mrf.mxu0  ;;  %v9978_v38 = vpop.f32.mrf.mxu1 }
 0x723   : > { %v9967_v38 = vadd.f32 %v9966_v1, %v9837_v15 }
 0x724   : > { %v13633_v3 = vpop.f32.mrf.mxu0  ;;  %v13635_v32 = vpop.f32.mrf.mxu1 }
 0x726   : > { %v9853_v33 = vpop.f32.mrf.mxu0  ;;  %v9983_v42 = vpop.f32.mrf.mxu1 }
 0x727   : > { %v9842_v33 = vadd.f32 %v9841_v27, %v13595_v57 }
 0x728   : > { %v13637_v9 = vpop.f32.mrf.mxu0  ;;  %v13639_v40 = vpop.f32.mrf.mxu1 }
 0x72a   : > { %v9858_v30 = vpop.f32.mrf.mxu0  ;;  %v9988_v39 = vpop.f32.mrf.mxu1 }
 0x72c   : > { %v13641_v49 = vpop.f32.mrf.mxu0  ;;  %v13643_v47 = vpop.f32.mrf.mxu1 }
 0x72d   : > { %v9862_v15 = vadd.f32 %v13641_v49, %v13607_v35 }
 0x72e   : > { %v9863_v44 = vpop.f32.mrf.mxu0  ;;  %v9993_v24 = vpop.f32.mrf.mxu1 }
 0x72f   : > { %v9972_v44 = vadd.f32 %v13627_v54, %v9842_v33  ;;  %v9847_v24 = vadd.f32 %v13629_v16, %v13598_v61 }
 0x730   : > { %v13645_v26 = vpop.f32.mrf.mxu0  ;;  %v13647_v53 = vpop.f32.mrf.mxu1 }
 0x732   : > { %v9868_v29 = vpop.f32.mrf.mxu0  ;;  %v9998_v13 = vpop.f32.mrf.mxu1 }
 0x734   : > { %v13649_v59 = vpop.f32.mrf.mxu0  ;;  %v13651_v55 = vpop.f32.mrf.mxu1 }
 0x736   : > { %v9873_v20 = vpop.f32.mrf.mxu0  ;;  %v10003_v11 = vpop.f32.mrf.mxu1 }
 0x737   : > { %v9977_v11 = vadd.f32 %v13631_v56, %v9847_v24 }
 0x738   : > { %v13653_v6 = vpop.f32.mrf.mxu0  ;;  %v13655_v2 = vpop.f32.mrf.mxu1 }
 0x739   : > { %v9877_v24 = vadd.f32 %v13653_v6, %v13616_v62 }
 0x73a   : > { %v9878_v51 = vpop.f32.mrf.mxu0  ;;  %v10008_v50 = vpop.f32.mrf.mxu1 }
 0x73b   : > { %v9852_v51 = vadd.f32 %v13633_v3, %v13601_v28 }
 0x73c   : > { %v13657_v19 = vpop.f32.mrf.mxu0  ;;  %v13659_v10 = vpop.f32.mrf.mxu1 }
 0x73e   : > { %v9883_v34 = vpop.f32.mrf.mxu0  ;;  %v10013_v31 = vpop.f32.mrf.mxu1 }
 0x740   : > { %v13662_v5 = vpop.f32.mrf.mxu0  ;;  %v13664_v23 = vpop.f32.mrf.mxu1 }
 0x742   : > { %v9888_v45 = vpop.f32.mrf.mxu0  ;;  %v10018_v8 = vpop.f32.mrf.mxu1 }
 0x743   : > { %v9982_v45 = vadd.f32 %v13635_v32, %v9852_v51  ;;  %v9857_v8 = vadd.f32 %v13637_v9, %v13604_v37 }
 0x744   : > { %v13668_v0 = vpop.f32.mrf.mxu0  ;;  %v13670_v7 = vpop.f32.mrf.mxu1 }
 0x746   : > { %v9893_v17 = vpop.f32.mrf.mxu0  ;;  %v10023_v12 = vpop.f32.mrf.mxu1 }
 0x748   : > { %v10091_v25 = vpop.f32.mrf.mxu0  ;;  %v10221_v63 = vpop.f32.mrf.mxu1 }
 0x749   : > { %v10092_v36 = vadd.f32 %v10091_v25, %v9962_v22  ;;  %v9987_v22 = vadd.f32 %v13639_v40, %v9857_v8 }
 0x74a   : > { %v10093_v43 = vpop.f32.mrf.mxu0  ;;  %v10407_v21 = vpop.f32.mrf.mxu1 }
 0x74b   : > { %v10222_v42 = vadd.f32 %v10221_v63, %v10092_v36  ;;  %v9992_v43 = vadd.f32 %v13643_v47, %v9862_v15  ;;  %v9867_v21 = vadd.f32 %v13645_v26, %v13610_v41 }
 0x74c   : > { %v10096_v14 = vpop.f32.mrf.mxu0  ;;  %v10226_v30 = vpop.f32.mrf.mxu1 }
 0x74d   : > { %10286 = vst.msk [vmem:[%s13676_s3] sm:$0xff] %vm10285_vm1, %v10222_v42  ;;  %v10097_v46 = vadd.f32 %v10096_v14, %v9967_v38  ;;  %v9997_v14 = vadd.f32 %v13647_v53, %v9867_v21 }
 0x74e   : > { %v10098_v52 = vpop.f32.mrf.mxu0  ;;  %v10410_v39 = vpop.f32.mrf.mxu1 }
 0x74f   : > { %v10227_v29 = vadd.f32 %v10226_v30, %v10097_v46  ;;  %v9872_v30 = vadd.f32 %v13649_v59, %v13613_v48 }
 0x750   : > { %v10101_v13 = vpop.f32.mrf.mxu0  ;;  %v10231_v20 = vpop.f32.mrf.mxu1 }
 0x751   : > { %10287 = vst.msk [vmem:[%s13676_s3 + $0x8] sm:$0xff] %vm10285_vm1, %v10227_v29  ;;  %v10102_v57 = vadd.f32 %v10101_v13, %v9972_v44  ;;  %v10002_v44 = vadd.f32 %v13651_v55, %v9872_v30 }
 0x752   : > { %v10103_v1 = vpop.f32.mrf.mxu0  ;;  %v10413_v27 = vpop.f32.mrf.mxu1 }
 0x753   : > { %v10232_v50 = vadd.f32 %v10231_v20, %v10102_v57  ;;  %v10007_v57 = vadd.f32 %v13655_v2, %v9877_v24  ;;  %v9882_v1 = vadd.f32 %v13657_v19, %v13619_v4 }
 0x754   : > { %v10106_v34 = vpop.f32.mrf.mxu0  ;;  %v10236_v54 = vpop.f32.mrf.mxu1 }
 0x755   : > { %10288 = vst.msk [vmem:[%s13676_s3 + $0x10] sm:$0xff] %vm10285_vm1, %v10232_v50  ;;  %v10107_v61 = vadd.f32 %v10106_v34, %v9977_v11  ;;  %v10012_v50 = vadd.f32 %v13659_v10, %v9882_v1  ;;  %v9887_v34 = vadd.f32 %v13662_v5, %v13622_v58 }
 0x756   : > { %v10108_v16 = vpop.f32.mrf.mxu0  ;;  %v10416_v31 = vpop.f32.mrf.mxu1 }
 0x757   : > { %v10237_v60 = vadd.f32 %v10236_v54, %v10107_v61  ;;  %v10017_v31 = vadd.f32 %v13664_v23, %v9887_v34 }
 0x758   : > { %v10111_v17 = vpop.f32.mrf.mxu0  ;;  %v10241_v56 = vpop.f32.mrf.mxu1 }
 0x759   : > { %10289 = vst.msk [vmem:[%s13676_s3 + $0x18] sm:$0xff] %vm10285_vm1, %v10237_v60  ;;  %v10112_v28 = vadd.f32 %v10111_v17, %v9982_v45  ;;  %v9892_v45 = vadd.f32 %v13668_v0, %v13625_v18 }
 0x75a   : > { %v10113_v3 = vpop.f32.mrf.mxu0  ;;  %v10419_v12 = vpop.f32.mrf.mxu1 }
 0x75b   : > { %v10242_v25 = vadd.f32 %v10241_v56, %v10112_v28  ;;  %v10022_v56 = vadd.f32 %v13670_v7, %v9892_v45 }
 0x75c   : > { %v10116_v63 = vpop.f32.mrf.mxu0  ;;  %v10246_v32 = vpop.f32.mrf.mxu1 }
 0x75d   : > { %10290 = vst.msk [vmem:[%s13676_s3 + $0x20] sm:$0xff] %vm10285_vm1, %v10242_v25  ;;  %v10117_v37 = vadd.f32 %v10116_v63, %v9987_v22 }
 0x75e   : > { %v10118_v9 = vpop.f32.mrf.mxu0  ;;  %v10422_v36 = vpop.f32.mrf.mxu1 }
 0x75f   : > { %v10247_v38 = vadd.f32 %v10246_v32, %v10117_v37 }
 0x760   : > { %v10121_v33 = vpop.f32.mrf.mxu0  ;;  %v10251_v40 = vpop.f32.mrf.mxu1 }
 0x761   : > { %10291 = vst.msk [vmem:[%s13676_s3 + $0x28] sm:$0xff] %vm10285_vm1, %v10247_v38  ;;  %v10122_v35 = vadd.f32 %v10121_v33, %v9992_v43 }
 0x762   : > { %v10123_v49 = vpop.f32.mrf.mxu0  ;;  %v10425_v42 = vpop.f32.mrf.mxu1 }
 0x763   : > { %v10252_v46 = vadd.f32 %v10251_v40, %v10122_v35 }
 0x764   : > { %v10126_v52 = vpop.f32.mrf.mxu0  ;;  %v10256_v47 = vpop.f32.mrf.mxu1 }
 0x765   : > { %10292 = vst.msk [vmem:[%s13676_s3 + $0x30] sm:$0xff] %vm10285_vm1, %v10252_v46  ;;  %v10127_v41 = vadd.f32 %v10126_v52, %v9997_v14 }
 0x766   : > { %v10128_v26 = vpop.f32.mrf.mxu0  ;;  %v10428_v39 = vpop.f32.mrf.mxu1 }
 0x767   : > { %v10257_v29 = vadd.f32 %v10256_v47, %v10127_v41 }
 0x768   : > { %v10131_v13 = vpop.f32.mrf.mxu0  ;;  %v10261_v53 = vpop.f32.mrf.mxu1 }
 0x769   : > { %10293 = vst.msk [vmem:[%s13676_s3 + $0x38] sm:$0xff] %vm10285_vm1, %v10257_v29  ;;  %v10132_v48 = vadd.f32 %v10131_v13, %v10002_v44 }
 0x76a   : > { %v10133_v59 = vpop.f32.mrf.mxu0  ;;  %v10431_v20 = vpop.f32.mrf.mxu1 }
 0x76b   : > { %v10262_v27 = vadd.f32 %v10261_v53, %v10132_v48 }
 0x76c   : > { %v10136_v11 = vpop.f32.mrf.mxu0  ;;  %v10266_v55 = vpop.f32.mrf.mxu1 }
 0x76d   : > { %10294 = vst.msk [vmem:[%s13676_s3 + $0x40] sm:$0xff] %vm10285_vm1, %v10262_v27  ;;  %v10137_v62 = vadd.f32 %v10136_v11, %v10007_v57 }
 0x76e   : > { %v10138_v6 = vpop.f32.mrf.mxu0  ;;  %v10434_v51 = vpop.f32.mrf.mxu1 }
 0x76f   : > { %v10267_v54 = vadd.f32 %v10266_v55, %v10137_v62 }
 0x770   : > { %v10141_v61 = vpop.f32.mrf.mxu0  ;;  %v10271_v2 = vpop.f32.mrf.mxu1 }
 0x771   : > { %10295 = vst.msk [vmem:[%s13676_s3 + $0x48] sm:$0xff] %vm10285_vm1, %v10267_v54  ;;  %v10142_v4 = vadd.f32 %v10141_v61, %v10012_v50 }
 0x772   : > { %v10143_v19 = vpop.f32.mrf.mxu0  ;;  %v10437_v16 = vpop.f32.mrf.mxu1 }
 0x773   : > { %v10272_v8 = vadd.f32 %v10271_v2, %v10142_v4 }
 0x774   : > { %v10146_v60 = vpop.f32.mrf.mxu0  ;;  %v10276_v10 = vpop.f32.mrf.mxu1 }
 0x775   : > { %10296 = vst.msk [vmem:[%s13676_s3 + $0x50] sm:$0xff] %vm10285_vm1, %v10272_v8  ;;  %v10147_v58 = vadd.f32 %v10146_v60, %v10017_v31 }
 0x776   : > { %v10148_v5 = vpop.f32.mrf.mxu0  ;;  %v10440_v17 = vpop.f32.mrf.mxu1 }
 0x777   : > { %v10277_v28 = vadd.f32 %v10276_v10, %v10147_v58 }
 0x778   : > { %v10151_v3 = vpop.f32.mrf.mxu0  ;;  %v10281_v12 = vpop.f32.mrf.mxu1 }
 0x779   : > { %10297 = vst.msk [vmem:[%s13676_s3 + $0x58] sm:$0xff] %vm10285_vm1, %v10277_v28  ;;  %v10152_v23 = vadd.f32 %v10151_v3, %v10022_v56 }
 0x77a   : > { %v10153_v22 = vpop.f32.mrf.mxu0  ;;  %v10443_v18 = vpop.f32.mrf.mxu1 }
 0x77b   : > { %v10282_v0 = vadd.f32 %v10281_v12, %v10152_v23 }
 0x77d   : > { %10299 = vst.msk [vmem:[%s13676_s3 + $0x60] sm:$0xf] %vm10298_vm2, %v10282_v0 }
 0x77e PF: > { %p12_p1 = scmp.ge.s32.totalorder %s10598_s14, 4   ;;  %s13755_s9 = smov %s10545_s10 }
 0x77f   : > { %s13756_s10 = smov %s10549_s11  ;;  %s13757_s11 = smov %s10608_s17 }
 0x780   : > { %s13758_s12 = smov %s10598_s14  ;;  %14 = sbr.rel (!%p12_p1) target bundleno = 3 (0x3), region = 71 }
 0x785   :  { %10321 = vsyncpa [#allocation3], 1 }
 0x786   :  { %10323 = vsyncpa [#allocation3 + $0x1], 1 }

</bundles_post_ra>
